<compile_context>
chip_gen: v7x
topology: tpu7x:2x2x1
jax: 0.10.0
libtpu: 0.0.40
codegen_flags: <defaults>
</compile_context>

<pallas_src>
import jax
import jax.numpy as jnp
from jax.experimental import pallas as pl
from jax.experimental.pallas import tpu as pltpu

EMBED_DIM = 100
HIDDEN_DIM = 200
POLARITIES_DIM = 3


# --------------------------------------------------------------------------------------
# Single fused kernel: LSTM (both sequences) -> masked time-sum -> /count -> attention
# (dead score path removed) -> dense.
# --------------------------------------------------------------------------------------
def ian_kernel(x_ref, wih_ref, whh_ref, b_ref, len_ref, nz_ref,
               attw_ref, attb_ref, wd_ref, bd_ref, out_ref, gx_ref):
    # x_ref:   (T*R, E)  time-major flattened embeddings; rows [0:B]=context, [B:2B]=aspect,
    #                    remaining rows are zero padding up to a full sublane group (R=8).
    # wih_ref: (E, 4H)   fused input->gate weights, gate order [i, f, g, o].
    # whh_ref: (H, 4H)   fused hidden->gate weights.
    # b_ref:   (1, 4H)   b_ih + b_hh.
    # len_ref: (R, 1)    int32 valid time-steps per row (time mask for the h-sum).
    # nz_ref:  (R, 1)    f32 nonzero-token counts per row (divisor; 1 for padding rows).
    # attw_ref:(4, H, H) [wk_aspect^T, wproj_aspect^T, wk_context^T, wproj_context^T].
    # attb_ref:(4, 1, H) matching biases.
    # wd_ref:  (2, H, 3) dense weight split into [aspect half, context half] (in, out).
    # bd_ref:  (1, 3)
    # out_ref: (B, 3)
    # gx_ref:  (T*R, 4H) VMEM scratch holding the hoisted input projection.
    TR = x_ref.shape[0]
    R = len_ref.shape[0]
    T = TR // R
    H = HIDDEN_DIM
    B = out_ref.shape[0]

    # ---- hoisted input projection: one MXU-friendly (T*R, E) x (E, 4H) matmul + bias ----
    gx_ref[...] = (jnp.dot(x_ref[...], wih_ref[...],
                           preferred_element_type=jnp.float32) + b_ref[...])

    whh = whh_ref[...]          # (H, 4H), loop-invariant
    lens = len_ref[...]         # (R, 1) int32, loop-invariant

    # ---- serial recurrence: only h @ Whh + elementwise gates on the critical path ----
    def step(t, carry):
        h, c, acc = carry
        row0 = pl.multiple_of(t * R, R)                    # R = 8 -> sublane-aligned slice
        g = gx_ref[pl.ds(row0, R), :] + jnp.dot(h, whh,
                                                preferred_element_type=jnp.float32)
        i_g = jax.nn.sigmoid(g[:, 0:H])
        f_g = jax.nn.sigmoid(g[:, H:2 * H])
        g_g = jnp.tanh(g[:, 2 * H:3 * H])
        o_g = jax.nn.sigmoid(g[:, 3 * H:4 * H])
        c_new = f_g * c + i_g * g_g
        h_new = o_g * jnp.tanh(c_new)
        valid = (t < lens).astype(jnp.float32)             # (R, 1) time mask per row
        return h_new, c_new, acc + valid * h_new

    zeros = jnp.zeros((R, H), jnp.float32)
    _, _, hsum = jax.lax.fori_loop(0, T, step, (zeros, zeros, zeros), unroll=True)

    # ---- average over valid tokens (fused division) ----
    avg = hsum / nz_ref[...]                               # (R, H)
    ctx_avg = avg[0:B, :]                                  # (B, H)
    asp_avg = avg[B:2 * B, :]                              # (B, H)

    # ---- bi-linear attention with k_len == q_len == 1:
    #      softmax over a length-1 axis is exactly 1.0, so output == proj(w_k(k)). ----
    def attn(k, base):
        kx = jnp.dot(k, attw_ref[base],
                     preferred_element_type=jnp.float32) + attb_ref[base]
        return jnp.dot(kx, attw_ref[base + 1],
                       preferred_element_type=jnp.float32) + attb_ref[base + 1]

    aspect_final = attn(asp_avg, 0)    # attention_aspect: k = aspect
    context_final = attn(ctx_avg, 2)   # attention_context: k = context

    # ---- final dense: cat(aspect_final, context_final) @ Wd + bd ----
    out_ref[...] = (jnp.dot(aspect_final, wd_ref[0], preferred_element_type=jnp.float32)
                    + jnp.dot(context_final, wd_ref[1], preferred_element_type=jnp.float32)
                    + bd_ref[...])


def ian_pallas_call(x_tm, lens, nz, params, *, batch, seq_len, rows):
    H, E, P = HIDDEN_DIM, EMBED_DIM, POLARITIES_DIM
    return pl.pallas_call(
        ian_kernel,
        out_shape=jax.ShapeDtypeStruct((batch, P), jnp.float32),
        grid=(1,),
        in_specs=[
            pl.BlockSpec((seq_len * rows, E), lambda i: (0, 0)),
            pl.BlockSpec((E, 4 * H), lambda i: (0, 0)),
            pl.BlockSpec((H, 4 * H), lambda i: (0, 0)),
            pl.BlockSpec((1, 4 * H), lambda i: (0, 0)),
            pl.BlockSpec((rows, 1), lambda i: (0, 0)),
            pl.BlockSpec((rows, 1), lambda i: (0, 0)),
            pl.BlockSpec((4, H, H), lambda i: (0, 0, 0)),
            pl.BlockSpec((4, 1, H), lambda i: (0, 0, 0)),
            pl.BlockSpec((2, H, P), lambda i: (0, 0, 0)),
            pl.BlockSpec((1, P), lambda i: (0, 0)),
        ],
        out_specs=pl.BlockSpec((batch, P), lambda i: (0, 0)),
        scratch_shapes=[pltpu.VMEM((seq_len * rows, 4 * H), jnp.float32)],
        compiler_params=pltpu.CompilerParams(dimension_semantics=("arbitrary",)),
    )(x_tm, params["wih"], params["whh"], params["b_lstm"], lens, nz,
      params["attw"], params["attb"], params["wd"], params["bd"])


# --------------------------------------------------------------------------------------
# Parameter construction (deterministic, synthetic; PyTorch layouts repacked for TPU).
# --------------------------------------------------------------------------------------
def init_params(key, vocab_size):
    keys = jax.random.split(key, 24)

    def normal(k, shape, scale=0.05):
        return scale * jax.random.normal(k, shape, dtype=jnp.float32)

    # nn.Embedding.from_pretrained(embedding_matrix) with a zero padding row.
    emb = normal(keys[0], (vocab_size, EMBED_DIM))
    emb = emb.at[0].set(0.0)

    # nn.LSTM(embed_dim, hidden_dim): weight_ih (4H, E), weight_hh (4H, H), biases (4H,).
    # Fused right-multiply form: (in, 4H), gate order [i, f, g, o] preserved along 4H.
    w_ih = normal(keys[1], (4 * HIDDEN_DIM, EMBED_DIM))
    w_hh = normal(keys[2], (4 * HIDDEN_DIM, HIDDEN_DIM))
    b_ih = normal(keys[3], (4 * HIDDEN_DIM,))
    b_hh = normal(keys[4], (4 * HIDDEN_DIM,))
    wih = w_ih.T                                        # (E, 4H)
    whh = w_hh.T                                        # (H, 4H)
    b_lstm = (b_ih + b_hh).reshape(1, 4 * HIDDEN_DIM)

    # Attention(hidden_dim, score_function='bi_linear'): only w_k and the output proj
    # reach the output when k_len = q_len = 1 (softmax over a size-1 axis == 1 exactly);
    # w_q / b_q / bilinear are still sampled for RNG parity with the full module.
    def make_attn(base):
        w_k = normal(keys[base + 0], (HIDDEN_DIM, HIDDEN_DIM))
        b_k = normal(keys[base + 1], (HIDDEN_DIM,))
        _w_q = normal(keys[base + 2], (HIDDEN_DIM, HIDDEN_DIM))   # dead path
        _b_q = normal(keys[base + 3], (HIDDEN_DIM,))              # dead path
        _bil = normal(keys[base + 4], (HIDDEN_DIM, HIDDEN_DIM))   # dead path
        w_p = normal(keys[base + 5], (HIDDEN_DIM, HIDDEN_DIM))
        b_p = normal(keys[base + 6], (HIDDEN_DIM,))
        return w_k.T, b_k.reshape(1, -1), w_p.T, b_p.reshape(1, -1)

    wk_a, bk_a, wp_a, bp_a = make_attn(5)
    wk_c, bk_c, wp_c, bp_c = make_attn(12)
    attw = jnp.stack([wk_a, wp_a, wk_c, wp_c], axis=0)   # (4, H, H)
    attb = jnp.stack([bk_a, bp_a, bk_c, bp_c], axis=0)   # (4, 1, H)

    # dense: Linear(2H, 3); split into the aspect half and context half.
    w_dense = normal(keys[19], (POLARITIES_DIM, 2 * HIDDEN_DIM))
    b_dense = normal(keys[20], (POLARITIES_DIM,))
    wd_t = w_dense.T                                                 # (2H, 3)
    wd = jnp.stack([wd_t[:HIDDEN_DIM], wd_t[HIDDEN_DIM:]], axis=0)   # (2, H, 3)
    bd = b_dense.reshape(1, POLARITIES_DIM)

    return dict(embedding=emb, wih=wih, whh=whh, b_lstm=b_lstm,
                attw=attw, attb=attb, wd=wd, bd=bd)


# --------------------------------------------------------------------------------------
# Full IAN forward: embedding gather + packing in XLA, everything else in one kernel.
# --------------------------------------------------------------------------------------
@jax.jit
def ian_forward(text_raw_indices, aspect_indices, params):
    emb = params["embedding"]
    B, Tc = text_raw_indices.shape
    _, Ta = aspect_indices.shape
    T = max(Tc, Ta)                          # static under jit
    R = ((2 * B + 7) // 8) * 8               # pad rows to a full sublane group

    ctx_e = jnp.take(emb, text_raw_indices, axis=0)            # (B, Tc, E)
    asp_e = jnp.take(emb, aspect_indices, axis=0)              # (B, Ta, E)
    ctx_e = jnp.pad(ctx_e, ((0, 0), (0, T - Tc), (0, 0)))
    asp_e = jnp.pad(asp_e, ((0, 0), (0, T - Ta), (0, 0)))
    x = jnp.concatenate([ctx_e, asp_e], axis=0)                # (2B, T, E)
    x = jnp.pad(x, ((0, R - 2 * B), (0, 0), (0, 0)))           # (R, T, E)
    x_tm = jnp.transpose(x, (1, 0, 2)).reshape(T * R, EMBED_DIM)  # time-major, flattened

    # Per-row valid time lengths (the spec sums ALL steps of each original tensor;
    # only the artificial padding we added here is masked out).
    lens = jnp.concatenate([jnp.full((B,), Tc, dtype=jnp.int32),
                            jnp.full((B,), Ta, dtype=jnp.int32),
                            jnp.zeros((R - 2 * B,), dtype=jnp.int32)]).reshape(R, 1)
    nz_ctx = jnp.sum(text_raw_indices != 0, axis=-1).astype(jnp.float32)
    nz_asp = jnp.sum(aspect_indices != 0, axis=-1).astype(jnp.float32)
    nz = jnp.concatenate([nz_ctx, nz_asp,
                          jnp.ones((R - 2 * B,), jnp.float32)]).reshape(R, 1)

    return ian_pallas_call(x_tm, lens, nz, params, batch=B, seq_len=T, rows=R)


# --------------------------------------------------------------------------------------
# Pure-JAX reference (same packed params) for a runtime sanity check.
# --------------------------------------------------------------------------------------
@jax.jit
def ian_reference(text_raw_indices, aspect_indices, params):
    emb = params["embedding"]
    wih, whh, b = params["wih"], params["whh"], params["b_lstm"]
    H = HIDDEN_DIM

    def lstm_sum_ref(x):                               # sum_t h_t over ALL steps of x
        B_, _, _ = x.shape

        def step(carry, x_t):
            h, c = carry
            g = x_t @ wih + h @ whh + b
            i = jax.nn.sigmoid(g[:, :H])
            f = jax.nn.sigmoid(g[:, H:2 * H])
            gg = jnp.tanh(g[:, 2 * H:3 * H])
            o = jax.nn.sigmoid(g[:, 3 * H:])
            c = f * c + i * gg
            h = o * jnp.tanh(c)
            return (h, c), h

        init = (jnp.zeros((B_, H), jnp.float32), jnp.zeros((B_, H), jnp.float32))
        _, hs = jax.lax.scan(step, init, jnp.transpose(x, (1, 0, 2)))
        return jnp.sum(hs, axis=0)

    ctx = jnp.take(emb, text_raw_indices, axis=0)
    asp = jnp.take(emb, aspect_indices, axis=0)
    nz_c = jnp.sum(text_raw_indices != 0, axis=-1).astype(jnp.float32)[:, None]
    nz_a = jnp.sum(aspect_indices != 0, axis=-1).astype(jnp.float32)[:, None]
    ctx_avg = lstm_sum_ref(ctx) / nz_c
    asp_avg = lstm_sum_ref(asp) / nz_a

    attw, attb = params["attw"], params["attb"]
    asp_fin = (asp_avg @ attw[0] + attb[0]) @ attw[1] + attb[1]
    ctx_fin = (ctx_avg @ attw[2] + attb[2]) @ attw[3] + attb[3]
    return asp_fin @ params["wd"][0] + ctx_fin @ params["wd"][1] + params["bd"]


if __name__ == "__main__":
    key = jax.random.PRNGKey(0)
    k_param, k_text, k_asp = jax.random.split(key, 3)

    vocab = 50
    B, T_ctx, T_asp = 2, 16, 8

    params = init_params(k_param, vocab)

    text_raw_indices = jax.random.randint(k_text, (B, T_ctx), 1, vocab, dtype=jnp.int32)
    text_raw_indices = text_raw_indices.at[:, -4:].set(0)   # trailing padding tokens
    aspect_indices = jax.random.randint(k_asp, (B, T_asp), 1, vocab, dtype=jnp.int32)
    aspect_indices = aspect_indices.at[:, -3:].set(0)       # trailing padding tokens

    out = ian_forward(text_raw_indices, aspect_indices, params)
    jax.block_until_ready(out)
    assert out.shape == (B, POLARITIES_DIM) and out.dtype == jnp.float32

    ref = ian_reference(text_raw_indices, aspect_indices, params)
    jax.block_until_ready(ref)
    assert jnp.allclose(out, ref, atol=2e-3, rtol=2e-2), (out, ref)

    print("KERNEL_OK")
</pallas_src>

<mosaic_0001>
module attributes {stable_mosaic.version = 11 : i64} {
  func.func @ian_kernel(%arg0: i32, %arg1: memref<128x100xf32, #tpu.memory_space<vmem>>, %arg2: memref<100x800xf32, #tpu.memory_space<vmem>>, %arg3: memref<200x800xf32, #tpu.memory_space<vmem>>, %arg4: memref<1x800xf32, #tpu.memory_space<vmem>>, %arg5: memref<8x1xi32, #tpu.memory_space<vmem>>, %arg6: memref<8x1xf32, #tpu.memory_space<vmem>>, %arg7: memref<4x200x200xf32, #tpu.memory_space<vmem>>, %arg8: memref<4x1x200xf32, #tpu.memory_space<vmem>>, %arg9: memref<2x200x3xf32, #tpu.memory_space<vmem>>, %arg10: memref<1x3xf32, #tpu.memory_space<vmem>>, %arg11: memref<2x3xf32, #tpu.memory_space<vmem>>, %arg12: memref<128x800xf32, #tpu.memory_space<vmem>>) attributes {dimension_semantics = [#tpu.dimension_semantics<arbitrary>], iteration_bounds = array<i64: 1>, scalar_prefetch = 0 : i64, scratch_operands = 1 : i64, tpu.core_type = #tpu.core_type<tc>, window_params = [{pipeline_mode = #tpu.pipeline_mode<synchronous>, transform_indices = @transform_0, window_bounds = array<i64: 128, 100>}, {pipeline_mode = #tpu.pipeline_mode<synchronous>, transform_indices = @transform_1, window_bounds = array<i64: 100, 800>}, {pipeline_mode = #tpu.pipeline_mode<synchronous>, transform_indices = @transform_2, window_bounds = array<i64: 200, 800>}, {pipeline_mode = #tpu.pipeline_mode<synchronous>, transform_indices = @transform_3, window_bounds = array<i64: 1, 800>}, {pipeline_mode = #tpu.pipeline_mode<synchronous>, transform_indices = @transform_4, window_bounds = array<i64: 8, 1>}, {pipeline_mode = #tpu.pipeline_mode<synchronous>, transform_indices = @transform_5, window_bounds = array<i64: 8, 1>}, {pipeline_mode = #tpu.pipeline_mode<synchronous>, transform_indices = @transform_6, window_bounds = array<i64: 4, 200, 200>}, {pipeline_mode = #tpu.pipeline_mode<synchronous>, transform_indices = @transform_7, window_bounds = array<i64: 4, 1, 200>}, {pipeline_mode = #tpu.pipeline_mode<synchronous>, transform_indices = @transform_8, window_bounds = array<i64: 2, 200, 3>}, {pipeline_mode = #tpu.pipeline_mode<synchronous>, transform_indices = @transform_9, window_bounds = array<i64: 1, 3>}, {pipeline_mode = #tpu.pipeline_mode<synchronous>, transform_indices = @transform_10, window_bounds = array<i64: 2, 3>}]} {
    %c0 = arith.constant 0 : index
    %c0_0 = arith.constant 0 : index
    %0 = vector.load %arg1[%c0, %c0_0] : memref<128x100xf32, #tpu.memory_space<vmem>>, vector<128x100xf32>
    %c0_1 = arith.constant 0 : index
    %c0_2 = arith.constant 0 : index
    %1 = vector.load %arg2[%c0_1, %c0_2] : memref<100x800xf32, #tpu.memory_space<vmem>>, vector<100x800xf32>
    %cst = arith.constant dense<0.000000e+00> : vector<128x800xf32>
    %2 = tpu.matmul %0, %1, %cst {dimension_numbers = #tpu.dot_dimension_numbers<[1], [0], [0], [1], [0, 0, 1, 1], [], []>} : vector<128x100xf32>, vector<100x800xf32>, vector<128x800xf32> -> vector<128x800xf32>
    %c0_3 = arith.constant 0 : index
    %c0_4 = arith.constant 0 : index
    %3 = vector.load %arg4[%c0_3, %c0_4] : memref<1x800xf32, #tpu.memory_space<vmem>>, vector<1x800xf32>
    %4 = vector.broadcast %3 : vector<1x800xf32> to vector<128x800xf32>
    %5 = arith.addf %2, %4 : vector<128x800xf32>
    %c0_5 = arith.constant 0 : index
    %c0_6 = arith.constant 0 : index
    %6 = vector.load %arg12[%c0_5, %c0_6] : memref<128x800xf32, #tpu.memory_space<vmem>>, vector<128x800xf32>
    tpu.vector_store %arg12[%c0_5, %c0_6], %5 {strides = array<i32>} : memref<128x800xf32, #tpu.memory_space<vmem>>, vector<128x800xf32>,
    %c0_7 = arith.constant 0 : index
    %c0_8 = arith.constant 0 : index
    %7 = vector.load %arg3[%c0_7, %c0_8] : memref<200x800xf32, #tpu.memory_space<vmem>>, vector<200x800xf32>
    %c0_9 = arith.constant 0 : index
    %c0_10 = arith.constant 0 : index
    %8 = vector.load %arg5[%c0_9, %c0_10] : memref<8x1xi32, #tpu.memory_space<vmem>>, vector<8x1xi32>
    %cst_11 = arith.constant 0.000000e+00 : f32
    %9 = vector.broadcast %cst_11 : f32 to vector<8x200xf32>
    %c0_i32 = arith.constant 0 : i32
    %c8_i32 = arith.constant 8 : i32
    %10 = arith.muli %c0_i32, %c8_i32 : i32
    %11 = tpu.assume_multiple %10, 8 : i32
    %12 = arith.index_cast %11 : i32 to index
    %c0_12 = arith.constant 0 : index
    %13 = vector.load %arg12[%12, %c0_12] : memref<128x800xf32, #tpu.memory_space<vmem>>, vector<8x800xf32>
    %cst_13 = arith.constant dense<0.000000e+00> : vector<8x800xf32>
    %14 = tpu.matmul %9, %7, %cst_13 {dimension_numbers = #tpu.dot_dimension_numbers<[1], [0], [0], [1], [0, 0, 1, 1], [], []>} : vector<8x200xf32>, vector<200x800xf32>, vector<8x800xf32> -> vector<8x800xf32>
    %15 = arith.addf %13, %14 : vector<8x800xf32>
    %16 = vector.extract_strided_slice %15 {offsets = [0, 0], sizes = [8, 200], strides = [1, 1]} : vector<8x800xf32> to vector<8x200xf32>
    %17 = arith.negf %16 : vector<8x200xf32>
    %18 = math.exp %17 : vector<8x200xf32>
    %cst_14 = arith.constant 1.000000e+00 : f32
    %19 = vector.broadcast %cst_14 : f32 to vector<8x200xf32>
    %20 = arith.addf %19, %18 : vector<8x200xf32>
    %21 = arith.divf %19, %20 : vector<8x200xf32>
    %22 = vector.extract_strided_slice %15 {offsets = [0, 200], sizes = [8, 200], strides = [1, 1]} : vector<8x800xf32> to vector<8x200xf32>
    %23 = arith.negf %22 : vector<8x200xf32>
    %24 = math.exp %23 : vector<8x200xf32>
    %cst_15 = arith.constant 1.000000e+00 : f32
    %25 = vector.broadcast %cst_15 : f32 to vector<8x200xf32>
    %26 = arith.addf %25, %24 : vector<8x200xf32>
    %27 = arith.divf %25, %26 : vector<8x200xf32>
    %28 = vector.extract_strided_slice %15 {offsets = [0, 400], sizes = [8, 200], strides = [1, 1]} : vector<8x800xf32> to vector<8x200xf32>
    %29 = math.tanh %28 : vector<8x200xf32>
    %30 = vector.extract_strided_slice %15 {offsets = [0, 600], sizes = [8, 200], strides = [1, 1]} : vector<8x800xf32> to vector<8x200xf32>
    %31 = arith.negf %30 : vector<8x200xf32>
    %32 = math.exp %31 : vector<8x200xf32>
    %cst_16 = arith.constant 1.000000e+00 : f32
    %33 = vector.broadcast %cst_16 : f32 to vector<8x200xf32>
    %34 = arith.addf %33, %32 : vector<8x200xf32>
    %35 = arith.divf %33, %34 : vector<8x200xf32>
    %36 = arith.mulf %27, %9 : vector<8x200xf32>
    %37 = arith.mulf %21, %29 : vector<8x200xf32>
    %38 = arith.addf %36, %37 : vector<8x200xf32>
    %39 = math.tanh %38 : vector<8x200xf32>
    %40 = arith.mulf %35, %39 : vector<8x200xf32>
    %41 = vector.broadcast %c0_i32 : i32 to vector<8x1xi32>
    %42 = arith.cmpi slt, %41, %8 : vector<8x1xi32>
    %43 = arith.extui %42 : vector<8x1xi1> to vector<8x1xi32>
    %44 = arith.sitofp %43 : vector<8x1xi32> to vector<8x1xf32>
    %45 = vector.broadcast %44 : vector<8x1xf32> to vector<8x200xf32>
    %46 = arith.mulf %45, %40 : vector<8x200xf32>
    %47 = arith.addf %9, %46 : vector<8x200xf32>
    %c1_i32 = arith.constant 1 : i32
    %c8_i32_17 = arith.constant 8 : i32
    %48 = arith.muli %c1_i32, %c8_i32_17 : i32
    %49 = tpu.assume_multiple %48, 8 : i32
    %50 = arith.index_cast %49 : i32 to index
    %c0_18 = arith.constant 0 : index
    %51 = vector.load %arg12[%50, %c0_18] : memref<128x800xf32, #tpu.memory_space<vmem>>, vector<8x800xf32>
    %cst_19 = arith.constant dense<0.000000e+00> : vector<8x800xf32>
    %52 = tpu.matmul %40, %7, %cst_19 {dimension_numbers = #tpu.dot_dimension_numbers<[1], [0], [0], [1], [0, 0, 1, 1], [], []>} : vector<8x200xf32>, vector<200x800xf32>, vector<8x800xf32> -> vector<8x800xf32>
    %53 = arith.addf %51, %52 : vector<8x800xf32>
    %54 = vector.extract_strided_slice %53 {offsets = [0, 0], sizes = [8, 200], strides = [1, 1]} : vector<8x800xf32> to vector<8x200xf32>
    %55 = arith.negf %54 : vector<8x200xf32>
    %56 = math.exp %55 : vector<8x200xf32>
    %cst_20 = arith.constant 1.000000e+00 : f32
    %57 = vector.broadcast %cst_20 : f32 to vector<8x200xf32>
    %58 = arith.addf %57, %56 : vector<8x200xf32>
    %59 = arith.divf %57, %58 : vector<8x200xf32>
    %60 = vector.extract_strided_slice %53 {offsets = [0, 200], sizes = [8, 200], strides = [1, 1]} : vector<8x800xf32> to vector<8x200xf32>
    %61 = arith.negf %60 : vector<8x200xf32>
    %62 = math.exp %61 : vector<8x200xf32>
    %cst_21 = arith.constant 1.000000e+00 : f32
    %63 = vector.broadcast %cst_21 : f32 to vector<8x200xf32>
    %64 = arith.addf %63, %62 : vector<8x200xf32>
    %65 = arith.divf %63, %64 : vector<8x200xf32>
    %66 = vector.extract_strided_slice %53 {offsets = [0, 400], sizes = [8, 200], strides = [1, 1]} : vector<8x800xf32> to vector<8x200xf32>
    %67 = math.tanh %66 : vector<8x200xf32>
    %68 = vector.extract_strided_slice %53 {offsets = [0, 600], sizes = [8, 200], strides = [1, 1]} : vector<8x800xf32> to vector<8x200xf32>
    %69 = arith.negf %68 : vector<8x200xf32>
    %70 = math.exp %69 : vector<8x200xf32>
    %cst_22 = arith.constant 1.000000e+00 : f32
    %71 = vector.broadcast %cst_22 : f32 to vector<8x200xf32>
    %72 = arith.addf %71, %70 : vector<8x200xf32>
    %73 = arith.divf %71, %72 : vector<8x200xf32>
    %74 = arith.mulf %65, %38 : vector<8x200xf32>
    %75 = arith.mulf %59, %67 : vector<8x200xf32>
    %76 = arith.addf %74, %75 : vector<8x200xf32>
    %77 = math.tanh %76 : vector<8x200xf32>
    %78 = arith.mulf %73, %77 : vector<8x200xf32>
    %79 = vector.broadcast %c1_i32 : i32 to vector<8x1xi32>
    %80 = arith.cmpi slt, %79, %8 : vector<8x1xi32>
    %81 = arith.extui %80 : vector<8x1xi1> to vector<8x1xi32>
    %82 = arith.sitofp %81 : vector<8x1xi32> to vector<8x1xf32>
    %83 = vector.broadcast %82 : vector<8x1xf32> to vector<8x200xf32>
    %84 = arith.mulf %83, %78 : vector<8x200xf32>
    %85 = arith.addf %47, %84 : vector<8x200xf32>
    %c2_i32 = arith.constant 2 : i32
    %c8_i32_23 = arith.constant 8 : i32
    %86 = arith.muli %c2_i32, %c8_i32_23 : i32
    %87 = tpu.assume_multiple %86, 8 : i32
    %88 = arith.index_cast %87 : i32 to index
    %c0_24 = arith.constant 0 : index
    %89 = vector.load %arg12[%88, %c0_24] : memref<128x800xf32, #tpu.memory_space<vmem>>, vector<8x800xf32>
    %cst_25 = arith.constant dense<0.000000e+00> : vector<8x800xf32>
    %90 = tpu.matmul %78, %7, %cst_25 {dimension_numbers = #tpu.dot_dimension_numbers<[1], [0], [0], [1], [0, 0, 1, 1], [], []>} : vector<8x200xf32>, vector<200x800xf32>, vector<8x800xf32> -> vector<8x800xf32>
    %91 = arith.addf %89, %90 : vector<8x800xf32>
    %92 = vector.extract_strided_slice %91 {offsets = [0, 0], sizes = [8, 200], strides = [1, 1]} : vector<8x800xf32> to vector<8x200xf32>
    %93 = arith.negf %92 : vector<8x200xf32>
    %94 = math.exp %93 : vector<8x200xf32>
    %cst_26 = arith.constant 1.000000e+00 : f32
    %95 = vector.broadcast %cst_26 : f32 to vector<8x200xf32>
    %96 = arith.addf %95, %94 : vector<8x200xf32>
    %97 = arith.divf %95, %96 : vector<8x200xf32>
    %98 = vector.extract_strided_slice %91 {offsets = [0, 200], sizes = [8, 200], strides = [1, 1]} : vector<8x800xf32> to vector<8x200xf32>
    %99 = arith.negf %98 : vector<8x200xf32>
    %100 = math.exp %99 : vector<8x200xf32>
    %cst_27 = arith.constant 1.000000e+00 : f32
    %101 = vector.broadcast %cst_27 : f32 to vector<8x200xf32>
    %102 = arith.addf %101, %100 : vector<8x200xf32>
    %103 = arith.divf %101, %102 : vector<8x200xf32>
    %104 = vector.extract_strided_slice %91 {offsets = [0, 400], sizes = [8, 200], strides = [1, 1]} : vector<8x800xf32> to vector<8x200xf32>
    %105 = math.tanh %104 : vector<8x200xf32>
    %106 = vector.extract_strided_slice %91 {offsets = [0, 600], sizes = [8, 200], strides = [1, 1]} : vector<8x800xf32> to vector<8x200xf32>
    %107 = arith.negf %106 : vector<8x200xf32>
    %108 = math.exp %107 : vector<8x200xf32>
    %cst_28 = arith.constant 1.000000e+00 : f32
    %109 = vector.broadcast %cst_28 : f32 to vector<8x200xf32>
    %110 = arith.addf %109, %108 : vector<8x200xf32>
    %111 = arith.divf %109, %110 : vector<8x200xf32>
    %112 = arith.mulf %103, %76 : vector<8x200xf32>
    %113 = arith.mulf %97, %105 : vector<8x200xf32>
    %114 = arith.addf %112, %113 : vector<8x200xf32>
    %115 = math.tanh %114 : vector<8x200xf32>
    %116 = arith.mulf %111, %115 : vector<8x200xf32>
    %117 = vector.broadcast %c2_i32 : i32 to vector<8x1xi32>
    %118 = arith.cmpi slt, %117, %8 : vector<8x1xi32>
    %119 = arith.extui %118 : vector<8x1xi1> to vector<8x1xi32>
    %120 = arith.sitofp %119 : vector<8x1xi32> to vector<8x1xf32>
    %121 = vector.broadcast %120 : vector<8x1xf32> to vector<8x200xf32>
    %122 = arith.mulf %121, %116 : vector<8x200xf32>
    %123 = arith.addf %85, %122 : vector<8x200xf32>
    %c3_i32 = arith.constant 3 : i32
    %c8_i32_29 = arith.constant 8 : i32
    %124 = arith.muli %c3_i32, %c8_i32_29 : i32
    %125 = tpu.assume_multiple %124, 8 : i32
    %126 = arith.index_cast %125 : i32 to index
    %c0_30 = arith.constant 0 : index
    %127 = vector.load %arg12[%126, %c0_30] : memref<128x800xf32, #tpu.memory_space<vmem>>, vector<8x800xf32>
    %cst_31 = arith.constant dense<0.000000e+00> : vector<8x800xf32>
    %128 = tpu.matmul %116, %7, %cst_31 {dimension_numbers = #tpu.dot_dimension_numbers<[1], [0], [0], [1], [0, 0, 1, 1], [], []>} : vector<8x200xf32>, vector<200x800xf32>, vector<8x800xf32> -> vector<8x800xf32>
    %129 = arith.addf %127, %128 : vector<8x800xf32>
    %130 = vector.extract_strided_slice %129 {offsets = [0, 0], sizes = [8, 200], strides = [1, 1]} : vector<8x800xf32> to vector<8x200xf32>
    %131 = arith.negf %130 : vector<8x200xf32>
    %132 = math.exp %131 : vector<8x200xf32>
    %cst_32 = arith.constant 1.000000e+00 : f32
    %133 = vector.broadcast %cst_32 : f32 to vector<8x200xf32>
    %134 = arith.addf %133, %132 : vector<8x200xf32>
    %135 = arith.divf %133, %134 : vector<8x200xf32>
    %136 = vector.extract_strided_slice %129 {offsets = [0, 200], sizes = [8, 200], strides = [1, 1]} : vector<8x800xf32> to vector<8x200xf32>
    %137 = arith.negf %136 : vector<8x200xf32>
    %138 = math.exp %137 : vector<8x200xf32>
    %cst_33 = arith.constant 1.000000e+00 : f32
    %139 = vector.broadcast %cst_33 : f32 to vector<8x200xf32>
    %140 = arith.addf %139, %138 : vector<8x200xf32>
    %141 = arith.divf %139, %140 : vector<8x200xf32>
    %142 = vector.extract_strided_slice %129 {offsets = [0, 400], sizes = [8, 200], strides = [1, 1]} : vector<8x800xf32> to vector<8x200xf32>
    %143 = math.tanh %142 : vector<8x200xf32>
    %144 = vector.extract_strided_slice %129 {offsets = [0, 600], sizes = [8, 200], strides = [1, 1]} : vector<8x800xf32> to vector<8x200xf32>
    %145 = arith.negf %144 : vector<8x200xf32>
    %146 = math.exp %145 : vector<8x200xf32>
    %cst_34 = arith.constant 1.000000e+00 : f32
    %147 = vector.broadcast %cst_34 : f32 to vector<8x200xf32>
    %148 = arith.addf %147, %146 : vector<8x200xf32>
    %149 = arith.divf %147, %148 : vector<8x200xf32>
    %150 = arith.mulf %141, %114 : vector<8x200xf32>
    %151 = arith.mulf %135, %143 : vector<8x200xf32>
    %152 = arith.addf %150, %151 : vector<8x200xf32>
    %153 = math.tanh %152 : vector<8x200xf32>
    %154 = arith.mulf %149, %153 : vector<8x200xf32>
    %155 = vector.broadcast %c3_i32 : i32 to vector<8x1xi32>
    %156 = arith.cmpi slt, %155, %8 : vector<8x1xi32>
    %157 = arith.extui %156 : vector<8x1xi1> to vector<8x1xi32>
    %158 = arith.sitofp %157 : vector<8x1xi32> to vector<8x1xf32>
    %159 = vector.broadcast %158 : vector<8x1xf32> to vector<8x200xf32>
    %160 = arith.mulf %159, %154 : vector<8x200xf32>
    %161 = arith.addf %123, %160 : vector<8x200xf32>
    %c4_i32 = arith.constant 4 : i32
    %c8_i32_35 = arith.constant 8 : i32
    %162 = arith.muli %c4_i32, %c8_i32_35 : i32
    %163 = tpu.assume_multiple %162, 8 : i32
    %164 = arith.index_cast %163 : i32 to index
    %c0_36 = arith.constant 0 : index
    %165 = vector.load %arg12[%164, %c0_36] : memref<128x800xf32, #tpu.memory_space<vmem>>, vector<8x800xf32>
    %cst_37 = arith.constant dense<0.000000e+00> : vector<8x800xf32>
    %166 = tpu.matmul %154, %7, %cst_37 {dimension_numbers = #tpu.dot_dimension_numbers<[1], [0], [0], [1], [0, 0, 1, 1], [], []>} : vector<8x200xf32>, vector<200x800xf32>, vector<8x800xf32> -> vector<8x800xf32>
    %167 = arith.addf %165, %166 : vector<8x800xf32>
    %168 = vector.extract_strided_slice %167 {offsets = [0, 0], sizes = [8, 200], strides = [1, 1]} : vector<8x800xf32> to vector<8x200xf32>
    %169 = arith.negf %168 : vector<8x200xf32>
    %170 = math.exp %169 : vector<8x200xf32>
    %cst_38 = arith.constant 1.000000e+00 : f32
    %171 = vector.broadcast %cst_38 : f32 to vector<8x200xf32>
    %172 = arith.addf %171, %170 : vector<8x200xf32>
    %173 = arith.divf %171, %172 : vector<8x200xf32>
    %174 = vector.extract_strided_slice %167 {offsets = [0, 200], sizes = [8, 200], strides = [1, 1]} : vector<8x800xf32> to vector<8x200xf32>
    %175 = arith.negf %174 : vector<8x200xf32>
    %176 = math.exp %175 : vector<8x200xf32>
    %cst_39 = arith.constant 1.000000e+00 : f32
    %177 = vector.broadcast %cst_39 : f32 to vector<8x200xf32>
    %178 = arith.addf %177, %176 : vector<8x200xf32>
    %179 = arith.divf %177, %178 : vector<8x200xf32>
    %180 = vector.extract_strided_slice %167 {offsets = [0, 400], sizes = [8, 200], strides = [1, 1]} : vector<8x800xf32> to vector<8x200xf32>
    %181 = math.tanh %180 : vector<8x200xf32>
    %182 = vector.extract_strided_slice %167 {offsets = [0, 600], sizes = [8, 200], strides = [1, 1]} : vector<8x800xf32> to vector<8x200xf32>
    %183 = arith.negf %182 : vector<8x200xf32>
    %184 = math.exp %183 : vector<8x200xf32>
    %cst_40 = arith.constant 1.000000e+00 : f32
    %185 = vector.broadcast %cst_40 : f32 to vector<8x200xf32>
    %186 = arith.addf %185, %184 : vector<8x200xf32>
    %187 = arith.divf %185, %186 : vector<8x200xf32>
    %188 = arith.mulf %179, %152 : vector<8x200xf32>
    %189 = arith.mulf %173, %181 : vector<8x200xf32>
    %190 = arith.addf %188, %189 : vector<8x200xf32>
    %191 = math.tanh %190 : vector<8x200xf32>
    %192 = arith.mulf %187, %191 : vector<8x200xf32>
    %193 = vector.broadcast %c4_i32 : i32 to vector<8x1xi32>
    %194 = arith.cmpi slt, %193, %8 : vector<8x1xi32>
    %195 = arith.extui %194 : vector<8x1xi1> to vector<8x1xi32>
    %196 = arith.sitofp %195 : vector<8x1xi32> to vector<8x1xf32>
    %197 = vector.broadcast %196 : vector<8x1xf32> to vector<8x200xf32>
    %198 = arith.mulf %197, %192 : vector<8x200xf32>
    %199 = arith.addf %161, %198 : vector<8x200xf32>
    %c5_i32 = arith.constant 5 : i32
    %c8_i32_41 = arith.constant 8 : i32
    %200 = arith.muli %c5_i32, %c8_i32_41 : i32
    %201 = tpu.assume_multiple %200, 8 : i32
    %202 = arith.index_cast %201 : i32 to index
    %c0_42 = arith.constant 0 : index
    %203 = vector.load %arg12[%202, %c0_42] : memref<128x800xf32, #tpu.memory_space<vmem>>, vector<8x800xf32>
    %cst_43 = arith.constant dense<0.000000e+00> : vector<8x800xf32>
    %204 = tpu.matmul %192, %7, %cst_43 {dimension_numbers = #tpu.dot_dimension_numbers<[1], [0], [0], [1], [0, 0, 1, 1], [], []>} : vector<8x200xf32>, vector<200x800xf32>, vector<8x800xf32> -> vector<8x800xf32>
    %205 = arith.addf %203, %204 : vector<8x800xf32>
    %206 = vector.extract_strided_slice %205 {offsets = [0, 0], sizes = [8, 200], strides = [1, 1]} : vector<8x800xf32> to vector<8x200xf32>
    %207 = arith.negf %206 : vector<8x200xf32>
    %208 = math.exp %207 : vector<8x200xf32>
    %cst_44 = arith.constant 1.000000e+00 : f32
    %209 = vector.broadcast %cst_44 : f32 to vector<8x200xf32>
    %210 = arith.addf %209, %208 : vector<8x200xf32>
    %211 = arith.divf %209, %210 : vector<8x200xf32>
    %212 = vector.extract_strided_slice %205 {offsets = [0, 200], sizes = [8, 200], strides = [1, 1]} : vector<8x800xf32> to vector<8x200xf32>
    %213 = arith.negf %212 : vector<8x200xf32>
    %214 = math.exp %213 : vector<8x200xf32>
    %cst_45 = arith.constant 1.000000e+00 : f32
    %215 = vector.broadcast %cst_45 : f32 to vector<8x200xf32>
    %216 = arith.addf %215, %214 : vector<8x200xf32>
    %217 = arith.divf %215, %216 : vector<8x200xf32>
    %218 = vector.extract_strided_slice %205 {offsets = [0, 400], sizes = [8, 200], strides = [1, 1]} : vector<8x800xf32> to vector<8x200xf32>
    %219 = math.tanh %218 : vector<8x200xf32>
    %220 = vector.extract_strided_slice %205 {offsets = [0, 600], sizes = [8, 200], strides = [1, 1]} : vector<8x800xf32> to vector<8x200xf32>
    %221 = arith.negf %220 : vector<8x200xf32>
    %222 = math.exp %221 : vector<8x200xf32>
    %cst_46 = arith.constant 1.000000e+00 : f32
    %223 = vector.broadcast %cst_46 : f32 to vector<8x200xf32>
    %224 = arith.addf %223, %222 : vector<8x200xf32>
    %225 = arith.divf %223, %224 : vector<8x200xf32>
    %226 = arith.mulf %217, %190 : vector<8x200xf32>
    %227 = arith.mulf %211, %219 : vector<8x200xf32>
    %228 = arith.addf %226, %227 : vector<8x200xf32>
    %229 = math.tanh %228 : vector<8x200xf32>
    %230 = arith.mulf %225, %229 : vector<8x200xf32>
    %231 = vector.broadcast %c5_i32 : i32 to vector<8x1xi32>
    %232 = arith.cmpi slt, %231, %8 : vector<8x1xi32>
    %233 = arith.extui %232 : vector<8x1xi1> to vector<8x1xi32>
    %234 = arith.sitofp %233 : vector<8x1xi32> to vector<8x1xf32>
    %235 = vector.broadcast %234 : vector<8x1xf32> to vector<8x200xf32>
    %236 = arith.mulf %235, %230 : vector<8x200xf32>
    %237 = arith.addf %199, %236 : vector<8x200xf32>
    %c6_i32 = arith.constant 6 : i32
    %c8_i32_47 = arith.constant 8 : i32
    %238 = arith.muli %c6_i32, %c8_i32_47 : i32
    %239 = tpu.assume_multiple %238, 8 : i32
    %240 = arith.index_cast %239 : i32 to index
    %c0_48 = arith.constant 0 : index
    %241 = vector.load %arg12[%240, %c0_48] : memref<128x800xf32, #tpu.memory_space<vmem>>, vector<8x800xf32>
    %cst_49 = arith.constant dense<0.000000e+00> : vector<8x800xf32>
    %242 = tpu.matmul %230, %7, %cst_49 {dimension_numbers = #tpu.dot_dimension_numbers<[1], [0], [0], [1], [0, 0, 1, 1], [], []>} : vector<8x200xf32>, vector<200x800xf32>, vector<8x800xf32> -> vector<8x800xf32>
    %243 = arith.addf %241, %242 : vector<8x800xf32>
    %244 = vector.extract_strided_slice %243 {offsets = [0, 0], sizes = [8, 200], strides = [1, 1]} : vector<8x800xf32> to vector<8x200xf32>
    %245 = arith.negf %244 : vector<8x200xf32>
    %246 = math.exp %245 : vector<8x200xf32>
    %cst_50 = arith.constant 1.000000e+00 : f32
    %247 = vector.broadcast %cst_50 : f32 to vector<8x200xf32>
    %248 = arith.addf %247, %246 : vector<8x200xf32>
    %249 = arith.divf %247, %248 : vector<8x200xf32>
    %250 = vector.extract_strided_slice %243 {offsets = [0, 200], sizes = [8, 200], strides = [1, 1]} : vector<8x800xf32> to vector<8x200xf32>
    %251 = arith.negf %250 : vector<8x200xf32>
    %252 = math.exp %251 : vector<8x200xf32>
    %cst_51 = arith.constant 1.000000e+00 : f32
    %253 = vector.broadcast %cst_51 : f32 to vector<8x200xf32>
    %254 = arith.addf %253, %252 : vector<8x200xf32>
    %255 = arith.divf %253, %254 : vector<8x200xf32>
    %256 = vector.extract_strided_slice %243 {offsets = [0, 400], sizes = [8, 200], strides = [1, 1]} : vector<8x800xf32> to vector<8x200xf32>
    %257 = math.tanh %256 : vector<8x200xf32>
    %258 = vector.extract_strided_slice %243 {offsets = [0, 600], sizes = [8, 200], strides = [1, 1]} : vector<8x800xf32> to vector<8x200xf32>
    %259 = arith.negf %258 : vector<8x200xf32>
    %260 = math.exp %259 : vector<8x200xf32>
    %cst_52 = arith.constant 1.000000e+00 : f32
    %261 = vector.broadcast %cst_52 : f32 to vector<8x200xf32>
    %262 = arith.addf %261, %260 : vector<8x200xf32>
    %263 = arith.divf %261, %262 : vector<8x200xf32>
    %264 = arith.mulf %255, %228 : vector<8x200xf32>
    %265 = arith.mulf %249, %257 : vector<8x200xf32>
    %266 = arith.addf %264, %265 : vector<8x200xf32>
    %267 = math.tanh %266 : vector<8x200xf32>
    %268 = arith.mulf %263, %267 : vector<8x200xf32>
    %269 = vector.broadcast %c6_i32 : i32 to vector<8x1xi32>
    %270 = arith.cmpi slt, %269, %8 : vector<8x1xi32>
    %271 = arith.extui %270 : vector<8x1xi1> to vector<8x1xi32>
    %272 = arith.sitofp %271 : vector<8x1xi32> to vector<8x1xf32>
    %273 = vector.broadcast %272 : vector<8x1xf32> to vector<8x200xf32>
    %274 = arith.mulf %273, %268 : vector<8x200xf32>
    %275 = arith.addf %237, %274 : vector<8x200xf32>
    %c7_i32 = arith.constant 7 : i32
    %c8_i32_53 = arith.constant 8 : i32
    %276 = arith.muli %c7_i32, %c8_i32_53 : i32
    %277 = tpu.assume_multiple %276, 8 : i32
    %278 = arith.index_cast %277 : i32 to index
    %c0_54 = arith.constant 0 : index
    %279 = vector.load %arg12[%278, %c0_54] : memref<128x800xf32, #tpu.memory_space<vmem>>, vector<8x800xf32>
    %cst_55 = arith.constant dense<0.000000e+00> : vector<8x800xf32>
    %280 = tpu.matmul %268, %7, %cst_55 {dimension_numbers = #tpu.dot_dimension_numbers<[1], [0], [0], [1], [0, 0, 1, 1], [], []>} : vector<8x200xf32>, vector<200x800xf32>, vector<8x800xf32> -> vector<8x800xf32>
    %281 = arith.addf %279, %280 : vector<8x800xf32>
    %282 = vector.extract_strided_slice %281 {offsets = [0, 0], sizes = [8, 200], strides = [1, 1]} : vector<8x800xf32> to vector<8x200xf32>
    %283 = arith.negf %282 : vector<8x200xf32>
    %284 = math.exp %283 : vector<8x200xf32>
    %cst_56 = arith.constant 1.000000e+00 : f32
    %285 = vector.broadcast %cst_56 : f32 to vector<8x200xf32>
    %286 = arith.addf %285, %284 : vector<8x200xf32>
    %287 = arith.divf %285, %286 : vector<8x200xf32>
    %288 = vector.extract_strided_slice %281 {offsets = [0, 200], sizes = [8, 200], strides = [1, 1]} : vector<8x800xf32> to vector<8x200xf32>
    %289 = arith.negf %288 : vector<8x200xf32>
    %290 = math.exp %289 : vector<8x200xf32>
    %cst_57 = arith.constant 1.000000e+00 : f32
    %291 = vector.broadcast %cst_57 : f32 to vector<8x200xf32>
    %292 = arith.addf %291, %290 : vector<8x200xf32>
    %293 = arith.divf %291, %292 : vector<8x200xf32>
    %294 = vector.extract_strided_slice %281 {offsets = [0, 400], sizes = [8, 200], strides = [1, 1]} : vector<8x800xf32> to vector<8x200xf32>
    %295 = math.tanh %294 : vector<8x200xf32>
    %296 = vector.extract_strided_slice %281 {offsets = [0, 600], sizes = [8, 200], strides = [1, 1]} : vector<8x800xf32> to vector<8x200xf32>
    %297 = arith.negf %296 : vector<8x200xf32>
    %298 = math.exp %297 : vector<8x200xf32>
    %cst_58 = arith.constant 1.000000e+00 : f32
    %299 = vector.broadcast %cst_58 : f32 to vector<8x200xf32>
    %300 = arith.addf %299, %298 : vector<8x200xf32>
    %301 = arith.divf %299, %300 : vector<8x200xf32>
    %302 = arith.mulf %293, %266 : vector<8x200xf32>
    %303 = arith.mulf %287, %295 : vector<8x200xf32>
    %304 = arith.addf %302, %303 : vector<8x200xf32>
    %305 = math.tanh %304 : vector<8x200xf32>
    %306 = arith.mulf %301, %305 : vector<8x200xf32>
    %307 = vector.broadcast %c7_i32 : i32 to vector<8x1xi32>
    %308 = arith.cmpi slt, %307, %8 : vector<8x1xi32>
    %309 = arith.extui %308 : vector<8x1xi1> to vector<8x1xi32>
    %310 = arith.sitofp %309 : vector<8x1xi32> to vector<8x1xf32>
    %311 = vector.broadcast %310 : vector<8x1xf32> to vector<8x200xf32>
    %312 = arith.mulf %311, %306 : vector<8x200xf32>
    %313 = arith.addf %275, %312 : vector<8x200xf32>
    %c8_i32_59 = arith.constant 8 : i32
    %c8_i32_60 = arith.constant 8 : i32
    %314 = arith.muli %c8_i32_59, %c8_i32_60 : i32
    %315 = tpu.assume_multiple %314, 8 : i32
    %316 = arith.index_cast %315 : i32 to index
    %c0_61 = arith.constant 0 : index
    %317 = vector.load %arg12[%316, %c0_61] : memref<128x800xf32, #tpu.memory_space<vmem>>, vector<8x800xf32>
    %cst_62 = arith.constant dense<0.000000e+00> : vector<8x800xf32>
    %318 = tpu.matmul %306, %7, %cst_62 {dimension_numbers = #tpu.dot_dimension_numbers<[1], [0], [0], [1], [0, 0, 1, 1], [], []>} : vector<8x200xf32>, vector<200x800xf32>, vector<8x800xf32> -> vector<8x800xf32>
    %319 = arith.addf %317, %318 : vector<8x800xf32>
    %320 = vector.extract_strided_slice %319 {offsets = [0, 0], sizes = [8, 200], strides = [1, 1]} : vector<8x800xf32> to vector<8x200xf32>
    %321 = arith.negf %320 : vector<8x200xf32>
    %322 = math.exp %321 : vector<8x200xf32>
    %cst_63 = arith.constant 1.000000e+00 : f32
    %323 = vector.broadcast %cst_63 : f32 to vector<8x200xf32>
    %324 = arith.addf %323, %322 : vector<8x200xf32>
    %325 = arith.divf %323, %324 : vector<8x200xf32>
    %326 = vector.extract_strided_slice %319 {offsets = [0, 200], sizes = [8, 200], strides = [1, 1]} : vector<8x800xf32> to vector<8x200xf32>
    %327 = arith.negf %326 : vector<8x200xf32>
    %328 = math.exp %327 : vector<8x200xf32>
    %cst_64 = arith.constant 1.000000e+00 : f32
    %329 = vector.broadcast %cst_64 : f32 to vector<8x200xf32>
    %330 = arith.addf %329, %328 : vector<8x200xf32>
    %331 = arith.divf %329, %330 : vector<8x200xf32>
    %332 = vector.extract_strided_slice %319 {offsets = [0, 400], sizes = [8, 200], strides = [1, 1]} : vector<8x800xf32> to vector<8x200xf32>
    %333 = math.tanh %332 : vector<8x200xf32>
    %334 = vector.extract_strided_slice %319 {offsets = [0, 600], sizes = [8, 200], strides = [1, 1]} : vector<8x800xf32> to vector<8x200xf32>
    %335 = arith.negf %334 : vector<8x200xf32>
    %336 = math.exp %335 : vector<8x200xf32>
    %cst_65 = arith.constant 1.000000e+00 : f32
    %337 = vector.broadcast %cst_65 : f32 to vector<8x200xf32>
    %338 = arith.addf %337, %336 : vector<8x200xf32>
    %339 = arith.divf %337, %338 : vector<8x200xf32>
    %340 = arith.mulf %331, %304 : vector<8x200xf32>
    %341 = arith.mulf %325, %333 : vector<8x200xf32>
    %342 = arith.addf %340, %341 : vector<8x200xf32>
    %343 = math.tanh %342 : vector<8x200xf32>
    %344 = arith.mulf %339, %343 : vector<8x200xf32>
    %345 = vector.broadcast %c8_i32_59 : i32 to vector<8x1xi32>
    %346 = arith.cmpi slt, %345, %8 : vector<8x1xi32>
    %347 = arith.extui %346 : vector<8x1xi1> to vector<8x1xi32>
    %348 = arith.sitofp %347 : vector<8x1xi32> to vector<8x1xf32>
    %349 = vector.broadcast %348 : vector<8x1xf32> to vector<8x200xf32>
    %350 = arith.mulf %349, %344 : vector<8x200xf32>
    %351 = arith.addf %313, %350 : vector<8x200xf32>
    %c9_i32 = arith.constant 9 : i32
    %c8_i32_66 = arith.constant 8 : i32
    %352 = arith.muli %c9_i32, %c8_i32_66 : i32
    %353 = tpu.assume_multiple %352, 8 : i32
    %354 = arith.index_cast %353 : i32 to index
    %c0_67 = arith.constant 0 : index
    %355 = vector.load %arg12[%354, %c0_67] : memref<128x800xf32, #tpu.memory_space<vmem>>, vector<8x800xf32>
    %cst_68 = arith.constant dense<0.000000e+00> : vector<8x800xf32>
    %356 = tpu.matmul %344, %7, %cst_68 {dimension_numbers = #tpu.dot_dimension_numbers<[1], [0], [0], [1], [0, 0, 1, 1], [], []>} : vector<8x200xf32>, vector<200x800xf32>, vector<8x800xf32> -> vector<8x800xf32>
    %357 = arith.addf %355, %356 : vector<8x800xf32>
    %358 = vector.extract_strided_slice %357 {offsets = [0, 0], sizes = [8, 200], strides = [1, 1]} : vector<8x800xf32> to vector<8x200xf32>
    %359 = arith.negf %358 : vector<8x200xf32>
    %360 = math.exp %359 : vector<8x200xf32>
    %cst_69 = arith.constant 1.000000e+00 : f32
    %361 = vector.broadcast %cst_69 : f32 to vector<8x200xf32>
    %362 = arith.addf %361, %360 : vector<8x200xf32>
    %363 = arith.divf %361, %362 : vector<8x200xf32>
    %364 = vector.extract_strided_slice %357 {offsets = [0, 200], sizes = [8, 200], strides = [1, 1]} : vector<8x800xf32> to vector<8x200xf32>
    %365 = arith.negf %364 : vector<8x200xf32>
    %366 = math.exp %365 : vector<8x200xf32>
    %cst_70 = arith.constant 1.000000e+00 : f32
    %367 = vector.broadcast %cst_70 : f32 to vector<8x200xf32>
    %368 = arith.addf %367, %366 : vector<8x200xf32>
    %369 = arith.divf %367, %368 : vector<8x200xf32>
    %370 = vector.extract_strided_slice %357 {offsets = [0, 400], sizes = [8, 200], strides = [1, 1]} : vector<8x800xf32> to vector<8x200xf32>
    %371 = math.tanh %370 : vector<8x200xf32>
    %372 = vector.extract_strided_slice %357 {offsets = [0, 600], sizes = [8, 200], strides = [1, 1]} : vector<8x800xf32> to vector<8x200xf32>
    %373 = arith.negf %372 : vector<8x200xf32>
    %374 = math.exp %373 : vector<8x200xf32>
    %cst_71 = arith.constant 1.000000e+00 : f32
    %375 = vector.broadcast %cst_71 : f32 to vector<8x200xf32>
    %376 = arith.addf %375, %374 : vector<8x200xf32>
    %377 = arith.divf %375, %376 : vector<8x200xf32>
    %378 = arith.mulf %369, %342 : vector<8x200xf32>
    %379 = arith.mulf %363, %371 : vector<8x200xf32>
    %380 = arith.addf %378, %379 : vector<8x200xf32>
    %381 = math.tanh %380 : vector<8x200xf32>
    %382 = arith.mulf %377, %381 : vector<8x200xf32>
    %383 = vector.broadcast %c9_i32 : i32 to vector<8x1xi32>
    %384 = arith.cmpi slt, %383, %8 : vector<8x1xi32>
    %385 = arith.extui %384 : vector<8x1xi1> to vector<8x1xi32>
    %386 = arith.sitofp %385 : vector<8x1xi32> to vector<8x1xf32>
    %387 = vector.broadcast %386 : vector<8x1xf32> to vector<8x200xf32>
    %388 = arith.mulf %387, %382 : vector<8x200xf32>
    %389 = arith.addf %351, %388 : vector<8x200xf32>
    %c10_i32 = arith.constant 10 : i32
    %c8_i32_72 = arith.constant 8 : i32
    %390 = arith.muli %c10_i32, %c8_i32_72 : i32
    %391 = tpu.assume_multiple %390, 8 : i32
    %392 = arith.index_cast %391 : i32 to index
    %c0_73 = arith.constant 0 : index
    %393 = vector.load %arg12[%392, %c0_73] : memref<128x800xf32, #tpu.memory_space<vmem>>, vector<8x800xf32>
    %cst_74 = arith.constant dense<0.000000e+00> : vector<8x800xf32>
    %394 = tpu.matmul %382, %7, %cst_74 {dimension_numbers = #tpu.dot_dimension_numbers<[1], [0], [0], [1], [0, 0, 1, 1], [], []>} : vector<8x200xf32>, vector<200x800xf32>, vector<8x800xf32> -> vector<8x800xf32>
    %395 = arith.addf %393, %394 : vector<8x800xf32>
    %396 = vector.extract_strided_slice %395 {offsets = [0, 0], sizes = [8, 200], strides = [1, 1]} : vector<8x800xf32> to vector<8x200xf32>
    %397 = arith.negf %396 : vector<8x200xf32>
    %398 = math.exp %397 : vector<8x200xf32>
    %cst_75 = arith.constant 1.000000e+00 : f32
    %399 = vector.broadcast %cst_75 : f32 to vector<8x200xf32>
    %400 = arith.addf %399, %398 : vector<8x200xf32>
    %401 = arith.divf %399, %400 : vector<8x200xf32>
    %402 = vector.extract_strided_slice %395 {offsets = [0, 200], sizes = [8, 200], strides = [1, 1]} : vector<8x800xf32> to vector<8x200xf32>
    %403 = arith.negf %402 : vector<8x200xf32>
    %404 = math.exp %403 : vector<8x200xf32>
    %cst_76 = arith.constant 1.000000e+00 : f32
    %405 = vector.broadcast %cst_76 : f32 to vector<8x200xf32>
    %406 = arith.addf %405, %404 : vector<8x200xf32>
    %407 = arith.divf %405, %406 : vector<8x200xf32>
    %408 = vector.extract_strided_slice %395 {offsets = [0, 400], sizes = [8, 200], strides = [1, 1]} : vector<8x800xf32> to vector<8x200xf32>
    %409 = math.tanh %408 : vector<8x200xf32>
    %410 = vector.extract_strided_slice %395 {offsets = [0, 600], sizes = [8, 200], strides = [1, 1]} : vector<8x800xf32> to vector<8x200xf32>
    %411 = arith.negf %410 : vector<8x200xf32>
    %412 = math.exp %411 : vector<8x200xf32>
    %cst_77 = arith.constant 1.000000e+00 : f32
    %413 = vector.broadcast %cst_77 : f32 to vector<8x200xf32>
    %414 = arith.addf %413, %412 : vector<8x200xf32>
    %415 = arith.divf %413, %414 : vector<8x200xf32>
    %416 = arith.mulf %407, %380 : vector<8x200xf32>
    %417 = arith.mulf %401, %409 : vector<8x200xf32>
    %418 = arith.addf %416, %417 : vector<8x200xf32>
    %419 = math.tanh %418 : vector<8x200xf32>
    %420 = arith.mulf %415, %419 : vector<8x200xf32>
    %421 = vector.broadcast %c10_i32 : i32 to vector<8x1xi32>
    %422 = arith.cmpi slt, %421, %8 : vector<8x1xi32>
    %423 = arith.extui %422 : vector<8x1xi1> to vector<8x1xi32>
    %424 = arith.sitofp %423 : vector<8x1xi32> to vector<8x1xf32>
    %425 = vector.broadcast %424 : vector<8x1xf32> to vector<8x200xf32>
    %426 = arith.mulf %425, %420 : vector<8x200xf32>
    %427 = arith.addf %389, %426 : vector<8x200xf32>
    %c11_i32 = arith.constant 11 : i32
    %c8_i32_78 = arith.constant 8 : i32
    %428 = arith.muli %c11_i32, %c8_i32_78 : i32
    %429 = tpu.assume_multiple %428, 8 : i32
    %430 = arith.index_cast %429 : i32 to index
    %c0_79 = arith.constant 0 : index
    %431 = vector.load %arg12[%430, %c0_79] : memref<128x800xf32, #tpu.memory_space<vmem>>, vector<8x800xf32>
    %cst_80 = arith.constant dense<0.000000e+00> : vector<8x800xf32>
    %432 = tpu.matmul %420, %7, %cst_80 {dimension_numbers = #tpu.dot_dimension_numbers<[1], [0], [0], [1], [0, 0, 1, 1], [], []>} : vector<8x200xf32>, vector<200x800xf32>, vector<8x800xf32> -> vector<8x800xf32>
    %433 = arith.addf %431, %432 : vector<8x800xf32>
    %434 = vector.extract_strided_slice %433 {offsets = [0, 0], sizes = [8, 200], strides = [1, 1]} : vector<8x800xf32> to vector<8x200xf32>
    %435 = arith.negf %434 : vector<8x200xf32>
    %436 = math.exp %435 : vector<8x200xf32>
    %cst_81 = arith.constant 1.000000e+00 : f32
    %437 = vector.broadcast %cst_81 : f32 to vector<8x200xf32>
    %438 = arith.addf %437, %436 : vector<8x200xf32>
    %439 = arith.divf %437, %438 : vector<8x200xf32>
    %440 = vector.extract_strided_slice %433 {offsets = [0, 200], sizes = [8, 200], strides = [1, 1]} : vector<8x800xf32> to vector<8x200xf32>
    %441 = arith.negf %440 : vector<8x200xf32>
    %442 = math.exp %441 : vector<8x200xf32>
    %cst_82 = arith.constant 1.000000e+00 : f32
    %443 = vector.broadcast %cst_82 : f32 to vector<8x200xf32>
    %444 = arith.addf %443, %442 : vector<8x200xf32>
    %445 = arith.divf %443, %444 : vector<8x200xf32>
    %446 = vector.extract_strided_slice %433 {offsets = [0, 400], sizes = [8, 200], strides = [1, 1]} : vector<8x800xf32> to vector<8x200xf32>
    %447 = math.tanh %446 : vector<8x200xf32>
    %448 = vector.extract_strided_slice %433 {offsets = [0, 600], sizes = [8, 200], strides = [1, 1]} : vector<8x800xf32> to vector<8x200xf32>
    %449 = arith.negf %448 : vector<8x200xf32>
    %450 = math.exp %449 : vector<8x200xf32>
    %cst_83 = arith.constant 1.000000e+00 : f32
    %451 = vector.broadcast %cst_83 : f32 to vector<8x200xf32>
    %452 = arith.addf %451, %450 : vector<8x200xf32>
    %453 = arith.divf %451, %452 : vector<8x200xf32>
    %454 = arith.mulf %445, %418 : vector<8x200xf32>
    %455 = arith.mulf %439, %447 : vector<8x200xf32>
    %456 = arith.addf %454, %455 : vector<8x200xf32>
    %457 = math.tanh %456 : vector<8x200xf32>
    %458 = arith.mulf %453, %457 : vector<8x200xf32>
    %459 = vector.broadcast %c11_i32 : i32 to vector<8x1xi32>
    %460 = arith.cmpi slt, %459, %8 : vector<8x1xi32>
    %461 = arith.extui %460 : vector<8x1xi1> to vector<8x1xi32>
    %462 = arith.sitofp %461 : vector<8x1xi32> to vector<8x1xf32>
    %463 = vector.broadcast %462 : vector<8x1xf32> to vector<8x200xf32>
    %464 = arith.mulf %463, %458 : vector<8x200xf32>
    %465 = arith.addf %427, %464 : vector<8x200xf32>
    %c12_i32 = arith.constant 12 : i32
    %c8_i32_84 = arith.constant 8 : i32
    %466 = arith.muli %c12_i32, %c8_i32_84 : i32
    %467 = tpu.assume_multiple %466, 8 : i32
    %468 = arith.index_cast %467 : i32 to index
    %c0_85 = arith.constant 0 : index
    %469 = vector.load %arg12[%468, %c0_85] : memref<128x800xf32, #tpu.memory_space<vmem>>, vector<8x800xf32>
    %cst_86 = arith.constant dense<0.000000e+00> : vector<8x800xf32>
    %470 = tpu.matmul %458, %7, %cst_86 {dimension_numbers = #tpu.dot_dimension_numbers<[1], [0], [0], [1], [0, 0, 1, 1], [], []>} : vector<8x200xf32>, vector<200x800xf32>, vector<8x800xf32> -> vector<8x800xf32>
    %471 = arith.addf %469, %470 : vector<8x800xf32>
    %472 = vector.extract_strided_slice %471 {offsets = [0, 0], sizes = [8, 200], strides = [1, 1]} : vector<8x800xf32> to vector<8x200xf32>
    %473 = arith.negf %472 : vector<8x200xf32>
    %474 = math.exp %473 : vector<8x200xf32>
    %cst_87 = arith.constant 1.000000e+00 : f32
    %475 = vector.broadcast %cst_87 : f32 to vector<8x200xf32>
    %476 = arith.addf %475, %474 : vector<8x200xf32>
    %477 = arith.divf %475, %476 : vector<8x200xf32>
    %478 = vector.extract_strided_slice %471 {offsets = [0, 200], sizes = [8, 200], strides = [1, 1]} : vector<8x800xf32> to vector<8x200xf32>
    %479 = arith.negf %478 : vector<8x200xf32>
    %480 = math.exp %479 : vector<8x200xf32>
    %cst_88 = arith.constant 1.000000e+00 : f32
    %481 = vector.broadcast %cst_88 : f32 to vector<8x200xf32>
    %482 = arith.addf %481, %480 : vector<8x200xf32>
    %483 = arith.divf %481, %482 : vector<8x200xf32>
    %484 = vector.extract_strided_slice %471 {offsets = [0, 400], sizes = [8, 200], strides = [1, 1]} : vector<8x800xf32> to vector<8x200xf32>
    %485 = math.tanh %484 : vector<8x200xf32>
    %486 = vector.extract_strided_slice %471 {offsets = [0, 600], sizes = [8, 200], strides = [1, 1]} : vector<8x800xf32> to vector<8x200xf32>
    %487 = arith.negf %486 : vector<8x200xf32>
    %488 = math.exp %487 : vector<8x200xf32>
    %cst_89 = arith.constant 1.000000e+00 : f32
    %489 = vector.broadcast %cst_89 : f32 to vector<8x200xf32>
    %490 = arith.addf %489, %488 : vector<8x200xf32>
    %491 = arith.divf %489, %490 : vector<8x200xf32>
    %492 = arith.mulf %483, %456 : vector<8x200xf32>
    %493 = arith.mulf %477, %485 : vector<8x200xf32>
    %494 = arith.addf %492, %493 : vector<8x200xf32>
    %495 = math.tanh %494 : vector<8x200xf32>
    %496 = arith.mulf %491, %495 : vector<8x200xf32>
    %497 = vector.broadcast %c12_i32 : i32 to vector<8x1xi32>
    %498 = arith.cmpi slt, %497, %8 : vector<8x1xi32>
    %499 = arith.extui %498 : vector<8x1xi1> to vector<8x1xi32>
    %500 = arith.sitofp %499 : vector<8x1xi32> to vector<8x1xf32>
    %501 = vector.broadcast %500 : vector<8x1xf32> to vector<8x200xf32>
    %502 = arith.mulf %501, %496 : vector<8x200xf32>
    %503 = arith.addf %465, %502 : vector<8x200xf32>
    %c13_i32 = arith.constant 13 : i32
    %c8_i32_90 = arith.constant 8 : i32
    %504 = arith.muli %c13_i32, %c8_i32_90 : i32
    %505 = tpu.assume_multiple %504, 8 : i32
    %506 = arith.index_cast %505 : i32 to index
    %c0_91 = arith.constant 0 : index
    %507 = vector.load %arg12[%506, %c0_91] : memref<128x800xf32, #tpu.memory_space<vmem>>, vector<8x800xf32>
    %cst_92 = arith.constant dense<0.000000e+00> : vector<8x800xf32>
    %508 = tpu.matmul %496, %7, %cst_92 {dimension_numbers = #tpu.dot_dimension_numbers<[1], [0], [0], [1], [0, 0, 1, 1], [], []>} : vector<8x200xf32>, vector<200x800xf32>, vector<8x800xf32> -> vector<8x800xf32>
    %509 = arith.addf %507, %508 : vector<8x800xf32>
    %510 = vector.extract_strided_slice %509 {offsets = [0, 0], sizes = [8, 200], strides = [1, 1]} : vector<8x800xf32> to vector<8x200xf32>
    %511 = arith.negf %510 : vector<8x200xf32>
    %512 = math.exp %511 : vector<8x200xf32>
    %cst_93 = arith.constant 1.000000e+00 : f32
    %513 = vector.broadcast %cst_93 : f32 to vector<8x200xf32>
    %514 = arith.addf %513, %512 : vector<8x200xf32>
    %515 = arith.divf %513, %514 : vector<8x200xf32>
    %516 = vector.extract_strided_slice %509 {offsets = [0, 200], sizes = [8, 200], strides = [1, 1]} : vector<8x800xf32> to vector<8x200xf32>
    %517 = arith.negf %516 : vector<8x200xf32>
    %518 = math.exp %517 : vector<8x200xf32>
    %cst_94 = arith.constant 1.000000e+00 : f32
    %519 = vector.broadcast %cst_94 : f32 to vector<8x200xf32>
    %520 = arith.addf %519, %518 : vector<8x200xf32>
    %521 = arith.divf %519, %520 : vector<8x200xf32>
    %522 = vector.extract_strided_slice %509 {offsets = [0, 400], sizes = [8, 200], strides = [1, 1]} : vector<8x800xf32> to vector<8x200xf32>
    %523 = math.tanh %522 : vector<8x200xf32>
    %524 = vector.extract_strided_slice %509 {offsets = [0, 600], sizes = [8, 200], strides = [1, 1]} : vector<8x800xf32> to vector<8x200xf32>
    %525 = arith.negf %524 : vector<8x200xf32>
    %526 = math.exp %525 : vector<8x200xf32>
    %cst_95 = arith.constant 1.000000e+00 : f32
    %527 = vector.broadcast %cst_95 : f32 to vector<8x200xf32>
    %528 = arith.addf %527, %526 : vector<8x200xf32>
    %529 = arith.divf %527, %528 : vector<8x200xf32>
    %530 = arith.mulf %521, %494 : vector<8x200xf32>
    %531 = arith.mulf %515, %523 : vector<8x200xf32>
    %532 = arith.addf %530, %531 : vector<8x200xf32>
    %533 = math.tanh %532 : vector<8x200xf32>
    %534 = arith.mulf %529, %533 : vector<8x200xf32>
    %535 = vector.broadcast %c13_i32 : i32 to vector<8x1xi32>
    %536 = arith.cmpi slt, %535, %8 : vector<8x1xi32>
    %537 = arith.extui %536 : vector<8x1xi1> to vector<8x1xi32>
    %538 = arith.sitofp %537 : vector<8x1xi32> to vector<8x1xf32>
    %539 = vector.broadcast %538 : vector<8x1xf32> to vector<8x200xf32>
    %540 = arith.mulf %539, %534 : vector<8x200xf32>
    %541 = arith.addf %503, %540 : vector<8x200xf32>
    %c14_i32 = arith.constant 14 : i32
    %c8_i32_96 = arith.constant 8 : i32
    %542 = arith.muli %c14_i32, %c8_i32_96 : i32
    %543 = tpu.assume_multiple %542, 8 : i32
    %544 = arith.index_cast %543 : i32 to index
    %c0_97 = arith.constant 0 : index
    %545 = vector.load %arg12[%544, %c0_97] : memref<128x800xf32, #tpu.memory_space<vmem>>, vector<8x800xf32>
    %cst_98 = arith.constant dense<0.000000e+00> : vector<8x800xf32>
    %546 = tpu.matmul %534, %7, %cst_98 {dimension_numbers = #tpu.dot_dimension_numbers<[1], [0], [0], [1], [0, 0, 1, 1], [], []>} : vector<8x200xf32>, vector<200x800xf32>, vector<8x800xf32> -> vector<8x800xf32>
    %547 = arith.addf %545, %546 : vector<8x800xf32>
    %548 = vector.extract_strided_slice %547 {offsets = [0, 0], sizes = [8, 200], strides = [1, 1]} : vector<8x800xf32> to vector<8x200xf32>
    %549 = arith.negf %548 : vector<8x200xf32>
    %550 = math.exp %549 : vector<8x200xf32>
    %cst_99 = arith.constant 1.000000e+00 : f32
    %551 = vector.broadcast %cst_99 : f32 to vector<8x200xf32>
    %552 = arith.addf %551, %550 : vector<8x200xf32>
    %553 = arith.divf %551, %552 : vector<8x200xf32>
    %554 = vector.extract_strided_slice %547 {offsets = [0, 200], sizes = [8, 200], strides = [1, 1]} : vector<8x800xf32> to vector<8x200xf32>
    %555 = arith.negf %554 : vector<8x200xf32>
    %556 = math.exp %555 : vector<8x200xf32>
    %cst_100 = arith.constant 1.000000e+00 : f32
    %557 = vector.broadcast %cst_100 : f32 to vector<8x200xf32>
    %558 = arith.addf %557, %556 : vector<8x200xf32>
    %559 = arith.divf %557, %558 : vector<8x200xf32>
    %560 = vector.extract_strided_slice %547 {offsets = [0, 400], sizes = [8, 200], strides = [1, 1]} : vector<8x800xf32> to vector<8x200xf32>
    %561 = math.tanh %560 : vector<8x200xf32>
    %562 = vector.extract_strided_slice %547 {offsets = [0, 600], sizes = [8, 200], strides = [1, 1]} : vector<8x800xf32> to vector<8x200xf32>
    %563 = arith.negf %562 : vector<8x200xf32>
    %564 = math.exp %563 : vector<8x200xf32>
    %cst_101 = arith.constant 1.000000e+00 : f32
    %565 = vector.broadcast %cst_101 : f32 to vector<8x200xf32>
    %566 = arith.addf %565, %564 : vector<8x200xf32>
    %567 = arith.divf %565, %566 : vector<8x200xf32>
    %568 = arith.mulf %559, %532 : vector<8x200xf32>
    %569 = arith.mulf %553, %561 : vector<8x200xf32>
    %570 = arith.addf %568, %569 : vector<8x200xf32>
    %571 = math.tanh %570 : vector<8x200xf32>
    %572 = arith.mulf %567, %571 : vector<8x200xf32>
    %573 = vector.broadcast %c14_i32 : i32 to vector<8x1xi32>
    %574 = arith.cmpi slt, %573, %8 : vector<8x1xi32>
    %575 = arith.extui %574 : vector<8x1xi1> to vector<8x1xi32>
    %576 = arith.sitofp %575 : vector<8x1xi32> to vector<8x1xf32>
    %577 = vector.broadcast %576 : vector<8x1xf32> to vector<8x200xf32>
    %578 = arith.mulf %577, %572 : vector<8x200xf32>
    %579 = arith.addf %541, %578 : vector<8x200xf32>
    %c15_i32 = arith.constant 15 : i32
    %c8_i32_102 = arith.constant 8 : i32
    %580 = arith.muli %c15_i32, %c8_i32_102 : i32
    %581 = tpu.assume_multiple %580, 8 : i32
    %582 = arith.index_cast %581 : i32 to index
    %c0_103 = arith.constant 0 : index
    %583 = vector.load %arg12[%582, %c0_103] : memref<128x800xf32, #tpu.memory_space<vmem>>, vector<8x800xf32>
    %cst_104 = arith.constant dense<0.000000e+00> : vector<8x800xf32>
    %584 = tpu.matmul %572, %7, %cst_104 {dimension_numbers = #tpu.dot_dimension_numbers<[1], [0], [0], [1], [0, 0, 1, 1], [], []>} : vector<8x200xf32>, vector<200x800xf32>, vector<8x800xf32> -> vector<8x800xf32>
    %585 = arith.addf %583, %584 : vector<8x800xf32>
    %586 = vector.extract_strided_slice %585 {offsets = [0, 0], sizes = [8, 200], strides = [1, 1]} : vector<8x800xf32> to vector<8x200xf32>
    %587 = arith.negf %586 : vector<8x200xf32>
    %588 = math.exp %587 : vector<8x200xf32>
    %cst_105 = arith.constant 1.000000e+00 : f32
    %589 = vector.broadcast %cst_105 : f32 to vector<8x200xf32>
    %590 = arith.addf %589, %588 : vector<8x200xf32>
    %591 = arith.divf %589, %590 : vector<8x200xf32>
    %592 = vector.extract_strided_slice %585 {offsets = [0, 200], sizes = [8, 200], strides = [1, 1]} : vector<8x800xf32> to vector<8x200xf32>
    %593 = arith.negf %592 : vector<8x200xf32>
    %594 = math.exp %593 : vector<8x200xf32>
    %cst_106 = arith.constant 1.000000e+00 : f32
    %595 = vector.broadcast %cst_106 : f32 to vector<8x200xf32>
    %596 = arith.addf %595, %594 : vector<8x200xf32>
    %597 = arith.divf %595, %596 : vector<8x200xf32>
    %598 = vector.extract_strided_slice %585 {offsets = [0, 400], sizes = [8, 200], strides = [1, 1]} : vector<8x800xf32> to vector<8x200xf32>
    %599 = math.tanh %598 : vector<8x200xf32>
    %600 = vector.extract_strided_slice %585 {offsets = [0, 600], sizes = [8, 200], strides = [1, 1]} : vector<8x800xf32> to vector<8x200xf32>
    %601 = arith.negf %600 : vector<8x200xf32>
    %602 = math.exp %601 : vector<8x200xf32>
    %cst_107 = arith.constant 1.000000e+00 : f32
    %603 = vector.broadcast %cst_107 : f32 to vector<8x200xf32>
    %604 = arith.addf %603, %602 : vector<8x200xf32>
    %605 = arith.divf %603, %604 : vector<8x200xf32>
    %606 = arith.mulf %597, %570 : vector<8x200xf32>
    %607 = arith.mulf %591, %599 : vector<8x200xf32>
    %608 = arith.addf %606, %607 : vector<8x200xf32>
    %609 = math.tanh %608 : vector<8x200xf32>
    %610 = arith.mulf %605, %609 : vector<8x200xf32>
    %611 = vector.broadcast %c15_i32 : i32 to vector<8x1xi32>
    %612 = arith.cmpi slt, %611, %8 : vector<8x1xi32>
    %613 = arith.extui %612 : vector<8x1xi1> to vector<8x1xi32>
    %614 = arith.sitofp %613 : vector<8x1xi32> to vector<8x1xf32>
    %615 = vector.broadcast %614 : vector<8x1xf32> to vector<8x200xf32>
    %616 = arith.mulf %615, %610 : vector<8x200xf32>
    %617 = arith.addf %579, %616 : vector<8x200xf32>
    %c16_i32 = arith.constant 16 : i32
    %c0_108 = arith.constant 0 : index
    %c0_109 = arith.constant 0 : index
    %618 = vector.load %arg6[%c0_108, %c0_109] : memref<8x1xf32, #tpu.memory_space<vmem>>, vector<8x1xf32>
    %619 = vector.broadcast %618 : vector<8x1xf32> to vector<8x200xf32>
    %620 = arith.divf %617, %619 : vector<8x200xf32>
    %621 = vector.extract_strided_slice %620 {offsets = [0, 0], sizes = [2, 200], strides = [1, 1]} : vector<8x200xf32> to vector<2x200xf32>
    %622 = vector.extract_strided_slice %620 {offsets = [2, 0], sizes = [2, 200], strides = [1, 1]} : vector<8x200xf32> to vector<2x200xf32>
    %c0_110 = arith.constant 0 : index
    %c0_111 = arith.constant 0 : index
    %c0_112 = arith.constant 0 : index
    %623 = vector.load %arg7[%c0_110, %c0_111, %c0_112] : memref<4x200x200xf32, #tpu.memory_space<vmem>>, vector<1x200x200xf32>
    %624 = vector.shape_cast %623 : vector<1x200x200xf32> to vector<200x200xf32>
    %cst_113 = arith.constant dense<0.000000e+00> : vector<2x200xf32>
    %625 = tpu.matmul %622, %624, %cst_113 {dimension_numbers = #tpu.dot_dimension_numbers<[1], [0], [0], [1], [0, 0, 1, 1], [], []>} : vector<2x200xf32>, vector<200x200xf32>, vector<2x200xf32> -> vector<2x200xf32>
    %c0_114 = arith.constant 0 : index
    %c0_115 = arith.constant 0 : index
    %c0_116 = arith.constant 0 : index
    %626 = vector.load %arg8[%c0_114, %c0_115, %c0_116] : memref<4x1x200xf32, #tpu.memory_space<vmem>>, vector<1x1x200xf32>
    %627 = vector.shape_cast %626 : vector<1x1x200xf32> to vector<1x200xf32>
    %628 = vector.broadcast %627 : vector<1x200xf32> to vector<2x200xf32>
    %629 = arith.addf %625, %628 : vector<2x200xf32>
    %c1 = arith.constant 1 : index
    %c0_117 = arith.constant 0 : index
    %c0_118 = arith.constant 0 : index
    %630 = vector.load %arg7[%c1, %c0_117, %c0_118] : memref<4x200x200xf32, #tpu.memory_space<vmem>>, vector<1x200x200xf32>
    %631 = vector.shape_cast %630 : vector<1x200x200xf32> to vector<200x200xf32>
    %cst_119 = arith.constant dense<0.000000e+00> : vector<2x200xf32>
    %632 = tpu.matmul %629, %631, %cst_119 {dimension_numbers = #tpu.dot_dimension_numbers<[1], [0], [0], [1], [0, 0, 1, 1], [], []>} : vector<2x200xf32>, vector<200x200xf32>, vector<2x200xf32> -> vector<2x200xf32>
    %c1_120 = arith.constant 1 : index
    %c0_121 = arith.constant 0 : index
    %c0_122 = arith.constant 0 : index
    %633 = vector.load %arg8[%c1_120, %c0_121, %c0_122] : memref<4x1x200xf32, #tpu.memory_space<vmem>>, vector<1x1x200xf32>
    %634 = vector.shape_cast %633 : vector<1x1x200xf32> to vector<1x200xf32>
    %635 = vector.broadcast %634 : vector<1x200xf32> to vector<2x200xf32>
    %636 = arith.addf %632, %635 : vector<2x200xf32>
    %c2 = arith.constant 2 : index
    %c0_123 = arith.constant 0 : index
    %c0_124 = arith.constant 0 : index
    %637 = vector.load %arg7[%c2, %c0_123, %c0_124] : memref<4x200x200xf32, #tpu.memory_space<vmem>>, vector<1x200x200xf32>
    %638 = vector.shape_cast %637 : vector<1x200x200xf32> to vector<200x200xf32>
    %cst_125 = arith.constant dense<0.000000e+00> : vector<2x200xf32>
    %639 = tpu.matmul %621, %638, %cst_125 {dimension_numbers = #tpu.dot_dimension_numbers<[1], [0], [0], [1], [0, 0, 1, 1], [], []>} : vector<2x200xf32>, vector<200x200xf32>, vector<2x200xf32> -> vector<2x200xf32>
    %c2_126 = arith.constant 2 : index
    %c0_127 = arith.constant 0 : index
    %c0_128 = arith.constant 0 : index
    %640 = vector.load %arg8[%c2_126, %c0_127, %c0_128] : memref<4x1x200xf32, #tpu.memory_space<vmem>>, vector<1x1x200xf32>
    %641 = vector.shape_cast %640 : vector<1x1x200xf32> to vector<1x200xf32>
    %642 = vector.broadcast %641 : vector<1x200xf32> to vector<2x200xf32>
    %643 = arith.addf %639, %642 : vector<2x200xf32>
    %c3 = arith.constant 3 : index
    %c0_129 = arith.constant 0 : index
    %c0_130 = arith.constant 0 : index
    %644 = vector.load %arg7[%c3, %c0_129, %c0_130] : memref<4x200x200xf32, #tpu.memory_space<vmem>>, vector<1x200x200xf32>
    %645 = vector.shape_cast %644 : vector<1x200x200xf32> to vector<200x200xf32>
    %cst_131 = arith.constant dense<0.000000e+00> : vector<2x200xf32>
    %646 = tpu.matmul %643, %645, %cst_131 {dimension_numbers = #tpu.dot_dimension_numbers<[1], [0], [0], [1], [0, 0, 1, 1], [], []>} : vector<2x200xf32>, vector<200x200xf32>, vector<2x200xf32> -> vector<2x200xf32>
    %c3_132 = arith.constant 3 : index
    %c0_133 = arith.constant 0 : index
    %c0_134 = arith.constant 0 : index
    %647 = vector.load %arg8[%c3_132, %c0_133, %c0_134] : memref<4x1x200xf32, #tpu.memory_space<vmem>>, vector<1x1x200xf32>
    %648 = vector.shape_cast %647 : vector<1x1x200xf32> to vector<1x200xf32>
    %649 = vector.broadcast %648 : vector<1x200xf32> to vector<2x200xf32>
    %650 = arith.addf %646, %649 : vector<2x200xf32>
    %c0_135 = arith.constant 0 : index
    %c0_136 = arith.constant 0 : index
    %c0_137 = arith.constant 0 : index
    %651 = vector.load %arg9[%c0_135, %c0_136, %c0_137] : memref<2x200x3xf32, #tpu.memory_space<vmem>>, vector<1x200x3xf32>
    %652 = vector.shape_cast %651 : vector<1x200x3xf32> to vector<200x3xf32>
    %cst_138 = arith.constant dense<0.000000e+00> : vector<2x3xf32>
    %653 = tpu.matmul %636, %652, %cst_138 {dimension_numbers = #tpu.dot_dimension_numbers<[1], [0], [0], [1], [0, 0, 1, 1], [], []>} : vector<2x200xf32>, vector<200x3xf32>, vector<2x3xf32> -> vector<2x3xf32>
    %c1_139 = arith.constant 1 : index
    %c0_140 = arith.constant 0 : index
    %c0_141 = arith.constant 0 : index
    %654 = vector.load %arg9[%c1_139, %c0_140, %c0_141] : memref<2x200x3xf32, #tpu.memory_space<vmem>>, vector<1x200x3xf32>
    %655 = vector.shape_cast %654 : vector<1x200x3xf32> to vector<200x3xf32>
    %cst_142 = arith.constant dense<0.000000e+00> : vector<2x3xf32>
    %656 = tpu.matmul %650, %655, %cst_142 {dimension_numbers = #tpu.dot_dimension_numbers<[1], [0], [0], [1], [0, 0, 1, 1], [], []>} : vector<2x200xf32>, vector<200x3xf32>, vector<2x3xf32> -> vector<2x3xf32>
    %657 = arith.addf %653, %656 : vector<2x3xf32>
    %c0_143 = arith.constant 0 : index
    %c0_144 = arith.constant 0 : index
    %658 = vector.load %arg10[%c0_143, %c0_144] : memref<1x3xf32, #tpu.memory_space<vmem>>, vector<1x3xf32>
    %659 = vector.broadcast %658 : vector<1x3xf32> to vector<2x3xf32>
    %660 = arith.addf %657, %659 : vector<2x3xf32>
    %c0_145 = arith.constant 0 : index
    %c0_146 = arith.constant 0 : index
    %661 = vector.load %arg11[%c0_145, %c0_146] : memref<2x3xf32, #tpu.memory_space<vmem>>, vector<2x3xf32>
    tpu.vector_store %arg11[%c0_145, %c0_146], %660 {strides = array<i32>} : memref<2x3xf32, #tpu.memory_space<vmem>>, vector<2x3xf32>,
    return
  }
  func.func @transform_0(%arg0: i32) -> (i32, i32) {
    %c0_i32 = arith.constant 0 : i32
    %c0_i32_0 = arith.constant 0 : i32
    %c0_i32_1 = arith.constant 0 : i32
    return %c0_i32, %c0_i32_0 : i32, i32
  }
  func.func @transform_1(%arg0: i32) -> (i32, i32) {
    %c0_i32 = arith.constant 0 : i32
    %c0_i32_0 = arith.constant 0 : i32
    %c0_i32_1 = arith.constant 0 : i32
    return %c0_i32, %c0_i32_0 : i32, i32
  }
  func.func @transform_2(%arg0: i32) -> (i32, i32) {
    %c0_i32 = arith.constant 0 : i32
    %c0_i32_0 = arith.constant 0 : i32
    %c0_i32_1 = arith.constant 0 : i32
    return %c0_i32, %c0_i32_0 : i32, i32
  }
  func.func @transform_3(%arg0: i32) -> (i32, i32) {
    %c0_i32 = arith.constant 0 : i32
    %c0_i32_0 = arith.constant 0 : i32
    %c0_i32_1 = arith.constant 0 : i32
    return %c0_i32, %c0_i32_0 : i32, i32
  }
  func.func @transform_4(%arg0: i32) -> (i32, i32) {
    %c0_i32 = arith.constant 0 : i32
    %c0_i32_0 = arith.constant 0 : i32
    %c0_i32_1 = arith.constant 0 : i32
    return %c0_i32, %c0_i32_0 : i32, i32
  }
  func.func @transform_5(%arg0: i32) -> (i32, i32) {
    %c0_i32 = arith.constant 0 : i32
    %c0_i32_0 = arith.constant 0 : i32
    %c0_i32_1 = arith.constant 0 : i32
    return %c0_i32, %c0_i32_0 : i32, i32
  }
  func.func @transform_6(%arg0: i32) -> (i32, i32, i32) {
    %c0_i32 = arith.constant 0 : i32
    %c0_i32_0 = arith.constant 0 : i32
    %c0_i32_1 = arith.constant 0 : i32
    %c0_i32_2 = arith.constant 0 : i32
    return %c0_i32, %c0_i32_0, %c0_i32_1 : i32, i32, i32
  }
  func.func @transform_7(%arg0: i32) -> (i32, i32, i32) {
    %c0_i32 = arith.constant 0 : i32
    %c0_i32_0 = arith.constant 0 : i32
    %c0_i32_1 = arith.constant 0 : i32
    %c0_i32_2 = arith.constant 0 : i32
    return %c0_i32, %c0_i32_0, %c0_i32_1 : i32, i32, i32
  }
  func.func @transform_8(%arg0: i32) -> (i32, i32, i32) {
    %c0_i32 = arith.constant 0 : i32
    %c0_i32_0 = arith.constant 0 : i32
    %c0_i32_1 = arith.constant 0 : i32
    %c0_i32_2 = arith.constant 0 : i32
    return %c0_i32, %c0_i32_0, %c0_i32_1 : i32, i32, i32
  }
  func.func @transform_9(%arg0: i32) -> (i32, i32) {
    %c0_i32 = arith.constant 0 : i32
    %c0_i32_0 = arith.constant 0 : i32
    %c0_i32_1 = arith.constant 0 : i32
    return %c0_i32, %c0_i32_0 : i32, i32
  }
  func.func @transform_10(%arg0: i32) -> (i32, i32) {
    %c0_i32 = arith.constant 0 : i32
    %c0_i32_0 = arith.constant 0 : i32
    %c0_i32_1 = arith.constant 0 : i32
    return %c0_i32, %c0_i32_0 : i32, i32
  }
}

</mosaic_0001>

<bundles_post_ra>
// kernel: ian_forward.1
= control target key start
LH: loop header
LB: loop body
LE: loop exit
PB: predicated region body
PF: predicated region fallthrough
CT: control target
= control target key end

     0   :  { %15 = vsyncpa [#allocation4], 0  ;;  %s16885_s0 = inlined_call_operand.vmem [shape: f32[128,100], index: 0, kind: input, shape index: {}]   ;;  %s16886_s1 = inlined_call_operand.vmem [shape: f32[100,800], index: 1, kind: input, shape index: {}]   ;;  %s16887_s2 = inlined_call_operand.hbm [shape: f32[200,800], index: 2, kind: input, shape index: {}]   ;;  %s16888_s3 = inlined_call_operand.vmem [shape: f32[1,800], index: 3, kind: input, shape index: {}]   ;;  %s16889_s4 = inlined_call_operand.vmem [shape: s32[8,1], index: 4, kind: input, shape index: {}]   ;;  %s16890_s5 = inlined_call_operand.vmem [shape: f32[8,1], index: 5, kind: input, shape index: {}]   ;;  %s16891_s6 = inlined_call_operand.hbm [shape: f32[4,200,200], index: 6, kind: input, shape index: {}]   ;;  %s16892_s7 = inlined_call_operand.vmem [shape: f32[4,1,200], index: 7, kind: input, shape index: {}]   ;;  %s16893_s8 = inlined_call_operand.vmem [shape: f32[2,200,3], index: 8, kind: input, shape index: {}]   ;;  %s16894_s9 = inlined_call_operand.vmem [shape: f32[1,3], index: 9, kind: input, shape index: {}]   ;;  %s16895_s10 = inlined_call_operand.hbm [shape: f32[2,3], index: 10, kind: output, shape index: {}]  }
   0x1   :  { %16 = vsyncpa [#allocation7], 0 }
   0x2   :  { %17 = vsyncpa [#allocation5], 0  ;;  %s13100_s13 = smov [#allocation3]   ;;  %s13028_s17 = scalar_lea.hbm %s16887_s2, 22400 }
   0x3   :  { %s27_s14 = sshll.u32 %s13100_s13, 4  ;;  %p13029_p0 = scmp.ne.s32.totalorder %s16887_s2, %s13028_s17  ;;  %s28_s14 = int_to_ptr.vmem [resolvable:$true] %s27_s14 }
   0x4   :  { %p13032_p1 = scmp.lt.u32.totalorder %s13028_s17, %s16887_s2 }
   0x6   :  { %p13034_p2 = pnand %p13032_p1, %p13029_p0 }
   0x8   :  { %13037 = shalt.err (!%p13034_p2)
}
   0x9   :  { %s13038_s22 = scalar_lea.vmem %s28_s14, 22400  ;;  %p13043_p4 = scmp.lt.s32.totalorder %s28_s14, %s28_s14 }
   0xa   :  { %p13039_p3 = scmp.ne.s32.totalorder %s28_s14, %s13038_s22  ;;  %p13044_p5 = scmp.lt.s32.totalorder %s13038_s22, %s13038_s22 }
   0xc   :  { %p13045_p6 = por %p13044_p5, %p13043_p4 }
   0xe   :  { %p13046_p7 = pnand %p13045_p6, %p13039_p3 }
  0x10   :  { %13049 = shalt.err (!%p13046_p7)
}
  0x11   :  { %s13101_s23 = smov 896   ;;  %s13102_s24 = smov 56  }
  0x12   :  { %33 = dma.hbm_to_vmem [thread:$0]  %s16887_s2, 22400, %s28_s14, [#allocation4], %s13101_s23, %s13101_s23, %s13102_s24  }
  0x13   :  { %s13103_s27 = smov [#allocation6]   ;;  %s13050_s11 = scalar_lea.hbm %s16891_s6, 25600 }
  0x14   :  { %s45_s28 = sshll.u32 %s13103_s27, 4  ;;  %p13051_p8 = scmp.ne.s32.totalorder %s16891_s6, %s13050_s11  ;;  %s46_s28 = int_to_ptr.vmem [resolvable:$true] %s45_s28 }
  0x15   :  { %p13054_p9 = scmp.lt.u32.totalorder %s13050_s11, %s16891_s6 }
  0x17   :  { %p13056_p10 = pnand %p13054_p9, %p13051_p8 }
  0x19   :  { %13059 = shalt.err (!%p13056_p10)
}
  0x1a   :  { %s13060_s17 = scalar_lea.vmem %s46_s28, 25600  ;;  %p13065_p12 = scmp.lt.s32.totalorder %s46_s28, %s46_s28 }
  0x1b   :  { %p13061_p11 = scmp.ne.s32.totalorder %s46_s28, %s13060_s17  ;;  %p13066_p13 = scmp.lt.s32.totalorder %s13060_s17, %s13060_s17 }
  0x1d   :  { %p13067_p0 = por %p13066_p13, %p13065_p12 }
  0x1f   :  { %p13068_p1 = pnand %p13067_p0, %p13061_p11 }
  0x21   :  { %13071 = shalt.err (!%p13068_p1)
}
  0x22   :  { %s13104_s2 = smov 256   ;;  %s13105_s14 = smov 16  }
  0x23   :  { %51 = dma.hbm_to_vmem [thread:$0]  %s16891_s6, 25600, %s46_s28, [#allocation7], %s13104_s2, %s13104_s2, %s13105_s14  }
  0x24   :  { %13094 = dma.done.wait [#allocation4], 22400  }
  0x25   :  { %13095 = vsyncadd [#allocation4], 4294944896 }
  0x26   :  { %13096 = dma.done.wait [#allocation7], 25600  }
  0x27   :  { %13097 = vsyncadd [#allocation7], 4294941696  ;;  %v16896_v0 = vmov 0.0   ;;  %v81_v1 = vld [vmem:[%s16886_s1 + $0x8] sm:$0xff]  ;;  %v88_v2 = vld [vmem:[%s16886_s1 + $0x40] sm:$0xff]  ;;  %vm257_vm0 = vcmask 1043456  }
  0x28   :  { %343 = vmatprep.mubr.f32.mxu0 %v16896_v0  ;;  %504 = vmatprep.mubr.f32.mxu1 %v16896_v0  ;;  %v83_v3 = vld [vmem:[%s16886_s1 + $0x18] sm:$0xff]  ;;  %v9086_v4 = vpack.c.bf16 %v88_v2, %v81_v1  ;;  %v90_v5 = vld [vmem:[%s16886_s1 + $0x50] sm:$0xff]  ;;  %v80_v6 = vld [vmem:[%s16886_s1] sm:$0xff]  ;;  %vm208_vm1 = vcmask 818176   ;;  %vm913_vm2 = vcmask 261120   ;;  %vm1553_vm3 = vcmask 916480  }
  0x29   :  { %v87_v7 = vld [vmem:[%s16886_s1 + $0x38] sm:$0xff]  ;;  %v9110_v8 = vpack.c.bf16 %v90_v5, %v83_v3  ;;  %v82_v10 = vld [vmem:[%s16886_s1 + $0x10] sm:$0xff]  ;;  %v89_v11 = vld [vmem:[%s16886_s1 + $0x48] sm:$0xff]  ;;  %s13109_s24 = smov 72   ;;  %vm1206_vm4 = vcmask 588800   ;;  %vm1584_vm5 = vcmask 130048  }
  0x2a   :  { %v9088_v9 = vpack.c.bf16 %v87_v7, %v80_v6  ;;  %v95_v12 = vld [vmem:[%s16886_s1 + $0x78] sm:$0xff]  ;;  %9087 = vmatprep.subr.bf16.mxu0 %v9086_v4  ;;  %v9112_v13 = vpack.c.bf16 %v89_v11, %v82_v10  ;;  %v102_v14 = vld [vmem:[%s16886_s1 + $0xb0] sm:$0xff]  ;;  %v97_v15 = vld [vmem:[%s16886_s1 + $0x88] sm:$0xff]  ;;  %s13110_s25 = smov 40   ;;  %vm1626_vm6 = vcmask 326656  }
  0x2b   :  { %v104_v16 = vld [vmem:[%s16886_s1 + $0xc0] sm:$0xff]  ;;  %9111 = vmatprep.subr.bf16.mxu1 %v9110_v8  ;;  %v9090_v17 = vpack.c.bf16 %v102_v14, %v95_v12  ;;  %v94_v19 = vld [vmem:[%s16886_s1 + $0x70] sm:$0xff]  ;;  %v101_v20 = vld [vmem:[%s16886_s1 + $0xa8] sm:$0xff] }
  0x2c   :  { %9089 = vmatpush1.bf16.msra.mxu0 %v9088_v9  ;;  %v9114_v18 = vpack.c.bf16 %v104_v16, %v97_v15  ;;  %v96_v21 = vld [vmem:[%s16886_s1 + $0x80] sm:$0xff]  ;;  %9113 = vmatpush1.bf16.msra.mxu1 %v9112_v13  ;;  %v9092_v22 = vpack.c.bf16 %v101_v20, %v94_v19  ;;  %v103_v23 = vld [vmem:[%s16886_s1 + $0xb8] sm:$0xff]  ;;  %v109_v24 = vld [vmem:[%s16886_s1 + $0xe8] sm:$0xff] }
  0x2d   :  { %v116_v25 = vld [vmem:[%s16886_s1 + $0x120] sm:$0xff]  ;;  %9091 = vmatprep.subr.bf16.mxu0 %v9090_v17  ;;  %v9116_v26 = vpack.c.bf16 %v103_v23, %v96_v21  ;;  %v111_v28 = vld [vmem:[%s16886_s1 + $0xf8] sm:$0xff]  ;;  %v118_v29 = vld [vmem:[%s16886_s1 + $0x130] sm:$0xff] }
  0x2e   :  { %9115 = vmatprep.subr.bf16.mxu1 %v9114_v18  ;;  %v9094_v27 = vpack.c.bf16 %v116_v25, %v109_v24  ;;  %v108_v30 = vld [vmem:[%s16886_s1 + $0xe0] sm:$0xff]  ;;  %v9118_v31 = vpack.c.bf16 %v118_v29, %v111_v28  ;;  %v115_v32 = vld [vmem:[%s16886_s1 + $0x118] sm:$0xff]  ;;  %v110_v33 = vld [vmem:[%s16886_s1 + $0xf0] sm:$0xff] }
  0x2f   :  { %v117_v34 = vld [vmem:[%s16886_s1 + $0x128] sm:$0xff]  ;;  %v9096_v35 = vpack.c.bf16 %v115_v32, %v108_v30  ;;  %v123_v36 = vld [vmem:[%s16886_s1 + $0x158] sm:$0xff]  ;;  %v130_v37 = vld [vmem:[%s16886_s1 + $0x190] sm:$0xff] }
  0x30   :  { %9093 = vmatpush1.bf16.msra.mxu0 %v9092_v22  ;;  %v125_v38 = vld [vmem:[%s16886_s1 + $0x168] sm:$0xff]  ;;  %9117 = vmatpush1.bf16.msra.mxu1 %v9116_v26  ;;  %v9120_v39 = vpack.c.bf16 %v117_v34, %v110_v33  ;;  %v9098_v40 = vpack.c.bf16 %v130_v37, %v123_v36  ;;  %v132_v41 = vld [vmem:[%s16886_s1 + $0x1a0] sm:$0xff]  ;;  %v122_v42 = vld [vmem:[%s16886_s1 + $0x150] sm:$0xff] }
  0x31   :  { %9095 = vmatprep.subr.bf16.mxu0 %v9094_v27  ;;  %v129_v43 = vld [vmem:[%s16886_s1 + $0x188] sm:$0xff]  ;;  %9119 = vmatprep.subr.bf16.mxu1 %v9118_v31  ;;  %v9122_v44 = vpack.c.bf16 %v132_v41, %v125_v38  ;;  %v124_v45 = vld [vmem:[%s16886_s1 + $0x160] sm:$0xff]  ;;  %v131_v46 = vld [vmem:[%s16886_s1 + $0x198] sm:$0xff] }
  0x32   :  { %v137_v47 = vld [vmem:[%s16886_s1 + $0x1c8] sm:$0xff]  ;;  %v144_v48 = vld [vmem:[%s16886_s1 + $0x200] sm:$0xff]  ;;  %v139_v49 = vld [vmem:[%s16886_s1 + $0x1d8] sm:$0xff]  ;;  %v9100_v51 = vpack.c.bf16 %v129_v43, %v122_v42  ;;  %v9124_v52 = vpack.c.bf16 %v131_v46, %v124_v45 }
  0x33   :  { %v146_v50 = vld [vmem:[%s16886_s1 + $0x210] sm:$0xff]  ;;  %v9102_v53 = vpack.c.bf16 %v144_v48, %v137_v47  ;;  %v136_v54 = vld [vmem:[%s16886_s1 + $0x1c0] sm:$0xff]  ;;  %v143_v55 = vld [vmem:[%s16886_s1 + $0x1f8] sm:$0xff] }
  0x34   :  { %9097 = vmatpush1.bf16.msra.mxu0 %v9096_v35  ;;  %9121 = vmatpush1.bf16.msra.mxu1 %v9120_v39  ;;  %v138_v56 = vld [vmem:[%s16886_s1 + $0x1d0] sm:$0xff]  ;;  %v9126_v57 = vpack.c.bf16 %v146_v50, %v139_v49  ;;  %v145_v58 = vld [vmem:[%s16886_s1 + $0x208] sm:$0xff]  ;;  %v151_v59 = vld [vmem:[%s16886_s1 + $0x238] sm:$0xff]  ;;  %v9104_v63 = vpack.c.bf16 %v143_v55, %v136_v54 }
  0x35   :  { %9099 = vmatprep.subr.bf16.mxu0 %v9098_v40  ;;  %9123 = vmatprep.subr.bf16.mxu1 %v9122_v44  ;;  %v158_v60 = vld [vmem:[%s16886_s1 + $0x270] sm:$0xff]  ;;  %v153_v61 = vld [vmem:[%s16886_s1 + $0x248] sm:$0xff]  ;;  %v160_v62 = vld [vmem:[%s16886_s1 + $0x280] sm:$0xff]  ;;  %v9128_v1 = vpack.c.bf16 %v145_v58, %v138_v56 }
  0x36   :  { %v9106_v2 = vpack.c.bf16 %v158_v60, %v151_v59  ;;  %v150_v3 = vld [vmem:[%s16886_s1 + $0x230] sm:$0xff]  ;;  %v157_v4 = vld [vmem:[%s16886_s1 + $0x268] sm:$0xff]  ;;  %v9130_v5 = vpack.c.bf16 %v160_v62, %v153_v61  ;;  %v152_v6 = vld [vmem:[%s16886_s1 + $0x240] sm:$0xff] }
  0x37   :  { %v159_v7 = vld [vmem:[%s16886_s1 + $0x278] sm:$0xff]  ;;  %v9108_v8 = vpack.c.bf16 %v157_v4, %v150_v3  ;;  %v165_v10 = vld [vmem:[%s16886_s1 + $0x2a8] sm:$0xf]  ;;  %v86_v12 = vld [vmem:[%s16886_s1 + $0x30] sm:$0xff] }
  0x38   :  { %9101 = vmatpush1.bf16.msra.mxu0 %v9100_v51  ;;  %9125 = vmatpush1.bf16.msra.mxu1 %v9124_v52  ;;  %v9132_v9 = vpack.c.bf16 %v159_v7, %v152_v6  ;;  %v167_v11 = vld [vmem:[%s16886_s1 + $0x2b8] sm:$0xf]  ;;  %v93_v13 = vld [vmem:[%s16886_s1 + $0x68] sm:$0xff]  ;;  %v164_v14 = vld [vmem:[%s16886_s1 + $0x2a0] sm:$0xf] }
  0x39   :  { %9103 = vmatprep.subr.bf16.mxu0 %v9102_v53  ;;  %9127 = vmatprep.subr.bf16.mxu1 %v9126_v57  ;;  %v166_v15 = vld [vmem:[%s16886_s1 + $0x2b0] sm:$0xf]  ;;  %v100_v16 = vld [vmem:[%s16886_s1 + $0xa0] sm:$0xff]  ;;  %v107_v17 = vld [vmem:[%s16886_s1 + $0xd8] sm:$0xff]  ;;  %v9158_v19 = vpack.c.bf16 %v93_v13, %v86_v12 }
  0x3a   :  { %v13368_v18 = vld [vmem:[%s16885_s0] sm:$0xff]  ;;  %v85_v20 = vld [vmem:[%s16886_s1 + $0x28] sm:$0xff]  ;;  %v9162_v22 = vpack.c.bf16 %v107_v17, %v100_v16  ;;  %v114_v23 = vld [vmem:[%s16886_s1 + $0x110] sm:$0xff] }
  0x3b   :  { %v92_v21 = vld [vmem:[%s16886_s1 + $0x60] sm:$0xff]  ;;  %v121_v24 = vld [vmem:[%s16886_s1 + $0x148] sm:$0xff]  ;;  %v91_v27 = vld [vmem:[%s16886_s1 + $0x58] sm:$0xff] }
  0x3c   :  { %9105 = vmatpush1.bf16.msra.mxu0 %v9104_v63  ;;  %9129 = vmatpush1.bf16.msra.mxu1 %v9128_v1  ;;  %v9134_v25 = vpack.c.bf16 %v92_v21, %v85_v20  ;;  %v84_v26 = vld [vmem:[%s16886_s1 + $0x20] sm:$0xff]  ;;  %v13397_v28 = vld [vmem:[%s16885_s0 + $0x8] sm:$0xff]  ;;  %v99_v29 = vld [vmem:[%s16886_s1 + $0x98] sm:$0xff]  ;;  %v9166_v31 = vpack.c.bf16 %v121_v24, %v114_v23 }
  0x3d   :  { %9107 = vmatprep.subr.bf16.mxu0 %v9106_v2  ;;  %9131 = vmatprep.subr.bf16.mxu1 %v9130_v5  ;;  %v106_v30 = vld [vmem:[%s16886_s1 + $0xd0] sm:$0xff]  ;;  %v128_v32 = vld [vmem:[%s16886_s1 + $0x180] sm:$0xff]  ;;  %v9136_v33 = vpack.c.bf16 %v91_v27, %v84_v26  ;;  %v135_v34 = vld [vmem:[%s16886_s1 + $0x1b8] sm:$0xff] }
  0x3e   :  { %v9138_v35 = vpack.c.bf16 %v106_v30, %v99_v29  ;;  %v98_v36 = vld [vmem:[%s16886_s1 + $0x90] sm:$0xff]  ;;  %v105_v37 = vld [vmem:[%s16886_s1 + $0xc8] sm:$0xff]  ;;  %v120_v40 = vld [vmem:[%s16886_s1 + $0x140] sm:$0xff]  ;;  %v9170_v41 = vpack.c.bf16 %v135_v34, %v128_v32 }
  0x3f   :  { %v13427_v38 = vld [vmem:[%s16885_s0 + $0x10] sm:$0xff]  ;;  %v113_v39 = vld [vmem:[%s16886_s1 + $0x108] sm:$0xff]  ;;  %v9140_v43 = vpack.c.bf16 %v105_v37, %v98_v36  ;;  %v112_v46 = vld [vmem:[%s16886_s1 + $0x100] sm:$0xff] }
  0x40   :  { %9109 = vmatpush1.bf16.msra.mxu0 %v9108_v8  ;;  %9133 = vmatpush1.bf16.msra.mxu1 %v9132_v9  ;;  %v142_v42 = vld [vmem:[%s16886_s1 + $0x1f0] sm:$0xff]  ;;  %v149_v44 = vld [vmem:[%s16886_s1 + $0x228] sm:$0xff]  ;;  %v9142_v45 = vpack.c.bf16 %v120_v40, %v113_v39  ;;  %v119_v47 = vld [vmem:[%s16886_s1 + $0x138] sm:$0xff] }
  0x41   :  { %8713 = vmatprep.subr.msk.mxu0 %vm257_vm0, %v165_v10  ;;  %8731 = vmatprep.subr.msk.mxu1 %vm257_vm0, %v167_v11  ;;  %v13456_v48 = vld [vmem:[%s16885_s0 + $0x18] sm:$0xff]  ;;  %v134_v50 = vld [vmem:[%s16886_s1 + $0x1b0] sm:$0xff]  ;;  %v9174_v51 = vpack.c.bf16 %v149_v44, %v142_v42  ;;  %v156_v52 = vld [vmem:[%s16886_s1 + $0x260] sm:$0xff]  ;;  %v9144_v53 = vpack.c.bf16 %v119_v47, %v112_v46 }
  0x42   :  { %v127_v49 = vld [vmem:[%s16886_s1 + $0x178] sm:$0xff]  ;;  %v126_v56 = vld [vmem:[%s16886_s1 + $0x170] sm:$0xff]  ;;  %v133_v57 = vld [vmem:[%s16886_s1 + $0x1a8] sm:$0xff] }
  0x43   :  { %v163_v54 = vld [vmem:[%s16886_s1 + $0x298] sm:$0xff]  ;;  %v9146_v55 = vpack.c.bf16 %v134_v50, %v127_v49  ;;  %v13485_v58 = vld [vmem:[%s16885_s0 + $0x20] sm:$0xff]  ;;  %v141_v59 = vld [vmem:[%s16886_s1 + $0x1e8] sm:$0xff]  ;;  %v9148_v62 = vpack.c.bf16 %v133_v57, %v126_v56 }
  0x44   :  { %8714 = vmatpush1.msk.msra.mxu0 %vm257_vm0, %v164_v14  ;;  %8732 = vmatpush1.msk.msra.mxu1 %vm257_vm0, %v166_v15  ;;  %v148_v60 = vld [vmem:[%s16886_s1 + $0x220] sm:$0xff]  ;;  %v9178_v61 = vpack.c.bf16 %v163_v54, %v156_v52  ;;  %v147_v2 = vld [vmem:[%s16886_s1 + $0x218] sm:$0xff]  ;;  %v13508_v3 = vld [vmem:[%s16885_s0 + $0x28] sm:$0xff] }
  0x45   :  { %8715 = vmatmul.mubr.msk.f32.vlgmr.msra.gmra.mrb[0].mxu0 %vm208_vm1, %v13368_v18  ;;  %8733 = vmatmul.mubr.msk.f32.vlgmr.msra.gmra.mrb[0].mxu1 %vm208_vm1, %v13368_v18  ;;  %v9150_v63 = vpack.c.bf16 %v148_v60, %v141_v59  ;;  %v140_v1 = vld [vmem:[%s16886_s1 + $0x1e0] sm:$0xff]  ;;  %v155_v4 = vld [vmem:[%s16886_s1 + $0x258] sm:$0xff]  ;;  %v162_v5 = vld [vmem:[%s16886_s1 + $0x290] sm:$0xff] }
  0x46   :  { %9159 = vmatprep.subr.bf16.mxu1 %v9158_v19  ;;  %349 = vmatprep.mubr.f32.mxu0 %v16896_v0  ;;  %v9152_v6 = vpack.c.bf16 %v147_v2, %v140_v1  ;;  %v170_v7 = vld [vmem:[%s16886_s1 + $0x2d0] sm:$0xf]  ;;  %v9154_v9 = vpack.c.bf16 %v162_v5, %v155_v4  ;;  %v161_v10 = vld [vmem:[%s16886_s1 + $0x288] sm:$0xff]  ;;  %v1028_v12 = vld [vmem:[#allocation3 + $0x40] sm:$0xff] }
  0x47   :  { %9161 = vmatpush3.bf16.msra.mxu1 %v9158_v19  ;;  %510 = vmatprep.mubr.f32.mxu1 %v16896_v0  ;;  %v154_v8 = vld [vmem:[%s16886_s1 + $0x250] sm:$0xff]  ;;  %v1021_v11 = vld [vmem:[#allocation3 + $0x8] sm:$0xff]  ;;  %v13545_v16 = vld [vmem:[%s16885_s0 + $0x38] sm:$0xff] }
  0x48   :  { %9163 = vmatprep.subr.bf16.mxu1 %v9162_v22  ;;  %9135 = vmatprep.subr.bf16.mxu0 %v9134_v25  ;;  %v13534_v13 = vld [vmem:[%s16885_s0 + $0x30] sm:$0xff]  ;;  %v9156_v14 = vpack.c.bf16 %v161_v10, %v154_v8  ;;  %v13538_v15 = vpack.c.bf16 %v1028_v12, %v1021_v11  ;;  %v169_v17 = vld [vmem:[%s16886_s1 + $0x2c8] sm:$0xf]  ;;  %v1023_v19 = vld [vmem:[#allocation3 + $0x18] sm:$0xff] }
  0x49   :  { %8716 = vmatmul.mubr.msk.f32.gmra.mrb[2].mxu0 %vm208_vm1, %v13397_v28  ;;  %8734 = vmatmul.mubr.msk.f32.gmra.mrb[2].mxu1 %vm208_vm1, %v13397_v28  ;;  %v1030_v20 = vld [vmem:[#allocation3 + $0x50] sm:$0xff]  ;;  %v168_v21 = vld [vmem:[%s16886_s1 + $0x2c0] sm:$0xf]  ;;  %v13583_v24 = vld [vmem:[%s16885_s0 + $0x48] sm:$0xff] }
  0x4a   :  { %355 = vmatprep.mubr.f32.mxu0 %v16896_v0  ;;  %516 = vmatprep.mubr.f32.mxu1 %v16896_v0  ;;  %17162 = vst [vmem:[#allocation12_spill] sm:$0xff] %v13538_v15  ;;  %v13570_v23 = vld [vmem:[%s16885_s0 + $0x40] sm:$0xff]  ;;  %v13594_v25 = vld [vmem:[%s16885_s0 + $0x50] sm:$0xff]  ;;  %v13605_v26 = vld [vmem:[%s16885_s0 + $0x58] sm:$0xff] }
  0x4b   :  { %9165 = vmatpush3.bf16.msra.mxu1 %v9162_v22  ;;  %9137 = vmatpush1.bf16.msra.mxu0 %v9136_v33  ;;  %v13562_v22 = vpack.c.bf16 %v1030_v20, %v1023_v19  ;;  %v13616_v27 = vld [vmem:[%s16885_s0 + $0x60] sm:$0xff]  ;;  %v13627_v29 = vld [vmem:[%s16885_s0 + $0x68] sm:$0xff]  ;;  %v13638_v30 = vld [vmem:[%s16885_s0 + $0x70] sm:$0xff] }
  0x4c   :  { %9167 = vmatprep.subr.bf16.mxu1 %v9166_v31  ;;  %9139 = vmatprep.subr.bf16.mxu0 %v9138_v35  ;;  %v1020_v32 = vld [vmem:[#allocation3] sm:$0xff]  ;;  %v1027_v33 = vld [vmem:[#allocation3 + $0x38] sm:$0xff]  ;;  %v1022_v35 = vld [vmem:[#allocation3 + $0x10] sm:$0xff] }
  0x4d   :  { %8717 = vmatmul.mubr.msk.f32.gmra.mrb[4].mxu0 %vm208_vm1, %v13427_v38  ;;  %8735 = vmatmul.mubr.msk.f32.gmra.mrb[4].mxu1 %vm208_vm1, %v13427_v38  ;;  %17163 = vst [vmem:[#allocation13_spill] sm:$0xff] %v13562_v22  ;;  %v1035_v34 = vld [vmem:[#allocation3 + $0x78] sm:$0xff]  ;;  %v1029_v36 = vld [vmem:[#allocation3 + $0x48] sm:$0xff]  ;;  %v1042_v37 = vld [vmem:[#allocation3 + $0xb0] sm:$0xff] }
  0x4e   :  { %361 = vmatprep.mubr.f32.mxu0 %v16896_v0  ;;  %522 = vmatprep.mubr.f32.mxu1 %v16896_v0  ;;  %v1037_v39 = vld [vmem:[#allocation3 + $0x88] sm:$0xff]  ;;  %v1044_v40 = vld [vmem:[#allocation3 + $0xc0] sm:$0xff]  ;;  %v1034_v42 = vld [vmem:[#allocation3 + $0x70] sm:$0xff]  ;;  %v13661_v44 = vpack.c.bf16 %v1029_v36, %v1022_v35 }
  0x4f   :  { %9169 = vmatpush3.bf16.msra.mxu1 %v9166_v31  ;;  %9141 = vmatpush1.bf16.msra.mxu0 %v9140_v43  ;;  %v13649_v31 = vld [vmem:[%s16885_s0 + $0x78] sm:$0xff]  ;;  %v1041_v43 = vld [vmem:[#allocation3 + $0xa8] sm:$0xff]  ;;  %v13665_v47 = vpack.c.bf16 %v1044_v40, %v1037_v39  ;;  %v1036_v49 = vld [vmem:[#allocation3 + $0x80] sm:$0xff] }
  0x50   :  { %9171 = vmatprep.subr.bf16.mxu1 %v9170_v41  ;;  %9143 = vmatprep.subr.bf16.mxu0 %v9142_v45  ;;  %17165 = vst [vmem:[#allocation15_spill] sm:$0xff] %v13661_v44  ;;  %v13663_v45 = vpack.c.bf16 %v1042_v37, %v1035_v34  ;;  %v1049_v46 = vld [vmem:[#allocation3 + $0xe8] sm:$0xff]  ;;  %v1043_v50 = vld [vmem:[#allocation3 + $0xb8] sm:$0xff]  ;;  %v13673_v54 = vpack.c.bf16 %v1041_v43, %v1034_v42  ;;  %v1072_v2 = vld [vmem:[#allocation3 + $0x1a0] sm:$0xff] }
  0x51   :  { %8718 = vmatmul.mubr.msk.f32.gmra.mrb[6].mxu0 %vm208_vm1, %v13456_v48  ;;  %8736 = vmatmul.mubr.msk.f32.gmra.mrb[6].mxu1 %vm208_vm1, %v13456_v48  ;;  %17167 = vst [vmem:[#allocation17_spill] sm:$0xff] %v13665_v47  ;;  %v1051_v52 = vld [vmem:[#allocation3 + $0xf8] sm:$0xff]  ;;  %v13676_v57 = vpack.c.bf16 %v1043_v50, %v1036_v49  ;;  %v1065_v1 = vld [vmem:[#allocation3 + $0x168] sm:$0xff]  ;;  %v1062_v5 = vld [vmem:[#allocation3 + $0x150] sm:$0xff] }
  0x52   :  { %367 = vmatprep.mubr.f32.mxu0 %v16896_v0  ;;  %528 = vmatprep.mubr.f32.mxu1 %v16896_v0  ;;  %17166 = vst [vmem:[#allocation16_spill] sm:$0xff] %v13663_v45  ;;  %17168 = vst [vmem:[#allocation18_spill] sm:$0xff] %v13673_v54  ;;  %v1055_v56 = vld [vmem:[#allocation3 + $0x118] sm:$0xff]  ;;  %v1077_v8 = vld [vmem:[#allocation3 + $0x1c8] sm:$0xff] }
  0x53   :  { %9173 = vmatpush3.bf16.msra.mxu1 %v9170_v41  ;;  %9145 = vmatpush1.bf16.msra.mxu0 %v9144_v53  ;;  %v13659_v41 = vpack.c.bf16 %v1027_v33, %v1020_v32  ;;  %v1058_v53 = vld [vmem:[#allocation3 + $0x130] sm:$0xff]  ;;  %17169 = vst [vmem:[#allocation19_spill] sm:$0xff] %v13676_v57  ;;  %v1063_v59 = vld [vmem:[#allocation3 + $0x158] sm:$0xff]  ;;  %v1064_v10 = vld [vmem:[#allocation3 + $0x160] sm:$0xff] }
  0x54   :  { %9175 = vmatprep.subr.bf16.mxu1 %v9174_v51  ;;  %9147 = vmatprep.subr.bf16.mxu0 %v9146_v55  ;;  %v1048_v55 = vld [vmem:[#allocation3 + $0xe0] sm:$0xff]  ;;  %v13682_v60 = vpack.c.bf16 %v1058_v53, %v1051_v52  ;;  %v1071_v11 = vld [vmem:[#allocation3 + $0x198] sm:$0xff]  ;;  %v1078_v35 = vld [vmem:[#allocation3 + $0x1d0] sm:$0xff] }
  0x55   :  { %8719 = vmatmul.mubr.msk.f32.gmra.mrb[8].mxu0 %vm208_vm1, %v13485_v58  ;;  %8737 = vmatmul.mubr.msk.f32.gmra.mrb[8].mxu1 %vm208_vm1, %v13485_v58  ;;  %17164 = vst [vmem:[#allocation14_spill] sm:$0xff] %v13659_v41  ;;  %v13692_v4 = vpack.c.bf16 %v1055_v56, %v1048_v55  ;;  %v1084_v12 = vld [vmem:[#allocation3 + $0x200] sm:$0xff]  ;;  %v1091_v33 = vld [vmem:[#allocation3 + $0x238] sm:$0xff]  ;;  %v1085_v36 = vld [vmem:[#allocation3 + $0x208] sm:$0xff] }
  0x56   :  { %373 = vmatprep.mubr.f32.mxu0 %v16896_v0  ;;  %534 = vmatprep.mubr.f32.mxu1 %v16896_v0  ;;  %17171 = vst [vmem:[#allocation21_spill] sm:$0xff] %v13682_v60  ;;  %v1076_v20 = vld [vmem:[#allocation3 + $0x1c0] sm:$0xff]  ;;  %v13717_v32 = vpack.c.bf16 %v1084_v12, %v1077_v8  ;;  %v1098_v37 = vld [vmem:[#allocation3 + $0x270] sm:$0xff]  ;;  %v1093_v39 = vld [vmem:[#allocation3 + $0x248] sm:$0xff] }
  0x57   :  { %9177 = vmatpush3.bf16.msra.mxu1 %v9174_v51  ;;  %9149 = vmatpush1.bf16.msra.mxu0 %v9148_v62  ;;  %v1056_v51 = vld [vmem:[#allocation3 + $0x120] sm:$0xff]  ;;  %v1057_v62 = vld [vmem:[#allocation3 + $0x128] sm:$0xff]  ;;  %17172 = vst [vmem:[#allocation22_spill] sm:$0xff] %v13692_v4  ;;  %v1090_v43 = vld [vmem:[#allocation3 + $0x230] sm:$0xff]  ;;  %v13736_v49 = vpack.c.bf16 %v1098_v37, %v1091_v33 }
  0x58   :  { %9179 = vmatprep.subr.bf16.mxu1 %v9178_v61  ;;  %9151 = vmatprep.subr.bf16.mxu0 %v9150_v63  ;;  %v1070_v63 = vld [vmem:[#allocation3 + $0x190] sm:$0xff]  ;;  %17178 = vst [vmem:[#allocation28_spill] sm:$0xff] %v13717_v32  ;;  %v1100_v40 = vld [vmem:[#allocation3 + $0x280] sm:$0xff]  ;;  %v1105_v50 = vld [vmem:[#allocation3 + $0x2a8] sm:$0xff] }
  0x59   :  { %8720 = vmatmul.mubr.msk.f32.gmra.mrb[10].mxu0 %vm208_vm1, %v13508_v3  ;;  %8738 = vmatmul.mubr.msk.f32.gmra.mrb[10].mxu1 %vm208_vm1, %v13508_v3  ;;  %17182 = vst [vmem:[#allocation32_spill] sm:$0xff] %v13736_v49  ;;  %v1092_v52 = vld [vmem:[#allocation3 + $0x240] sm:$0xff]  ;;  %v1099_v53 = vld [vmem:[#allocation3 + $0x278] sm:$0xff]  ;;  %v1113_v8 = vld [vmem:[#allocation3 + $0x2e8] sm:$0xff] }
  0x5a   :  { %379 = vmatprep.mubr.f32.mxu0 %v16896_v0  ;;  %540 = vmatprep.mubr.f32.mxu1 %v16896_v0  ;;  %v1112_v55 = vld [vmem:[#allocation3 + $0x2e0] sm:$0xff]  ;;  %v1107_v56 = vld [vmem:[#allocation3 + $0x2b8] sm:$0xff]  ;;  %v1133_v33 = vld [vmem:[#allocation3 + $0x388] sm:$0xff] }
  0x5b   :  { %9181 = vmatpush3.bf16.msra.mxu1 %v9178_v61  ;;  %9153 = vmatpush1.bf16.msra.mxu0 %v9152_v6  ;;  %v1050_v61 = vld [vmem:[#allocation3 + $0xf0] sm:$0xff]  ;;  %v1069_v6 = vld [vmem:[#allocation3 + $0x188] sm:$0xff]  ;;  %v1128_v12 = vld [vmem:[#allocation3 + $0x360] sm:$0xff] }
  0x5c   :  { %9060 = vmatprep.subr.msk.mxu1 %vm257_vm0, %v170_v7  ;;  %9155 = vmatprep.subr.bf16.mxu0 %v9154_v9  ;;  %v13701_v9 = vpack.c.bf16 %v1072_v2, %v1065_v1  ;;  %v13711_v19 = vpack.c.bf16 %v1069_v6, %v1062_v5  ;;  %v13755_v1 = vpack.c.bf16 %v1112_v55, %v1105_v50  ;;  %v1119_v2 = vld [vmem:[#allocation3 + $0x318] sm:$0xff]  ;;  %v1106_v6 = vld [vmem:[#allocation3 + $0x2b0] sm:$0xff]  ;;  %v1132_v50 = vld [vmem:[#allocation3 + $0x380] sm:$0xff] }
  0x5d   :  { %8721 = vmatmul.mubr.msk.f32.gmra.mrb[12].mxu0 %vm208_vm1, %v13534_v13  ;;  %8739 = vmatmul.mubr.msk.f32.gmra.mrb[12].mxu1 %vm208_vm1, %v13534_v13  ;;  %v1127_v37 = vld [vmem:[#allocation3 + $0x358] sm:$0xff] }
  0x5e   :  { %385 = vmatprep.mubr.f32.mxu0 %v16896_v0  ;;  %546 = vmatprep.mubr.f32.mxu1 %v16896_v0  ;;  %17175 = vst [vmem:[#allocation25_spill] sm:$0xff] %v13701_v9  ;;  %17176 = vst [vmem:[#allocation26_spill] sm:$0xff] %v13711_v19  ;;  %v1147_v55 = vld [vmem:[#allocation3 + $0x3f8] sm:$0xff] }
  0x5f   :  { %9061 = vmatpush3.msk.msra.mxu1 %vm257_vm0, %v170_v7  ;;  %9157 = vmatpush1.bf16.msra.mxu0 %v9156_v14  ;;  %v13698_v7 = vpack.c.bf16 %v1070_v63, %v1063_v59  ;;  %v1079_v14 = vld [vmem:[#allocation3 + $0x1d8] sm:$0xff]  ;;  %v1114_v59 = vld [vmem:[#allocation3 + $0x2f0] sm:$0xff]  ;;  %17186 = vst [vmem:[#allocation36_spill] sm:$0xff] %v13755_v1 }
  0x60   :  { %9183 = vmatprep.subr.bf16.mxu1 %v13538_v15  ;;  %8749 = vmatprep.subr.msk.mxu0 %vm257_vm0, %v169_v17  ;;  %v1086_v17 = vld [vmem:[#allocation3 + $0x210] sm:$0xff]  ;;  %v1111_v63 = vld [vmem:[#allocation3 + $0x2d8] sm:$0xff]  ;;  %v13758_v5 = vpack.c.bf16 %v1114_v59, %v1107_v56 }
  0x61   :  { %8722 = vmatmul.mubr.msk.f32.gmra.mrb[14].mxu0 %vm208_vm1, %v13545_v16  ;;  %8740 = vmatmul.mubr.msk.f32.gmra.mrb[14].mxu1 %vm208_vm1, %v13545_v16  ;;  %17174 = vst [vmem:[#allocation24_spill] sm:$0xff] %v13698_v7  ;;  %v13720_v34 = vpack.c.bf16 %v1086_v17, %v1079_v14  ;;  %v1118_v17 = vld [vmem:[#allocation3 + $0x310] sm:$0xff] }
  0x62   :  { %391 = vmatprep.mubr.f32.mxu0 %v16896_v0  ;;  %552 = vmatprep.mubr.f32.mxu1 %v16896_v0  ;;  %17187 = vst [vmem:[#allocation37_spill] sm:$0xff] %v13758_v5  ;;  %v1134_v59 = vld [vmem:[#allocation3 + $0x390] sm:$0xff] }
  0x63   :  { %8750 = vmatpush1.msk.msra.mxu0 %vm257_vm0, %v168_v21  ;;  %v1083_v21 = vld [vmem:[#allocation3 + $0x1f8] sm:$0xff]  ;;  %17179 = vst [vmem:[#allocation29_spill] sm:$0xff] %v13720_v34 }
  0x64   :  { %9231 = vmatprep.subr.bf16.mxu0 %v13562_v22  ;;  %v13730_v42 = vpack.c.bf16 %v1083_v21, %v1076_v20  ;;  %v1125_v20 = vld [vmem:[#allocation3 + $0x348] sm:$0xff] }
  0x65   :  { %8723 = vmatmul.mubr.msk.f32.gmra.mrb[16].mxu0 %vm208_vm1, %v13570_v23  ;;  %8741 = vmatmul.mubr.msk.f32.gmra.mrb[16].mxu1 %vm208_vm1, %v13570_v23 }
  0x66   :  { %397 = vmatprep.mubr.f32.mxu0 %v16896_v0  ;;  %558 = vmatprep.mubr.f32.mxu1 %v16896_v0  ;;  %17180 = vst [vmem:[#allocation30_spill] sm:$0xff] %v13730_v42 }
  0x69   :  { %8724 = vmatmul.mubr.msk.f32.gmra.mrb[18].mxu0 %vm208_vm1, %v13583_v24  ;;  %8742 = vmatmul.mubr.msk.f32.gmra.mrb[18].mxu1 %vm208_vm1, %v13583_v24 }
  0x6a   :  { %403 = vmatprep.mubr.f32.mxu0 %v16896_v0  ;;  %564 = vmatprep.mubr.f32.mxu1 %v16896_v0 }
  0x6d   :  { %8725 = vmatmul.mubr.msk.f32.gmra.mrb[20].mxu0 %vm208_vm1, %v13594_v25  ;;  %8743 = vmatmul.mubr.msk.f32.gmra.mrb[20].mxu1 %vm208_vm1, %v13594_v25 }
  0x6e   :  { %409 = vmatprep.mubr.f32.mxu0 %v16896_v0  ;;  %570 = vmatprep.mubr.f32.mxu1 %v16896_v0 }
  0x71   :  { %8726 = vmatmul.mubr.msk.f32.gmra.mrb[22].mxu0 %vm208_vm1, %v13605_v26  ;;  %8744 = vmatmul.mubr.msk.f32.gmra.mrb[22].mxu1 %vm208_vm1, %v13605_v26 }
  0x72   :  { %415 = vmatprep.mubr.f32.mxu0 %v16896_v0  ;;  %576 = vmatprep.mubr.f32.mxu1 %v16896_v0 }
  0x75   :  { %8727 = vmatmul.mubr.msk.f32.gmra.mrb[24].mxu0 %vm208_vm1, %v13616_v27  ;;  %8745 = vmatmul.mubr.msk.f32.gmra.mrb[24].mxu1 %vm208_vm1, %v13616_v27 }
  0x76   :  { %421 = vmatprep.mubr.f32.mxu0 %v16896_v0  ;;  %582 = vmatprep.mubr.f32.mxu1 %v16896_v0 }
  0x79   :  { %8728 = vmatmul.mubr.msk.f32.gmra.mrb[26].mxu0 %vm208_vm1, %v13627_v29  ;;  %8746 = vmatmul.mubr.msk.f32.gmra.mrb[26].mxu1 %vm208_vm1, %v13627_v29 }
  0x7a   :  { %427 = vmatprep.mubr.f32.mxu0 %v16896_v0  ;;  %588 = vmatprep.mubr.f32.mxu1 %v16896_v0 }
  0x7d   :  { %8729 = vmatmul.mubr.msk.f32.gmra.mrb[28].mxu0 %vm208_vm1, %v13638_v30  ;;  %8747 = vmatmul.mubr.msk.f32.gmra.mrb[28].mxu1 %vm208_vm1, %v13638_v30 }
  0x7e   :  { %433 = vmatprep.mubr.f32.mxu0 %v16896_v0  ;;  %594 = vmatprep.mubr.f32.mxu1 %v16896_v0 }
  0x81   :  { %8730 = vmatmul.mubr.msk.f32.gmra.mrb[30].mxu0 %vm208_vm1, %v13649_v31  ;;  %8748 = vmatmul.mubr.msk.f32.gmra.mrb[30].mxu1 %vm208_vm1, %v13649_v31 }
  0x82   :  { %665 = vmatprep.mubr.f32.mxu0 %v16896_v0  ;;  %9062 = vmatprep.mubr.msk.f32.mxu1 %vm208_vm1, %v13368_v18 }
  0x85   :  { %8751 = vmatmul.mubr.msk.f32.vlgmr.msra.gmra.mrb[32].mxu0 %vm208_vm1, %v13368_v18  ;;  %9063 = vmatmul.mubr.msk.f32.vlgmr.msra.gmra.mrb[32].mxu1 %vm208_vm1, %v13397_v28  ;;  %v13679_v18 = vpack.c.bf16 %v1056_v51, %v1049_v46  ;;  %v1097_v46 = vld [vmem:[#allocation3 + $0x268] sm:$0xff]  ;;  %v13739_v51 = vpack.c.bf16 %v1100_v40, %v1093_v39  ;;  %v1140_v39 = vld [vmem:[#allocation3 + $0x3c0] sm:$0xff]  ;;  %v1135_v40 = vld [vmem:[#allocation3 + $0x398] sm:$0xff] }
  0x86   :  { %671 = vmatprep.mubr.f32.mxu0 %v16896_v0  ;;  %9185 = vmatpush1.bf16.msra.mxu1 %v13659_v41 }
  0x87   :  { %9233 = vmatpush1.bf16.msra.mxu0 %v13661_v44  ;;  %9187 = vmatprep.subr.bf16.mxu1 %v13663_v45  ;;  %17170 = vst [vmem:[#allocation20_spill] sm:$0xff] %v13679_v18  ;;  %17183 = vst [vmem:[#allocation33_spill] sm:$0xff] %v13739_v51 }
  0x88   :  { %9235 = vmatprep.subr.bf16.mxu0 %v13665_v47  ;;  %9065 = vmatprep.mubr.msk.f32.mxu1 %vm208_vm1, %v13427_v38 }
  0x89   :  { %8752 = vmatmul.mubr.msk.f32.gmra.mrb[34].mxu0 %vm208_vm1, %v13397_v28  ;;  %9066 = vmatmul.mubr.msk.f32.gmra.mrb[34].mxu1 %vm208_vm1, %v13456_v48  ;;  %v13695_v28 = vpack.c.bf16 %v1057_v62, %v1050_v61  ;;  %v13749_v61 = vpack.c.bf16 %v1097_v46, %v1090_v43  ;;  %v1104_v62 = vld [vmem:[#allocation3 + $0x2a0] sm:$0xff]  ;;  %v1142_v43 = vld [vmem:[#allocation3 + $0x3d0] sm:$0xff]  ;;  %v13787_v46 = vpack.c.bf16 %v1125_v20, %v1118_v17  ;;  %v1161_v17 = vld [vmem:[#allocation3 + $0x468] sm:$0xff] }
  0x8a   :  { %677 = vmatprep.mubr.f32.mxu0 %v16896_v0  ;;  %9189 = vmatpush1.bf16.msra.mxu1 %v13673_v54  ;;  %v13768_v14 = vpack.c.bf16 %v1111_v63, %v1104_v62  ;;  %v13796_v56 = vpack.c.bf16 %v1142_v43, %v1135_v40  ;;  %v1141_v62 = vld [vmem:[#allocation3 + $0x3c8] sm:$0xff]  ;;  %v1154_v63 = vld [vmem:[#allocation3 + $0x430] sm:$0xff] }
  0x8b   :  { %9237 = vmatpush1.bf16.msra.mxu0 %v13676_v57  ;;  %17173 = vst [vmem:[#allocation23_spill] sm:$0xff] %v13695_v28  ;;  %9191 = vmatprep.subr.bf16.mxu1 %v13679_v18  ;;  %17184 = vst [vmem:[#allocation34_spill] sm:$0xff] %v13749_v61  ;;  %v1170_v40 = vld [vmem:[#allocation3 + $0x4b0] sm:$0xff] }
  0x8c   :  { %9239 = vmatprep.subr.bf16.mxu0 %v13682_v60  ;;  %9068 = vmatprep.mubr.msk.f32.mxu1 %vm208_vm1, %v13485_v58  ;;  %17188 = vst [vmem:[#allocation38_spill] sm:$0xff] %v13768_v14  ;;  %17192 = vst [vmem:[#allocation42_spill] sm:$0xff] %v13787_v46 }
  0x8d   :  { %8753 = vmatmul.mubr.msk.f32.gmra.mrb[36].mxu0 %vm208_vm1, %v13427_v38  ;;  %9069 = vmatmul.mubr.msk.f32.gmra.mrb[36].mxu1 %vm208_vm1, %v13508_v3  ;;  %v13714_v38 = vpack.c.bf16 %v1071_v11, %v1064_v10  ;;  %v1126_v10 = vld [vmem:[#allocation3 + $0x350] sm:$0xff]  ;;  %v1121_v11 = vld [vmem:[#allocation3 + $0x328] sm:$0xff]  ;;  %17195 = vst [vmem:[#allocation45_spill] sm:$0xff] %v13796_v56 }
  0x8e   :  { %683 = vmatprep.mubr.f32.mxu0 %v16896_v0  ;;  %9193 = vmatpush1.bf16.msra.mxu1 %v13692_v4  ;;  %v13774_v21 = vpack.c.bf16 %v1126_v10, %v1119_v2  ;;  %v1149_v2 = vld [vmem:[#allocation3 + $0x408] sm:$0xff]  ;;  %v1146_v10 = vld [vmem:[#allocation3 + $0x3f0] sm:$0xff] }
  0x8f   :  { %9241 = vmatpush1.bf16.msra.mxu0 %v13695_v28  ;;  %17177 = vst [vmem:[#allocation27_spill] sm:$0xff] %v13714_v38  ;;  %9195 = vmatprep.subr.bf16.mxu1 %v13698_v7 }
  0x90   :  { %9243 = vmatprep.subr.bf16.mxu0 %v13701_v9  ;;  %9071 = vmatprep.mubr.msk.f32.mxu1 %vm208_vm1, %v13534_v13  ;;  %17190 = vst [vmem:[#allocation40_spill] sm:$0xff] %v13774_v21 }
  0x91   :  { %8754 = vmatmul.mubr.msk.f32.gmra.mrb[38].mxu0 %vm208_vm1, %v13456_v48  ;;  %9072 = vmatmul.mubr.msk.f32.gmra.mrb[38].mxu1 %vm208_vm1, %v13545_v16  ;;  %v13733_v48 = vpack.c.bf16 %v1085_v36, %v1078_v35  ;;  %v13777_v35 = vpack.c.bf16 %v1128_v12, %v1121_v11  ;;  %v1120_v36 = vld [vmem:[#allocation3 + $0x320] sm:$0xff]  ;;  %v1153_v11 = vld [vmem:[#allocation3 + $0x428] sm:$0xff]  ;;  %v13812_v12 = vpack.c.bf16 %v1154_v63, %v1147_v55  ;;  %v1162_v63 = vld [vmem:[#allocation3 + $0x470] sm:$0xff] }
  0x92   :  { %689 = vmatprep.mubr.f32.mxu0 %v16896_v0  ;;  %9197 = vmatpush1.bf16.msra.mxu1 %v13711_v19  ;;  %v13822_v43 = vpack.c.bf16 %v1153_v11, %v1146_v10  ;;  %v1177_v10 = vld [vmem:[#allocation3 + $0x4e8] sm:$0xff]  ;;  %v1184_v11 = vld [vmem:[#allocation3 + $0x520] sm:$0xff] }
  0x93   :  { %9245 = vmatpush1.bf16.msra.mxu0 %v13714_v38  ;;  %17181 = vst [vmem:[#allocation31_spill] sm:$0xff] %v13733_v48  ;;  %9199 = vmatprep.subr.bf16.mxu1 %v13717_v32  ;;  %17191 = vst [vmem:[#allocation41_spill] sm:$0xff] %v13777_v35 }
  0x94   :  { %9247 = vmatprep.subr.bf16.mxu0 %v13720_v34  ;;  %9074 = vmatprep.mubr.msk.f32.mxu1 %vm208_vm1, %v13570_v23  ;;  %17198 = vst [vmem:[#allocation48_spill] sm:$0xff] %v13812_v12  ;;  %17200 = vst [vmem:[#allocation50_spill] sm:$0xff] %v13822_v43 }
  0x95   :  { %8755 = vmatmul.mubr.msk.f32.gmra.mrb[40].mxu0 %vm208_vm1, %v13485_v58  ;;  %9075 = vmatmul.mubr.msk.f32.gmra.mrb[40].mxu1 %vm208_vm1, %v13583_v24  ;;  %v13752_v58 = vpack.c.bf16 %v1099_v53, %v1092_v52  ;;  %v1139_v52 = vld [vmem:[#allocation3 + $0x3b8] sm:$0xff]  ;;  %v13793_v53 = vpack.c.bf16 %v1140_v39, %v1133_v33  ;;  %v1148_v33 = vld [vmem:[#allocation3 + $0x400] sm:$0xff] }
  0x96   :  { %695 = vmatprep.mubr.f32.mxu0 %v16896_v0  ;;  %9201 = vmatpush1.bf16.msra.mxu1 %v13730_v42  ;;  %v1163_v39 = vld [vmem:[#allocation3 + $0x478] sm:$0xff] }
  0x97   :  { %9249 = vmatpush1.bf16.msra.mxu0 %v13733_v48  ;;  %17185 = vst [vmem:[#allocation35_spill] sm:$0xff] %v13752_v58  ;;  %9203 = vmatprep.subr.bf16.mxu1 %v13736_v49  ;;  %17194 = vst [vmem:[#allocation44_spill] sm:$0xff] %v13793_v53 }
  0x98   :  { %9251 = vmatprep.subr.bf16.mxu0 %v13739_v51  ;;  %9077 = vmatprep.mubr.msk.f32.mxu1 %vm208_vm1, %v13594_v25 }
  0x99   :  { %8756 = vmatmul.mubr.msk.f32.gmra.mrb[42].mxu0 %vm208_vm1, %v13508_v3  ;;  %9078 = vmatmul.mubr.msk.f32.gmra.mrb[42].mxu1 %vm208_vm1, %v13605_v26  ;;  %v13771_v3 = vpack.c.bf16 %v1113_v8, %v1106_v6  ;;  %v1156_v6 = vld [vmem:[#allocation3 + $0x440] sm:$0xff]  ;;  %v13806_v8 = vpack.c.bf16 %v1139_v52, %v1132_v50  ;;  %v1167_v52 = vld [vmem:[#allocation3 + $0x498] sm:$0xff] }
  0x9a   :  { %701 = vmatprep.mubr.f32.mxu0 %v16896_v0  ;;  %9205 = vmatpush1.bf16.msra.mxu1 %v13749_v61  ;;  %v13815_v20 = vpack.c.bf16 %v1156_v6, %v1149_v2  ;;  %v1160_v50 = vld [vmem:[#allocation3 + $0x460] sm:$0xff]  ;;  %v1169_v2 = vld [vmem:[#allocation3 + $0x4a8] sm:$0xff]  ;;  %v1182_v6 = vld [vmem:[#allocation3 + $0x510] sm:$0xff] }
  0x9b   :  { %9253 = vmatpush1.bf16.msra.mxu0 %v13752_v58  ;;  %17189 = vst [vmem:[#allocation39_spill] sm:$0xff] %v13771_v3  ;;  %9207 = vmatprep.subr.bf16.mxu1 %v13755_v1  ;;  %17196 = vst [vmem:[#allocation46_spill] sm:$0xff] %v13806_v8 }
  0x9c   :  { %9255 = vmatprep.subr.bf16.mxu0 %v13758_v5  ;;  %9080 = vmatprep.mubr.msk.f32.mxu1 %vm208_vm1, %v13616_v27  ;;  %17199 = vst [vmem:[#allocation49_spill] sm:$0xff] %v13815_v20 }
  0x9d   :  { %8757 = vmatmul.mubr.msk.f32.gmra.mrb[44].mxu0 %vm208_vm1, %v13534_v13  ;;  %9081 = vmatmul.mubr.msk.f32.gmra.mrb[44].mxu1 %vm208_vm1, %v13627_v29  ;;  %v13790_v13 = vpack.c.bf16 %v1127_v37, %v1120_v36  ;;  %v1155_v36 = vld [vmem:[#allocation3 + $0x438] sm:$0xff]  ;;  %v1168_v37 = vld [vmem:[#allocation3 + $0x4a0] sm:$0xff] }
  0x9e   :  { %707 = vmatprep.mubr.f32.mxu0 %v16896_v0  ;;  %9209 = vmatpush1.bf16.msra.mxu1 %v13768_v14  ;;  %v13825_v55 = vpack.c.bf16 %v1155_v36, %v1148_v33  ;;  %v13837_v33 = vpack.c.bf16 %v1167_v52, %v1160_v50  ;;  %v13840_v36 = vpack.c.bf16 %v1169_v2, %v1162_v63  ;;  %v17208_v50 = vmov 0.0   ;;  %v13858_v63 = vld [vmem:[#allocation3 + $0x548] sm:$0xff]  ;;  %v1032_v2 = vld [vmem:[#allocation3 + $0x60] sm:$0xff] }
  0x9f   :  { %9257 = vmatpush1.bf16.msra.mxu0 %v13771_v3  ;;  %17193 = vst [vmem:[#allocation43_spill] sm:$0xff] %v13790_v13  ;;  %9211 = vmatprep.subr.bf16.mxu1 %v13774_v21 }
  0xa0   :  { %9259 = vmatprep.subr.bf16.mxu0 %v13777_v35  ;;  %9083 = vmatprep.mubr.msk.f32.mxu1 %vm208_vm1, %v13638_v30  ;;  %17201 = vst [vmem:[#allocation51_spill] sm:$0xff] %v13825_v55  ;;  %17204 = vst [vmem:[#allocation54_spill] sm:$0xff] %v13837_v33 }
  0xa1   :  { %8758 = vmatmul.mubr.msk.f32.gmra.mrb[46].mxu0 %vm208_vm1, %v13545_v16  ;;  %9084 = vmatmul.mubr.msk.f32.gmra.mrb[46].mxu1 %vm208_vm1, %v13649_v31  ;;  %v13809_v16 = vpack.c.bf16 %v1141_v62, %v1134_v59  ;;  %v1175_v59 = vld [vmem:[#allocation3 + $0x4d8] sm:$0xff]  ;;  %v13831_v62 = vpack.c.bf16 %v1170_v40, %v1163_v39  ;;  %17205 = vst [vmem:[#allocation55_spill] sm:$0xff] %v13840_v36  ;;  %v1181_v39 = vld [vmem:[#allocation3 + $0x508] sm:$0xff]  ;;  %v1176_v40 = vld [vmem:[#allocation3 + $0x4e0] sm:$0xff] }
  0xa2   :  { %713 = vmatprep.mubr.f32.mxu0 %v16896_v0  ;;  %9213 = vmatpush1.bf16.msra.mxu1 %v13787_v46 }
  0xa3   :  { %9261 = vmatpush1.bf16.msra.mxu0 %v13790_v13  ;;  %17197 = vst [vmem:[#allocation47_spill] sm:$0xff] %v13809_v16  ;;  %9215 = vmatprep.subr.bf16.mxu1 %v13793_v53  ;;  %17203 = vst [vmem:[#allocation53_spill] sm:$0xff] %v13831_v62 }
  0xa4   :  { %9263 = vmatprep.subr.bf16.mxu0 %v13796_v56  ;;  %1274 = vmatprep.mubr.f32.mxu1 %v16896_v0 }
  0xa5   :  { %8759 = vmatmul.mubr.msk.f32.gmra.mrb[48].mxu0 %vm208_vm1, %v13570_v23  ;;  %v13828_v23 = vpack.c.bf16 %v1168_v37, %v1161_v17  ;;  %v1174_v17 = vld [vmem:[#allocation3 + $0x4d0] sm:$0xff]  ;;  %v13843_v37 = vpack.c.bf16 %v1182_v6, %v1175_v59  ;;  %v13863_v6 = vld [vmem:[#allocation3 + $0x558] sm:$0xff] }
  0xa6   :  { %719 = vmatprep.mubr.f32.mxu0 %v16896_v0  ;;  %9217 = vmatpush1.bf16.msra.mxu1 %v13806_v8  ;;  %v13852_v52 = vpack.c.bf16 %v1181_v39, %v1174_v17  ;;  %17211 = vst [vmem:[#allocation60_spill] sm:$0xff] %v13863_v6  ;;  %v1046_v17 = vld [vmem:[#allocation3 + $0xd0] sm:$0xff]  ;;  %v13869_v39 = vld [vmem:[#allocation3 + $0x540] sm:$0xff] }
  0xa7   :  { %9265 = vmatpush1.bf16.msra.mxu0 %v13809_v16  ;;  %9219 = vmatprep.subr.bf16.mxu1 %v13812_v12  ;;  %17202 = vst [vmem:[#allocation52_spill] sm:$0xff] %v13828_v23  ;;  %17206 = vst [vmem:[#allocation56_spill] sm:$0xff] %v13843_v37 }
  0xa8   :  { %9267 = vmatprep.subr.bf16.mxu0 %v13815_v20  ;;  %17209 = vst [vmem:[#allocation58_spill] sm:$0xff] %v13852_v52  ;;  %17212 = vst [vmem:[#allocation61_spill] sm:$0xff] %v13869_v39 }
  0xa9   :  { %8760 = vmatmul.mubr.msk.f32.gmra.mrb[50].mxu0 %vm208_vm1, %v13583_v24  ;;  %v13846_v24 = vpack.c.bf16 %v1184_v11, %v1177_v10  ;;  %v1024_v10 = vld [vmem:[#allocation3 + $0x20] sm:$0xff]  ;;  %v1031_v11 = vld [vmem:[#allocation3 + $0x58] sm:$0xff] }
  0xaa   :  { %725 = vmatprep.mubr.f32.mxu0 %v16896_v0  ;;  %9221 = vmatpush1.bf16.msra.mxu1 %v13822_v43  ;;  %v1183_v0 = vld [vmem:[#allocation3 + $0x518] sm:$0xff] }
  0xab   :  { %9269 = vmatpush1.bf16.msra.mxu0 %v13825_v55  ;;  %9223 = vmatprep.subr.bf16.mxu1 %v13828_v23  ;;  %17207 = vst [vmem:[#allocation57_spill] sm:$0xff] %v13846_v24  ;;  %v13855_v59 = vpack.c.bf16 %v1183_v0, %v1176_v40  ;;  %v1039_v0 = vld [vmem:[#allocation3 + $0x98] sm:$0xff]  ;;  %v1053_v55 = vld [vmem:[#allocation3 + $0x108] sm:$0xff] }
  0xac   :  { %9271 = vmatprep.subr.bf16.mxu0 %v13831_v62  ;;  %v1045_v62 = vld [vmem:[#allocation3 + $0xc8] sm:$0xff] }
  0xad   :  { %8761 = vmatmul.mubr.msk.f32.gmra.mrb[52].mxu0 %vm208_vm1, %v13594_v25  ;;  %17210 = vst [vmem:[#allocation59_spill] sm:$0xff] %v13855_v59  ;;  %v1025_v25 = vld [vmem:[#allocation3 + $0x28] sm:$0xff] }
  0xae   :  { %731 = vmatprep.mubr.f32.mxu0 %v17208_v50  ;;  %9225 = vmatpush1.bf16.msra.mxu1 %v13837_v33  ;;  %v13871_v40 = vpack.c.bf16 %v1032_v2, %v1025_v25  ;;  %v1060_v25 = vld [vmem:[#allocation3 + $0x140] sm:$0xff] }
  0xaf   :  { %9273 = vmatpush1.bf16.msra.mxu0 %v13840_v36  ;;  %9227 = vmatprep.subr.bf16.mxu1 %v13843_v37  ;;  %v13881_v36 = vpack.c.bf16 %v1046_v17, %v1039_v0  ;;  %v13894_v2 = vpack.c.bf16 %v1060_v25, %v1053_v55  ;;  %v1067_v0 = vld [vmem:[#allocation3 + $0x178] sm:$0xff]  ;;  %v1074_v17 = vld [vmem:[#allocation3 + $0x1b0] sm:$0xff] }
  0xb0   :  { %9275 = vmatprep.subr.bf16.mxu0 %v13846_v24  ;;  %17213 = vst [vmem:[#allocation62_spill] sm:$0xff] %v13871_v40  ;;  %v13878_v24 = vpack.c.bf16 %v1031_v11, %v1024_v10  ;;  %v1052_v10 = vld [vmem:[#allocation3 + $0x100] sm:$0xff]  ;;  %v1059_v11 = vld [vmem:[#allocation3 + $0x138] sm:$0xff]  ;;  %v13905_v55 = vpack.c.bf16 %v1074_v17, %v1067_v0  ;;  %v1026_v25 = vld [vmem:[#allocation3 + $0x30] sm:$0xff] }
  0xb1   :  { %8762 = vmatmul.mubr.msk.f32.gmra.mrb[54].mxu0 %vm208_vm1, %v13605_v26  ;;  %v13874_v26 = vld [vmem:[#allocation3 + $0x550] sm:$0xff]  ;;  %17216 = vst [vmem:[#allocation65_spill] sm:$0xff] %v13881_v36  ;;  %17218 = vst [vmem:[#allocation67_spill] sm:$0xff] %v13894_v2  ;;  %v1080_v0 = vld [vmem:[#allocation3 + $0x1e0] sm:$0xff] }
  0xb2   :  { %737 = vmatprep.mubr.f32.mxu0 %v17208_v50  ;;  %9229 = vmatpush1.bf16.msra.mxu1 %v13852_v52  ;;  %17214 = vst [vmem:[#allocation63_spill] sm:$0xff] %v13874_v26  ;;  %17215 = vst [vmem:[#allocation64_spill] sm:$0xff] %v13878_v24  ;;  %v1087_v17 = vld [vmem:[#allocation3 + $0x218] sm:$0xff] }
  0xb3   :  { %9277 = vmatpush1.bf16.msra.mxu0 %v13855_v59  ;;  %1258 = vmatprep.subr.mxu1 %v13858_v63  ;;  %v1038_v59 = vld [vmem:[#allocation3 + $0x90] sm:$0xff]  ;;  %17220 = vst [vmem:[#allocation69_spill] sm:$0xff] %v13905_v55 }
  0xb4   :  { %1329 = vmatprep.subr.mxu0 %v13863_v6  ;;  %v1095_v6 = vld [vmem:[#allocation3 + $0x258] sm:$0xff] }
  0xb5   :  { %8763 = vmatmul.mubr.msk.f32.gmra.mrb[56].mxu0 %vm208_vm1, %v13616_v27  ;;  %v13890_v27 = vpack.c.bf16 %v1045_v62, %v1038_v59  ;;  %v1066_v62 = vld [vmem:[#allocation3 + $0x170] sm:$0xff]  ;;  %v1073_v59 = vld [vmem:[#allocation3 + $0x1a8] sm:$0xff] }
  0xb6   :  { %743 = vmatprep.mubr.f32.mxu0 %v17208_v50  ;;  %1259 = vmatpush1.msra.mxu1 %v13869_v39  ;;  %v1130_v39 = vld [vmem:[#allocation3 + $0x370] sm:$0xff] }
  0xb7   :  { %1330 = vmatpush1.msra.mxu0 %v13874_v26  ;;  %1275 = vmatmul.mubr.f32.vlgmr.msra.gmra.mrb[48].mxu1 %v17208_v50  ;;  %17217 = vst [vmem:[#allocation66_spill] sm:$0xff] %v13890_v27  ;;  %v16911_v26 = vmov 0.0|0.0  }
  0xb8   :  { %9279 = vmatprep.subr.bf16.mxu1 %v13871_v40  ;;  %9326 = vmatprep.subr.bf16.mxu0 %v16911_v26  ;;  %v1081_v26 = vld [vmem:[#allocation3 + $0x1e8] sm:$0xff]  ;;  %v1102_v40 = vld [vmem:[#allocation3 + $0x290] sm:$0xff] }
  0xb9   :  { %9281 = vmatpush1.bf16.msra.mxu1 %v13878_v24  ;;  %8764 = vmatmul.mubr.msk.f32.gmra.mrb[58].mxu0 %vm208_vm1, %v13627_v29  ;;  %v13901_v29 = vpack.c.bf16 %v1059_v11, %v1052_v10  ;;  %v1088_v24 = vld [vmem:[#allocation3 + $0x220] sm:$0xff] }
  0xba   :  { %9283 = vmatprep.subr.bf16.mxu1 %v13881_v36  ;;  %749 = vmatprep.mubr.f32.mxu0 %v17208_v50  ;;  %v1033_v36 = vld [vmem:[#allocation3 + $0x68] sm:$0xff]  ;;  %v13916_v11 = vpack.c.bf16 %v1088_v24, %v1081_v26  ;;  %v13926_v24 = vpack.c.bf16 %v1102_v40, %v1095_v6  ;;  %v1094_v26 = vld [vmem:[#allocation3 + $0x250] sm:$0xff] }
  0xbb   :  { %1416 = vmatprep.mubr.f32.mxu1 %v17208_v50  ;;  %17219 = vst [vmem:[#allocation68_spill] sm:$0xff] %v13901_v29  ;;  %v13914_v10 = vpack.c.bf16 %v1033_v36, %v1026_v25  ;;  %v17227_v25 = vmov 0.0|0.0  }
  0xbc   :  { %17223 = vst [vmem:[#allocation72_spill] sm:$0xff] %v13916_v11  ;;  %17226 = vst [vmem:[#allocation75_spill] sm:$0xff] %v13926_v24 }
  0xbd   :  { %9285 = vmatpush1.bf16.msra.mxu1 %v13890_v27  ;;  %8765 = vmatmul.mubr.msk.f32.gmra.mrb[60].mxu0 %vm208_vm1, %v13638_v30  ;;  %v13910_v30 = vpack.c.bf16 %v1073_v59, %v1066_v62  ;;  %17222 = vst [vmem:[#allocation71_spill] sm:$0xff] %v13914_v10  ;;  %v1047_v27 = vld [vmem:[#allocation3 + $0xd8] sm:$0xff]  ;;  %v1101_v62 = vld [vmem:[#allocation3 + $0x288] sm:$0xff]  ;;  %v1054_v59 = vld [vmem:[#allocation3 + $0x110] sm:$0xff] }
  0xbe   :  { %9287 = vmatprep.subr.bf16.mxu1 %v13894_v2  ;;  %755 = vmatprep.mubr.f32.mxu0 %v17208_v50  ;;  %v1040_v2 = vld [vmem:[#allocation3 + $0xa0] sm:$0xff] }
  0xbf   :  { %17221 = vst [vmem:[#allocation70_spill] sm:$0xff] %v13910_v30  ;;  %v13924_v36 = vpack.c.bf16 %v1047_v27, %v1040_v2  ;;  %v1108_v27 = vld [vmem:[#allocation3 + $0x2c0] sm:$0xff]  ;;  %v1115_v2 = vld [vmem:[#allocation3 + $0x2f8] sm:$0xff] }
  0xc1   :  { %9289 = vmatpush1.bf16.msra.mxu1 %v13901_v29  ;;  %8766 = vmatmul.mubr.msk.f32.gmra.mrb[62].mxu0 %vm208_vm1, %v13649_v31  ;;  %v13920_v31 = vpack.c.bf16 %v1087_v17, %v1080_v0  ;;  %17225 = vst [vmem:[#allocation74_spill] sm:$0xff] %v13924_v36  ;;  %v1109_v29 = vld [vmem:[#allocation3 + $0x2c8] sm:$0xff]  ;;  %v13931_v0 = vpack.c.bf16 %v1101_v62, %v1094_v26  ;;  %v1068_v17 = vld [vmem:[#allocation3 + $0x180] sm:$0xff] }
  0xc2   :  { %9291 = vmatprep.subr.bf16.mxu1 %v13905_v55  ;;  %1345 = vmatprep.mubr.f32.mxu0 %v17208_v50  ;;  %v1061_v55 = vld [vmem:[#allocation3 + $0x148] sm:$0xff]  ;;  %v13941_v26 = vpack.c.bf16 %v1115_v2, %v1108_v27  ;;  %v1143_v2 = vld [vmem:[#allocation3 + $0x3d8] sm:$0xff] }
  0xc3   :  { %17224 = vst [vmem:[#allocation73_spill] sm:$0xff] %v13920_v31  ;;  %17228 = vst [vmem:[#allocation76_spill] sm:$0xff] %v13931_v0  ;;  %v13935_v6 = vpack.c.bf16 %v1061_v55, %v1054_v59  ;;  %v1129_v62 = vld [vmem:[#allocation3 + $0x368] sm:$0xff]  ;;  %v1082_v59 = vld [vmem:[#allocation3 + $0x1f0] sm:$0xff] }
  0xc4   :  { %17231 = vst [vmem:[#allocation79_spill] sm:$0xff] %v13941_v26 }
  0xc5   :  { %9293 = vmatpush1.bf16.msra.mxu1 %v13910_v30  ;;  %1346 = vmatmul.mubr.f32.vlgmr.msra.gmra.mrb[64].mxu0 %v17208_v50  ;;  %v1116_v30 = vld [vmem:[#allocation3 + $0x300] sm:$0xff]  ;;  %17229 = vst [vmem:[#allocation77_spill] sm:$0xff] %v13935_v6 }
  0xc6   :  { %9328 = vmatpush1.bf16.msra.mxu0 %v13914_v10  ;;  %9295 = vmatprep.subr.bf16.mxu1 %v13916_v11  ;;  %v13937_v40 = vpack.c.bf16 %v1116_v30, %v1109_v29  ;;  %v1075_v11 = vld [vmem:[#allocation3 + $0x1b8] sm:$0xff]  ;;  %v1122_v30 = vld [vmem:[#allocation3 + $0x330] sm:$0xff] }
  0xc7   :  { %9329 = vmatprep.subr.bf16.mxu0 %v17227_v25  ;;  %1487 = vmatprep.mubr.f32.mxu0 %v17208_v50  ;;  %v1123_v10 = vld [vmem:[#allocation3 + $0x338] sm:$0xff]  ;;  %v13945_v55 = vpack.c.bf16 %v1075_v11, %v1068_v17  ;;  %v13951_v27 = vpack.c.bf16 %v1129_v62, %v1122_v30  ;;  %v1096_v17 = vld [vmem:[#allocation3 + $0x260] sm:$0xff]  ;;  %v1157_v62 = vld [vmem:[#allocation3 + $0x448] sm:$0xff] }
  0xc8   :  { %17230 = vst [vmem:[#allocation78_spill] sm:$0xff] %v13937_v40  ;;  %v13947_v29 = vpack.c.bf16 %v1130_v39, %v1123_v10  ;;  %v1136_v10 = vld [vmem:[#allocation3 + $0x3a0] sm:$0xff] }
  0xc9   :  { %9297 = vmatpush1.bf16.msra.mxu1 %v13920_v31  ;;  %17232 = vst [vmem:[#allocation80_spill] sm:$0xff] %v13945_v55  ;;  %v1137_v31 = vld [vmem:[#allocation3 + $0x3a8] sm:$0xff]  ;;  %17234 = vst [vmem:[#allocation82_spill] sm:$0xff] %v13951_v27  ;;  %v13961_v30 = vpack.c.bf16 %v1143_v2, %v1136_v10  ;;  %v1171_v2 = vld [vmem:[#allocation3 + $0x4b8] sm:$0xff] }
  0xca   :  { %9331 = vmatpush1.bf16.msra.mxu0 %v13924_v36  ;;  %9299 = vmatprep.subr.bf16.mxu1 %v13926_v24  ;;  %17233 = vst [vmem:[#allocation81_spill] sm:$0xff] %v13947_v29  ;;  %v1089_v24 = vld [vmem:[#allocation3 + $0x228] sm:$0xff]  ;;  %v1144_v36 = vld [vmem:[#allocation3 + $0x3e0] sm:$0xff] }
  0xcb   :  { %9332 = vmatprep.subr.bf16.mxu0 %v17227_v25  ;;  %v13955_v11 = vpack.c.bf16 %v1089_v24, %v1082_v59  ;;  %v13957_v39 = vpack.c.bf16 %v1144_v36, %v1137_v31  ;;  %17237 = vst [vmem:[#allocation85_spill] sm:$0xff] %v13961_v30  ;;  %v1150_v36 = vld [vmem:[#allocation3 + $0x410] sm:$0xff] }
  0xcc   :  { %v1110_v59 = vld [vmem:[#allocation3 + $0x2d0] sm:$0xff]  ;;  %v13971_v10 = vpack.c.bf16 %v1157_v62, %v1150_v36  ;;  %v1185_v62 = vld [vmem:[#allocation3 + $0x528] sm:$0xff] }
  0xcd   :  { %9301 = vmatpush1.bf16.msra.mxu1 %v13931_v0  ;;  %17235 = vst [vmem:[#allocation83_spill] sm:$0xff] %v13955_v11  ;;  %17236 = vst [vmem:[#allocation84_spill] sm:$0xff] %v13957_v39  ;;  %v1151_v0 = vld [vmem:[#allocation3 + $0x418] sm:$0xff] }
  0xce   :  { %9334 = vmatpush1.bf16.msra.mxu0 %v13935_v6  ;;  %9303 = vmatprep.subr.bf16.mxu1 %v13937_v40  ;;  %v1103_v40 = vld [vmem:[#allocation3 + $0x298] sm:$0xff]  ;;  %v1158_v6 = vld [vmem:[#allocation3 + $0x450] sm:$0xff] }
  0xcf   :  { %9335 = vmatprep.subr.bf16.mxu0 %v17227_v25  ;;  %v13965_v24 = vpack.c.bf16 %v1103_v40, %v1096_v17  ;;  %v13967_v31 = vpack.c.bf16 %v1158_v6, %v1151_v0  ;;  %v1164_v6 = vld [vmem:[#allocation3 + $0x480] sm:$0xff] }
  0xd0   :  { %v1124_v17 = vld [vmem:[#allocation3 + $0x340] sm:$0xff]  ;;  %v13981_v36 = vpack.c.bf16 %v1171_v2, %v1164_v6 }
  0xd1   :  { %9305 = vmatpush1.bf16.msra.mxu1 %v13941_v26  ;;  %17238 = vst [vmem:[#allocation86_spill] sm:$0xff] %v13965_v24  ;;  %17239 = vst [vmem:[#allocation87_spill] sm:$0xff] %v13967_v31  ;;  %v1165_v26 = vld [vmem:[#allocation3 + $0x488] sm:$0xff]  ;;  %v1192_v2 = vld [vmem:[#allocation3 + $0x560] sm:$0xff] }
  0xd2   :  { %9337 = vmatpush1.bf16.msra.mxu0 %v13945_v55  ;;  %9307 = vmatprep.subr.bf16.mxu1 %v13947_v29  ;;  %v1117_v29 = vld [vmem:[#allocation3 + $0x308] sm:$0xff]  ;;  %v1172_v55 = vld [vmem:[#allocation3 + $0x4c0] sm:$0xff]  ;;  %17241 = vst [vmem:[#allocation89_spill] sm:$0xff] %v13981_v36 }
  0xd3   :  { %9338 = vmatprep.subr.bf16.mxu0 %v17227_v25  ;;  %v13975_v40 = vpack.c.bf16 %v1117_v29, %v1110_v59  ;;  %v13977_v0 = vpack.c.bf16 %v1172_v55, %v1165_v26  ;;  %v1178_v55 = vld [vmem:[#allocation3 + $0x4f0] sm:$0xff] }
  0xd4   :  { %v1138_v59 = vld [vmem:[#allocation3 + $0x3b0] sm:$0xff] }
  0xd5   :  { %9309 = vmatpush1.bf16.msra.mxu1 %v13951_v27  ;;  %17240 = vst [vmem:[#allocation88_spill] sm:$0xff] %v13977_v0  ;;  %v1179_v27 = vld [vmem:[#allocation3 + $0x4f8] sm:$0xff] }
  0xd6   :  { %9340 = vmatpush1.bf16.msra.mxu0 %v13955_v11  ;;  %9311 = vmatprep.subr.bf16.mxu1 %v13957_v39  ;;  %v1131_v39 = vld [vmem:[#allocation3 + $0x378] sm:$0xff]  ;;  %v1186_v11 = vld [vmem:[#allocation3 + $0x530] sm:$0xff] }
  0xd7   :  { %9341 = vmatprep.subr.bf16.mxu0 %v17227_v25  ;;  %v13985_v29 = vpack.c.bf16 %v1131_v39, %v1124_v17  ;;  %v13987_v26 = vpack.c.bf16 %v1186_v11, %v1179_v27  ;;  %v1193_v27 = vld [vmem:[#allocation3 + $0x568] sm:$0xff]  ;;  %v1152_v11 = vld [vmem:[#allocation3 + $0x420] sm:$0xff]  ;;  %v1159_v39 = vld [vmem:[#allocation3 + $0x458] sm:$0xff] }
  0xd8   :  { %v14000_v17 = vpack.c.bf16 %v1159_v39, %v1152_v11  ;;  %v1194_v11 = vld [vmem:[#allocation3 + $0x570] sm:$0xff] }
  0xd9   :  { %9313 = vmatpush1.bf16.msra.mxu1 %v13961_v30  ;;  %v13991_v30 = vpack.c.bf16 %v1185_v62, %v1178_v55  ;;  %v1166_v55 = vld [vmem:[#allocation3 + $0x490] sm:$0xff]  ;;  %v1173_v62 = vld [vmem:[#allocation3 + $0x4c8] sm:$0xff] }
  0xda   :  { %9343 = vmatpush1.bf16.msra.mxu0 %v13965_v24  ;;  %9315 = vmatprep.subr.bf16.mxu1 %v13967_v31  ;;  %v1145_v31 = vld [vmem:[#allocation3 + $0x3e8] sm:$0xff] }
  0xdb   :  { %9344 = vmatprep.subr.bf16.mxu0 %v17227_v25  ;;  %17242 = vst [vmem:[#allocation90_spill] sm:$0xff] %v13991_v30  ;;  %v13995_v6 = vpack.c.bf16 %v1145_v31, %v1138_v59  ;;  %v14005_v31 = vpack.c.bf16 %v1173_v62, %v1166_v55  ;;  %v1180_v59 = vld [vmem:[#allocation3 + $0x500] sm:$0xff] }
  0xdd   :  { %9317 = vmatpush1.bf16.msra.mxu1 %v13971_v10  ;;  %17243 = vst [vmem:[#allocation91_spill] sm:$0xff] %v13995_v6 }
  0xde   :  { %9346 = vmatpush1.bf16.msra.mxu0 %v13975_v40  ;;  %9319 = vmatprep.subr.bf16.mxu1 %v13977_v0 }
  0xdf   :  { %9347 = vmatprep.subr.bf16.mxu0 %v17227_v25 }
  0xe1   :  { %9321 = vmatpush1.bf16.msra.mxu1 %v13981_v36 }
  0xe2   :  { %9349 = vmatpush1.bf16.msra.mxu0 %v13985_v29  ;;  %9323 = vmatprep.subr.bf16.mxu1 %v13987_v26 }
  0xe3   :  { %9350 = vmatprep.subr.bf16.mxu0 %v17227_v25 }
  0xe5   :  { %9325 = vmatpush1.bf16.msra.mxu1 %v13991_v30  ;;  %v1187_v30 = vld [vmem:[#allocation3 + $0x538] sm:$0xff] }
  0xe6   :  { %9352 = vmatpush1.bf16.msra.mxu0 %v13995_v6  ;;  %1400 = vmatprep.subr.mxu1 %v1193_v27  ;;  %v14012_v27 = vpack.c.bf16 %v1187_v30, %v1180_v59  ;;  %v173_v30 = vlaneseq  ;;  %v14063_v59 = vld [vmem:[%s16888_s3] sm:$0x7f]  ;;  %s13108_s3 = smov 112  }
  0xe7   :  { %9353 = vmatprep.subr.bf16.mxu0 %v17227_v25 }
  0xe8   :  { %v14047_v39 = vshrl.u32 %v173_v30, 7 }
  0xe9   :  { %1401 = vmatpush1.msra.mxu1 %v1192_v2 }
  0xea   :  { %1417 = vmatmul.mubr.f32.vlgmr.msra.gmra.mrb[50].mxu1 %v17208_v50  ;;  %9355 = vmatpush1.bf16.msra.mxu0 %v14000_v17  ;;  %v14052_v2 = vsub.s32 0, %v14047_v39  ;;  %v183_v55 = vsub.s32 2, %v14047_v39  ;;  %v14058_v62 = vsub.s32 1, %v14047_v39 }
  0xeb   :  { %9356 = vmatprep.subr.bf16.mxu0 %v17227_v25  ;;  %9363 = vmatprep.subr.bf16.mxu1 %v13538_v15 }
  0xec   :  { %9365 = vmatpush1.bf16.msra.mxu1 %v13659_v41  ;;  %17244 = vst [vmem:[#allocation92_spill] sm:$0xff] %v14052_v2  ;;  %17245 = vst [vmem:[#allocation93_spill] sm:$0xff] %v14058_v62  ;;  %v14070_v30 = vrot.slane %v14063_v59, %v14052_v2 }
  0xed   :  { %9367 = vmatprep.subr.bf16.mxu1 %v13663_v45 }
  0xee   :  { %9358 = vmatpush1.bf16.msra.mxu0 %v14005_v31 }
  0xef   :  { %9359 = vmatprep.subr.bf16.mxu0 %v17227_v25 }
  0xf0   :  { %9369 = vmatpush1.bf16.msra.mxu1 %v13673_v54 }
  0xf1   :  { %9371 = vmatprep.subr.bf16.mxu1 %v13679_v18 }
  0xf2   :  { %9361 = vmatpush1.bf16.msra.mxu0 %v14012_v27 }
  0xf3   :  { %1471 = vmatprep.subr.mxu0 %v17208_v50 }
  0xf4   :  { %9373 = vmatpush1.bf16.msra.mxu1 %v13692_v4 }
  0xf5   :  { %9375 = vmatprep.subr.bf16.mxu1 %v13698_v7 }
  0xf6   :  { %1472 = vmatpush1.msra.mxu0 %v1194_v11  ;;  %v187_v11 = vsub.s32 3, %v14047_v39 }
  0xf7   :  { %1488 = vmatmul.mubr.f32.vlgmr.msra.gmra.mrb[66].mxu0 %v17208_v50  ;;  %9411 = vmatprep.subr.bf16.mxu0 %v13562_v22 }
  0xf8   :  { %9413 = vmatpush1.bf16.msra.mxu0 %v13661_v44  ;;  %9377 = vmatpush1.bf16.msra.mxu1 %v13711_v19 }
  0xf9   :  { %9415 = vmatprep.subr.bf16.mxu0 %v13665_v47  ;;  %9379 = vmatprep.subr.bf16.mxu1 %v13717_v32 }
  0xfc   :  { %9417 = vmatpush1.bf16.msra.mxu0 %v13676_v57  ;;  %9381 = vmatpush1.bf16.msra.mxu1 %v13730_v42 }
  0xfd   :  { %9419 = vmatprep.subr.bf16.mxu0 %v13682_v60  ;;  %9383 = vmatprep.subr.bf16.mxu1 %v13736_v49 }
 0x100   :  { %9421 = vmatpush1.bf16.msra.mxu0 %v13695_v28  ;;  %9385 = vmatpush1.bf16.msra.mxu1 %v13749_v61 }
 0x101   :  { %9423 = vmatprep.subr.bf16.mxu0 %v13701_v9  ;;  %9387 = vmatprep.subr.bf16.mxu1 %v13755_v1 }
 0x104   :  { %9425 = vmatpush1.bf16.msra.mxu0 %v13714_v38  ;;  %9389 = vmatpush1.bf16.msra.mxu1 %v13768_v14 }
 0x105   :  { %9427 = vmatprep.subr.bf16.mxu0 %v13720_v34  ;;  %9391 = vmatprep.subr.bf16.mxu1 %v13774_v21 }
 0x108   :  { %9429 = vmatpush1.bf16.msra.mxu0 %v13733_v48  ;;  %9393 = vmatpush1.bf16.msra.mxu1 %v13787_v46 }
 0x109   :  { %9431 = vmatprep.subr.bf16.mxu0 %v13739_v51  ;;  %9395 = vmatprep.subr.bf16.mxu1 %v13793_v53 }
 0x10c   :  { %9433 = vmatpush1.bf16.msra.mxu0 %v13752_v58  ;;  %9397 = vmatpush1.bf16.msra.mxu1 %v13806_v8 }
 0x10d   :  { %9435 = vmatprep.subr.bf16.mxu0 %v13758_v5  ;;  %9399 = vmatprep.subr.bf16.mxu1 %v13812_v12  ;;  %v14082_v12 = vrot.slane %v14063_v59, %v187_v11 }
 0x110   :  { %9437 = vmatpush1.bf16.msra.mxu0 %v13771_v3  ;;  %9401 = vmatpush1.bf16.msra.mxu1 %v13822_v43  ;;  %v14079_v43 = vrot.slane %v14063_v59, %v14058_v62  ;;  %v17251_v3 = vld [vmem:[#allocation57_spill] sm:$0xff] }
 0x111   :  { %9439 = vmatprep.subr.bf16.mxu0 %v13777_v35  ;;  %9403 = vmatprep.subr.bf16.mxu1 %v13828_v23  ;;  %v14075_v23 = vrot.slane %v14063_v59, %v183_v55 }
 0x114   :  { %9441 = vmatpush1.bf16.msra.mxu0 %v13790_v13  ;;  %9405 = vmatpush1.bf16.msra.mxu1 %v13837_v33 }
 0x115   :  { %9443 = vmatprep.subr.bf16.mxu0 %v13796_v56  ;;  %9407 = vmatprep.subr.bf16.mxu1 %v13843_v37  ;;  %v17246_v56 = vld [vmem:[#allocation51_spill] sm:$0xff] }
 0x118   :  { %v345_v8 = vpop.f32.mrb[0].mxu0  ;;  %9445 = vmatpush1.bf16.msra.mxu0 %v13809_v16  ;;  %9409 = vmatpush1.bf16.msra.mxu1 %v13852_v52  ;;  %v506_v2 = vpop.f32.mrb[0].mxu1 }
 0x119   :  { %v14087_v33 = vadd.f32 %v345_v8, %v14070_v30  ;;  %v347_v37 = vpop.f32.mrb[1].mxu0  ;;  %9447 = vmatprep.subr.bf16.mxu0 %v13815_v20  ;;  %1680 = vmatprep.subr.mxu1 %v13858_v63  ;;  %v14092_v55 = vadd.f32 %v506_v2, %v14075_v23  ;;  %v508_v62 = vpop.f32.mrb[1].mxu1  ;;  %v17247_v8 = vld [vmem:[#allocation61_spill] sm:$0xff]  ;;  %v17249_v2 = vld [vmem:[#allocation62_spill] sm:$0xff] }
 0x11a   :  { %v14095_v11 = vadd.f32 %v347_v37, %v14079_v43  ;;  %v14098_v16 = vadd.f32 %v508_v62, %v14082_v12  ;;  %v17248_v63 = vld [vmem:[#allocation53_spill] sm:$0xff] }
 0x11c   :  { %v351_v52 = vpop.f32.mrb[2].mxu0  ;;  %9449 = vmatpush1.bf16.msra.mxu0 %v17246_v56  ;;  %1681 = vmatpush1.msra.mxu1 %v17247_v8  ;;  %v512_v53 = vpop.f32.mrb[2].mxu1  ;;  %v17250_v8 = vld [vmem:[#allocation55_spill] sm:$0xff] }
 0x11d   :  { %v352_v20 = vadd.f32 %v351_v52, %v14070_v30  ;;  %v353_v13 = vpop.f32.mrb[3].mxu0  ;;  %9451 = vmatprep.subr.bf16.mxu0 %v17248_v63  ;;  %9459 = vmatprep.subr.bf16.mxu1 %v17249_v2  ;;  %v513_v46 = vadd.f32 %v512_v53, %v14075_v23  ;;  %v514_v37 = vpop.f32.mrb[3].mxu1 }
 0x11e   :  { %v354_v35 = vadd.f32 %v353_v13, %v14079_v43  ;;  %v515_v62 = vadd.f32 %v514_v37, %v14082_v12 }
 0x11f   :  { %915 = vst [vmem:[#allocation2 + $0x38] sm:$0xff] %v352_v20  ;;  %917 = vst [vmem:[#allocation2 + $0x48] sm:$0xff] %v513_v46  ;;  %v17252_v46 = vld [vmem:[#allocation59_spill] sm:$0xff] }
 0x120   :  { %916 = vst [vmem:[#allocation2 + $0x40] sm:$0xff] %v354_v35  ;;  %v357_v56 = vpop.f32.mrb[4].mxu0  ;;  %9453 = vmatpush1.bf16.msra.mxu0 %v17250_v8  ;;  %918 = vst [vmem:[#allocation2 + $0x50] sm:$0xff] %v515_v62  ;;  %v518_v52 = vpop.f32.mrb[4].mxu1  ;;  %v17253_v8 = vld [vmem:[#allocation60_spill] sm:$0xff] }
 0x121   :  { %v358_v21 = vadd.f32 %v357_v56, %v14070_v30  ;;  %v359_v63 = vpop.f32.mrb[5].mxu0  ;;  %9455 = vmatprep.subr.bf16.mxu0 %v17251_v3  ;;  %v519_v53 = vadd.f32 %v518_v52, %v14075_v23  ;;  %v520_v2 = vpop.f32.mrb[5].mxu1 }
 0x122   :  { %v360_v13 = vadd.f32 %v359_v63, %v14079_v43  ;;  %v521_v37 = vadd.f32 %v520_v2, %v14082_v12 }
 0x123   :  { %922 = vst [vmem:[#allocation2 + $0x70] sm:$0xff] %v358_v21  ;;  %924 = vst [vmem:[#allocation2 + $0x80] sm:$0xff] %v519_v53  ;;  %v17254_v53 = vld [vmem:[#allocation63_spill] sm:$0xff] }
 0x124   :  { %923 = vst [vmem:[#allocation2 + $0x78] sm:$0xff] %v360_v13  ;;  %v363_v35 = vpop.f32.mrb[6].mxu0  ;;  %9457 = vmatpush1.bf16.msra.mxu0 %v17252_v46  ;;  %925 = vst [vmem:[#allocation2 + $0x88] sm:$0xff] %v521_v37  ;;  %v524_v20 = vpop.f32.mrb[6].mxu1 }
 0x125   :  { %v364_v56 = vadd.f32 %v363_v35, %v14070_v30  ;;  %v365_v62 = vpop.f32.mrb[7].mxu0  ;;  %1751 = vmatprep.subr.mxu0 %v17253_v8  ;;  %v525_v52 = vadd.f32 %v524_v20, %v14075_v23  ;;  %v526_v3 = vpop.f32.mrb[7].mxu1 }
 0x126   :  { %v366_v63 = vadd.f32 %v365_v62, %v14079_v43  ;;  %v527_v2 = vadd.f32 %v526_v3, %v14082_v12 }
 0x127   :  { %929 = vst [vmem:[#allocation2 + $0xa8] sm:$0xff] %v364_v56  ;;  %931 = vst [vmem:[#allocation2 + $0xb8] sm:$0xff] %v525_v52 }
 0x128   :  { %930 = vst [vmem:[#allocation2 + $0xb0] sm:$0xff] %v366_v63  ;;  %v369_v21 = vpop.f32.mrb[8].mxu0  ;;  %1752 = vmatpush1.msra.mxu0 %v17254_v53  ;;  %932 = vst [vmem:[#allocation2 + $0xc0] sm:$0xff] %v527_v2  ;;  %v530_v13 = vpop.f32.mrb[8].mxu1 }
 0x129   :  { %v370_v37 = vadd.f32 %v369_v21, %v14070_v30  ;;  %v371_v35 = vpop.f32.mrb[9].mxu0  ;;  %9506 = vmatprep.subr.bf16.mxu0 %v17227_v25  ;;  %v531_v8 = vadd.f32 %v530_v13, %v14075_v23  ;;  %v532_v20 = vpop.f32.mrb[9].mxu1 }
 0x12a   :  { %v372_v62 = vadd.f32 %v371_v35, %v14079_v43  ;;  %v533_v3 = vadd.f32 %v532_v20, %v14082_v12 }
 0x12b   :  { %936 = vst [vmem:[#allocation2 + $0xe0] sm:$0xff] %v370_v37  ;;  %938 = vst [vmem:[#allocation2 + $0xf0] sm:$0xff] %v531_v8 }
 0x12c   :  { %937 = vst [vmem:[#allocation2 + $0xe8] sm:$0xff] %v372_v62  ;;  %v375_v56 = vpop.f32.mrb[10].mxu0  ;;  %939 = vst [vmem:[#allocation2 + $0xf8] sm:$0xff] %v533_v3  ;;  %v536_v52 = vpop.f32.mrb[10].mxu1 }
 0x12d   :  { %v376_v63 = vadd.f32 %v375_v56, %v14070_v30  ;;  %v377_v2 = vpop.f32.mrb[11].mxu0  ;;  %v537_v21 = vadd.f32 %v536_v52, %v14075_v23  ;;  %v538_v53 = vpop.f32.mrb[11].mxu1 }
 0x12e   :  { %v378_v46 = vadd.f32 %v377_v2, %v14079_v43  ;;  %v539_v13 = vadd.f32 %v538_v53, %v14082_v12 }
 0x12f   :  { %943 = vst [vmem:[#allocation2 + $0x118] sm:$0xff] %v376_v63  ;;  %945 = vst [vmem:[#allocation2 + $0x128] sm:$0xff] %v537_v21 }
 0x130   :  { %944 = vst [vmem:[#allocation2 + $0x120] sm:$0xff] %v378_v46  ;;  %v381_v35 = vpop.f32.mrb[12].mxu0  ;;  %946 = vst [vmem:[#allocation2 + $0x130] sm:$0xff] %v539_v13  ;;  %v542_v37 = vpop.f32.mrb[12].mxu1 }
 0x131   :  { %v382_v8 = vadd.f32 %v381_v35, %v14070_v30  ;;  %v383_v20 = vpop.f32.mrb[13].mxu0  ;;  %v543_v62 = vadd.f32 %v542_v37, %v14075_v23  ;;  %v544_v3 = vpop.f32.mrb[13].mxu1 }
 0x132   :  { %v384_v56 = vadd.f32 %v383_v20, %v14079_v43  ;;  %v545_v52 = vadd.f32 %v544_v3, %v14082_v12 }
 0x133   :  { %950 = vst [vmem:[#allocation2 + $0x150] sm:$0xff] %v382_v8  ;;  %952 = vst [vmem:[#allocation2 + $0x160] sm:$0xff] %v543_v62 }
 0x134   :  { %951 = vst [vmem:[#allocation2 + $0x158] sm:$0xff] %v384_v56  ;;  %v387_v2 = vpop.f32.mrb[14].mxu0  ;;  %953 = vst [vmem:[#allocation2 + $0x168] sm:$0xff] %v545_v52  ;;  %v548_v63 = vpop.f32.mrb[14].mxu1 }
 0x135   :  { %v388_v46 = vadd.f32 %v387_v2, %v14070_v30  ;;  %v389_v21 = vpop.f32.mrb[15].mxu0  ;;  %v549_v53 = vadd.f32 %v548_v63, %v14075_v23  ;;  %v550_v13 = vpop.f32.mrb[15].mxu1 }
 0x136   :  { %v390_v35 = vadd.f32 %v389_v21, %v14079_v43  ;;  %v551_v37 = vadd.f32 %v550_v13, %v14082_v12 }
 0x137   :  { %957 = vst [vmem:[#allocation2 + $0x188] sm:$0xff] %v388_v46  ;;  %959 = vst [vmem:[#allocation2 + $0x198] sm:$0xff] %v549_v53 }
 0x138   :  { %958 = vst [vmem:[#allocation2 + $0x190] sm:$0xff] %v390_v35  ;;  %v393_v20 = vpop.f32.mrb[16].mxu0  ;;  %960 = vst [vmem:[#allocation2 + $0x1a0] sm:$0xff] %v551_v37  ;;  %v554_v8 = vpop.f32.mrb[16].mxu1 }
 0x139   :  { %v394_v62 = vadd.f32 %v393_v20, %v14070_v30  ;;  %v395_v3 = vpop.f32.mrb[17].mxu0  ;;  %v555_v56 = vadd.f32 %v554_v8, %v14075_v23  ;;  %v556_v52 = vpop.f32.mrb[17].mxu1 }
 0x13a   :  { %v396_v2 = vadd.f32 %v395_v3, %v14079_v43  ;;  %v557_v63 = vadd.f32 %v556_v52, %v14082_v12 }
 0x13b   :  { %964 = vst [vmem:[#allocation2 + $0x1c0] sm:$0xff] %v394_v62  ;;  %966 = vst [vmem:[#allocation2 + $0x1d0] sm:$0xff] %v555_v56 }
 0x13c   :  { %965 = vst [vmem:[#allocation2 + $0x1c8] sm:$0xff] %v396_v2  ;;  %v399_v21 = vpop.f32.mrb[18].mxu0  ;;  %967 = vst [vmem:[#allocation2 + $0x1d8] sm:$0xff] %v557_v63  ;;  %v560_v46 = vpop.f32.mrb[18].mxu1 }
 0x13d   :  { %v400_v53 = vadd.f32 %v399_v21, %v14070_v30  ;;  %v401_v13 = vpop.f32.mrb[19].mxu0  ;;  %v561_v35 = vadd.f32 %v560_v46, %v14075_v23  ;;  %v562_v37 = vpop.f32.mrb[19].mxu1 }
 0x13e   :  { %v402_v20 = vadd.f32 %v401_v13, %v14079_v43  ;;  %v563_v8 = vadd.f32 %v562_v37, %v14082_v12 }
 0x13f   :  { %971 = vst [vmem:[#allocation2 + $0x1f8] sm:$0xff] %v400_v53  ;;  %973 = vst [vmem:[#allocation2 + $0x208] sm:$0xff] %v561_v35 }
 0x140   :  { %972 = vst [vmem:[#allocation2 + $0x200] sm:$0xff] %v402_v20  ;;  %v405_v3 = vpop.f32.mrb[20].mxu0  ;;  %974 = vst [vmem:[#allocation2 + $0x210] sm:$0xff] %v563_v8  ;;  %v566_v62 = vpop.f32.mrb[20].mxu1 }
 0x141   :  { %v406_v56 = vadd.f32 %v405_v3, %v14070_v30  ;;  %v407_v52 = vpop.f32.mrb[21].mxu0  ;;  %v567_v2 = vadd.f32 %v566_v62, %v14075_v23  ;;  %v568_v63 = vpop.f32.mrb[21].mxu1 }
 0x142   :  { %v408_v21 = vadd.f32 %v407_v52, %v14079_v43  ;;  %v569_v46 = vadd.f32 %v568_v63, %v14082_v12 }
 0x143   :  { %978 = vst [vmem:[#allocation2 + $0x230] sm:$0xff] %v406_v56  ;;  %980 = vst [vmem:[#allocation2 + $0x240] sm:$0xff] %v567_v2 }
 0x144   :  { %979 = vst [vmem:[#allocation2 + $0x238] sm:$0xff] %v408_v21  ;;  %v411_v13 = vpop.f32.mrb[22].mxu0  ;;  %981 = vst [vmem:[#allocation2 + $0x248] sm:$0xff] %v569_v46  ;;  %v572_v53 = vpop.f32.mrb[22].mxu1 }
 0x145   :  { %v412_v35 = vadd.f32 %v411_v13, %v14070_v30  ;;  %v413_v37 = vpop.f32.mrb[23].mxu0  ;;  %v573_v20 = vadd.f32 %v572_v53, %v14075_v23  ;;  %v574_v8 = vpop.f32.mrb[23].mxu1 }
 0x146   :  { %v414_v3 = vadd.f32 %v413_v37, %v14079_v43  ;;  %v575_v62 = vadd.f32 %v574_v8, %v14082_v12 }
 0x147   :  { %985 = vst [vmem:[#allocation2 + $0x268] sm:$0xff] %v412_v35  ;;  %987 = vst [vmem:[#allocation2 + $0x278] sm:$0xff] %v573_v20 }
 0x148   :  { %986 = vst [vmem:[#allocation2 + $0x270] sm:$0xff] %v414_v3  ;;  %v417_v52 = vpop.f32.mrb[24].mxu0  ;;  %988 = vst [vmem:[#allocation2 + $0x280] sm:$0xff] %v575_v62  ;;  %v578_v56 = vpop.f32.mrb[24].mxu1 }
 0x149   :  { %v418_v2 = vadd.f32 %v417_v52, %v14070_v30  ;;  %v419_v63 = vpop.f32.mrb[25].mxu0  ;;  %v579_v21 = vadd.f32 %v578_v56, %v14075_v23  ;;  %v580_v46 = vpop.f32.mrb[25].mxu1 }
 0x14a   :  { %v420_v13 = vadd.f32 %v419_v63, %v14079_v43  ;;  %v581_v53 = vadd.f32 %v580_v46, %v14082_v12 }
 0x14b   :  { %992 = vst [vmem:[#allocation2 + $0x2a0] sm:$0xff] %v418_v2  ;;  %994 = vst [vmem:[#allocation2 + $0x2b0] sm:$0xff] %v579_v21 }
 0x14c   :  { %993 = vst [vmem:[#allocation2 + $0x2a8] sm:$0xff] %v420_v13  ;;  %v423_v37 = vpop.f32.mrb[26].mxu0  ;;  %995 = vst [vmem:[#allocation2 + $0x2b8] sm:$0xff] %v581_v53  ;;  %v584_v35 = vpop.f32.mrb[26].mxu1  ;;  %v191_v13 = vsub.s32 4, %v14047_v39 }
 0x14d   :  { %v424_v20 = vadd.f32 %v423_v37, %v14070_v30  ;;  %v425_v8 = vpop.f32.mrb[27].mxu0  ;;  %v585_v3 = vadd.f32 %v584_v35, %v14075_v23  ;;  %v586_v62 = vpop.f32.mrb[27].mxu1  ;;  %v199_v35 = vsub.s32 6, %v14047_v39 }
 0x14e   :  { %v426_v52 = vadd.f32 %v425_v8, %v14079_v43  ;;  %v587_v56 = vadd.f32 %v586_v62, %v14082_v12  ;;  %v195_v62 = vsub.s32 5, %v14047_v39 }
 0x14f   :  { %999 = vst [vmem:[#allocation2 + $0x2d8] sm:$0xff] %v424_v20  ;;  %1001 = vst [vmem:[#allocation2 + $0x2e8] sm:$0xff] %v585_v3 }
 0x150   :  { %1000 = vst [vmem:[#allocation2 + $0x2e0] sm:$0xff] %v426_v52  ;;  %v429_v63 = vpop.f32.mrb[28].mxu0  ;;  %1002 = vst [vmem:[#allocation2 + $0x2f0] sm:$0xff] %v587_v56  ;;  %v590_v2 = vpop.f32.mrb[28].mxu1 }
 0x151   :  { %v430_v21 = vadd.f32 %v429_v63, %v14070_v30  ;;  %v431_v46 = vpop.f32.mrb[29].mxu0  ;;  %v591_v53 = vadd.f32 %v590_v2, %v14075_v23  ;;  %v592_v37 = vpop.f32.mrb[29].mxu1  ;;  %v14171_v2 = vrot.slane %v14063_v59, %v191_v13 }
 0x152   :  { %v432_v8 = vadd.f32 %v431_v46, %v14079_v43  ;;  %v593_v20 = vadd.f32 %v592_v37, %v14082_v12  ;;  %v14175_v46 = vrot.slane %v14063_v59, %v199_v35 }
 0x153   :  { %1006 = vst [vmem:[#allocation2 + $0x310] sm:$0xff] %v430_v21  ;;  %1008 = vst [vmem:[#allocation2 + $0x320] sm:$0xff] %v591_v53  ;;  %v14179_v21 = vrot.slane %v14063_v59, %v195_v62 }
 0x154   :  { %1007 = vst [vmem:[#allocation2 + $0x318] sm:$0xff] %v432_v8  ;;  %v435_v3 = vpop.f32.mrb[30].mxu0  ;;  %1009 = vst [vmem:[#allocation2 + $0x328] sm:$0xff] %v593_v20  ;;  %v596_v52 = vpop.f32.mrb[30].mxu1 }
 0x155   :  { %v436_v56 = vadd.f32 %v435_v3, %v14070_v30  ;;  %v437_v63 = vpop.f32.mrb[31].mxu0  ;;  %v597_v14 = vadd.f32 %v596_v52, %v14075_v23  ;;  %v598_v5 = vpop.f32.mrb[31].mxu1 }
 0x156   :  { %v438_v39 = vadd.f32 %v437_v63, %v14079_v43  ;;  %v599_v53 = vadd.f32 %v598_v5, %v14082_v12 }
 0x157   :  { %1013 = vst [vmem:[#allocation2 + $0x348] sm:$0xff] %v436_v56  ;;  %1015 = vst [vmem:[#allocation2 + $0x358] sm:$0xff] %v597_v14 }
 0x158   :  { %1014 = vst [vmem:[#allocation2 + $0x350] sm:$0xff] %v438_v39  ;;  %v667_v30 = vpop.f32.mrb[32].mxu0  ;;  %1016 = vst [vmem:[#allocation2 + $0x360] sm:$0xff] %v599_v53  ;;  %v9064_v13 = vpop.f32.mrb[32].mxu1 }
 0x159   :  { %v14183_v23 = vadd.f32 %v667_v30, %v14171_v2  ;;  %v669_v37 = vpop.f32.mrb[33].mxu0  ;;  %v834_v35 = vadd.f32 %v9064_v13, %v14175_v46  ;;  %v828_v8 = vpop.f32.mrb[33].mxu1 }
 0x15a   :  { %v14187_v43 = vadd.f32 %v669_v37, %v14179_v21  ;;  %v829_v59 = vadd.f32 %v828_v8, %v14175_v46 }
 0x15b   :  { %921 = vst.msk [vmem:[#allocation2 + $0x68] sm:$0xff] %vm913_vm2, %v834_v35 }
 0x15c   :  { %v673_v5 = vpop.f32.mrb[34].mxu0  ;;  %914 = vst.msk [vmem:[#allocation2 + $0x30] sm:$0xff] %vm913_vm2, %v829_v59  ;;  %v9067_v14 = vpop.f32.mrb[34].mxu1 }
 0x15d   :  { %v14193_v12 = vadd.f32 %v673_v5, %v14171_v2  ;;  %v675_v62 = vpop.f32.mrb[35].mxu0  ;;  %v844_v20 = vadd.f32 %v9067_v14, %v14175_v46  ;;  %v838_v3 = vpop.f32.mrb[35].mxu1 }
 0x15e   :  { %v14197_v52 = vadd.f32 %v675_v62, %v14179_v21  ;;  %v839_v56 = vadd.f32 %v838_v3, %v14175_v46 }
 0x15f   :  { %935 = vst.msk [vmem:[#allocation2 + $0xd8] sm:$0xff] %vm913_vm2, %v844_v20 }
 0x160   :  { %v679_v63 = vpop.f32.mrb[36].mxu0  ;;  %928 = vst.msk [vmem:[#allocation2 + $0xa0] sm:$0xff] %vm913_vm2, %v839_v56  ;;  %v9070_v39 = vpop.f32.mrb[36].mxu1 }
 0x161   :  { %v680_v53 = vadd.f32 %v679_v63, %v14171_v2  ;;  %v681_v30 = vpop.f32.mrb[37].mxu0  ;;  %v854_v13 = vadd.f32 %v9070_v39, %v14175_v46  ;;  %v848_v37 = vpop.f32.mrb[37].mxu1 }
 0x162   :  { %v682_v35 = vadd.f32 %v681_v30, %v14179_v21  ;;  %v849_v8 = vadd.f32 %v848_v37, %v14175_v46 }
 0x163   :  { %926 = vst [vmem:[#allocation2 + $0x90] sm:$0xff] %v680_v53  ;;  %949 = vst.msk [vmem:[#allocation2 + $0x148] sm:$0xff] %vm913_vm2, %v854_v13 }
 0x164   :  { %927 = vst [vmem:[#allocation2 + $0x98] sm:$0xff] %v682_v35  ;;  %v685_v59 = vpop.f32.mrb[38].mxu0  ;;  %942 = vst.msk [vmem:[#allocation2 + $0x110] sm:$0xff] %vm913_vm2, %v849_v8  ;;  %v9073_v5 = vpop.f32.mrb[38].mxu1 }
 0x165   :  { %v686_v14 = vadd.f32 %v685_v59, %v14171_v2  ;;  %v687_v62 = vpop.f32.mrb[39].mxu0  ;;  %v864_v20 = vadd.f32 %v9073_v5, %v14175_v46  ;;  %v858_v3 = vpop.f32.mrb[39].mxu1 }
 0x166   :  { %v688_v56 = vadd.f32 %v687_v62, %v14179_v21  ;;  %v859_v63 = vadd.f32 %v858_v3, %v14175_v46 }
 0x167   :  { %933 = vst [vmem:[#allocation2 + $0xc8] sm:$0xff] %v686_v14  ;;  %963 = vst.msk [vmem:[#allocation2 + $0x1b8] sm:$0xff] %vm913_vm2, %v864_v20 }
 0x168   :  { %934 = vst [vmem:[#allocation2 + $0xd0] sm:$0xff] %v688_v56  ;;  %v691_v39 = vpop.f32.mrb[40].mxu0  ;;  %956 = vst.msk [vmem:[#allocation2 + $0x180] sm:$0xff] %vm913_vm2, %v859_v63  ;;  %v9076_v53 = vpop.f32.mrb[40].mxu1 }
 0x169   :  { %v692_v30 = vadd.f32 %v691_v39, %v14171_v2  ;;  %v693_v13 = vpop.f32.mrb[41].mxu0  ;;  %v874_v37 = vadd.f32 %v9076_v53, %v14175_v46  ;;  %v868_v35 = vpop.f32.mrb[41].mxu1 }
 0x16a   :  { %v694_v8 = vadd.f32 %v693_v13, %v14179_v21  ;;  %v869_v59 = vadd.f32 %v868_v35, %v14175_v46 }
 0x16b   :  { %940 = vst [vmem:[#allocation2 + $0x100] sm:$0xff] %v692_v30  ;;  %977 = vst.msk [vmem:[#allocation2 + $0x228] sm:$0xff] %vm913_vm2, %v874_v37 }
 0x16c   :  { %941 = vst [vmem:[#allocation2 + $0x108] sm:$0xff] %v694_v8  ;;  %v697_v5 = vpop.f32.mrb[42].mxu0  ;;  %970 = vst.msk [vmem:[#allocation2 + $0x1f0] sm:$0xff] %vm913_vm2, %v869_v59  ;;  %v9079_v14 = vpop.f32.mrb[42].mxu1 }
 0x16d   :  { %v698_v62 = vadd.f32 %v697_v5, %v14171_v2  ;;  %v699_v20 = vpop.f32.mrb[43].mxu0  ;;  %v884_v3 = vadd.f32 %v9079_v14, %v14175_v46  ;;  %v878_v56 = vpop.f32.mrb[43].mxu1 }
 0x16e   :  { %v700_v63 = vadd.f32 %v699_v20, %v14179_v21  ;;  %v879_v39 = vadd.f32 %v878_v56, %v14175_v46 }
 0x16f   :  { %947 = vst [vmem:[#allocation2 + $0x138] sm:$0xff] %v698_v62  ;;  %991 = vst.msk [vmem:[#allocation2 + $0x298] sm:$0xff] %vm913_vm2, %v884_v3 }
 0x170   :  { %948 = vst [vmem:[#allocation2 + $0x140] sm:$0xff] %v700_v63  ;;  %v703_v53 = vpop.f32.mrb[44].mxu0  ;;  %984 = vst.msk [vmem:[#allocation2 + $0x260] sm:$0xff] %vm913_vm2, %v879_v39  ;;  %v9082_v30 = vpop.f32.mrb[44].mxu1 }
 0x171   :  { %v704_v13 = vadd.f32 %v703_v53, %v14171_v2  ;;  %v705_v37 = vpop.f32.mrb[45].mxu0  ;;  %v894_v35 = vadd.f32 %v9082_v30, %v14175_v46  ;;  %v888_v8 = vpop.f32.mrb[45].mxu1 }
 0x172   :  { %v706_v59 = vadd.f32 %v705_v37, %v14179_v21  ;;  %v889_v5 = vadd.f32 %v888_v8, %v14175_v46 }
 0x173   :  { %954 = vst [vmem:[#allocation2 + $0x170] sm:$0xff] %v704_v13  ;;  %1005 = vst.msk [vmem:[#allocation2 + $0x308] sm:$0xff] %vm913_vm2, %v894_v35 }
 0x174   :  { %955 = vst [vmem:[#allocation2 + $0x178] sm:$0xff] %v706_v59  ;;  %v709_v14 = vpop.f32.mrb[46].mxu0  ;;  %998 = vst.msk [vmem:[#allocation2 + $0x2d0] sm:$0xff] %vm913_vm2, %v889_v5  ;;  %v9085_v20 = vpop.f32.mrb[46].mxu1 }
 0x175   :  { %v710_v62 = vadd.f32 %v709_v14, %v14171_v2  ;;  %v711_v3 = vpop.f32.mrb[47].mxu0  ;;  %v904_v56 = vadd.f32 %v9085_v20, %v14175_v46  ;;  %v898_v39 = vpop.f32.mrb[47].mxu1 }
 0x176   :  { %v712_v63 = vadd.f32 %v711_v3, %v14179_v21  ;;  %v899_v53 = vadd.f32 %v898_v39, %v14175_v46 }
 0x177   :  { %961 = vst [vmem:[#allocation2 + $0x1a8] sm:$0xff] %v710_v62  ;;  %1019 = vst.msk [vmem:[#allocation2 + $0x378] sm:$0xff] %vm913_vm2, %v904_v56 }
 0x178   :  { %962 = vst [vmem:[#allocation2 + $0x1b0] sm:$0xff] %v712_v63  ;;  %v715_v30 = vpop.f32.mrb[48].mxu0  ;;  %1012 = vst.msk [vmem:[#allocation2 + $0x340] sm:$0xff] %vm913_vm2, %v899_v53 }
 0x179   :  { %v716_v13 = vadd.f32 %v715_v30, %v14171_v2  ;;  %v717_v37 = vpop.f32.mrb[49].mxu0 }
 0x17a   :  { %v718_v35 = vadd.f32 %v717_v37, %v14179_v21 }
 0x17b   :  { %968 = vst [vmem:[#allocation2 + $0x1e0] sm:$0xff] %v716_v13 }
 0x17c   :  { %969 = vst [vmem:[#allocation2 + $0x1e8] sm:$0xff] %v718_v35  ;;  %v721_v8 = vpop.f32.mrb[50].mxu0 }
 0x17d   :  { %v722_v59 = vadd.f32 %v721_v8, %v14171_v2  ;;  %v723_v5 = vpop.f32.mrb[51].mxu0 }
 0x17e   :  { %v724_v14 = vadd.f32 %v723_v5, %v14179_v21 }
 0x17f   :  { %975 = vst [vmem:[#allocation2 + $0x218] sm:$0xff] %v722_v59 }
 0x180   :  { %976 = vst [vmem:[#allocation2 + $0x220] sm:$0xff] %v724_v14  ;;  %v727_v46 = vpop.f32.mrb[52].mxu0 }
 0x181   :  { %v728_v62 = vadd.f32 %v727_v46, %v14171_v2  ;;  %v729_v20 = vpop.f32.mrb[53].mxu0 }
 0x182   :  { %v730_v3 = vadd.f32 %v729_v20, %v14179_v21 }
 0x183   :  { %982 = vst [vmem:[#allocation2 + $0x250] sm:$0xff] %v728_v62 }
 0x184   :  { %983 = vst [vmem:[#allocation2 + $0x258] sm:$0xff] %v730_v3  ;;  %v733_v56 = vpop.f32.mrb[54].mxu0 }
 0x185   :  { %v734_v63 = vadd.f32 %v733_v56, %v14171_v2  ;;  %v735_v39 = vpop.f32.mrb[55].mxu0 }
 0x186   :  { %v736_v53 = vadd.f32 %v735_v39, %v14179_v21 }
 0x187   :  { %989 = vst [vmem:[#allocation2 + $0x288] sm:$0xff] %v734_v63 }
 0x188   :  { %990 = vst [vmem:[#allocation2 + $0x290] sm:$0xff] %v736_v53  ;;  %v739_v30 = vpop.f32.mrb[56].mxu0 }
 0x189   :  { %v740_v13 = vadd.f32 %v739_v30, %v14171_v2  ;;  %v741_v37 = vpop.f32.mrb[57].mxu0 }
 0x18a   :  { %v742_v35 = vadd.f32 %v741_v37, %v14179_v21  ;;  %v1276_v8 = vpop.f32.mrb[48].mxu1 }
 0x18b   :  { %996 = vst [vmem:[#allocation2 + $0x2c0] sm:$0xff] %v740_v13  ;;  %v1278_v59 = vpop.f32.mrb[49].mxu1 }
 0x18c   :  { %997 = vst [vmem:[#allocation2 + $0x2c8] sm:$0xff] %v742_v35  ;;  %v745_v5 = vpop.f32.mrb[58].mxu0 }
 0x18d   :  { %v746_v14 = vadd.f32 %v745_v5, %v14171_v2  ;;  %v747_v46 = vpop.f32.mrb[59].mxu0 }
 0x18e   :  { %v748_v62 = vadd.f32 %v747_v46, %v14179_v21 }
 0x18f   :  { %1003 = vst [vmem:[#allocation2 + $0x2f8] sm:$0xff] %v746_v14 }
 0x190   :  { %1004 = vst [vmem:[#allocation2 + $0x300] sm:$0xff] %v748_v62  ;;  %v751_v20 = vpop.f32.mrb[60].mxu0 }
 0x191   :  { %v752_v3 = vadd.f32 %v751_v20, %v14171_v2  ;;  %v753_v56 = vpop.f32.mrb[61].mxu0 }
 0x192   :  { %v754_v63 = vadd.f32 %v753_v56, %v14179_v21  ;;  %v1493_v56 = vadd.f32 %v1276_v8, %v14087_v33 }
 0x193   :  { %1010 = vst [vmem:[#allocation2 + $0x330] sm:$0xff] %v752_v3 }
 0x194   :  { %1011 = vst [vmem:[#allocation2 + $0x338] sm:$0xff] %v754_v63  ;;  %v757_v39 = vpop.f32.mrb[62].mxu0  ;;  %v1494_v63 = vadd.f32 %v1278_v59, %v14095_v11 }
 0x195   :  { %v758_v53 = vadd.f32 %v757_v39, %v14171_v2  ;;  %v759_v30 = vpop.f32.mrb[63].mxu0 }
 0x196   :  { %v760_v13 = vadd.f32 %v759_v30, %v14179_v21  ;;  %v8785_v39 = vmul.f32 -1.442695, %v1494_v63 }
 0x197   :  { %1017 = vst [vmem:[#allocation2 + $0x368] sm:$0xff] %v758_v53 }
 0x198   :  { %1018 = vst [vmem:[#allocation2 + $0x370] sm:$0xff] %v760_v13  ;;  %v1347_v37 = vpop.f32.mrb[64].mxu0 }
 0x199   :  { %v1349_v35 = vpop.f32.mrb[65].mxu0  ;;  %v1495_v8 = vadd.f32 %v1347_v37, %v14092_v55 }
 0x19a   :  { %v1496_v5 = vadd.f32 %v1349_v35, %v14098_v16  ;;  %v8784_v16 = vmul.f32 -1.442695, %v1493_v56 }
 0x19b   :  { %v8786_v56 = vmul.f32 -1.442695, %v1495_v8 }
 0x19c   :  { %12381 = vtanh.f32 %v1496_v5  ;;  %v8787_v59 = vmul.f32 -1.442695, %v1496_v5 }
 0x1a6   :  { %v12382_v14 = vpop.eup %12381 }
 0x1a7   :  { %1549 = vrot.lane.b32.xlu0 %v12382_v14, %s13108_s3 }
 0x1bd   :  { %v1418_v46 = vpop.f32.mrb[50].mxu1 }
 0x1be   :  { %v14257_v62 = vadd.f32 %v1418_v46, %v14183_v23  ;;  %v1420_v20 = vpop.f32.mrb[51].mxu1 }
 0x1c0   :  { %12383 = vtanh.f32 %v14257_v62 }
 0x1c1   :  { %12385 = vpow2.f32 %v8784_v16 }
 0x1c2   :  { %12387 = vpow2.f32 %v8785_v39 }
 0x1ca   :  { %v12384_v2 = vpop.eup %12383  ;;  %v1489_v21 = vpop.f32.mrb[66].mxu0 }
 0x1cb   :  { %1551 = vrot.lane.b32.xlu0 %v12384_v2, %s13108_s3  ;;  %v1491_v3 = vpop.f32.mrb[67].mxu0  ;;  %v12386_v53 = vpop.eup %12385 }
 0x1cc   :  { %v1506_v30 = vadd.f32 1.0, %v12386_v53  ;;  %v12388_v23 = vpop.eup %12387 }
 0x1cd   :  { %v1507_v13 = vadd.f32 1.0, %v12388_v23 }
 0x1ce   :  { %12389 = vrcp.f32 %v1506_v30 }
 0x1cf   :  { %12391 = vrcp.f32 %v1507_v13 }
 0x1d0   :  { %12393 = vpow2.f32 %v8787_v59  ;;  %v1498_v59 = vadd.f32 %v1420_v20, %v14187_v43 }
 0x1d1   :  { %12395 = vpow2.f32 %v8786_v56  ;;  %v1205_v56 = vld [vmem:[#allocation2 + $0x30] sm:$0xff] }
 0x1d8   :  { %v12390_v46 = vpop.eup %12389 }
 0x1d9   :  { %v12392_v33 = vpop.eup %12391 }
 0x1da   :  { %v12394_v16 = vpop.eup %12393  ;;  %v1544_v30 = vmul.f32 0.0, %v12392_v33 }
 0x1db   :  { %v12396_v63 = vpop.eup %12395  ;;  %v1519_v39 = vadd.f32 1.0, %v12394_v16  ;;  %v1499_v16 = vadd.f32 %v1489_v21, %v1205_v56 }
 0x1dc   :  { %v1518_v53 = vadd.f32 1.0, %v12396_v63  ;;  %v8789_v63 = vmul.f32 -1.442695, %v1498_v59 }
 0x1dd   :  { %12397 = vrcp.f32 %v1519_v39  ;;  %v8790_v39 = vmul.f32 -1.442695, %v1499_v16 }
 0x1de   :  { %12399 = vrcp.f32 %v1518_v53  ;;  %v8788_v53 = vmul.f32 -1.442695, %v14257_v62 }
 0x1e7   :  { %v12398_v23 = vpop.eup %12397 }
 0x1e8   :  { %v1546_v55 = vmul.f32 0.0, %v12398_v23 }
 0x219   :  { %v1550_v35 = vpop.permute.xlu0 %1549 }
 0x23d   :  { %v1552_v14 = vpop.permute.xlu0 %1551 }
 0x23e   :  { %v1554_v2 = vsel %vm1553_vm3, %v1550_v35, %v1552_v14  ;;  %v1558_v11 = vmul.f32 %v12392_v33, %v1552_v14  ;;  %v12400_v35 = vpop.eup %12399 }
 0x23f   :  { %v1557_v3 = vmul.f32 %v12390_v46, %v1554_v2  ;;  %v1545_v37 = vmul.f32 0.0, %v12400_v35 }
 0x241   :  { %1561 = vrot.lane.b32.xlu1 %v1557_v3, %s13109_s24 }
 0x245   :  { %1563 = vrot.lane.b32.xlu1 %v1558_v11, %s13109_s24 }
 0x2b3   :  { %v1562_v13 = vpop.permute.xlu1 %1561 }
 0x2b4   :  { %v14267_v46 = vadd.f32 %v1562_v13, %v1544_v30 }
 0x2b6   :  { %12401 = vtanh.f32 %v14267_v46 }
 0x2b7   :  { %v1564_v5 = vpop.permute.xlu1 %1563 }
 0x2b8   :  { %v1565_v14 = vsel %vm1206_vm4, %v1562_v13, %v1564_v5  ;;  %v14271_v2 = vadd.f32 %v1564_v5, %v1546_v55 }
 0x2b9   :  { %v14273_v3 = vadd.f32 %v1565_v14, %v1545_v37 }
 0x2ba   :  { %12403 = vtanh.f32 %v14271_v2 }
 0x2bb   :  { %12405 = vtanh.f32 %v14273_v3 }
 0x2bc   :  { %12407 = vpow2.f32 %v8789_v63 }
 0x2bd   :  { %12409 = vpow2.f32 %v8790_v39 }
 0x2be   :  { %12411 = vpow2.f32 %v8788_v53 }
 0x2c0   :  { %v12402_v33 = vpop.eup %12401 }
 0x2c1   :  { %1578 = vrot.lane.b32.xlu0 %v12402_v33, %s13105_s14 }
 0x2c4   :  { %v12404_v11 = vpop.eup %12403 }
 0x2c5   :  { %v12406_v8 = vpop.eup %12405  ;;  %1582 = vrot.lane.b32.xlu0 %v12404_v11, %s13105_s14 }
 0x2c6   :  { %1580 = vrot.lane.b32.xlu1 %v12406_v8, %s13105_s14  ;;  %v12408_v30 = vpop.eup %12407 }
 0x2c7   :  { %v12410_v23 = vpop.eup %12409  ;;  %v1536_v13 = vadd.f32 1.0, %v12408_v30 }
 0x2c8   :  { %v1537_v35 = vadd.f32 1.0, %v12410_v23  ;;  %v12412_v55 = vpop.eup %12411  ;;  %v17258_v23 = vld [vmem:[#allocation64_spill] sm:$0xff] }
 0x2c9   :  { %12413 = vrcp.f32 %v1536_v13  ;;  %v1535_v37 = vadd.f32 1.0, %v12412_v55  ;;  %v17259_v13 = vld [vmem:[#allocation71_spill] sm:$0xff]  ;;  %v17261_v55 = vld [vmem:[#allocation66_spill] sm:$0xff] }
 0x2ca   :  { %12415 = vrcp.f32 %v1537_v35  ;;  %v17260_v35 = vld [vmem:[#allocation65_spill] sm:$0xff] }
 0x2cb   :  { %12417 = vrcp.f32 %v1535_v37  ;;  %v17262_v37 = vld [vmem:[#allocation74_spill] sm:$0xff] }
 0x2d3   :  { %v12414_v20 = vpop.eup %12413 }
 0x2d4   :  { %v12416_v14 = vpop.eup %12415 }
 0x2d5   :  { %v12418_v59 = vpop.eup %12417 }
 0x333   :  { %v1579_v5 = vpop.permute.xlu0 %1578 }
 0x334   :  { %v14292_v56 = vmul.f32 %v12418_v59, %v1579_v5  ;;  %v17270_v59 = vld [vmem:[#allocation73_spill] sm:$0xff] }
 0x336   :  { %17257 = vst [vmem:[#allocation63_spill] sm:$0xff] %v14292_v56 }
 0x337   :  { %v1583_v43 = vpop.permute.xlu0 %1582 }
 0x338   :  { %v1581_v21 = vpop.permute.xlu1 %1580 }
 0x339   :  { %v1585_v33 = vsel %vm1584_vm5, %v1579_v5, %v1581_v21  ;;  %v1586_v62 = vsel %vm1584_vm5, %v1581_v21, %v1583_v43  ;;  %v17263_v5 = vld [vmem:[#allocation67_spill] sm:$0xff]  ;;  %v17264_v43 = vld [vmem:[#allocation68_spill] sm:$0xff]  ;;  %v17266_v21 = vld [vmem:[#allocation69_spill] sm:$0xff] }
 0x33a   :  { %v14284_v11 = vmul.f32 %v12416_v14, %v1586_v62  ;;  %v14286_v8 = vmul.f32 %v12414_v20, %v1585_v33  ;;  %v17265_v20 = vld [vmem:[#allocation77_spill] sm:$0xff]  ;;  %v17267_v14 = vld [vmem:[#allocation70_spill] sm:$0xff]  ;;  %v17268_v33 = vld [vmem:[#allocation80_spill] sm:$0xff] }
 0x33b   :  { %v17269_v62 = vld [vmem:[#allocation72_spill] sm:$0xff] }
 0x33c   :  { %17255 = vst [vmem:[#allocation61_spill] sm:$0xff] %v14284_v11  ;;  %17256 = vst [vmem:[#allocation60_spill] sm:$0xff] %v14286_v8  ;;  %1624 = vrot.lane.b32.xlu0 %v14284_v11, %s13110_s25  ;;  %1622 = vrot.lane.b32.xlu1 %v14286_v8, %s13110_s25  ;;  %v17275_v11 = vld [vmem:[#allocation79_spill] sm:$0xff]  ;;  %v17277_v8 = vld [vmem:[#allocation82_spill] sm:$0xff] }
 0x340   :  { %1620 = vrot.lane.b32.xlu1 %v14292_v56, %s13110_s25  ;;  %v17276_v56 = vld [vmem:[#allocation81_spill] sm:$0xff] }
 0x3ae   :  { %v1625_v16 = vpop.permute.xlu0 %1624  ;;  %v1623_v63 = vpop.permute.xlu1 %1622 }
 0x3af   :  { %v1628_v39 = vsel %vm1626_vm6, %v1623_v63, %v1625_v16  ;;  %v17271_v16 = vld [vmem:[#allocation83_spill] sm:$0xff] }
 0x3b0   :  { %8792 = vmatprep.mubr.msk.f32.mxu1 %vm1206_vm4, %v1628_v39  ;;  %8793 = vmatprep.mubr.msk.f32.mxu0 %vm1206_vm4, %v1628_v39 }
 0x3b2   :  { %v1621_v53 = vpop.permute.xlu1 %1620 }
 0x3b3   :  { %v1627_v30 = vsel %vm1626_vm6, %v1621_v53, %v1623_v63  ;;  %v17272_v63 = vld [vmem:[#allocation75_spill] sm:$0xff]  ;;  %v17274_v53 = vld [vmem:[#allocation78_spill] sm:$0xff] }
 0x3b4   :  { %1697 = vmatmul.mubr.f32.vlgmr.msra.gmra.mrb[52].mxu1 %v1627_v30  ;;  %1768 = vmatmul.mubr.f32.vlgmr.msra.gmra.mrb[68].mxu0 %v1627_v30 }
 0x3b5   :  { %9461 = vmatpush1.bf16.msra.mxu1 %v17258_v23  ;;  %9508 = vmatpush1.bf16.msra.mxu0 %v17259_v13 }
 0x3b6   :  { %8794 = vmatprep.mubr.msk.f32.mxu1 %vm1206_vm4, %v1628_v39  ;;  %8795 = vmatprep.mubr.msk.f32.mxu0 %vm1206_vm4, %v1628_v39  ;;  %v17273_v39 = vld [vmem:[#allocation76_spill] sm:$0xff] }
 0x3b7   :  { %9463 = vmatprep.subr.bf16.mxu1 %v17260_v35  ;;  %9509 = vmatprep.subr.bf16.mxu0 %v17227_v25 }
 0x3b9   :  { %9465 = vmatpush1.bf16.msra.mxu1 %v17261_v55  ;;  %9511 = vmatpush1.bf16.msra.mxu0 %v17262_v37 }
 0x3ba   :  { %9467 = vmatprep.subr.bf16.mxu1 %v17263_v5  ;;  %9512 = vmatprep.subr.bf16.mxu0 %v17227_v25 }
 0x3bd   :  { %9469 = vmatpush1.bf16.msra.mxu1 %v17264_v43  ;;  %9514 = vmatpush1.bf16.msra.mxu0 %v17265_v20 }
 0x3be   :  { %9471 = vmatprep.subr.bf16.mxu1 %v17266_v21  ;;  %9515 = vmatprep.subr.bf16.mxu0 %v17227_v25 }
 0x3c1   :  { %9473 = vmatpush1.bf16.msra.mxu1 %v17267_v14  ;;  %9517 = vmatpush1.bf16.msra.mxu0 %v17268_v33 }
 0x3c2   :  { %9475 = vmatprep.subr.bf16.mxu1 %v17269_v62  ;;  %9518 = vmatprep.subr.bf16.mxu0 %v17227_v25 }
 0x3c5   :  { %9477 = vmatpush1.bf16.msra.mxu1 %v17270_v59  ;;  %9520 = vmatpush1.bf16.msra.mxu0 %v17271_v16 }
 0x3c6   :  { %9479 = vmatprep.subr.bf16.mxu1 %v17272_v63  ;;  %9521 = vmatprep.subr.bf16.mxu0 %v17227_v25  ;;  %v17278_v63 = vld [vmem:[#allocation84_spill] sm:$0xff] }
 0x3c9   :  { %9481 = vmatpush1.bf16.msra.mxu1 %v17273_v39  ;;  %9523 = vmatpush1.bf16.msra.mxu0 %v13965_v24  ;;  %v17279_v24 = vld [vmem:[#allocation85_spill] sm:$0xff] }
 0x3ca   :  { %9483 = vmatprep.subr.bf16.mxu1 %v17274_v53  ;;  %9524 = vmatprep.subr.bf16.mxu0 %v17227_v25  ;;  %v17280_v53 = vld [vmem:[#allocation87_spill] sm:$0xff] }
 0x3cd   :  { %9485 = vmatpush1.bf16.msra.mxu1 %v17275_v11  ;;  %9526 = vmatpush1.bf16.msra.mxu0 %v13975_v40 }
 0x3ce   :  { %9487 = vmatprep.subr.bf16.mxu1 %v17276_v56  ;;  %9527 = vmatprep.subr.bf16.mxu0 %v17227_v25 }
 0x3d1   :  { %9489 = vmatpush1.bf16.msra.mxu1 %v17277_v8  ;;  %9529 = vmatpush1.bf16.msra.mxu0 %v13985_v29 }
 0x3d2   :  { %9491 = vmatprep.subr.bf16.mxu1 %v17278_v63  ;;  %9530 = vmatprep.subr.bf16.mxu0 %v17227_v25 }
 0x3d5   :  { %9493 = vmatpush1.bf16.msra.mxu1 %v17279_v24  ;;  %9532 = vmatpush1.bf16.msra.mxu0 %v13995_v6  ;;  %v17281_v6 = vld [vmem:[#allocation90_spill] sm:$0xff] }
 0x3d6   :  { %9495 = vmatprep.subr.bf16.mxu1 %v17280_v53  ;;  %9533 = vmatprep.subr.bf16.mxu0 %v17227_v25  ;;  %v14348_v53 = vld [vmem:[#allocation3 + $0x568] sm:$0xff] }
 0x3d9   :  { %9497 = vmatpush1.bf16.msra.mxu1 %v13971_v10  ;;  %9535 = vmatpush1.bf16.msra.mxu0 %v14000_v17 }
 0x3da   :  { %9499 = vmatprep.subr.bf16.mxu1 %v13977_v0  ;;  %9536 = vmatprep.subr.bf16.mxu0 %v17227_v25  ;;  %v14352_v0 = vld [vmem:[#allocation3 + $0x560] sm:$0xff] }
 0x3db   :  { %17282 = vst [vmem:[#allocation64_spill] sm:$0xff] %v14352_v0 }
 0x3dd   :  { %9501 = vmatpush1.bf16.msra.mxu1 %v13981_v36  ;;  %9538 = vmatpush1.bf16.msra.mxu0 %v14005_v31  ;;  %v14355_v36 = vld [vmem:[#allocation3 + $0x570] sm:$0xff] }
 0x3de   :  { %9503 = vmatprep.subr.bf16.mxu1 %v13987_v26  ;;  %9539 = vmatprep.subr.bf16.mxu0 %v17227_v25  ;;  %17283 = vst [vmem:[#allocation71_spill] sm:$0xff] %v14355_v36 }
 0x3e1   :  { %9505 = vmatpush1.bf16.msra.mxu1 %v17281_v6  ;;  %9541 = vmatpush1.bf16.msra.mxu0 %v14012_v27 }
 0x3e2   :  { %1822 = vmatprep.subr.mxu1 %v14348_v53  ;;  %1893 = vmatprep.subr.mxu0 %v17208_v50 }
 0x3e5   :  { %1823 = vmatpush1.msra.mxu1 %v14352_v0  ;;  %1894 = vmatpush1.msra.mxu0 %v14355_v36 }
 0x3e6   :  { %1839 = vmatmul.mubr.f32.vlgmr.msra.gmra.mrb[54].mxu1 %v1627_v30  ;;  %1910 = vmatmul.mubr.f32.vlgmr.msra.gmra.mrb[70].mxu0 %v1627_v30  ;;  %v17284_v30 = vld [vmem:[#allocation37_spill] sm:$0xff] }
 0x3e7   :  { %9543 = vmatprep.subr.bf16.mxu1 %v13538_v15  ;;  %9591 = vmatprep.subr.bf16.mxu0 %v13562_v22 }
 0x3e8   :  { %9545 = vmatpush1.bf16.msra.mxu1 %v13659_v41  ;;  %9593 = vmatpush1.bf16.msra.mxu0 %v13661_v44 }
 0x3e9   :  { %9547 = vmatprep.subr.bf16.mxu1 %v13663_v45  ;;  %9595 = vmatprep.subr.bf16.mxu0 %v13665_v47 }
 0x3ec   :  { %9549 = vmatpush1.bf16.msra.mxu1 %v13673_v54  ;;  %9597 = vmatpush1.bf16.msra.mxu0 %v13676_v57 }
 0x3ed   :  { %9551 = vmatprep.subr.bf16.mxu1 %v13679_v18  ;;  %9599 = vmatprep.subr.bf16.mxu0 %v13682_v60 }
 0x3f0   :  { %9553 = vmatpush1.bf16.msra.mxu1 %v13692_v4  ;;  %9601 = vmatpush1.bf16.msra.mxu0 %v13695_v28 }
 0x3f1   :  { %9555 = vmatprep.subr.bf16.mxu1 %v13698_v7  ;;  %9603 = vmatprep.subr.bf16.mxu0 %v13701_v9  ;;  %v12998_v7 = vld [vmem:[#allocation2 + $0x40] sm:$0xff] }
 0x3f4   :  { %9557 = vmatpush1.bf16.msra.mxu1 %v13711_v19  ;;  %9605 = vmatpush1.bf16.msra.mxu0 %v13714_v38  ;;  %v17285_v38 = vld [vmem:[#allocation38_spill] sm:$0xff] }
 0x3f5   :  { %9559 = vmatprep.subr.bf16.mxu1 %v13717_v32  ;;  %9607 = vmatprep.subr.bf16.mxu0 %v13720_v34  ;;  %v17286_v32 = vld [vmem:[#allocation39_spill] sm:$0xff]  ;;  %v17287_v34 = vld [vmem:[#allocation40_spill] sm:$0xff] }
 0x3f8   :  { %9561 = vmatpush1.bf16.msra.mxu1 %v13730_v42  ;;  %9609 = vmatpush1.bf16.msra.mxu0 %v13733_v48  ;;  %v17288_v42 = vld [vmem:[#allocation41_spill] sm:$0xff]  ;;  %v17289_v48 = vld [vmem:[#allocation42_spill] sm:$0xff] }
 0x3f9   :  { %9563 = vmatprep.subr.bf16.mxu1 %v13736_v49  ;;  %9611 = vmatprep.subr.bf16.mxu0 %v13739_v51  ;;  %v17290_v49 = vld [vmem:[#allocation43_spill] sm:$0xff]  ;;  %v17291_v51 = vld [vmem:[#allocation44_spill] sm:$0xff] }
 0x3fc   :  { %9565 = vmatpush1.bf16.msra.mxu1 %v13749_v61  ;;  %9613 = vmatpush1.bf16.msra.mxu0 %v13752_v58  ;;  %v17292_v61 = vld [vmem:[#allocation45_spill] sm:$0xff]  ;;  %v17293_v58 = vld [vmem:[#allocation46_spill] sm:$0xff] }
 0x3fd   :  { %9567 = vmatprep.subr.bf16.mxu1 %v13755_v1  ;;  %9615 = vmatprep.subr.bf16.mxu0 %v17284_v30  ;;  %v17294_v1 = vld [vmem:[#allocation47_spill] sm:$0xff]  ;;  %v17295_v30 = vld [vmem:[#allocation48_spill] sm:$0xff] }
 0x400   :  { %9569 = vmatpush1.bf16.msra.mxu1 %v17285_v38  ;;  %9617 = vmatpush1.bf16.msra.mxu0 %v17286_v32  ;;  %v17296_v38 = vld [vmem:[#allocation49_spill] sm:$0xff]  ;;  %v17297_v32 = vld [vmem:[#allocation50_spill] sm:$0xff] }
 0x401   :  { %9571 = vmatprep.subr.bf16.mxu1 %v17287_v34  ;;  %9619 = vmatprep.subr.bf16.mxu0 %v17288_v42  ;;  %v17298_v34 = vld [vmem:[#allocation51_spill] sm:$0xff]  ;;  %v17299_v42 = vld [vmem:[#allocation52_spill] sm:$0xff] }
 0x404   :  { %9573 = vmatpush1.bf16.msra.mxu1 %v17289_v48  ;;  %9621 = vmatpush1.bf16.msra.mxu0 %v17290_v49  ;;  %v17300_v48 = vld [vmem:[#allocation53_spill] sm:$0xff]  ;;  %v17301_v49 = vld [vmem:[#allocation54_spill] sm:$0xff] }
 0x405   :  { %9575 = vmatprep.subr.bf16.mxu1 %v17291_v51  ;;  %9623 = vmatprep.subr.bf16.mxu0 %v17292_v61  ;;  %v17302_v51 = vld [vmem:[#allocation55_spill] sm:$0xff]  ;;  %v17303_v61 = vld [vmem:[#allocation56_spill] sm:$0xff] }
 0x408   :  { %9577 = vmatpush1.bf16.msra.mxu1 %v17293_v58  ;;  %9625 = vmatpush1.bf16.msra.mxu0 %v17294_v1  ;;  %v17304_v58 = vld [vmem:[#allocation57_spill] sm:$0xff]  ;;  %v17305_v1 = vld [vmem:[#allocation58_spill] sm:$0xff] }
 0x409   :  { %9579 = vmatprep.subr.bf16.mxu1 %v17295_v30  ;;  %9627 = vmatprep.subr.bf16.mxu0 %v17296_v38  ;;  %v17306_v30 = vld [vmem:[#allocation59_spill] sm:$0xff]  ;;  %v14406_v38 = vld [vmem:[#allocation3 + $0x548] sm:$0xff] }
 0x40a   :  { %17307 = vst [vmem:[#allocation65_spill] sm:$0xff] %v14406_v38 }
 0x40c   :  { %9581 = vmatpush1.bf16.msra.mxu1 %v17297_v32  ;;  %9629 = vmatpush1.bf16.msra.mxu0 %v17298_v34  ;;  %v14409_v34 = vld [vmem:[#allocation3 + $0x558] sm:$0xff] }
 0x40d   :  { %9583 = vmatprep.subr.bf16.mxu1 %v17299_v42  ;;  %9631 = vmatprep.subr.bf16.mxu0 %v17300_v48  ;;  %17308 = vst [vmem:[#allocation66_spill] sm:$0xff] %v14409_v34  ;;  %v14412_v48 = vld [vmem:[#allocation3 + $0x540] sm:$0xff] }
 0x40e   :  { %17309 = vst [vmem:[#allocation74_spill] sm:$0xff] %v14412_v48 }
 0x410   :  { %9585 = vmatpush1.bf16.msra.mxu1 %v17301_v49  ;;  %9633 = vmatpush1.bf16.msra.mxu0 %v17302_v51  ;;  %v14415_v51 = vld [vmem:[#allocation3 + $0x550] sm:$0xff] }
 0x411   :  { %9587 = vmatprep.subr.bf16.mxu1 %v17303_v61  ;;  %9635 = vmatprep.subr.bf16.mxu0 %v17304_v58  ;;  %17310 = vst [vmem:[#allocation67_spill] sm:$0xff] %v14415_v51  ;;  %v17311_v58 = vld [vmem:[#allocation62_spill] sm:$0xff] }
 0x414   :  { %9589 = vmatpush1.bf16.msra.mxu1 %v17305_v1  ;;  %9637 = vmatpush1.bf16.msra.mxu0 %v17306_v30 }
 0x415   :  { %2099 = vmatprep.subr.mxu1 %v14406_v38  ;;  %2170 = vmatprep.subr.mxu0 %v14409_v34  ;;  %v1613_v38 = vld [vmem:[#allocation2 + $0x50] sm:$0xff] }
 0x418   :  { %2100 = vmatpush1.msra.mxu1 %v14412_v48  ;;  %2171 = vmatpush1.msra.mxu0 %v14415_v51 }
 0x419   :  { %9639 = vmatprep.subr.bf16.mxu1 %v17311_v58  ;;  %9686 = vmatprep.subr.bf16.mxu0 %v17227_v25 }
 0x487   :  { %v1698_v30 = vpop.f32.mrb[52].mxu1  ;;  %v1769_v1 = vpop.f32.mrb[68].mxu0 }
 0x488   :  { %v1700_v61 = vpop.f32.mrb[53].mxu1  ;;  %v1771_v49 = vpop.f32.mrb[69].mxu0 }
 0x489   :  { %v1918_v42 = vadd.f32 %v1771_v49, %v1613_v38  ;;  %v1916_v28 = vadd.f32 %v12998_v7, %v1700_v61  ;;  %v12999_v38 = vld [vmem:[#allocation2 + $0x38] sm:$0xff] }
 0x48a   :  { %v1915_v49 = vadd.f32 %v12999_v38, %v1698_v30 }
 0x48b   :  { %12419 = vtanh.f32 %v1918_v42  ;;  %v8797_v4 = vmul.f32 -1.442695, %v1916_v28  ;;  %v8799_v61 = vmul.f32 -1.442695, %v1918_v42 }
 0x48c   :  { %v8796_v60 = vmul.f32 -1.442695, %v1915_v49 }
 0x495   :  { %v12420_v34 = vpop.eup %12419 }
 0x496   :  { %1971 = vrot.lane.b32.xlu0 %v12420_v34, %s13108_s3 }
 0x4b9   :  { %v1840_v32 = vpop.f32.mrb[54].mxu1  ;;  %v14421_v48 = vpop.f32.mrb[70].mxu0 }
 0x4ba   :  { %v14424_v19 = vadd.f32 %v1840_v32, %v14193_v12  ;;  %v1842_v51 = vpop.f32.mrb[55].mxu1  ;;  %v1913_v58 = vpop.f32.mrb[71].mxu0 }
 0x4bc   :  { %12421 = vtanh.f32 %v14424_v19 }
 0x4bd   :  { %12423 = vpow2.f32 %v8797_v4  ;;  %v1612_v4 = vld [vmem:[#allocation2 + $0x48] sm:$0xff] }
 0x4be   :  { %12425 = vpow2.f32 %v8796_v60  ;;  %v1917_v60 = vadd.f32 %v1769_v1, %v1612_v4  ;;  %v1616_v4 = vld [vmem:[#allocation2 + $0x68] sm:$0xff] }
 0x4c0   :  { %v8798_v28 = vmul.f32 -1.442695, %v1917_v60  ;;  %v1921_v60 = vadd.f32 %v14421_v48, %v1616_v4 }
 0x4c6   :  { %v12422_v9 = vpop.eup %12421 }
 0x4c7   :  { %1973 = vrot.lane.b32.xlu1 %v12422_v9, %s13108_s3  ;;  %v12424_v34 = vpop.eup %12423 }
 0x4c8   :  { %v12426_v18 = vpop.eup %12425  ;;  %v1929_v57 = vadd.f32 1.0, %v12424_v34 }
 0x4c9   :  { %v1928_v32 = vadd.f32 1.0, %v12426_v18 }
 0x4ca   :  { %12427 = vrcp.f32 %v1929_v57 }
 0x4cb   :  { %12429 = vrcp.f32 %v1928_v32 }
 0x4cc   :  { %12431 = vpow2.f32 %v8798_v28 }
 0x4cd   :  { %12433 = vpow2.f32 %v8799_v61  ;;  %v8802_v61 = vmul.f32 -1.442695, %v1921_v60 }
 0x4d4   :  { %v12428_v58 = vpop.eup %12427 }
 0x4d5   :  { %v12430_v47 = vpop.eup %12429 }
 0x4d6   :  { %v12432_v57 = vpop.eup %12431 }
 0x4d7   :  { %v12434_v18 = vpop.eup %12433  ;;  %v1940_v30 = vadd.f32 1.0, %v12432_v57  ;;  %v8800_v57 = vmul.f32 -1.442695, %v14424_v19 }
 0x4d8   :  { %v1941_v38 = vadd.f32 1.0, %v12434_v18 }
 0x4d9   :  { %12435 = vrcp.f32 %v1940_v30 }
 0x4da   :  { %12437 = vrcp.f32 %v1941_v38 }
 0x4e3   :  { %v12436_v49 = vpop.eup %12435 }
 0x4e4   :  { %v12438_v34 = vpop.eup %12437 }
 0x4e5   :  { %v1968_v1 = vmul.f32 %v12438_v34, %v14271_v2 }
 0x508   :  { %v1972_v12 = vpop.permute.xlu0 %1971 }
 0x539   :  { %v1974_v54 = vpop.permute.xlu1 %1973 }
 0x53a   :  { %v1975_v9 = vsel %vm1553_vm3, %v1972_v12, %v1974_v54  ;;  %v1979_v45 = vmul.f32 %v12428_v58, %v1974_v54 }
 0x53b   :  { %v1978_v7 = vmul.f32 %v12430_v47, %v1975_v9  ;;  %v1966_v47 = vmul.f32 %v12428_v58, %v14267_v46 }
 0x53c   :  { %1984 = vrot.lane.b32.xlu1 %v1979_v45, %s13109_s24  ;;  %v1967_v45 = vmul.f32 %v12436_v49, %v14273_v3  ;;  %v1920_v3 = vadd.f32 %v1842_v51, %v14197_v52 }
 0x53d   :  { %1982 = vrot.lane.b32.xlu0 %v1978_v7, %s13109_s24 }
 0x53e   :  { %v8801_v28 = vmul.f32 -1.442695, %v1920_v3 }
 0x5ae   :  { %v1985_v54 = vpop.permute.xlu1 %1984 }
 0x5af   :  { %v1983_v32 = vpop.permute.xlu0 %1982  ;;  %v14439_v7 = vadd.f32 %v1985_v54, %v1968_v1 }
 0x5b0   :  { %v1986_v42 = vsel %vm1206_vm4, %v1983_v32, %v1985_v54  ;;  %v14435_v12 = vadd.f32 %v1983_v32, %v1966_v47 }
 0x5b1   :  { %v14437_v9 = vadd.f32 %v1986_v42, %v1967_v45 }
 0x5b2   :  { %12439 = vtanh.f32 %v14435_v12 }
 0x5b3   :  { %12441 = vtanh.f32 %v14437_v9 }
 0x5b4   :  { %12443 = vtanh.f32 %v14439_v7 }
 0x5b5   :  { %12445 = vpow2.f32 %v8801_v28 }
 0x5b6   :  { %12447 = vpow2.f32 %v8802_v61  ;;  %v17315_v61 = vld [vmem:[#allocation75_spill] sm:$0xff] }
 0x5b7   :  { %12449 = vpow2.f32 %v8800_v57  ;;  %v17316_v57 = vld [vmem:[#allocation86_spill] sm:$0xff] }
 0x5bc   :  { %v12440_v46 = vpop.eup %12439 }
 0x5bd   :  { %v12442_v58 = vpop.eup %12441  ;;  %1999 = vrot.lane.b32.xlu0 %v12440_v46, %s13105_s14 }
 0x5be   :  { %2001 = vrot.lane.b32.xlu1 %v12442_v58, %s13105_s14  ;;  %v12444_v2 = vpop.eup %12443 }
 0x5bf   :  { %v12446_v18 = vpop.eup %12445 }
 0x5c0   :  { %v12448_v30 = vpop.eup %12447  ;;  %v1958_v38 = vadd.f32 1.0, %v12446_v18  ;;  %v17317_v18 = vld [vmem:[#allocation78_spill] sm:$0xff] }
 0x5c1   :  { %2003 = vrot.lane.b32.xlu0 %v12444_v2, %s13105_s14  ;;  %v12450_v49 = vpop.eup %12449  ;;  %v1959_v34 = vadd.f32 1.0, %v12448_v30  ;;  %v17318_v30 = vld [vmem:[#allocation91_spill] sm:$0xff] }
 0x5c2   :  { %v1957_v54 = vadd.f32 1.0, %v12450_v49  ;;  %12451 = vrcp.f32 %v1958_v38  ;;  %v17319_v38 = vld [vmem:[#allocation87_spill] sm:$0xff]  ;;  %v17320_v49 = vld [vmem:[#allocation88_spill] sm:$0xff] }
 0x5c3   :  { %12453 = vrcp.f32 %v1959_v34  ;;  %v17321_v34 = vld [vmem:[#allocation89_spill] sm:$0xff] }
 0x5c4   :  { %12455 = vrcp.f32 %v1957_v54  ;;  %v17322_v54 = vld [vmem:[#allocation16_spill] sm:$0xff] }
 0x5cc   :  { %v12452_v47 = vpop.eup %12451 }
 0x5cd   :  { %v12454_v32 = vpop.eup %12453 }
 0x5ce   :  { %v12456_v42 = vpop.eup %12455 }
 0x62f   :  { %v2000_v51 = vpop.permute.xlu0 %1999 }
 0x630   :  { %v2002_v52 = vpop.permute.xlu1 %2001  ;;  %v14458_v58 = vmul.f32 %v12456_v42, %v2000_v51  ;;  %v17330_v42 = vld [vmem:[#allocation24_spill] sm:$0xff] }
 0x631   :  { %v2005_v48 = vsel %vm1584_vm5, %v2000_v51, %v2002_v52  ;;  %v17323_v51 = vld [vmem:[#allocation17_spill] sm:$0xff] }
 0x632   :  { %v14451_v45 = vmul.f32 %v12452_v47, %v2005_v48  ;;  %17314 = vst [vmem:[#allocation69_spill] sm:$0xff] %v14458_v58  ;;  %v17325_v47 = vld [vmem:[#allocation19_spill] sm:$0xff]  ;;  %v17326_v48 = vld [vmem:[#allocation20_spill] sm:$0xff] }
 0x633   :  { %v2004_v19 = vpop.permute.xlu0 %2003 }
 0x634   :  { %17312 = vst [vmem:[#allocation68_spill] sm:$0xff] %v14451_v45  ;;  %v2006_v1 = vsel %vm1584_vm5, %v2002_v52, %v2004_v19  ;;  %2042 = vrot.lane.b32.xlu1 %v14451_v45, %s13110_s25  ;;  %v17324_v52 = vld [vmem:[#allocation18_spill] sm:$0xff]  ;;  %v17327_v19 = vld [vmem:[#allocation21_spill] sm:$0xff]  ;;  %v17338_v45 = vld [vmem:[#allocation32_spill] sm:$0xff] }
 0x635   :  { %v14456_v46 = vmul.f32 %v12454_v32, %v2006_v1  ;;  %v17328_v32 = vld [vmem:[#allocation22_spill] sm:$0xff]  ;;  %v17329_v1 = vld [vmem:[#allocation23_spill] sm:$0xff] }
 0x637   :  { %17313 = vst [vmem:[#allocation77_spill] sm:$0xff] %v14456_v46  ;;  %2044 = vrot.lane.b32.xlu0 %v14456_v46, %s13110_s25  ;;  %v17336_v46 = vld [vmem:[#allocation30_spill] sm:$0xff] }
 0x638   :  { %2040 = vrot.lane.b32.xlu1 %v14458_v58, %s13110_s25  ;;  %v17337_v58 = vld [vmem:[#allocation31_spill] sm:$0xff] }
 0x6a6   :  { %v2043_v2 = vpop.permute.xlu1 %2042 }
 0x6a9   :  { %v2045_v3 = vpop.permute.xlu0 %2044 }
 0x6aa   :  { %v2047_v4 = vsel %vm1626_vm6, %v2043_v2, %v2045_v3  ;;  %v2041_v60 = vpop.permute.xlu1 %2040  ;;  %v17332_v3 = vld [vmem:[#allocation26_spill] sm:$0xff] }
 0x6ab   :  { %v2046_v28 = vsel %vm1626_vm6, %v2041_v60, %v2043_v2  ;;  %8804 = vmatprep.mubr.msk.f32.mxu1 %vm1206_vm4, %v2047_v4  ;;  %8805 = vmatprep.mubr.msk.f32.mxu0 %vm1206_vm4, %v2047_v4  ;;  %v17331_v2 = vld [vmem:[#allocation25_spill] sm:$0xff]  ;;  %v17334_v60 = vld [vmem:[#allocation28_spill] sm:$0xff] }
 0x6ac   :  { %2116 = vmatmul.mubr.f32.vlgmr.msra.gmra.mrb[56].mxu1 %v2046_v28  ;;  %2187 = vmatmul.mubr.f32.vlgmr.msra.gmra.mrb[72].mxu0 %v2046_v28 }
 0x6ad   :  { %9641 = vmatpush1.bf16.msra.mxu1 %v17258_v23  ;;  %9688 = vmatpush1.bf16.msra.mxu0 %v17259_v13 }
 0x6ae   :  { %8806 = vmatprep.mubr.msk.f32.mxu1 %vm1206_vm4, %v2047_v4  ;;  %8807 = vmatprep.mubr.msk.f32.mxu0 %vm1206_vm4, %v2047_v4  ;;  %v17333_v4 = vld [vmem:[#allocation27_spill] sm:$0xff] }
 0x6af   :  { %9643 = vmatprep.subr.bf16.mxu1 %v17260_v35  ;;  %9689 = vmatprep.subr.bf16.mxu0 %v17227_v25 }
 0x6b1   :  { %9645 = vmatpush1.bf16.msra.mxu1 %v17261_v55  ;;  %9691 = vmatpush1.bf16.msra.mxu0 %v17262_v37 }
 0x6b2   :  { %9647 = vmatprep.subr.bf16.mxu1 %v17263_v5  ;;  %9692 = vmatprep.subr.bf16.mxu0 %v17227_v25 }
 0x6b5   :  { %9649 = vmatpush1.bf16.msra.mxu1 %v17264_v43  ;;  %9694 = vmatpush1.bf16.msra.mxu0 %v17265_v20 }
 0x6b6   :  { %9651 = vmatprep.subr.bf16.mxu1 %v17266_v21  ;;  %9695 = vmatprep.subr.bf16.mxu0 %v17227_v25 }
 0x6b9   :  { %9653 = vmatpush1.bf16.msra.mxu1 %v17267_v14  ;;  %9697 = vmatpush1.bf16.msra.mxu0 %v17268_v33 }
 0x6ba   :  { %9655 = vmatprep.subr.bf16.mxu1 %v17269_v62  ;;  %9698 = vmatprep.subr.bf16.mxu0 %v17227_v25 }
 0x6bd   :  { %9657 = vmatpush1.bf16.msra.mxu1 %v17270_v59  ;;  %9700 = vmatpush1.bf16.msra.mxu0 %v17271_v16 }
 0x6be   :  { %9659 = vmatprep.subr.bf16.mxu1 %v17315_v61  ;;  %9701 = vmatprep.subr.bf16.mxu0 %v17227_v25 }
 0x6c1   :  { %9661 = vmatpush1.bf16.msra.mxu1 %v17273_v39  ;;  %9703 = vmatpush1.bf16.msra.mxu0 %v17316_v57 }
 0x6c2   :  { %9663 = vmatprep.subr.bf16.mxu1 %v17317_v18  ;;  %9704 = vmatprep.subr.bf16.mxu0 %v17227_v25 }
 0x6c5   :  { %9665 = vmatpush1.bf16.msra.mxu1 %v17275_v11  ;;  %9706 = vmatpush1.bf16.msra.mxu0 %v13975_v40 }
 0x6c6   :  { %9667 = vmatprep.subr.bf16.mxu1 %v17276_v56  ;;  %9707 = vmatprep.subr.bf16.mxu0 %v17227_v25 }
 0x6c9   :  { %9669 = vmatpush1.bf16.msra.mxu1 %v17277_v8  ;;  %9709 = vmatpush1.bf16.msra.mxu0 %v13985_v29 }
 0x6ca   :  { %9671 = vmatprep.subr.bf16.mxu1 %v17278_v63  ;;  %9710 = vmatprep.subr.bf16.mxu0 %v17227_v25 }
 0x6cd   :  { %9673 = vmatpush1.bf16.msra.mxu1 %v17279_v24  ;;  %9712 = vmatpush1.bf16.msra.mxu0 %v17318_v30 }
 0x6ce   :  { %9675 = vmatprep.subr.bf16.mxu1 %v17319_v38  ;;  %9713 = vmatprep.subr.bf16.mxu0 %v17227_v25 }
 0x6d1   :  { %9677 = vmatpush1.bf16.msra.mxu1 %v13971_v10  ;;  %9715 = vmatpush1.bf16.msra.mxu0 %v14000_v17 }
 0x6d2   :  { %9679 = vmatprep.subr.bf16.mxu1 %v17320_v49  ;;  %9716 = vmatprep.subr.bf16.mxu0 %v17227_v25 }
 0x6d5   :  { %9681 = vmatpush1.bf16.msra.mxu1 %v17321_v34  ;;  %9718 = vmatpush1.bf16.msra.mxu0 %v14005_v31 }
 0x6d6   :  { %9683 = vmatprep.subr.bf16.mxu1 %v13987_v26  ;;  %9719 = vmatprep.subr.bf16.mxu0 %v17227_v25 }
 0x6d9   :  { %9685 = vmatpush1.bf16.msra.mxu1 %v17281_v6  ;;  %9721 = vmatpush1.bf16.msra.mxu0 %v14012_v27 }
 0x6da   :  { %2241 = vmatprep.subr.mxu1 %v14348_v53  ;;  %2312 = vmatprep.subr.mxu0 %v17208_v50 }
 0x6dd   :  { %2242 = vmatpush1.msra.mxu1 %v14352_v0  ;;  %2313 = vmatpush1.msra.mxu0 %v14355_v36 }
 0x6de   :  { %2258 = vmatmul.mubr.f32.vlgmr.msra.gmra.mrb[58].mxu1 %v2046_v28  ;;  %2329 = vmatmul.mubr.f32.vlgmr.msra.gmra.mrb[74].mxu0 %v2046_v28  ;;  %v17335_v28 = vld [vmem:[#allocation29_spill] sm:$0xff] }
 0x6df   :  { %9723 = vmatprep.subr.bf16.mxu1 %v13538_v15  ;;  %9771 = vmatprep.subr.bf16.mxu0 %v13562_v22 }
 0x6e0   :  { %9725 = vmatpush1.bf16.msra.mxu1 %v13659_v41  ;;  %9773 = vmatpush1.bf16.msra.mxu0 %v13661_v44 }
 0x6e1   :  { %9727 = vmatprep.subr.bf16.mxu1 %v17322_v54  ;;  %9775 = vmatprep.subr.bf16.mxu0 %v17323_v51  ;;  %v2030_v51 = vld [vmem:[#allocation2 + $0x70] sm:$0xff] }
 0x6e4   :  { %9729 = vmatpush1.bf16.msra.mxu1 %v17324_v52  ;;  %9777 = vmatpush1.bf16.msra.mxu0 %v17325_v47  ;;  %v2031_v52 = vld [vmem:[#allocation2 + $0x78] sm:$0xff] }
 0x6e5   :  { %9731 = vmatprep.subr.bf16.mxu1 %v17326_v48  ;;  %9779 = vmatprep.subr.bf16.mxu0 %v17327_v19 }
 0x6e8   :  { %9733 = vmatpush1.bf16.msra.mxu1 %v17328_v32  ;;  %9781 = vmatpush1.bf16.msra.mxu0 %v17329_v1  ;;  %v17339_v32 = vld [vmem:[#allocation33_spill] sm:$0xff]  ;;  %v17340_v1 = vld [vmem:[#allocation34_spill] sm:$0xff] }
 0x6e9   :  { %9735 = vmatprep.subr.bf16.mxu1 %v17330_v42  ;;  %9783 = vmatprep.subr.bf16.mxu0 %v17331_v2  ;;  %v17341_v42 = vld [vmem:[#allocation35_spill] sm:$0xff]  ;;  %v17342_v2 = vld [vmem:[#allocation36_spill] sm:$0xff] }
 0x6ec   :  { %9737 = vmatpush1.bf16.msra.mxu1 %v17332_v3  ;;  %9785 = vmatpush1.bf16.msra.mxu0 %v17333_v4  ;;  %v17343_v3 = vld [vmem:[#allocation37_spill] sm:$0xff]  ;;  %v17344_v4 = vld [vmem:[#allocation38_spill] sm:$0xff] }
 0x6ed   :  { %9739 = vmatprep.subr.bf16.mxu1 %v17334_v60  ;;  %9787 = vmatprep.subr.bf16.mxu0 %v17335_v28  ;;  %v17345_v60 = vld [vmem:[#allocation39_spill] sm:$0xff]  ;;  %v17346_v28 = vld [vmem:[#allocation40_spill] sm:$0xff] }
 0x6f0   :  { %9741 = vmatpush1.bf16.msra.mxu1 %v17336_v46  ;;  %9789 = vmatpush1.bf16.msra.mxu0 %v17337_v58  ;;  %v17347_v46 = vld [vmem:[#allocation41_spill] sm:$0xff]  ;;  %v17348_v58 = vld [vmem:[#allocation42_spill] sm:$0xff] }
 0x6f1   :  { %9743 = vmatprep.subr.bf16.mxu1 %v17338_v45  ;;  %9791 = vmatprep.subr.bf16.mxu0 %v17339_v32  ;;  %v17349_v45 = vld [vmem:[#allocation43_spill] sm:$0xff]  ;;  %v17350_v32 = vld [vmem:[#allocation44_spill] sm:$0xff] }
 0x6f4   :  { %9745 = vmatpush1.bf16.msra.mxu1 %v17340_v1  ;;  %9793 = vmatpush1.bf16.msra.mxu0 %v17341_v42  ;;  %v17351_v1 = vld [vmem:[#allocation45_spill] sm:$0xff]  ;;  %v17352_v42 = vld [vmem:[#allocation46_spill] sm:$0xff] }
 0x6f5   :  { %9747 = vmatprep.subr.bf16.mxu1 %v17342_v2  ;;  %9795 = vmatprep.subr.bf16.mxu0 %v17343_v3  ;;  %v17353_v2 = vld [vmem:[#allocation47_spill] sm:$0xff]  ;;  %v17354_v3 = vld [vmem:[#allocation48_spill] sm:$0xff] }
 0x6f8   :  { %9749 = vmatpush1.bf16.msra.mxu1 %v17344_v4  ;;  %9797 = vmatpush1.bf16.msra.mxu0 %v17345_v60  ;;  %v17355_v4 = vld [vmem:[#allocation49_spill] sm:$0xff]  ;;  %v17356_v60 = vld [vmem:[#allocation50_spill] sm:$0xff] }
 0x6f9   :  { %9751 = vmatprep.subr.bf16.mxu1 %v17346_v28  ;;  %9799 = vmatprep.subr.bf16.mxu0 %v17347_v46  ;;  %v17357_v28 = vld [vmem:[#allocation51_spill] sm:$0xff]  ;;  %v17358_v46 = vld [vmem:[#allocation52_spill] sm:$0xff] }
 0x6fc   :  { %9753 = vmatpush1.bf16.msra.mxu1 %v17348_v58  ;;  %9801 = vmatpush1.bf16.msra.mxu0 %v17349_v45  ;;  %v17359_v58 = vld [vmem:[#allocation53_spill] sm:$0xff]  ;;  %v17360_v45 = vld [vmem:[#allocation54_spill] sm:$0xff] }
 0x6fd   :  { %9755 = vmatprep.subr.bf16.mxu1 %v17350_v32  ;;  %9803 = vmatprep.subr.bf16.mxu0 %v17351_v1  ;;  %v17361_v32 = vld [vmem:[#allocation55_spill] sm:$0xff]  ;;  %v17362_v1 = vld [vmem:[#allocation56_spill] sm:$0xff] }
 0x700   :  { %9757 = vmatpush1.bf16.msra.mxu1 %v17352_v42  ;;  %9805 = vmatpush1.bf16.msra.mxu0 %v17353_v2  ;;  %v17363_v42 = vld [vmem:[#allocation57_spill] sm:$0xff]  ;;  %v17364_v2 = vld [vmem:[#allocation58_spill] sm:$0xff] }
 0x701   :  { %9759 = vmatprep.subr.bf16.mxu1 %v17354_v3  ;;  %9807 = vmatprep.subr.bf16.mxu0 %v17355_v4  ;;  %v17365_v3 = vld [vmem:[#allocation59_spill] sm:$0xff]  ;;  %v17366_v4 = vld [vmem:[#allocation65_spill] sm:$0xff] }
 0x704   :  { %9761 = vmatpush1.bf16.msra.mxu1 %v17356_v60  ;;  %9809 = vmatpush1.bf16.msra.mxu0 %v17357_v28  ;;  %v17367_v60 = vld [vmem:[#allocation66_spill] sm:$0xff] }
 0x705   :  { %9763 = vmatprep.subr.bf16.mxu1 %v17358_v46  ;;  %9811 = vmatprep.subr.bf16.mxu0 %v17359_v58  ;;  %v17368_v28 = vld [vmem:[#allocation74_spill] sm:$0xff]  ;;  %v17369_v46 = vld [vmem:[#allocation67_spill] sm:$0xff] }
 0x706   :  { %v17370_v58 = vld [vmem:[#allocation62_spill] sm:$0xff] }
 0x708   :  { %9765 = vmatpush1.bf16.msra.mxu1 %v17360_v45  ;;  %9813 = vmatpush1.bf16.msra.mxu0 %v17361_v32 }
 0x709   :  { %9767 = vmatprep.subr.bf16.mxu1 %v17362_v1  ;;  %9815 = vmatprep.subr.bf16.mxu0 %v17363_v42  ;;  %v2033_v42 = vld [vmem:[#allocation2 + $0x88] sm:$0xff] }
 0x70c   :  { %9769 = vmatpush1.bf16.msra.mxu1 %v17364_v2  ;;  %9817 = vmatpush1.bf16.msra.mxu0 %v17365_v3 }
 0x70d   :  { %2518 = vmatprep.subr.mxu1 %v17366_v4  ;;  %2589 = vmatprep.subr.mxu0 %v17367_v60  ;;  %v2034_v4 = vld [vmem:[#allocation2 + $0x90] sm:$0xff] }
 0x710   :  { %2519 = vmatpush1.msra.mxu1 %v17368_v28  ;;  %2590 = vmatpush1.msra.mxu0 %v17369_v46 }
 0x711   :  { %9819 = vmatprep.subr.bf16.mxu1 %v17370_v58  ;;  %9866 = vmatprep.subr.bf16.mxu0 %v17227_v25 }
 0x77f   :  { %v2117_v32 = vpop.f32.mrb[56].mxu1  ;;  %v2188_v1 = vpop.f32.mrb[72].mxu0 }
 0x780   :  { %v2119_v45 = vpop.f32.mrb[57].mxu1  ;;  %v2190_v19 = vpop.f32.mrb[73].mxu0 }
 0x781   :  { %v2337_v2 = vadd.f32 %v2190_v19, %v2033_v42  ;;  %v2335_v19 = vadd.f32 %v2119_v45, %v2031_v52  ;;  %v2334_v42 = vadd.f32 %v2117_v32, %v2030_v51  ;;  %v2032_v45 = vld [vmem:[#allocation2 + $0x80] sm:$0xff] }
 0x783   :  { %12457 = vtanh.f32 %v2337_v2  ;;  %v8809_v54 = vmul.f32 -1.442695, %v2335_v19  ;;  %v8808_v44 = vmul.f32 -1.442695, %v2334_v42  ;;  %v8811_v51 = vmul.f32 -1.442695, %v2337_v2 }
 0x78d   :  { %v12458_v3 = vpop.eup %12457 }
 0x78e   :  { %2390 = vrot.lane.b32.xlu0 %v12458_v3, %s13108_s3 }
 0x7b1   :  { %v2259_v60 = vpop.f32.mrb[58].mxu1  ;;  %v14575_v48 = vpop.f32.mrb[74].mxu0 }
 0x7b2   :  { %v14577_v28 = vadd.f32 %v2259_v60, %v2034_v4  ;;  %v2261_v46 = vpop.f32.mrb[59].mxu1  ;;  %v2332_v58 = vpop.f32.mrb[75].mxu0 }
 0x7b4   :  { %12459 = vtanh.f32 %v14577_v28 }
 0x7b5   :  { %12461 = vpow2.f32 %v8809_v54 }
 0x7b6   :  { %12463 = vpow2.f32 %v8808_v44  ;;  %v2336_v44 = vadd.f32 %v2188_v1, %v2032_v45  ;;  %v2036_v45 = vld [vmem:[#allocation2 + $0xa0] sm:$0xff] }
 0x7b8   :  { %v8810_v54 = vmul.f32 -1.442695, %v2336_v44  ;;  %v2340_v44 = vadd.f32 %v14575_v48, %v2036_v45 }
 0x7be   :  { %v12460_v47 = vpop.eup %12459 }
 0x7bf   :  { %2392 = vrot.lane.b32.xlu1 %v12460_v47, %s13108_s3  ;;  %v12462_v3 = vpop.eup %12461 }
 0x7c0   :  { %v12464_v41 = vpop.eup %12463  ;;  %v2348_v22 = vadd.f32 1.0, %v12462_v3 }
 0x7c1   :  { %v2347_v4 = vadd.f32 1.0, %v12464_v41 }
 0x7c2   :  { %12465 = vrcp.f32 %v2348_v22 }
 0x7c3   :  { %12467 = vrcp.f32 %v2347_v4 }
 0x7c4   :  { %12469 = vpow2.f32 %v8810_v54 }
 0x7c5   :  { %12471 = vpow2.f32 %v8811_v51  ;;  %v8814_v51 = vmul.f32 -1.442695, %v2340_v44 }
 0x7cc   :  { %v12466_v58 = vpop.eup %12465 }
 0x7cd   :  { %v12468_v36 = vpop.eup %12467 }
 0x7ce   :  { %v12470_v22 = vpop.eup %12469 }
 0x7cf   :  { %v12472_v41 = vpop.eup %12471  ;;  %v2359_v52 = vadd.f32 1.0, %v12470_v22  ;;  %v8812_v22 = vmul.f32 -1.442695, %v14577_v28 }
 0x7d0   :  { %v2360_v32 = vadd.f32 1.0, %v12472_v41 }
 0x7d1   :  { %12473 = vrcp.f32 %v2359_v52 }
 0x7d2   :  { %12475 = vrcp.f32 %v2360_v32 }
 0x7db   :  { %v12474_v19 = vpop.eup %12473 }
 0x7dc   :  { %v12476_v42 = vpop.eup %12475 }
 0x7dd   :  { %v2387_v1 = vmul.f32 %v12476_v42, %v14439_v7  ;;  %v2035_v7 = vld [vmem:[#allocation2 + $0x98] sm:$0xff] }
 0x800   :  { %v2391_v60 = vpop.permute.xlu0 %2390 }
 0x831   :  { %v2393_v15 = vpop.permute.xlu1 %2392 }
 0x832   :  { %v2394_v47 = vsel %vm1553_vm3, %v2391_v60, %v2393_v15  ;;  %v2398_v0 = vmul.f32 %v12466_v58, %v2393_v15 }
 0x833   :  { %v2397_v50 = vmul.f32 %v12468_v36, %v2394_v47  ;;  %v2385_v36 = vmul.f32 %v12466_v58, %v14435_v12  ;;  %v2339_v47 = vadd.f32 %v2261_v46, %v2035_v7 }
 0x834   :  { %2403 = vrot.lane.b32.xlu1 %v2398_v0, %s13109_s24  ;;  %v2386_v0 = vmul.f32 %v12474_v19, %v14437_v9 }
 0x835   :  { %2401 = vrot.lane.b32.xlu0 %v2397_v50, %s13109_s24  ;;  %v8813_v54 = vmul.f32 -1.442695, %v2339_v47 }
 0x8a6   :  { %v2404_v15 = vpop.permute.xlu1 %2403 }
 0x8a7   :  { %v2402_v50 = vpop.permute.xlu0 %2401  ;;  %v14592_v60 = vadd.f32 %v2404_v15, %v2387_v1 }
 0x8a8   :  { %v2405_v2 = vsel %vm1206_vm4, %v2402_v50, %v2404_v15  ;;  %v14588_v3 = vadd.f32 %v2402_v50, %v2385_v36 }
 0x8a9   :  { %v14590_v4 = vadd.f32 %v2405_v2, %v2386_v0 }
 0x8aa   :  { %12477 = vtanh.f32 %v14588_v3 }
 0x8ab   :  { %12479 = vtanh.f32 %v14590_v4 }
 0x8ac   :  { %12481 = vtanh.f32 %v14592_v60 }
 0x8ad   :  { %12483 = vpow2.f32 %v8813_v54 }
 0x8ae   :  { %12485 = vpow2.f32 %v8814_v51  ;;  %v17374_v51 = vmov 0.0  }
 0x8af   :  { %12487 = vpow2.f32 %v8812_v22  ;;  %v17375_v22 = vld [vmem:[#allocation64_spill] sm:$0xff] }
 0x8b4   :  { %v12478_v12 = vpop.eup %12477 }
 0x8b5   :  { %v12480_v58 = vpop.eup %12479  ;;  %2418 = vrot.lane.b32.xlu0 %v12478_v12, %s13105_s14 }
 0x8b6   :  { %2420 = vrot.lane.b32.xlu1 %v12480_v58, %s13105_s14  ;;  %v12482_v9 = vpop.eup %12481 }
 0x8b7   :  { %v12484_v41 = vpop.eup %12483 }
 0x8b8   :  { %v12486_v52 = vpop.eup %12485  ;;  %v2377_v32 = vadd.f32 1.0, %v12484_v41  ;;  %v17376_v41 = vld [vmem:[#allocation71_spill] sm:$0xff] }
 0x8b9   :  { %2422 = vrot.lane.b32.xlu0 %v12482_v9, %s13105_s14  ;;  %v12488_v19 = vpop.eup %12487  ;;  %v2378_v42 = vadd.f32 1.0, %v12486_v52  ;;  %v17377_v52 = vld [vmem:[#allocation12_spill] sm:$0xff] }
 0x8ba   :  { %v2376_v15 = vadd.f32 1.0, %v12488_v19  ;;  %12489 = vrcp.f32 %v2377_v32  ;;  %v17378_v32 = vld [vmem:[#allocation13_spill] sm:$0xff]  ;;  %v17379_v19 = vld [vmem:[#allocation14_spill] sm:$0xff] }
 0x8bb   :  { %12491 = vrcp.f32 %v2378_v42  ;;  %v17380_v42 = vld [vmem:[#allocation15_spill] sm:$0xff] }
 0x8bc   :  { %12493 = vrcp.f32 %v2376_v15  ;;  %v17381_v15 = vld [vmem:[#allocation16_spill] sm:$0xff] }
 0x8c4   :  { %v12490_v0 = vpop.eup %12489 }
 0x8c5   :  { %v12492_v1 = vpop.eup %12491 }
 0x8c6   :  { %v12494_v12 = vpop.eup %12493 }
 0x927   :  { %v2419_v46 = vpop.permute.xlu0 %2418 }
 0x928   :  { %v2421_v36 = vpop.permute.xlu1 %2420  ;;  %v14610_v9 = vmul.f32 %v12494_v12, %v2419_v46  ;;  %v17390_v12 = vld [vmem:[#allocation25_spill] sm:$0xff] }
 0x929   :  { %v2424_v48 = vsel %vm1584_vm5, %v2419_v46, %v2421_v36  ;;  %v17382_v46 = vld [vmem:[#allocation17_spill] sm:$0xff] }
 0x92a   :  { %v14603_v50 = vmul.f32 %v12490_v0, %v2424_v48  ;;  %17373 = vst [vmem:[#allocation72_spill] sm:$0xff] %v14610_v9  ;;  %v17385_v0 = vld [vmem:[#allocation20_spill] sm:$0xff]  ;;  %v17386_v48 = vld [vmem:[#allocation21_spill] sm:$0xff] }
 0x92b   :  { %v2423_v28 = vpop.permute.xlu0 %2422 }
 0x92c   :  { %17371 = vst [vmem:[#allocation70_spill] sm:$0xff] %v14603_v50  ;;  %v2425_v2 = vsel %vm1584_vm5, %v2421_v36, %v2423_v28  ;;  %2461 = vrot.lane.b32.xlu1 %v14603_v50, %s13110_s25  ;;  %v17384_v36 = vld [vmem:[#allocation19_spill] sm:$0xff]  ;;  %v17387_v28 = vld [vmem:[#allocation22_spill] sm:$0xff] }
 0x92d   :  { %v14608_v58 = vmul.f32 %v12492_v1, %v2425_v2  ;;  %v17388_v1 = vld [vmem:[#allocation23_spill] sm:$0xff]  ;;  %v17389_v2 = vld [vmem:[#allocation24_spill] sm:$0xff] }
 0x92e   :  { %v17400_v50 = vld [vmem:[#allocation35_spill] sm:$0xff] }
 0x92f   :  { %17372 = vst [vmem:[#allocation80_spill] sm:$0xff] %v14608_v58  ;;  %2463 = vrot.lane.b32.xlu0 %v14608_v58, %s13110_s25  ;;  %v17398_v58 = vld [vmem:[#allocation33_spill] sm:$0xff] }
 0x930   :  { %2459 = vrot.lane.b32.xlu1 %v14610_v9, %s13110_s25  ;;  %v17399_v9 = vld [vmem:[#allocation34_spill] sm:$0xff] }
 0x99e   :  { %v2462_v7 = vpop.permute.xlu1 %2461 }
 0x9a1   :  { %v2464_v47 = vpop.permute.xlu0 %2463 }
 0x9a2   :  { %v2466_v45 = vsel %vm1626_vm6, %v2462_v7, %v2464_v47  ;;  %v2460_v44 = vpop.permute.xlu1 %2459  ;;  %v17392_v47 = vld [vmem:[#allocation27_spill] sm:$0xff] }
 0x9a3   :  { %v2465_v54 = vsel %vm1626_vm6, %v2460_v44, %v2462_v7  ;;  %8816 = vmatprep.mubr.msk.f32.mxu1 %vm1206_vm4, %v2466_v45  ;;  %8817 = vmatprep.mubr.msk.f32.mxu0 %vm1206_vm4, %v2466_v45  ;;  %v17391_v7 = vld [vmem:[#allocation26_spill] sm:$0xff]  ;;  %v17394_v44 = vld [vmem:[#allocation29_spill] sm:$0xff] }
 0x9a4   :  { %2535 = vmatmul.mubr.f32.vlgmr.msra.gmra.mrb[60].mxu1 %v2465_v54  ;;  %2606 = vmatmul.mubr.f32.vlgmr.msra.gmra.mrb[76].mxu0 %v2465_v54 }
 0x9a5   :  { %9821 = vmatpush1.bf16.msra.mxu1 %v17258_v23  ;;  %9868 = vmatpush1.bf16.msra.mxu0 %v17259_v13 }
 0x9a6   :  { %8818 = vmatprep.mubr.msk.f32.mxu1 %vm1206_vm4, %v2466_v45  ;;  %8819 = vmatprep.mubr.msk.f32.mxu0 %vm1206_vm4, %v2466_v45  ;;  %v17393_v45 = vld [vmem:[#allocation28_spill] sm:$0xff] }
 0x9a7   :  { %9823 = vmatprep.subr.bf16.mxu1 %v17260_v35  ;;  %9869 = vmatprep.subr.bf16.mxu0 %v17227_v25 }
 0x9a9   :  { %9825 = vmatpush1.bf16.msra.mxu1 %v17261_v55  ;;  %9871 = vmatpush1.bf16.msra.mxu0 %v17262_v37 }
 0x9aa   :  { %9827 = vmatprep.subr.bf16.mxu1 %v17263_v5  ;;  %9872 = vmatprep.subr.bf16.mxu0 %v17227_v25 }
 0x9ad   :  { %9829 = vmatpush1.bf16.msra.mxu1 %v17264_v43  ;;  %9874 = vmatpush1.bf16.msra.mxu0 %v17265_v20 }
 0x9ae   :  { %9831 = vmatprep.subr.bf16.mxu1 %v17266_v21  ;;  %9875 = vmatprep.subr.bf16.mxu0 %v17227_v25 }
 0x9b1   :  { %9833 = vmatpush1.bf16.msra.mxu1 %v17267_v14  ;;  %9877 = vmatpush1.bf16.msra.mxu0 %v17268_v33 }
 0x9b2   :  { %9835 = vmatprep.subr.bf16.mxu1 %v17269_v62  ;;  %9878 = vmatprep.subr.bf16.mxu0 %v17227_v25 }
 0x9b5   :  { %9837 = vmatpush1.bf16.msra.mxu1 %v17270_v59  ;;  %9880 = vmatpush1.bf16.msra.mxu0 %v17271_v16 }
 0x9b6   :  { %9839 = vmatprep.subr.bf16.mxu1 %v17315_v61  ;;  %9881 = vmatprep.subr.bf16.mxu0 %v17227_v25 }
 0x9b9   :  { %9841 = vmatpush1.bf16.msra.mxu1 %v17273_v39  ;;  %9883 = vmatpush1.bf16.msra.mxu0 %v17316_v57 }
 0x9ba   :  { %9843 = vmatprep.subr.bf16.mxu1 %v17317_v18  ;;  %9884 = vmatprep.subr.bf16.mxu0 %v17227_v25 }
 0x9bd   :  { %9845 = vmatpush1.bf16.msra.mxu1 %v17275_v11  ;;  %9886 = vmatpush1.bf16.msra.mxu0 %v13975_v40 }
 0x9be   :  { %9847 = vmatprep.subr.bf16.mxu1 %v17276_v56  ;;  %9887 = vmatprep.subr.bf16.mxu0 %v17227_v25 }
 0x9c1   :  { %9849 = vmatpush1.bf16.msra.mxu1 %v17277_v8  ;;  %9889 = vmatpush1.bf16.msra.mxu0 %v13985_v29 }
 0x9c2   :  { %9851 = vmatprep.subr.bf16.mxu1 %v17278_v63  ;;  %9890 = vmatprep.subr.bf16.mxu0 %v17227_v25 }
 0x9c5   :  { %9853 = vmatpush1.bf16.msra.mxu1 %v17279_v24  ;;  %9892 = vmatpush1.bf16.msra.mxu0 %v17318_v30 }
 0x9c6   :  { %9855 = vmatprep.subr.bf16.mxu1 %v17319_v38  ;;  %9893 = vmatprep.subr.bf16.mxu0 %v17227_v25 }
 0x9c9   :  { %9857 = vmatpush1.bf16.msra.mxu1 %v13971_v10  ;;  %9895 = vmatpush1.bf16.msra.mxu0 %v14000_v17 }
 0x9ca   :  { %9859 = vmatprep.subr.bf16.mxu1 %v17320_v49  ;;  %9896 = vmatprep.subr.bf16.mxu0 %v17227_v25 }
 0x9cd   :  { %9861 = vmatpush1.bf16.msra.mxu1 %v17321_v34  ;;  %9898 = vmatpush1.bf16.msra.mxu0 %v14005_v31 }
 0x9ce   :  { %9863 = vmatprep.subr.bf16.mxu1 %v13987_v26  ;;  %9899 = vmatprep.subr.bf16.mxu0 %v17227_v25 }
 0x9d1   :  { %9865 = vmatpush1.bf16.msra.mxu1 %v17281_v6  ;;  %9901 = vmatpush1.bf16.msra.mxu0 %v14012_v27 }
 0x9d2   :  { %2660 = vmatprep.subr.mxu1 %v14348_v53  ;;  %2731 = vmatprep.subr.mxu0 %v17374_v51  ;;  %v17383_v53 = vld [vmem:[#allocation18_spill] sm:$0xff] }
 0x9d5   :  { %2661 = vmatpush1.msra.mxu1 %v17375_v22  ;;  %2732 = vmatpush1.msra.mxu0 %v17376_v41  ;;  %v17396_v22 = vld [vmem:[#allocation31_spill] sm:$0xff]  ;;  %v17397_v41 = vld [vmem:[#allocation32_spill] sm:$0xff] }
 0x9d6   :  { %2677 = vmatmul.mubr.f32.vlgmr.msra.gmra.mrb[62].mxu1 %v2465_v54  ;;  %2748 = vmatmul.mubr.f32.vlgmr.msra.gmra.mrb[78].mxu0 %v2465_v54  ;;  %v17395_v54 = vld [vmem:[#allocation30_spill] sm:$0xff] }
 0x9d7   :  { %9903 = vmatprep.subr.bf16.mxu1 %v17377_v52  ;;  %9951 = vmatprep.subr.bf16.mxu0 %v17378_v32 }
 0x9d8   :  { %9905 = vmatpush1.bf16.msra.mxu1 %v17379_v19  ;;  %9953 = vmatpush1.bf16.msra.mxu0 %v17380_v42 }
 0x9d9   :  { %9907 = vmatprep.subr.bf16.mxu1 %v17381_v15  ;;  %9955 = vmatprep.subr.bf16.mxu0 %v17382_v46 }
 0x9dc   :  { %9909 = vmatpush1.bf16.msra.mxu1 %v17383_v53  ;;  %9957 = vmatpush1.bf16.msra.mxu0 %v17384_v36 }
 0x9dd   :  { %9911 = vmatprep.subr.bf16.mxu1 %v17385_v0  ;;  %9959 = vmatprep.subr.bf16.mxu0 %v17386_v48  ;;  %v2450_v48 = vld [vmem:[#allocation2 + $0xb0] sm:$0xff]  ;;  %v2449_v0 = vld [vmem:[#allocation2 + $0xa8] sm:$0xff] }
 0x9e0   :  { %9913 = vmatpush1.bf16.msra.mxu1 %v17387_v28  ;;  %9961 = vmatpush1.bf16.msra.mxu0 %v17388_v1 }
 0x9e1   :  { %9915 = vmatprep.subr.bf16.mxu1 %v17389_v2  ;;  %9963 = vmatprep.subr.bf16.mxu0 %v17390_v12  ;;  %v17401_v12 = vld [vmem:[#allocation36_spill] sm:$0xff] }
 0x9e4   :  { %9917 = vmatpush1.bf16.msra.mxu1 %v17391_v7  ;;  %9965 = vmatpush1.bf16.msra.mxu0 %v17392_v47  ;;  %v17402_v7 = vld [vmem:[#allocation37_spill] sm:$0xff]  ;;  %v17403_v47 = vld [vmem:[#allocation38_spill] sm:$0xff] }
 0x9e5   :  { %9919 = vmatprep.subr.bf16.mxu1 %v17393_v45  ;;  %9967 = vmatprep.subr.bf16.mxu0 %v17394_v44  ;;  %v17404_v45 = vld [vmem:[#allocation39_spill] sm:$0xff]  ;;  %v17405_v44 = vld [vmem:[#allocation40_spill] sm:$0xff] }
 0x9e8   :  { %9921 = vmatpush1.bf16.msra.mxu1 %v17395_v54  ;;  %9969 = vmatpush1.bf16.msra.mxu0 %v17396_v22  ;;  %v17406_v54 = vld [vmem:[#allocation41_spill] sm:$0xff]  ;;  %v17407_v22 = vld [vmem:[#allocation42_spill] sm:$0xff] }
 0x9e9   :  { %9923 = vmatprep.subr.bf16.mxu1 %v17397_v41  ;;  %9971 = vmatprep.subr.bf16.mxu0 %v17398_v58  ;;  %v17408_v41 = vld [vmem:[#allocation43_spill] sm:$0xff]  ;;  %v17409_v58 = vld [vmem:[#allocation44_spill] sm:$0xff] }
 0x9ec   :  { %9925 = vmatpush1.bf16.msra.mxu1 %v17399_v9  ;;  %9973 = vmatpush1.bf16.msra.mxu0 %v17400_v50  ;;  %v17410_v9 = vld [vmem:[#allocation45_spill] sm:$0xff]  ;;  %v17411_v50 = vld [vmem:[#allocation46_spill] sm:$0xff] }
 0x9ed   :  { %9927 = vmatprep.subr.bf16.mxu1 %v17401_v12  ;;  %9975 = vmatprep.subr.bf16.mxu0 %v17402_v7  ;;  %v17412_v12 = vld [vmem:[#allocation47_spill] sm:$0xff]  ;;  %v17413_v7 = vld [vmem:[#allocation48_spill] sm:$0xff] }
 0x9f0   :  { %9929 = vmatpush1.bf16.msra.mxu1 %v17403_v47  ;;  %9977 = vmatpush1.bf16.msra.mxu0 %v17404_v45  ;;  %v17414_v47 = vld [vmem:[#allocation49_spill] sm:$0xff]  ;;  %v17415_v45 = vld [vmem:[#allocation50_spill] sm:$0xff] }
 0x9f1   :  { %9931 = vmatprep.subr.bf16.mxu1 %v17405_v44  ;;  %9979 = vmatprep.subr.bf16.mxu0 %v17406_v54  ;;  %v17416_v44 = vld [vmem:[#allocation51_spill] sm:$0xff]  ;;  %v17417_v54 = vld [vmem:[#allocation52_spill] sm:$0xff] }
 0x9f4   :  { %9933 = vmatpush1.bf16.msra.mxu1 %v17407_v22  ;;  %9981 = vmatpush1.bf16.msra.mxu0 %v17408_v41  ;;  %v17418_v22 = vld [vmem:[#allocation53_spill] sm:$0xff]  ;;  %v17419_v41 = vld [vmem:[#allocation54_spill] sm:$0xff] }
 0x9f5   :  { %9935 = vmatprep.subr.bf16.mxu1 %v17409_v58  ;;  %9983 = vmatprep.subr.bf16.mxu0 %v17410_v9  ;;  %v17420_v58 = vld [vmem:[#allocation55_spill] sm:$0xff]  ;;  %v17421_v9 = vld [vmem:[#allocation56_spill] sm:$0xff] }
 0x9f8   :  { %9937 = vmatpush1.bf16.msra.mxu1 %v17411_v50  ;;  %9985 = vmatpush1.bf16.msra.mxu0 %v17412_v12  ;;  %v17422_v50 = vld [vmem:[#allocation57_spill] sm:$0xff]  ;;  %v17423_v12 = vld [vmem:[#allocation58_spill] sm:$0xff] }
 0x9f9   :  { %9939 = vmatprep.subr.bf16.mxu1 %v17413_v7  ;;  %9987 = vmatprep.subr.bf16.mxu0 %v17414_v47  ;;  %v17424_v7 = vld [vmem:[#allocation59_spill] sm:$0xff]  ;;  %v17425_v47 = vld [vmem:[#allocation65_spill] sm:$0xff] }
 0x9fc   :  { %9941 = vmatpush1.bf16.msra.mxu1 %v17415_v45  ;;  %9989 = vmatpush1.bf16.msra.mxu0 %v17416_v44  ;;  %v17426_v45 = vld [vmem:[#allocation66_spill] sm:$0xff] }
 0x9fd   :  { %9943 = vmatprep.subr.bf16.mxu1 %v17417_v54  ;;  %9991 = vmatprep.subr.bf16.mxu0 %v17418_v22  ;;  %v17427_v44 = vld [vmem:[#allocation74_spill] sm:$0xff]  ;;  %v17428_v54 = vld [vmem:[#allocation67_spill] sm:$0xff] }
 0x9fe   :  { %v17429_v22 = vld [vmem:[#allocation62_spill] sm:$0xff] }
 0xa00   :  { %9945 = vmatpush1.bf16.msra.mxu1 %v17419_v41  ;;  %9993 = vmatpush1.bf16.msra.mxu0 %v17420_v58 }
 0xa01   :  { %9947 = vmatprep.subr.bf16.mxu1 %v17421_v9  ;;  %9995 = vmatprep.subr.bf16.mxu0 %v17422_v50  ;;  %v2452_v50 = vld [vmem:[#allocation2 + $0xc0] sm:$0xff] }
 0xa04   :  { %9949 = vmatpush1.bf16.msra.mxu1 %v17423_v12  ;;  %9997 = vmatpush1.bf16.msra.mxu0 %v17424_v7 }
 0xa05   :  { %2937 = vmatprep.subr.mxu1 %v17425_v47  ;;  %3008 = vmatprep.subr.mxu0 %v17426_v45  ;;  %v2453_v47 = vld [vmem:[#allocation2 + $0xc8] sm:$0xff] }
 0xa08   :  { %2938 = vmatpush1.msra.mxu1 %v17427_v44  ;;  %3009 = vmatpush1.msra.mxu0 %v17428_v54 }
 0xa09   :  { %9999 = vmatprep.subr.bf16.mxu1 %v17429_v22  ;;  %10046 = vmatprep.subr.bf16.mxu0 %v17227_v25 }
 0xa77   :  { %v2536_v58 = vpop.f32.mrb[60].mxu1  ;;  %v2607_v9 = vpop.f32.mrb[76].mxu0 }
 0xa78   :  { %v2538_v41 = vpop.f32.mrb[61].mxu1  ;;  %v2609_v2 = vpop.f32.mrb[77].mxu0 }
 0xa79   :  { %v2756_v12 = vadd.f32 %v2609_v2, %v2452_v50  ;;  %v2754_v50 = vadd.f32 %v2538_v41, %v2450_v48  ;;  %v2753_v2 = vadd.f32 %v2536_v58, %v2449_v0  ;;  %v2451_v58 = vld [vmem:[#allocation2 + $0xb8] sm:$0xff] }
 0xa7b   :  { %12495 = vtanh.f32 %v2756_v12  ;;  %v8821_v36 = vmul.f32 -1.442695, %v2754_v50  ;;  %v8820_v53 = vmul.f32 -1.442695, %v2753_v2  ;;  %v8823_v0 = vmul.f32 -1.442695, %v2756_v12 }
 0xa85   :  { %v12496_v7 = vpop.eup %12495 }
 0xa86   :  { %2809 = vrot.lane.b32.xlu0 %v12496_v7, %s13108_s3 }
 0xaa9   :  { %v2678_v45 = vpop.f32.mrb[62].mxu1  ;;  %v14727_v1 = vpop.f32.mrb[78].mxu0 }
 0xaaa   :  { %v14729_v44 = vadd.f32 %v2678_v45, %v2453_v47  ;;  %v2680_v54 = vpop.f32.mrb[63].mxu1  ;;  %v2751_v22 = vpop.f32.mrb[79].mxu0 }
 0xaac   :  { %12497 = vtanh.f32 %v14729_v44 }
 0xaad   :  { %12499 = vpow2.f32 %v8821_v36 }
 0xaae   :  { %12501 = vpow2.f32 %v8820_v53  ;;  %v2755_v53 = vadd.f32 %v2607_v9, %v2451_v58  ;;  %v2455_v58 = vld [vmem:[#allocation2 + $0xd8] sm:$0xff] }
 0xab0   :  { %v8822_v36 = vmul.f32 -1.442695, %v2755_v53  ;;  %v2759_v53 = vadd.f32 %v14727_v1, %v2455_v58 }
 0xab6   :  { %v12498_v28 = vpop.eup %12497 }
 0xab7   :  { %2811 = vrot.lane.b32.xlu1 %v12498_v28, %s13108_s3  ;;  %v12500_v7 = vpop.eup %12499 }
 0xab8   :  { %v12502_v46 = vpop.eup %12501  ;;  %v2767_v15 = vadd.f32 1.0, %v12500_v7 }
 0xab9   :  { %v2766_v47 = vadd.f32 1.0, %v12502_v46 }
 0xaba   :  { %12503 = vrcp.f32 %v2767_v15 }
 0xabb   :  { %12505 = vrcp.f32 %v2766_v47 }
 0xabc   :  { %12507 = vpow2.f32 %v8822_v36 }
 0xabd   :  { %12509 = vpow2.f32 %v8823_v0  ;;  %v8826_v0 = vmul.f32 -1.442695, %v2759_v53 }
 0xac4   :  { %v12504_v22 = vpop.eup %12503 }
 0xac5   :  { %v12506_v19 = vpop.eup %12505 }
 0xac6   :  { %v12508_v15 = vpop.eup %12507 }
 0xac7   :  { %v12510_v46 = vpop.eup %12509  ;;  %v2778_v48 = vadd.f32 1.0, %v12508_v15  ;;  %v8824_v15 = vmul.f32 -1.442695, %v14729_v44 }
 0xac8   :  { %v2779_v41 = vadd.f32 1.0, %v12510_v46 }
 0xac9   :  { %12511 = vrcp.f32 %v2778_v48 }
 0xaca   :  { %12513 = vrcp.f32 %v2779_v41 }
 0xad3   :  { %v12512_v50 = vpop.eup %12511 }
 0xad4   :  { %v12514_v2 = vpop.eup %12513 }
 0xad5   :  { %v2806_v9 = vmul.f32 %v12514_v2, %v14592_v60  ;;  %v2454_v60 = vld [vmem:[#allocation2 + $0xd0] sm:$0xff] }
 0xaf8   :  { %v2810_v45 = vpop.permute.xlu0 %2809 }
 0xb29   :  { %v2812_v42 = vpop.permute.xlu1 %2811 }
 0xb2a   :  { %v2813_v28 = vsel %vm1553_vm3, %v2810_v45, %v2812_v42  ;;  %v2817_v32 = vmul.f32 %v12504_v22, %v2812_v42 }
 0xb2b   :  { %v2816_v52 = vmul.f32 %v12506_v19, %v2813_v28  ;;  %v2804_v19 = vmul.f32 %v12504_v22, %v14588_v3  ;;  %v2758_v28 = vadd.f32 %v2680_v54, %v2454_v60 }
 0xb2c   :  { %2822 = vrot.lane.b32.xlu1 %v2817_v32, %s13109_s24  ;;  %v2805_v32 = vmul.f32 %v12512_v50, %v14590_v4 }
 0xb2d   :  { %2820 = vrot.lane.b32.xlu0 %v2816_v52, %s13109_s24  ;;  %v8825_v36 = vmul.f32 -1.442695, %v2758_v28 }
 0xb9e   :  { %v2823_v42 = vpop.permute.xlu1 %2822 }
 0xb9f   :  { %v2821_v52 = vpop.permute.xlu0 %2820  ;;  %v14744_v45 = vadd.f32 %v2823_v42, %v2806_v9 }
 0xba0   :  { %v2824_v12 = vsel %vm1206_vm4, %v2821_v52, %v2823_v42  ;;  %v14740_v7 = vadd.f32 %v2821_v52, %v2804_v19 }
 0xba1   :  { %v14742_v47 = vadd.f32 %v2824_v12, %v2805_v32 }
 0xba2   :  { %12515 = vtanh.f32 %v14740_v7 }
 0xba3   :  { %12517 = vtanh.f32 %v14742_v47 }
 0xba4   :  { %12519 = vtanh.f32 %v14744_v45 }
 0xba5   :  { %12521 = vpow2.f32 %v8825_v36 }
 0xba6   :  { %12523 = vpow2.f32 %v8826_v0  ;;  %v14820_v0 = vld [vmem:[#allocation3 + $0x568] sm:$0xff] }
 0xba7   :  { %12525 = vpow2.f32 %v8824_v15  ;;  %v14824_v15 = vld [vmem:[#allocation3 + $0x560] sm:$0xff] }
 0xba8   :  { %17433 = vst [vmem:[#allocation79_spill] sm:$0xff] %v14824_v15 }
 0xbac   :  { %v12516_v3 = vpop.eup %12515 }
 0xbad   :  { %v12518_v22 = vpop.eup %12517  ;;  %2837 = vrot.lane.b32.xlu0 %v12516_v3, %s13105_s14 }
 0xbae   :  { %2839 = vrot.lane.b32.xlu1 %v12518_v22, %s13105_s14  ;;  %v12520_v4 = vpop.eup %12519 }
 0xbaf   :  { %v12522_v46 = vpop.eup %12521 }
 0xbb0   :  { %v12524_v48 = vpop.eup %12523  ;;  %v2796_v41 = vadd.f32 1.0, %v12522_v46  ;;  %v14827_v46 = vld [vmem:[#allocation3 + $0x570] sm:$0xff] }
 0xbb1   :  { %2841 = vrot.lane.b32.xlu0 %v12520_v4, %s13105_s14  ;;  %v12526_v50 = vpop.eup %12525  ;;  %v2797_v2 = vadd.f32 1.0, %v12524_v48  ;;  %17434 = vst [vmem:[#allocation81_spill] sm:$0xff] %v14827_v46  ;;  %v17435_v48 = vld [vmem:[#allocation12_spill] sm:$0xff] }
 0xbb2   :  { %v2795_v42 = vadd.f32 1.0, %v12526_v50  ;;  %12527 = vrcp.f32 %v2796_v41  ;;  %v17436_v41 = vld [vmem:[#allocation13_spill] sm:$0xff]  ;;  %v17437_v50 = vld [vmem:[#allocation14_spill] sm:$0xff] }
 0xbb3   :  { %12529 = vrcp.f32 %v2797_v2  ;;  %v17438_v2 = vld [vmem:[#allocation15_spill] sm:$0xff] }
 0xbb4   :  { %12531 = vrcp.f32 %v2795_v42  ;;  %v17439_v42 = vld [vmem:[#allocation16_spill] sm:$0xff] }
 0xbbc   :  { %v12528_v32 = vpop.eup %12527 }
 0xbbd   :  { %v12530_v9 = vpop.eup %12529 }
 0xbbe   :  { %v12532_v3 = vpop.eup %12531 }
 0xc1f   :  { %v2838_v54 = vpop.permute.xlu0 %2837 }
 0xc20   :  { %v2840_v19 = vpop.permute.xlu1 %2839  ;;  %v14762_v4 = vmul.f32 %v12532_v3, %v2838_v54  ;;  %v17447_v3 = vld [vmem:[#allocation24_spill] sm:$0xff] }
 0xc21   :  { %v2843_v1 = vsel %vm1584_vm5, %v2838_v54, %v2840_v19  ;;  %v17440_v54 = vld [vmem:[#allocation17_spill] sm:$0xff] }
 0xc22   :  { %v14755_v52 = vmul.f32 %v12528_v32, %v2843_v1  ;;  %17432 = vst [vmem:[#allocation76_spill] sm:$0xff] %v14762_v4  ;;  %v17442_v32 = vld [vmem:[#allocation19_spill] sm:$0xff]  ;;  %v17443_v1 = vld [vmem:[#allocation20_spill] sm:$0xff] }
 0xc23   :  { %v2842_v44 = vpop.permute.xlu0 %2841 }
 0xc24   :  { %17430 = vst [vmem:[#allocation73_spill] sm:$0xff] %v14755_v52  ;;  %v2844_v12 = vsel %vm1584_vm5, %v2840_v19, %v2842_v44  ;;  %2880 = vrot.lane.b32.xlu1 %v14755_v52, %s13110_s25  ;;  %v17441_v19 = vld [vmem:[#allocation18_spill] sm:$0xff]  ;;  %v17444_v44 = vld [vmem:[#allocation21_spill] sm:$0xff]  ;;  %v17455_v52 = vld [vmem:[#allocation32_spill] sm:$0xff] }
 0xc25   :  { %v14760_v22 = vmul.f32 %v12530_v9, %v2844_v12  ;;  %v17445_v9 = vld [vmem:[#allocation22_spill] sm:$0xff]  ;;  %v17446_v12 = vld [vmem:[#allocation23_spill] sm:$0xff] }
 0xc27   :  { %17431 = vst [vmem:[#allocation83_spill] sm:$0xff] %v14760_v22  ;;  %2882 = vrot.lane.b32.xlu0 %v14760_v22, %s13110_s25  ;;  %v17453_v22 = vld [vmem:[#allocation30_spill] sm:$0xff] }
 0xc28   :  { %2878 = vrot.lane.b32.xlu1 %v14762_v4, %s13110_s25  ;;  %v17454_v4 = vld [vmem:[#allocation31_spill] sm:$0xff] }
 0xc96   :  { %v2881_v60 = vpop.permute.xlu1 %2880 }
 0xc99   :  { %v2883_v28 = vpop.permute.xlu0 %2882 }
 0xc9a   :  { %v2885_v58 = vsel %vm1626_vm6, %v2881_v60, %v2883_v28  ;;  %v2879_v53 = vpop.permute.xlu1 %2878  ;;  %v17449_v28 = vld [vmem:[#allocation26_spill] sm:$0xff] }
 0xc9b   :  { %v2884_v36 = vsel %vm1626_vm6, %v2879_v53, %v2881_v60  ;;  %8828 = vmatprep.mubr.msk.f32.mxu1 %vm1206_vm4, %v2885_v58  ;;  %8829 = vmatprep.mubr.msk.f32.mxu0 %vm1206_vm4, %v2885_v58  ;;  %v17448_v60 = vld [vmem:[#allocation25_spill] sm:$0xff]  ;;  %v17451_v53 = vld [vmem:[#allocation28_spill] sm:$0xff] }
 0xc9c   :  { %2954 = vmatmul.mubr.f32.vlgmr.msra.gmra.mrb[64].mxu1 %v2884_v36  ;;  %3025 = vmatmul.mubr.f32.vlgmr.msra.gmra.mrb[80].mxu0 %v2884_v36 }
 0xc9d   :  { %10001 = vmatpush1.bf16.msra.mxu1 %v17258_v23  ;;  %10048 = vmatpush1.bf16.msra.mxu0 %v17259_v13 }
 0xc9e   :  { %8830 = vmatprep.mubr.msk.f32.mxu1 %vm1206_vm4, %v2885_v58  ;;  %8831 = vmatprep.mubr.msk.f32.mxu0 %vm1206_vm4, %v2885_v58  ;;  %v17450_v58 = vld [vmem:[#allocation27_spill] sm:$0xff] }
 0xc9f   :  { %10003 = vmatprep.subr.bf16.mxu1 %v17260_v35  ;;  %10049 = vmatprep.subr.bf16.mxu0 %v17227_v25 }
 0xca1   :  { %10005 = vmatpush1.bf16.msra.mxu1 %v17261_v55  ;;  %10051 = vmatpush1.bf16.msra.mxu0 %v17262_v37 }
 0xca2   :  { %10007 = vmatprep.subr.bf16.mxu1 %v17263_v5  ;;  %10052 = vmatprep.subr.bf16.mxu0 %v17227_v25 }
 0xca5   :  { %10009 = vmatpush1.bf16.msra.mxu1 %v17264_v43  ;;  %10054 = vmatpush1.bf16.msra.mxu0 %v17265_v20 }
 0xca6   :  { %10011 = vmatprep.subr.bf16.mxu1 %v17266_v21  ;;  %10055 = vmatprep.subr.bf16.mxu0 %v17227_v25 }
 0xca9   :  { %10013 = vmatpush1.bf16.msra.mxu1 %v17267_v14  ;;  %10057 = vmatpush1.bf16.msra.mxu0 %v17268_v33 }
 0xcaa   :  { %10015 = vmatprep.subr.bf16.mxu1 %v17269_v62  ;;  %10058 = vmatprep.subr.bf16.mxu0 %v17227_v25 }
 0xcad   :  { %10017 = vmatpush1.bf16.msra.mxu1 %v17270_v59  ;;  %10060 = vmatpush1.bf16.msra.mxu0 %v17271_v16 }
 0xcae   :  { %10019 = vmatprep.subr.bf16.mxu1 %v17315_v61  ;;  %10061 = vmatprep.subr.bf16.mxu0 %v17227_v25 }
 0xcb1   :  { %10021 = vmatpush1.bf16.msra.mxu1 %v17273_v39  ;;  %10063 = vmatpush1.bf16.msra.mxu0 %v17316_v57 }
 0xcb2   :  { %10023 = vmatprep.subr.bf16.mxu1 %v17317_v18  ;;  %10064 = vmatprep.subr.bf16.mxu0 %v17227_v25 }
 0xcb5   :  { %10025 = vmatpush1.bf16.msra.mxu1 %v17275_v11  ;;  %10066 = vmatpush1.bf16.msra.mxu0 %v13975_v40 }
 0xcb6   :  { %10027 = vmatprep.subr.bf16.mxu1 %v17276_v56  ;;  %10067 = vmatprep.subr.bf16.mxu0 %v17227_v25 }
 0xcb9   :  { %10029 = vmatpush1.bf16.msra.mxu1 %v17277_v8  ;;  %10069 = vmatpush1.bf16.msra.mxu0 %v13985_v29 }
 0xcba   :  { %10031 = vmatprep.subr.bf16.mxu1 %v17278_v63  ;;  %10070 = vmatprep.subr.bf16.mxu0 %v17227_v25 }
 0xcbd   :  { %10033 = vmatpush1.bf16.msra.mxu1 %v17279_v24  ;;  %10072 = vmatpush1.bf16.msra.mxu0 %v17318_v30 }
 0xcbe   :  { %10035 = vmatprep.subr.bf16.mxu1 %v17319_v38  ;;  %10073 = vmatprep.subr.bf16.mxu0 %v17227_v25 }
 0xcc1   :  { %10037 = vmatpush1.bf16.msra.mxu1 %v13971_v10  ;;  %10075 = vmatpush1.bf16.msra.mxu0 %v14000_v17 }
 0xcc2   :  { %10039 = vmatprep.subr.bf16.mxu1 %v17320_v49  ;;  %10076 = vmatprep.subr.bf16.mxu0 %v17227_v25 }
 0xcc5   :  { %10041 = vmatpush1.bf16.msra.mxu1 %v17321_v34  ;;  %10078 = vmatpush1.bf16.msra.mxu0 %v14005_v31 }
 0xcc6   :  { %10043 = vmatprep.subr.bf16.mxu1 %v13987_v26  ;;  %10079 = vmatprep.subr.bf16.mxu0 %v17227_v25 }
 0xcc9   :  { %10045 = vmatpush1.bf16.msra.mxu1 %v17281_v6  ;;  %10081 = vmatpush1.bf16.msra.mxu0 %v14012_v27 }
 0xcca   :  { %3079 = vmatprep.subr.mxu1 %v14820_v0  ;;  %3150 = vmatprep.subr.mxu0 %v17374_v51 }
 0xccd   :  { %3080 = vmatpush1.msra.mxu1 %v14824_v15  ;;  %3151 = vmatpush1.msra.mxu0 %v14827_v46 }
 0xcce   :  { %3096 = vmatmul.mubr.f32.vlgmr.msra.gmra.mrb[66].mxu1 %v2884_v36  ;;  %3167 = vmatmul.mubr.f32.vlgmr.msra.gmra.mrb[82].mxu0 %v2884_v36  ;;  %v17452_v36 = vld [vmem:[#allocation29_spill] sm:$0xff] }
 0xccf   :  { %10083 = vmatprep.subr.bf16.mxu1 %v17435_v48  ;;  %10131 = vmatprep.subr.bf16.mxu0 %v17436_v41 }
 0xcd0   :  { %10085 = vmatpush1.bf16.msra.mxu1 %v17437_v50  ;;  %10133 = vmatpush1.bf16.msra.mxu0 %v17438_v2 }
 0xcd1   :  { %10087 = vmatprep.subr.bf16.mxu1 %v17439_v42  ;;  %10135 = vmatprep.subr.bf16.mxu0 %v17440_v54  ;;  %v2868_v54 = vld [vmem:[#allocation2 + $0xe0] sm:$0xff] }
 0xcd4   :  { %10089 = vmatpush1.bf16.msra.mxu1 %v17441_v19  ;;  %10137 = vmatpush1.bf16.msra.mxu0 %v17442_v32  ;;  %v2869_v19 = vld [vmem:[#allocation2 + $0xe8] sm:$0xff] }
 0xcd5   :  { %10091 = vmatprep.subr.bf16.mxu1 %v17443_v1  ;;  %10139 = vmatprep.subr.bf16.mxu0 %v17444_v44 }
 0xcd8   :  { %10093 = vmatpush1.bf16.msra.mxu1 %v17445_v9  ;;  %10141 = vmatpush1.bf16.msra.mxu0 %v17446_v12  ;;  %v17456_v9 = vld [vmem:[#allocation33_spill] sm:$0xff]  ;;  %v17457_v12 = vld [vmem:[#allocation34_spill] sm:$0xff] }
 0xcd9   :  { %10095 = vmatprep.subr.bf16.mxu1 %v17447_v3  ;;  %10143 = vmatprep.subr.bf16.mxu0 %v17448_v60  ;;  %v17458_v3 = vld [vmem:[#allocation35_spill] sm:$0xff]  ;;  %v17459_v60 = vld [vmem:[#allocation36_spill] sm:$0xff] }
 0xcdc   :  { %10097 = vmatpush1.bf16.msra.mxu1 %v17449_v28  ;;  %10145 = vmatpush1.bf16.msra.mxu0 %v17450_v58  ;;  %v17460_v28 = vld [vmem:[#allocation37_spill] sm:$0xff]  ;;  %v17461_v58 = vld [vmem:[#allocation38_spill] sm:$0xff] }
 0xcdd   :  { %10099 = vmatprep.subr.bf16.mxu1 %v17451_v53  ;;  %10147 = vmatprep.subr.bf16.mxu0 %v17452_v36  ;;  %v17462_v53 = vld [vmem:[#allocation39_spill] sm:$0xff]  ;;  %v17463_v36 = vld [vmem:[#allocation40_spill] sm:$0xff] }
 0xce0   :  { %10101 = vmatpush1.bf16.msra.mxu1 %v17453_v22  ;;  %10149 = vmatpush1.bf16.msra.mxu0 %v17454_v4  ;;  %v17464_v22 = vld [vmem:[#allocation41_spill] sm:$0xff]  ;;  %v17465_v4 = vld [vmem:[#allocation42_spill] sm:$0xff] }
 0xce1   :  { %10103 = vmatprep.subr.bf16.mxu1 %v17455_v52  ;;  %10151 = vmatprep.subr.bf16.mxu0 %v17456_v9  ;;  %v17466_v52 = vld [vmem:[#allocation43_spill] sm:$0xff]  ;;  %v17467_v9 = vld [vmem:[#allocation44_spill] sm:$0xff] }
 0xce4   :  { %10105 = vmatpush1.bf16.msra.mxu1 %v17457_v12  ;;  %10153 = vmatpush1.bf16.msra.mxu0 %v17458_v3  ;;  %v17468_v12 = vld [vmem:[#allocation45_spill] sm:$0xff]  ;;  %v17469_v3 = vld [vmem:[#allocation46_spill] sm:$0xff] }
 0xce5   :  { %10107 = vmatprep.subr.bf16.mxu1 %v17459_v60  ;;  %10155 = vmatprep.subr.bf16.mxu0 %v17460_v28  ;;  %v17470_v60 = vld [vmem:[#allocation47_spill] sm:$0xff]  ;;  %v17471_v28 = vld [vmem:[#allocation48_spill] sm:$0xff] }
 0xce8   :  { %10109 = vmatpush1.bf16.msra.mxu1 %v17461_v58  ;;  %10157 = vmatpush1.bf16.msra.mxu0 %v17462_v53  ;;  %v17472_v58 = vld [vmem:[#allocation49_spill] sm:$0xff]  ;;  %v17473_v53 = vld [vmem:[#allocation50_spill] sm:$0xff] }
 0xce9   :  { %10111 = vmatprep.subr.bf16.mxu1 %v17463_v36  ;;  %10159 = vmatprep.subr.bf16.mxu0 %v17464_v22  ;;  %v17474_v36 = vld [vmem:[#allocation51_spill] sm:$0xff]  ;;  %v17475_v22 = vld [vmem:[#allocation52_spill] sm:$0xff] }
 0xcec   :  { %10113 = vmatpush1.bf16.msra.mxu1 %v17465_v4  ;;  %10161 = vmatpush1.bf16.msra.mxu0 %v17466_v52  ;;  %v17476_v4 = vld [vmem:[#allocation53_spill] sm:$0xff]  ;;  %v17477_v52 = vld [vmem:[#allocation54_spill] sm:$0xff] }
 0xced   :  { %10115 = vmatprep.subr.bf16.mxu1 %v17467_v9  ;;  %10163 = vmatprep.subr.bf16.mxu0 %v17468_v12  ;;  %v17478_v9 = vld [vmem:[#allocation55_spill] sm:$0xff]  ;;  %v17479_v12 = vld [vmem:[#allocation56_spill] sm:$0xff] }
 0xcf0   :  { %10117 = vmatpush1.bf16.msra.mxu1 %v17469_v3  ;;  %10165 = vmatpush1.bf16.msra.mxu0 %v17470_v60  ;;  %v17480_v3 = vld [vmem:[#allocation57_spill] sm:$0xff]  ;;  %v17481_v60 = vld [vmem:[#allocation58_spill] sm:$0xff] }
 0xcf1   :  { %10119 = vmatprep.subr.bf16.mxu1 %v17471_v28  ;;  %10167 = vmatprep.subr.bf16.mxu0 %v17472_v58  ;;  %v17482_v28 = vld [vmem:[#allocation59_spill] sm:$0xff]  ;;  %v14878_v58 = vld [vmem:[#allocation3 + $0x548] sm:$0xff] }
 0xcf2   :  { %17483 = vst [vmem:[#allocation82_spill] sm:$0xff] %v14878_v58 }
 0xcf4   :  { %10121 = vmatpush1.bf16.msra.mxu1 %v17473_v53  ;;  %10169 = vmatpush1.bf16.msra.mxu0 %v17474_v36  ;;  %v14881_v36 = vld [vmem:[#allocation3 + $0x558] sm:$0xff]  ;;  %v2872_v53 = vld [vmem:[#allocation2 + $0x100] sm:$0xff] }
 0xcf5   :  { %10123 = vmatprep.subr.bf16.mxu1 %v17475_v22  ;;  %10171 = vmatprep.subr.bf16.mxu0 %v17476_v4  ;;  %17484 = vst [vmem:[#allocation84_spill] sm:$0xff] %v14881_v36  ;;  %v14884_v4 = vld [vmem:[#allocation3 + $0x540] sm:$0xff] }
 0xcf6   :  { %17485 = vst [vmem:[#allocation85_spill] sm:$0xff] %v14884_v4 }
 0xcf8   :  { %10125 = vmatpush1.bf16.msra.mxu1 %v17477_v52  ;;  %10173 = vmatpush1.bf16.msra.mxu0 %v17478_v9  ;;  %v14887_v9 = vld [vmem:[#allocation3 + $0x550] sm:$0xff] }
 0xcf9   :  { %10127 = vmatprep.subr.bf16.mxu1 %v17479_v12  ;;  %10175 = vmatprep.subr.bf16.mxu0 %v17480_v3  ;;  %17486 = vst [vmem:[#allocation90_spill] sm:$0xff] %v14887_v9  ;;  %v17487_v3 = vld [vmem:[#allocation62_spill] sm:$0xff] }
 0xcfc   :  { %10129 = vmatpush1.bf16.msra.mxu1 %v17481_v60  ;;  %10177 = vmatpush1.bf16.msra.mxu0 %v17482_v28 }
 0xcfd   :  { %3356 = vmatprep.subr.mxu1 %v14878_v58  ;;  %3427 = vmatprep.subr.mxu0 %v14881_v36  ;;  %v2871_v58 = vld [vmem:[#allocation2 + $0xf8] sm:$0xff] }
 0xd00   :  { %3357 = vmatpush1.msra.mxu1 %v14884_v4  ;;  %3428 = vmatpush1.msra.mxu0 %v14887_v9 }
 0xd01   :  { %10179 = vmatprep.subr.bf16.mxu1 %v17487_v3  ;;  %10226 = vmatprep.subr.bf16.mxu0 %v17227_v25 }
 0xd6f   :  { %v2955_v28 = vpop.f32.mrb[64].mxu1  ;;  %v3026_v60 = vpop.f32.mrb[80].mxu0 }
 0xd70   :  { %v2957_v12 = vpop.f32.mrb[65].mxu1  ;;  %v3028_v52 = vpop.f32.mrb[81].mxu0 }
 0xd71   :  { %v3175_v22 = vadd.f32 %v3028_v52, %v2871_v58  ;;  %v3173_v52 = vadd.f32 %v2957_v12, %v2869_v19  ;;  %v3172_v58 = vadd.f32 %v2955_v28, %v2868_v54 }
 0xd73   :  { %12533 = vtanh.f32 %v3175_v22  ;;  %v8833_v42 = vmul.f32 -1.442695, %v3173_v52  ;;  %v8832_v2 = vmul.f32 -1.442695, %v3172_v58  ;;  %v8835_v19 = vmul.f32 -1.442695, %v3175_v22 }
 0xd7d   :  { %v12534_v36 = vpop.eup %12533 }
 0xd7e   :  { %3228 = vrot.lane.b32.xlu0 %v12534_v36, %s13108_s3 }
 0xda1   :  { %v3097_v4 = vpop.f32.mrb[66].mxu1  ;;  %v14893_v44 = vpop.f32.mrb[82].mxu0 }
 0xda2   :  { %v14895_v1 = vadd.f32 %v3097_v4, %v2872_v53  ;;  %v3099_v9 = vpop.f32.mrb[67].mxu1  ;;  %v3170_v3 = vpop.f32.mrb[83].mxu0 }
 0xda4   :  { %12535 = vtanh.f32 %v14895_v1 }
 0xda5   :  { %12537 = vpow2.f32 %v8833_v42  ;;  %v2870_v42 = vld [vmem:[#allocation2 + $0xf0] sm:$0xff] }
 0xda6   :  { %12539 = vpow2.f32 %v8832_v2  ;;  %v3174_v2 = vadd.f32 %v3026_v60, %v2870_v42  ;;  %v2874_v42 = vld [vmem:[#allocation2 + $0x110] sm:$0xff] }
 0xda8   :  { %v8834_v54 = vmul.f32 -1.442695, %v3174_v2  ;;  %v3178_v2 = vadd.f32 %v14893_v44, %v2874_v42 }
 0xdae   :  { %v12536_v32 = vpop.eup %12535 }
 0xdaf   :  { %3230 = vrot.lane.b32.xlu1 %v12536_v32, %s13108_s3  ;;  %v12538_v36 = vpop.eup %12537 }
 0xdb0   :  { %v12540_v50 = vpop.eup %12539  ;;  %v3186_v41 = vadd.f32 1.0, %v12538_v36 }
 0xdb1   :  { %v3185_v4 = vadd.f32 1.0, %v12540_v50 }
 0xdb2   :  { %12541 = vrcp.f32 %v3186_v41 }
 0xdb3   :  { %12543 = vrcp.f32 %v3185_v4 }
 0xdb4   :  { %12545 = vpow2.f32 %v8834_v54 }
 0xdb5   :  { %12547 = vpow2.f32 %v8835_v19  ;;  %v8838_v19 = vmul.f32 -1.442695, %v3178_v2 }
 0xdbc   :  { %v12542_v3 = vpop.eup %12541 }
 0xdbd   :  { %v12544_v46 = vpop.eup %12543 }
 0xdbe   :  { %v12546_v41 = vpop.eup %12545 }
 0xdbf   :  { %v12548_v50 = vpop.eup %12547  ;;  %v3197_v12 = vadd.f32 1.0, %v12546_v41  ;;  %v8836_v41 = vmul.f32 -1.442695, %v14895_v1 }
 0xdc0   :  { %v3198_v28 = vadd.f32 1.0, %v12548_v50 }
 0xdc1   :  { %12549 = vrcp.f32 %v3197_v12 }
 0xdc2   :  { %12551 = vrcp.f32 %v3198_v28 }
 0xdcb   :  { %v12550_v52 = vpop.eup %12549 }
 0xdcc   :  { %v12552_v58 = vpop.eup %12551 }
 0xdcd   :  { %v3225_v60 = vmul.f32 %v12552_v58, %v14744_v45  ;;  %v2873_v45 = vld [vmem:[#allocation2 + $0x108] sm:$0xff] }
 0xdf0   :  { %v3229_v53 = vpop.permute.xlu0 %3228 }
 0xe21   :  { %v3231_v48 = vpop.permute.xlu1 %3230 }
 0xe22   :  { %v3232_v32 = vsel %vm1553_vm3, %v3229_v53, %v3231_v48  ;;  %v3236_v15 = vmul.f32 %v12542_v3, %v3231_v48 }
 0xe23   :  { %v3235_v51 = vmul.f32 %v12544_v46, %v3232_v32  ;;  %v3223_v46 = vmul.f32 %v12542_v3, %v14740_v7  ;;  %v3177_v32 = vadd.f32 %v3099_v9, %v2873_v45 }
 0xe24   :  { %3241 = vrot.lane.b32.xlu1 %v3236_v15, %s13109_s24  ;;  %v3224_v15 = vmul.f32 %v12550_v52, %v14742_v47 }
 0xe25   :  { %3239 = vrot.lane.b32.xlu0 %v3235_v51, %s13109_s24  ;;  %v8837_v54 = vmul.f32 -1.442695, %v3177_v32 }
 0xe96   :  { %v3242_v48 = vpop.permute.xlu1 %3241 }
 0xe97   :  { %v3240_v51 = vpop.permute.xlu0 %3239  ;;  %v14910_v53 = vadd.f32 %v3242_v48, %v3225_v60 }
 0xe98   :  { %v3243_v22 = vsel %vm1206_vm4, %v3240_v51, %v3242_v48  ;;  %v14906_v36 = vadd.f32 %v3240_v51, %v3223_v46 }
 0xe99   :  { %v14908_v4 = vadd.f32 %v3243_v22, %v3224_v15 }
 0xe9a   :  { %12553 = vtanh.f32 %v14906_v36 }
 0xe9b   :  { %12555 = vtanh.f32 %v14908_v4 }
 0xe9c   :  { %12557 = vtanh.f32 %v14910_v53 }
 0xe9d   :  { %12559 = vpow2.f32 %v8837_v54 }
 0xe9e   :  { %12561 = vpow2.f32 %v8838_v19  ;;  %v17491_v19 = vmov 0.0  }
 0xe9f   :  { %12563 = vpow2.f32 %v8836_v41  ;;  %v17492_v41 = vld [vmem:[#allocation79_spill] sm:$0xff] }
 0xea4   :  { %v12554_v7 = vpop.eup %12553 }
 0xea5   :  { %v12556_v3 = vpop.eup %12555  ;;  %3256 = vrot.lane.b32.xlu0 %v12554_v7, %s13105_s14 }
 0xea6   :  { %3258 = vrot.lane.b32.xlu1 %v12556_v3, %s13105_s14  ;;  %v12558_v47 = vpop.eup %12557 }
 0xea7   :  { %v12560_v50 = vpop.eup %12559 }
 0xea8   :  { %v12562_v12 = vpop.eup %12561  ;;  %v3215_v28 = vadd.f32 1.0, %v12560_v50  ;;  %v17493_v50 = vld [vmem:[#allocation81_spill] sm:$0xff] }
 0xea9   :  { %3260 = vrot.lane.b32.xlu0 %v12558_v47, %s13105_s14  ;;  %v12564_v52 = vpop.eup %12563  ;;  %v3216_v58 = vadd.f32 1.0, %v12562_v12  ;;  %v17494_v12 = vld [vmem:[#allocation12_spill] sm:$0xff] }
 0xeaa   :  { %v3214_v48 = vadd.f32 1.0, %v12564_v52  ;;  %12565 = vrcp.f32 %v3215_v28  ;;  %v17495_v28 = vld [vmem:[#allocation13_spill] sm:$0xff]  ;;  %v17496_v52 = vld [vmem:[#allocation14_spill] sm:$0xff] }
 0xeab   :  { %12567 = vrcp.f32 %v3216_v58  ;;  %v17497_v58 = vld [vmem:[#allocation15_spill] sm:$0xff] }
 0xeac   :  { %12569 = vrcp.f32 %v3214_v48  ;;  %v17498_v48 = vld [vmem:[#allocation16_spill] sm:$0xff] }
 0xeb4   :  { %v12566_v15 = vpop.eup %12565 }
 0xeb5   :  { %v12568_v60 = vpop.eup %12567 }
 0xeb6   :  { %v12570_v7 = vpop.eup %12569 }
 0xf17   :  { %v3257_v9 = vpop.permute.xlu0 %3256 }
 0xf18   :  { %v3259_v46 = vpop.permute.xlu1 %3258  ;;  %v14928_v47 = vmul.f32 %v12570_v7, %v3257_v9  ;;  %v17506_v7 = vld [vmem:[#allocation24_spill] sm:$0xff] }
 0xf19   :  { %v3262_v44 = vsel %vm1584_vm5, %v3257_v9, %v3259_v46  ;;  %v17499_v9 = vld [vmem:[#allocation17_spill] sm:$0xff] }
 0xf1a   :  { %v14921_v51 = vmul.f32 %v12566_v15, %v3262_v44  ;;  %17490 = vst [vmem:[#allocation78_spill] sm:$0xff] %v14928_v47  ;;  %v17501_v15 = vld [vmem:[#allocation19_spill] sm:$0xff]  ;;  %v17502_v44 = vld [vmem:[#allocation20_spill] sm:$0xff] }
 0xf1b   :  { %v3261_v1 = vpop.permute.xlu0 %3260 }
 0xf1c   :  { %17488 = vst [vmem:[#allocation75_spill] sm:$0xff] %v14921_v51  ;;  %v3263_v22 = vsel %vm1584_vm5, %v3259_v46, %v3261_v1  ;;  %3299 = vrot.lane.b32.xlu1 %v14921_v51, %s13110_s25  ;;  %v17500_v46 = vld [vmem:[#allocation18_spill] sm:$0xff]  ;;  %v17503_v1 = vld [vmem:[#allocation21_spill] sm:$0xff]  ;;  %v17514_v51 = vld [vmem:[#allocation32_spill] sm:$0xff] }
 0xf1d   :  { %v14926_v3 = vmul.f32 %v12568_v60, %v3263_v22  ;;  %v17504_v60 = vld [vmem:[#allocation22_spill] sm:$0xff]  ;;  %v17505_v22 = vld [vmem:[#allocation23_spill] sm:$0xff] }
 0xf1f   :  { %17489 = vst [vmem:[#allocation86_spill] sm:$0xff] %v14926_v3  ;;  %3301 = vrot.lane.b32.xlu0 %v14926_v3, %s13110_s25  ;;  %v17512_v3 = vld [vmem:[#allocation30_spill] sm:$0xff] }
 0xf20   :  { %3297 = vrot.lane.b32.xlu1 %v14928_v47, %s13110_s25  ;;  %v17513_v47 = vld [vmem:[#allocation31_spill] sm:$0xff] }
 0xf8e   :  { %v3300_v45 = vpop.permute.xlu1 %3299 }
 0xf91   :  { %v3302_v32 = vpop.permute.xlu0 %3301 }
 0xf92   :  { %v3304_v42 = vsel %vm1626_vm6, %v3300_v45, %v3302_v32  ;;  %v3298_v2 = vpop.permute.xlu1 %3297  ;;  %v17508_v32 = vld [vmem:[#allocation26_spill] sm:$0xff] }
 0xf93   :  { %v3303_v54 = vsel %vm1626_vm6, %v3298_v2, %v3300_v45  ;;  %8840 = vmatprep.mubr.msk.f32.mxu1 %vm1206_vm4, %v3304_v42  ;;  %8841 = vmatprep.mubr.msk.f32.mxu0 %vm1206_vm4, %v3304_v42  ;;  %v17507_v45 = vld [vmem:[#allocation25_spill] sm:$0xff]  ;;  %v17510_v2 = vld [vmem:[#allocation28_spill] sm:$0xff] }
 0xf94   :  { %3373 = vmatmul.mubr.f32.vlgmr.msra.gmra.mrb[68].mxu1 %v3303_v54  ;;  %3444 = vmatmul.mubr.f32.vlgmr.msra.gmra.mrb[84].mxu0 %v3303_v54 }
 0xf95   :  { %10181 = vmatpush1.bf16.msra.mxu1 %v17258_v23  ;;  %10228 = vmatpush1.bf16.msra.mxu0 %v17259_v13 }
 0xf96   :  { %8842 = vmatprep.mubr.msk.f32.mxu1 %vm1206_vm4, %v3304_v42  ;;  %8843 = vmatprep.mubr.msk.f32.mxu0 %vm1206_vm4, %v3304_v42  ;;  %v17509_v42 = vld [vmem:[#allocation27_spill] sm:$0xff] }
 0xf97   :  { %10183 = vmatprep.subr.bf16.mxu1 %v17260_v35  ;;  %10229 = vmatprep.subr.bf16.mxu0 %v17227_v25 }
 0xf99   :  { %10185 = vmatpush1.bf16.msra.mxu1 %v17261_v55  ;;  %10231 = vmatpush1.bf16.msra.mxu0 %v17262_v37 }
 0xf9a   :  { %10187 = vmatprep.subr.bf16.mxu1 %v17263_v5  ;;  %10232 = vmatprep.subr.bf16.mxu0 %v17227_v25 }
 0xf9d   :  { %10189 = vmatpush1.bf16.msra.mxu1 %v17264_v43  ;;  %10234 = vmatpush1.bf16.msra.mxu0 %v17265_v20 }
 0xf9e   :  { %10191 = vmatprep.subr.bf16.mxu1 %v17266_v21  ;;  %10235 = vmatprep.subr.bf16.mxu0 %v17227_v25 }
 0xfa1   :  { %10193 = vmatpush1.bf16.msra.mxu1 %v17267_v14  ;;  %10237 = vmatpush1.bf16.msra.mxu0 %v17268_v33 }
 0xfa2   :  { %10195 = vmatprep.subr.bf16.mxu1 %v17269_v62  ;;  %10238 = vmatprep.subr.bf16.mxu0 %v17227_v25 }
 0xfa5   :  { %10197 = vmatpush1.bf16.msra.mxu1 %v17270_v59  ;;  %10240 = vmatpush1.bf16.msra.mxu0 %v17271_v16 }
 0xfa6   :  { %10199 = vmatprep.subr.bf16.mxu1 %v17315_v61  ;;  %10241 = vmatprep.subr.bf16.mxu0 %v17227_v25 }
 0xfa9   :  { %10201 = vmatpush1.bf16.msra.mxu1 %v17273_v39  ;;  %10243 = vmatpush1.bf16.msra.mxu0 %v17316_v57 }
 0xfaa   :  { %10203 = vmatprep.subr.bf16.mxu1 %v17317_v18  ;;  %10244 = vmatprep.subr.bf16.mxu0 %v17227_v25 }
 0xfad   :  { %10205 = vmatpush1.bf16.msra.mxu1 %v17275_v11  ;;  %10246 = vmatpush1.bf16.msra.mxu0 %v13975_v40 }
 0xfae   :  { %10207 = vmatprep.subr.bf16.mxu1 %v17276_v56  ;;  %10247 = vmatprep.subr.bf16.mxu0 %v17227_v25 }
 0xfb1   :  { %10209 = vmatpush1.bf16.msra.mxu1 %v17277_v8  ;;  %10249 = vmatpush1.bf16.msra.mxu0 %v13985_v29 }
 0xfb2   :  { %10211 = vmatprep.subr.bf16.mxu1 %v17278_v63  ;;  %10250 = vmatprep.subr.bf16.mxu0 %v17227_v25 }
 0xfb5   :  { %10213 = vmatpush1.bf16.msra.mxu1 %v17279_v24  ;;  %10252 = vmatpush1.bf16.msra.mxu0 %v17318_v30 }
 0xfb6   :  { %10215 = vmatprep.subr.bf16.mxu1 %v17319_v38  ;;  %10253 = vmatprep.subr.bf16.mxu0 %v17227_v25 }
 0xfb9   :  { %10217 = vmatpush1.bf16.msra.mxu1 %v13971_v10  ;;  %10255 = vmatpush1.bf16.msra.mxu0 %v14000_v17 }
 0xfba   :  { %10219 = vmatprep.subr.bf16.mxu1 %v17320_v49  ;;  %10256 = vmatprep.subr.bf16.mxu0 %v17227_v25 }
 0xfbd   :  { %10221 = vmatpush1.bf16.msra.mxu1 %v17321_v34  ;;  %10258 = vmatpush1.bf16.msra.mxu0 %v14005_v31 }
 0xfbe   :  { %10223 = vmatprep.subr.bf16.mxu1 %v13987_v26  ;;  %10259 = vmatprep.subr.bf16.mxu0 %v17227_v25 }
 0xfc1   :  { %10225 = vmatpush1.bf16.msra.mxu1 %v17281_v6  ;;  %10261 = vmatpush1.bf16.msra.mxu0 %v14012_v27 }
 0xfc2   :  { %3498 = vmatprep.subr.mxu1 %v14820_v0  ;;  %3569 = vmatprep.subr.mxu0 %v17491_v19 }
 0xfc5   :  { %3499 = vmatpush1.msra.mxu1 %v17492_v41  ;;  %3570 = vmatpush1.msra.mxu0 %v17493_v50 }
 0xfc6   :  { %3515 = vmatmul.mubr.f32.vlgmr.msra.gmra.mrb[70].mxu1 %v3303_v54  ;;  %3586 = vmatmul.mubr.f32.vlgmr.msra.gmra.mrb[86].mxu0 %v3303_v54  ;;  %v17511_v54 = vld [vmem:[#allocation29_spill] sm:$0xff] }
 0xfc7   :  { %10263 = vmatprep.subr.bf16.mxu1 %v17494_v12  ;;  %10311 = vmatprep.subr.bf16.mxu0 %v17495_v28 }
 0xfc8   :  { %10265 = vmatpush1.bf16.msra.mxu1 %v17496_v52  ;;  %10313 = vmatpush1.bf16.msra.mxu0 %v17497_v58 }
 0xfc9   :  { %10267 = vmatprep.subr.bf16.mxu1 %v17498_v48  ;;  %10315 = vmatprep.subr.bf16.mxu0 %v17499_v9  ;;  %v3287_v9 = vld [vmem:[#allocation2 + $0x118] sm:$0xff] }
 0xfcc   :  { %10269 = vmatpush1.bf16.msra.mxu1 %v17500_v46  ;;  %10317 = vmatpush1.bf16.msra.mxu0 %v17501_v15  ;;  %v3288_v46 = vld [vmem:[#allocation2 + $0x120] sm:$0xff] }
 0xfcd   :  { %10271 = vmatprep.subr.bf16.mxu1 %v17502_v44  ;;  %10319 = vmatprep.subr.bf16.mxu0 %v17503_v1 }
 0xfd0   :  { %10273 = vmatpush1.bf16.msra.mxu1 %v17504_v60  ;;  %10321 = vmatpush1.bf16.msra.mxu0 %v17505_v22  ;;  %v17515_v60 = vld [vmem:[#allocation33_spill] sm:$0xff]  ;;  %v17516_v22 = vld [vmem:[#allocation34_spill] sm:$0xff] }
 0xfd1   :  { %10275 = vmatprep.subr.bf16.mxu1 %v17506_v7  ;;  %10323 = vmatprep.subr.bf16.mxu0 %v17507_v45  ;;  %v17517_v7 = vld [vmem:[#allocation35_spill] sm:$0xff]  ;;  %v17518_v45 = vld [vmem:[#allocation36_spill] sm:$0xff] }
 0xfd4   :  { %10277 = vmatpush1.bf16.msra.mxu1 %v17508_v32  ;;  %10325 = vmatpush1.bf16.msra.mxu0 %v17509_v42  ;;  %v17519_v32 = vld [vmem:[#allocation37_spill] sm:$0xff]  ;;  %v17520_v42 = vld [vmem:[#allocation38_spill] sm:$0xff] }
 0xfd5   :  { %10279 = vmatprep.subr.bf16.mxu1 %v17510_v2  ;;  %10327 = vmatprep.subr.bf16.mxu0 %v17511_v54  ;;  %v17521_v2 = vld [vmem:[#allocation39_spill] sm:$0xff]  ;;  %v17522_v54 = vld [vmem:[#allocation40_spill] sm:$0xff] }
 0xfd8   :  { %10281 = vmatpush1.bf16.msra.mxu1 %v17512_v3  ;;  %10329 = vmatpush1.bf16.msra.mxu0 %v17513_v47  ;;  %v17523_v3 = vld [vmem:[#allocation41_spill] sm:$0xff]  ;;  %v17524_v47 = vld [vmem:[#allocation42_spill] sm:$0xff] }
 0xfd9   :  { %10283 = vmatprep.subr.bf16.mxu1 %v17514_v51  ;;  %10331 = vmatprep.subr.bf16.mxu0 %v17515_v60  ;;  %v17525_v51 = vld [vmem:[#allocation43_spill] sm:$0xff]  ;;  %v17526_v60 = vld [vmem:[#allocation44_spill] sm:$0xff] }
 0xfdc   :  { %10285 = vmatpush1.bf16.msra.mxu1 %v17516_v22  ;;  %10333 = vmatpush1.bf16.msra.mxu0 %v17517_v7  ;;  %v17527_v22 = vld [vmem:[#allocation45_spill] sm:$0xff]  ;;  %v17528_v7 = vld [vmem:[#allocation46_spill] sm:$0xff] }
 0xfdd   :  { %10287 = vmatprep.subr.bf16.mxu1 %v17518_v45  ;;  %10335 = vmatprep.subr.bf16.mxu0 %v17519_v32  ;;  %v17529_v45 = vld [vmem:[#allocation47_spill] sm:$0xff]  ;;  %v17530_v32 = vld [vmem:[#allocation48_spill] sm:$0xff] }
 0xfe0   :  { %10289 = vmatpush1.bf16.msra.mxu1 %v17520_v42  ;;  %10337 = vmatpush1.bf16.msra.mxu0 %v17521_v2  ;;  %v17531_v42 = vld [vmem:[#allocation49_spill] sm:$0xff]  ;;  %v17532_v2 = vld [vmem:[#allocation50_spill] sm:$0xff] }
 0xfe1   :  { %10291 = vmatprep.subr.bf16.mxu1 %v17522_v54  ;;  %10339 = vmatprep.subr.bf16.mxu0 %v17523_v3  ;;  %v17533_v54 = vld [vmem:[#allocation51_spill] sm:$0xff]  ;;  %v17534_v3 = vld [vmem:[#allocation52_spill] sm:$0xff] }
 0xfe4   :  { %10293 = vmatpush1.bf16.msra.mxu1 %v17524_v47  ;;  %10341 = vmatpush1.bf16.msra.mxu0 %v17525_v51  ;;  %v17535_v47 = vld [vmem:[#allocation53_spill] sm:$0xff]  ;;  %v17536_v51 = vld [vmem:[#allocation54_spill] sm:$0xff] }
 0xfe5   :  { %10295 = vmatprep.subr.bf16.mxu1 %v17526_v60  ;;  %10343 = vmatprep.subr.bf16.mxu0 %v17527_v22  ;;  %v17537_v60 = vld [vmem:[#allocation55_spill] sm:$0xff]  ;;  %v17538_v22 = vld [vmem:[#allocation56_spill] sm:$0xff] }
 0xfe8   :  { %10297 = vmatpush1.bf16.msra.mxu1 %v17528_v7  ;;  %10345 = vmatpush1.bf16.msra.mxu0 %v17529_v45  ;;  %v17539_v7 = vld [vmem:[#allocation57_spill] sm:$0xff]  ;;  %v17540_v45 = vld [vmem:[#allocation58_spill] sm:$0xff] }
 0xfe9   :  { %10299 = vmatprep.subr.bf16.mxu1 %v17530_v32  ;;  %10347 = vmatprep.subr.bf16.mxu0 %v17531_v42  ;;  %v17541_v32 = vld [vmem:[#allocation59_spill] sm:$0xff]  ;;  %v17542_v42 = vld [vmem:[#allocation82_spill] sm:$0xff] }
 0xfec   :  { %10301 = vmatpush1.bf16.msra.mxu1 %v17532_v2  ;;  %10349 = vmatpush1.bf16.msra.mxu0 %v17533_v54  ;;  %v17543_v2 = vld [vmem:[#allocation84_spill] sm:$0xff]  ;;  %v17544_v54 = vld [vmem:[#allocation85_spill] sm:$0xff] }
 0xfed   :  { %10303 = vmatprep.subr.bf16.mxu1 %v17534_v3  ;;  %10351 = vmatprep.subr.bf16.mxu0 %v17535_v47  ;;  %v17545_v3 = vld [vmem:[#allocation90_spill] sm:$0xff] }
 0xfee   :  { %v17546_v47 = vld [vmem:[#allocation62_spill] sm:$0xff] }
 0xff0   :  { %10305 = vmatpush1.bf16.msra.mxu1 %v17536_v51  ;;  %10353 = vmatpush1.bf16.msra.mxu0 %v17537_v60 }
 0xff1   :  { %10307 = vmatprep.subr.bf16.mxu1 %v17538_v22  ;;  %10355 = vmatprep.subr.bf16.mxu0 %v17539_v7  ;;  %v3290_v7 = vld [vmem:[#allocation2 + $0x130] sm:$0xff] }
 0xff4   :  { %10309 = vmatpush1.bf16.msra.mxu1 %v17540_v45  ;;  %10357 = vmatpush1.bf16.msra.mxu0 %v17541_v32 }
 0xff5   :  { %3775 = vmatprep.subr.mxu1 %v17542_v42  ;;  %3846 = vmatprep.subr.mxu0 %v17543_v2  ;;  %v3291_v42 = vld [vmem:[#allocation2 + $0x138] sm:$0xff] }
 0xff8   :  { %3776 = vmatpush1.msra.mxu1 %v17544_v54  ;;  %3847 = vmatpush1.msra.mxu0 %v17545_v3 }
 0xff9   :  { %10359 = vmatprep.subr.bf16.mxu1 %v17546_v47  ;;  %10406 = vmatprep.subr.bf16.mxu0 %v17227_v25 }
0x1067   :  { %v3374_v60 = vpop.f32.mrb[68].mxu1  ;;  %v3445_v22 = vpop.f32.mrb[84].mxu0 }
0x1068   :  { %v3376_v51 = vpop.f32.mrb[69].mxu1  ;;  %v3447_v1 = vpop.f32.mrb[85].mxu0 }
0x1069   :  { %v3594_v45 = vadd.f32 %v3447_v1, %v3290_v7  ;;  %v3592_v1 = vadd.f32 %v3376_v51, %v3288_v46  ;;  %v3591_v7 = vadd.f32 %v3374_v60, %v3287_v9  ;;  %v3289_v51 = vld [vmem:[#allocation2 + $0x128] sm:$0xff] }
0x106b   :  { %12571 = vtanh.f32 %v3594_v45  ;;  %v8845_v48 = vmul.f32 -1.442695, %v3592_v1  ;;  %v8844_v58 = vmul.f32 -1.442695, %v3591_v7  ;;  %v8847_v9 = vmul.f32 -1.442695, %v3594_v45 }
0x1075   :  { %v12572_v32 = vpop.eup %12571 }
0x1076   :  { %3647 = vrot.lane.b32.xlu0 %v12572_v32, %s13108_s3 }
0x1099   :  { %v3516_v2 = vpop.f32.mrb[70].mxu1  ;;  %v15045_v44 = vpop.f32.mrb[86].mxu0 }
0x109a   :  { %v15047_v54 = vadd.f32 %v3516_v2, %v3291_v42  ;;  %v3518_v3 = vpop.f32.mrb[71].mxu1  ;;  %v3589_v47 = vpop.f32.mrb[87].mxu0 }
0x109c   :  { %12573 = vtanh.f32 %v15047_v54 }
0x109d   :  { %12575 = vpow2.f32 %v8845_v48 }
0x109e   :  { %12577 = vpow2.f32 %v8844_v58  ;;  %v3593_v58 = vadd.f32 %v3445_v22, %v3289_v51  ;;  %v3293_v51 = vld [vmem:[#allocation2 + $0x148] sm:$0xff] }
0x10a0   :  { %v8846_v48 = vmul.f32 -1.442695, %v3593_v58  ;;  %v3597_v58 = vadd.f32 %v15045_v44, %v3293_v51 }
0x10a6   :  { %v12574_v15 = vpop.eup %12573 }
0x10a7   :  { %3649 = vrot.lane.b32.xlu1 %v12574_v15, %s13108_s3  ;;  %v12576_v32 = vpop.eup %12575 }
0x10a8   :  { %v12578_v52 = vpop.eup %12577  ;;  %v3605_v28 = vadd.f32 1.0, %v12576_v32 }
0x10a9   :  { %v3604_v42 = vadd.f32 1.0, %v12578_v52 }
0x10aa   :  { %12579 = vrcp.f32 %v3605_v28 }
0x10ab   :  { %12581 = vrcp.f32 %v3604_v42 }
0x10ac   :  { %12583 = vpow2.f32 %v8846_v48 }
0x10ad   :  { %12585 = vpow2.f32 %v8847_v9  ;;  %v8850_v9 = vmul.f32 -1.442695, %v3597_v58 }
0x10b4   :  { %v12580_v47 = vpop.eup %12579 }
0x10b5   :  { %v12582_v50 = vpop.eup %12581 }
0x10b6   :  { %v12584_v28 = vpop.eup %12583 }
0x10b7   :  { %v12586_v52 = vpop.eup %12585  ;;  %v3616_v46 = vadd.f32 1.0, %v12584_v28  ;;  %v8848_v28 = vmul.f32 -1.442695, %v15047_v54 }
0x10b8   :  { %v3617_v60 = vadd.f32 1.0, %v12586_v52 }
0x10b9   :  { %12587 = vrcp.f32 %v3616_v46 }
0x10ba   :  { %12589 = vrcp.f32 %v3617_v60 }
0x10c3   :  { %v12588_v1 = vpop.eup %12587 }
0x10c4   :  { %v12590_v7 = vpop.eup %12589 }
0x10c5   :  { %v3644_v22 = vmul.f32 %v12590_v7, %v14910_v53  ;;  %v3292_v53 = vld [vmem:[#allocation2 + $0x140] sm:$0xff] }
0x10e8   :  { %v3648_v2 = vpop.permute.xlu0 %3647 }
0x1119   :  { %v3650_v12 = vpop.permute.xlu1 %3649 }
0x111a   :  { %v3651_v15 = vsel %vm1553_vm3, %v3648_v2, %v3650_v12  ;;  %v3655_v41 = vmul.f32 %v12580_v47, %v3650_v12 }
0x111b   :  { %v3654_v19 = vmul.f32 %v12582_v50, %v3651_v15  ;;  %v3642_v50 = vmul.f32 %v12580_v47, %v14906_v36  ;;  %v3596_v15 = vadd.f32 %v3518_v3, %v3292_v53 }
0x111c   :  { %3660 = vrot.lane.b32.xlu1 %v3655_v41, %s13109_s24  ;;  %v3643_v41 = vmul.f32 %v12588_v1, %v14908_v4 }
0x111d   :  { %3658 = vrot.lane.b32.xlu0 %v3654_v19, %s13109_s24  ;;  %v8849_v48 = vmul.f32 -1.442695, %v3596_v15 }
0x118e   :  { %v3661_v12 = vpop.permute.xlu1 %3660 }
0x118f   :  { %v3659_v19 = vpop.permute.xlu0 %3658  ;;  %v15062_v2 = vadd.f32 %v3661_v12, %v3644_v22 }
0x1190   :  { %v3662_v45 = vsel %vm1206_vm4, %v3659_v19, %v3661_v12  ;;  %v15058_v32 = vadd.f32 %v3659_v19, %v3642_v50 }
0x1191   :  { %v15060_v42 = vadd.f32 %v3662_v45, %v3643_v41 }
0x1192   :  { %12591 = vtanh.f32 %v15058_v32 }
0x1193   :  { %12593 = vtanh.f32 %v15060_v42 }
0x1194   :  { %12595 = vtanh.f32 %v15062_v2 }
0x1195   :  { %12597 = vpow2.f32 %v8849_v48 }
0x1196   :  { %12599 = vpow2.f32 %v8850_v9  ;;  %v17550_v9 = vmov 0.0  }
0x1197   :  { %12601 = vpow2.f32 %v8848_v28  ;;  %v17551_v28 = vld [vmem:[#allocation79_spill] sm:$0xff] }
0x119c   :  { %v12592_v36 = vpop.eup %12591 }
0x119d   :  { %v12594_v47 = vpop.eup %12593  ;;  %3675 = vrot.lane.b32.xlu0 %v12592_v36, %s13105_s14 }
0x119e   :  { %3677 = vrot.lane.b32.xlu1 %v12594_v47, %s13105_s14  ;;  %v12596_v4 = vpop.eup %12595 }
0x119f   :  { %v12598_v52 = vpop.eup %12597 }
0x11a0   :  { %v12600_v46 = vpop.eup %12599  ;;  %v3634_v60 = vadd.f32 1.0, %v12598_v52  ;;  %v17552_v52 = vld [vmem:[#allocation81_spill] sm:$0xff] }
0x11a1   :  { %3679 = vrot.lane.b32.xlu0 %v12596_v4, %s13105_s14  ;;  %v12602_v1 = vpop.eup %12601  ;;  %v3635_v7 = vadd.f32 1.0, %v12600_v46  ;;  %v17553_v46 = vld [vmem:[#allocation12_spill] sm:$0xff] }
0x11a2   :  { %v3633_v12 = vadd.f32 1.0, %v12602_v1  ;;  %12603 = vrcp.f32 %v3634_v60  ;;  %v17554_v60 = vld [vmem:[#allocation13_spill] sm:$0xff]  ;;  %v17555_v1 = vld [vmem:[#allocation14_spill] sm:$0xff] }
0x11a3   :  { %12605 = vrcp.f32 %v3635_v7  ;;  %v17556_v7 = vld [vmem:[#allocation15_spill] sm:$0xff] }
0x11a4   :  { %12607 = vrcp.f32 %v3633_v12  ;;  %v17557_v12 = vld [vmem:[#allocation16_spill] sm:$0xff] }
0x11ac   :  { %v12604_v41 = vpop.eup %12603 }
0x11ad   :  { %v12606_v22 = vpop.eup %12605 }
0x11ae   :  { %v12608_v36 = vpop.eup %12607 }
0x120f   :  { %v3676_v3 = vpop.permute.xlu0 %3675 }
0x1210   :  { %v3678_v50 = vpop.permute.xlu1 %3677  ;;  %v15080_v4 = vmul.f32 %v12608_v36, %v3676_v3  ;;  %v17566_v36 = vld [vmem:[#allocation25_spill] sm:$0xff] }
0x1211   :  { %v3681_v44 = vsel %vm1584_vm5, %v3676_v3, %v3678_v50  ;;  %v17558_v3 = vld [vmem:[#allocation17_spill] sm:$0xff] }
0x1212   :  { %v15073_v19 = vmul.f32 %v12604_v41, %v3681_v44  ;;  %17549 = vst [vmem:[#allocation88_spill] sm:$0xff] %v15080_v4  ;;  %v17561_v41 = vld [vmem:[#allocation20_spill] sm:$0xff]  ;;  %v17562_v44 = vld [vmem:[#allocation21_spill] sm:$0xff] }
0x1213   :  { %v3680_v54 = vpop.permute.xlu0 %3679 }
0x1214   :  { %17547 = vst [vmem:[#allocation91_spill] sm:$0xff] %v15073_v19  ;;  %v3682_v45 = vsel %vm1584_vm5, %v3678_v50, %v3680_v54  ;;  %3718 = vrot.lane.b32.xlu1 %v15073_v19, %s13110_s25  ;;  %v17560_v50 = vld [vmem:[#allocation19_spill] sm:$0xff]  ;;  %v17563_v54 = vld [vmem:[#allocation22_spill] sm:$0xff] }
0x1215   :  { %v15078_v47 = vmul.f32 %v12606_v22, %v3682_v45  ;;  %v17564_v22 = vld [vmem:[#allocation23_spill] sm:$0xff]  ;;  %v17565_v45 = vld [vmem:[#allocation24_spill] sm:$0xff] }
0x1216   :  { %v17576_v19 = vld [vmem:[#allocation35_spill] sm:$0xff] }
0x1217   :  { %17548 = vst [vmem:[#allocation87_spill] sm:$0xff] %v15078_v47  ;;  %3720 = vrot.lane.b32.xlu0 %v15078_v47, %s13110_s25  ;;  %v17574_v47 = vld [vmem:[#allocation33_spill] sm:$0xff] }
0x1218   :  { %3716 = vrot.lane.b32.xlu1 %v15080_v4, %s13110_s25  ;;  %v17575_v4 = vld [vmem:[#allocation34_spill] sm:$0xff] }
0x1286   :  { %v3719_v53 = vpop.permute.xlu1 %3718 }
0x1289   :  { %v3721_v15 = vpop.permute.xlu0 %3720 }
0x128a   :  { %v3723_v51 = vsel %vm1626_vm6, %v3719_v53, %v3721_v15  ;;  %v3717_v58 = vpop.permute.xlu1 %3716  ;;  %v17568_v15 = vld [vmem:[#allocation27_spill] sm:$0xff] }
0x128b   :  { %v3722_v48 = vsel %vm1626_vm6, %v3717_v58, %v3719_v53  ;;  %8852 = vmatprep.mubr.msk.f32.mxu1 %vm1206_vm4, %v3723_v51  ;;  %8853 = vmatprep.mubr.msk.f32.mxu0 %vm1206_vm4, %v3723_v51  ;;  %v17567_v53 = vld [vmem:[#allocation26_spill] sm:$0xff]  ;;  %v17570_v58 = vld [vmem:[#allocation29_spill] sm:$0xff] }
0x128c   :  { %3792 = vmatmul.mubr.f32.vlgmr.msra.gmra.mrb[72].mxu1 %v3722_v48  ;;  %3863 = vmatmul.mubr.f32.vlgmr.msra.gmra.mrb[88].mxu0 %v3722_v48 }
0x128d   :  { %10361 = vmatpush1.bf16.msra.mxu1 %v17258_v23  ;;  %10408 = vmatpush1.bf16.msra.mxu0 %v17259_v13 }
0x128e   :  { %8854 = vmatprep.mubr.msk.f32.mxu1 %vm1206_vm4, %v3723_v51  ;;  %8855 = vmatprep.mubr.msk.f32.mxu0 %vm1206_vm4, %v3723_v51  ;;  %v17569_v51 = vld [vmem:[#allocation28_spill] sm:$0xff] }
0x128f   :  { %10363 = vmatprep.subr.bf16.mxu1 %v17260_v35  ;;  %10409 = vmatprep.subr.bf16.mxu0 %v17227_v25 }
0x1291   :  { %10365 = vmatpush1.bf16.msra.mxu1 %v17261_v55  ;;  %10411 = vmatpush1.bf16.msra.mxu0 %v17262_v37 }
0x1292   :  { %10367 = vmatprep.subr.bf16.mxu1 %v17263_v5  ;;  %10412 = vmatprep.subr.bf16.mxu0 %v17227_v25 }
0x1295   :  { %10369 = vmatpush1.bf16.msra.mxu1 %v17264_v43  ;;  %10414 = vmatpush1.bf16.msra.mxu0 %v17265_v20 }
0x1296   :  { %10371 = vmatprep.subr.bf16.mxu1 %v17266_v21  ;;  %10415 = vmatprep.subr.bf16.mxu0 %v17227_v25 }
0x1299   :  { %10373 = vmatpush1.bf16.msra.mxu1 %v17267_v14  ;;  %10417 = vmatpush1.bf16.msra.mxu0 %v17268_v33 }
0x129a   :  { %10375 = vmatprep.subr.bf16.mxu1 %v17269_v62  ;;  %10418 = vmatprep.subr.bf16.mxu0 %v17227_v25 }
0x129d   :  { %10377 = vmatpush1.bf16.msra.mxu1 %v17270_v59  ;;  %10420 = vmatpush1.bf16.msra.mxu0 %v17271_v16 }
0x129e   :  { %10379 = vmatprep.subr.bf16.mxu1 %v17315_v61  ;;  %10421 = vmatprep.subr.bf16.mxu0 %v17227_v25 }
0x12a1   :  { %10381 = vmatpush1.bf16.msra.mxu1 %v17273_v39  ;;  %10423 = vmatpush1.bf16.msra.mxu0 %v17316_v57 }
0x12a2   :  { %10383 = vmatprep.subr.bf16.mxu1 %v17317_v18  ;;  %10424 = vmatprep.subr.bf16.mxu0 %v17227_v25 }
0x12a5   :  { %10385 = vmatpush1.bf16.msra.mxu1 %v17275_v11  ;;  %10426 = vmatpush1.bf16.msra.mxu0 %v13975_v40 }
0x12a6   :  { %10387 = vmatprep.subr.bf16.mxu1 %v17276_v56  ;;  %10427 = vmatprep.subr.bf16.mxu0 %v17227_v25 }
0x12a9   :  { %10389 = vmatpush1.bf16.msra.mxu1 %v17277_v8  ;;  %10429 = vmatpush1.bf16.msra.mxu0 %v13985_v29 }
0x12aa   :  { %10391 = vmatprep.subr.bf16.mxu1 %v17278_v63  ;;  %10430 = vmatprep.subr.bf16.mxu0 %v17227_v25 }
0x12ad   :  { %10393 = vmatpush1.bf16.msra.mxu1 %v17279_v24  ;;  %10432 = vmatpush1.bf16.msra.mxu0 %v17318_v30 }
0x12ae   :  { %10395 = vmatprep.subr.bf16.mxu1 %v17319_v38  ;;  %10433 = vmatprep.subr.bf16.mxu0 %v17227_v25 }
0x12b1   :  { %10397 = vmatpush1.bf16.msra.mxu1 %v13971_v10  ;;  %10435 = vmatpush1.bf16.msra.mxu0 %v14000_v17 }
0x12b2   :  { %10399 = vmatprep.subr.bf16.mxu1 %v17320_v49  ;;  %10436 = vmatprep.subr.bf16.mxu0 %v17227_v25 }
0x12b5   :  { %10401 = vmatpush1.bf16.msra.mxu1 %v17321_v34  ;;  %10438 = vmatpush1.bf16.msra.mxu0 %v14005_v31 }
0x12b6   :  { %10403 = vmatprep.subr.bf16.mxu1 %v13987_v26  ;;  %10439 = vmatprep.subr.bf16.mxu0 %v17227_v25 }
0x12b9   :  { %10405 = vmatpush1.bf16.msra.mxu1 %v17281_v6  ;;  %10441 = vmatpush1.bf16.msra.mxu0 %v14012_v27 }
0x12ba   :  { %3917 = vmatprep.subr.mxu1 %v14820_v0  ;;  %3988 = vmatprep.subr.mxu0 %v17550_v9  ;;  %v17559_v0 = vld [vmem:[#allocation18_spill] sm:$0xff] }
0x12bd   :  { %3918 = vmatpush1.msra.mxu1 %v17551_v28  ;;  %3989 = vmatpush1.msra.mxu0 %v17552_v52  ;;  %v17572_v28 = vld [vmem:[#allocation31_spill] sm:$0xff]  ;;  %v17573_v52 = vld [vmem:[#allocation32_spill] sm:$0xff] }
0x12be   :  { %3934 = vmatmul.mubr.f32.vlgmr.msra.gmra.mrb[74].mxu1 %v3722_v48  ;;  %4005 = vmatmul.mubr.f32.vlgmr.msra.gmra.mrb[90].mxu0 %v3722_v48  ;;  %v17571_v48 = vld [vmem:[#allocation30_spill] sm:$0xff] }
0x12bf   :  { %10443 = vmatprep.subr.bf16.mxu1 %v17553_v46  ;;  %10491 = vmatprep.subr.bf16.mxu0 %v17554_v60 }
0x12c0   :  { %10445 = vmatpush1.bf16.msra.mxu1 %v17555_v1  ;;  %10493 = vmatpush1.bf16.msra.mxu0 %v17556_v7 }
0x12c1   :  { %10447 = vmatprep.subr.bf16.mxu1 %v17557_v12  ;;  %10495 = vmatprep.subr.bf16.mxu0 %v17558_v3 }
0x12c4   :  { %10449 = vmatpush1.bf16.msra.mxu1 %v17559_v0  ;;  %10497 = vmatpush1.bf16.msra.mxu0 %v17560_v50 }
0x12c5   :  { %10451 = vmatprep.subr.bf16.mxu1 %v17561_v41  ;;  %10499 = vmatprep.subr.bf16.mxu0 %v17562_v44  ;;  %v3707_v44 = vld [vmem:[#allocation2 + $0x158] sm:$0xff]  ;;  %v3706_v41 = vld [vmem:[#allocation2 + $0x150] sm:$0xff] }
0x12c8   :  { %10453 = vmatpush1.bf16.msra.mxu1 %v17563_v54  ;;  %10501 = vmatpush1.bf16.msra.mxu0 %v17564_v22 }
0x12c9   :  { %10455 = vmatprep.subr.bf16.mxu1 %v17565_v45  ;;  %10503 = vmatprep.subr.bf16.mxu0 %v17566_v36  ;;  %v17577_v36 = vld [vmem:[#allocation36_spill] sm:$0xff] }
0x12cc   :  { %10457 = vmatpush1.bf16.msra.mxu1 %v17567_v53  ;;  %10505 = vmatpush1.bf16.msra.mxu0 %v17568_v15  ;;  %v17578_v53 = vld [vmem:[#allocation37_spill] sm:$0xff]  ;;  %v17579_v15 = vld [vmem:[#allocation38_spill] sm:$0xff] }
0x12cd   :  { %10459 = vmatprep.subr.bf16.mxu1 %v17569_v51  ;;  %10507 = vmatprep.subr.bf16.mxu0 %v17570_v58  ;;  %v17580_v51 = vld [vmem:[#allocation39_spill] sm:$0xff]  ;;  %v17581_v58 = vld [vmem:[#allocation40_spill] sm:$0xff] }
0x12d0   :  { %10461 = vmatpush1.bf16.msra.mxu1 %v17571_v48  ;;  %10509 = vmatpush1.bf16.msra.mxu0 %v17572_v28  ;;  %v17582_v48 = vld [vmem:[#allocation41_spill] sm:$0xff]  ;;  %v17583_v28 = vld [vmem:[#allocation42_spill] sm:$0xff] }
0x12d1   :  { %10463 = vmatprep.subr.bf16.mxu1 %v17573_v52  ;;  %10511 = vmatprep.subr.bf16.mxu0 %v17574_v47  ;;  %v17584_v52 = vld [vmem:[#allocation43_spill] sm:$0xff]  ;;  %v17585_v47 = vld [vmem:[#allocation44_spill] sm:$0xff] }
0x12d4   :  { %10465 = vmatpush1.bf16.msra.mxu1 %v17575_v4  ;;  %10513 = vmatpush1.bf16.msra.mxu0 %v17576_v19  ;;  %v17586_v4 = vld [vmem:[#allocation45_spill] sm:$0xff]  ;;  %v17587_v19 = vld [vmem:[#allocation46_spill] sm:$0xff] }
0x12d5   :  { %10467 = vmatprep.subr.bf16.mxu1 %v17577_v36  ;;  %10515 = vmatprep.subr.bf16.mxu0 %v17578_v53  ;;  %v17588_v36 = vld [vmem:[#allocation47_spill] sm:$0xff]  ;;  %v17589_v53 = vld [vmem:[#allocation48_spill] sm:$0xff] }
0x12d8   :  { %10469 = vmatpush1.bf16.msra.mxu1 %v17579_v15  ;;  %10517 = vmatpush1.bf16.msra.mxu0 %v17580_v51  ;;  %v17590_v15 = vld [vmem:[#allocation49_spill] sm:$0xff]  ;;  %v17591_v51 = vld [vmem:[#allocation50_spill] sm:$0xff] }
0x12d9   :  { %10471 = vmatprep.subr.bf16.mxu1 %v17581_v58  ;;  %10519 = vmatprep.subr.bf16.mxu0 %v17582_v48  ;;  %v17592_v58 = vld [vmem:[#allocation51_spill] sm:$0xff]  ;;  %v17593_v48 = vld [vmem:[#allocation52_spill] sm:$0xff] }
0x12dc   :  { %10473 = vmatpush1.bf16.msra.mxu1 %v17583_v28  ;;  %10521 = vmatpush1.bf16.msra.mxu0 %v17584_v52  ;;  %v17594_v28 = vld [vmem:[#allocation53_spill] sm:$0xff]  ;;  %v17595_v52 = vld [vmem:[#allocation54_spill] sm:$0xff] }
0x12dd   :  { %10475 = vmatprep.subr.bf16.mxu1 %v17585_v47  ;;  %10523 = vmatprep.subr.bf16.mxu0 %v17586_v4  ;;  %v17596_v47 = vld [vmem:[#allocation55_spill] sm:$0xff]  ;;  %v17597_v4 = vld [vmem:[#allocation56_spill] sm:$0xff] }
0x12e0   :  { %10477 = vmatpush1.bf16.msra.mxu1 %v17587_v19  ;;  %10525 = vmatpush1.bf16.msra.mxu0 %v17588_v36  ;;  %v17598_v19 = vld [vmem:[#allocation57_spill] sm:$0xff]  ;;  %v17599_v36 = vld [vmem:[#allocation58_spill] sm:$0xff] }
0x12e1   :  { %10479 = vmatprep.subr.bf16.mxu1 %v17589_v53  ;;  %10527 = vmatprep.subr.bf16.mxu0 %v17590_v15  ;;  %v17600_v53 = vld [vmem:[#allocation59_spill] sm:$0xff]  ;;  %v17601_v15 = vld [vmem:[#allocation82_spill] sm:$0xff] }
0x12e4   :  { %10481 = vmatpush1.bf16.msra.mxu1 %v17591_v51  ;;  %10529 = vmatpush1.bf16.msra.mxu0 %v17592_v58  ;;  %v17602_v51 = vld [vmem:[#allocation84_spill] sm:$0xff]  ;;  %v17603_v58 = vld [vmem:[#allocation85_spill] sm:$0xff] }
0x12e5   :  { %10483 = vmatprep.subr.bf16.mxu1 %v17593_v48  ;;  %10531 = vmatprep.subr.bf16.mxu0 %v17594_v28  ;;  %v17604_v48 = vld [vmem:[#allocation90_spill] sm:$0xff] }
0x12e6   :  { %v17605_v28 = vld [vmem:[#allocation62_spill] sm:$0xff] }
0x12e8   :  { %10485 = vmatpush1.bf16.msra.mxu1 %v17595_v52  ;;  %10533 = vmatpush1.bf16.msra.mxu0 %v17596_v47 }
0x12e9   :  { %10487 = vmatprep.subr.bf16.mxu1 %v17597_v4  ;;  %10535 = vmatprep.subr.bf16.mxu0 %v17598_v19  ;;  %v3709_v19 = vld [vmem:[#allocation2 + $0x168] sm:$0xff] }
0x12ec   :  { %10489 = vmatpush1.bf16.msra.mxu1 %v17599_v36  ;;  %10537 = vmatpush1.bf16.msra.mxu0 %v17600_v53 }
0x12ed   :  { %4194 = vmatprep.subr.mxu1 %v17601_v15  ;;  %4265 = vmatprep.subr.mxu0 %v17602_v51  ;;  %v3710_v15 = vld [vmem:[#allocation2 + $0x170] sm:$0xff] }
0x12f0   :  { %4195 = vmatpush1.msra.mxu1 %v17603_v58  ;;  %4266 = vmatpush1.msra.mxu0 %v17604_v48 }
0x12f1   :  { %10539 = vmatprep.subr.bf16.mxu1 %v17605_v28  ;;  %10586 = vmatprep.subr.bf16.mxu0 %v17227_v25 }
0x135f   :  { %v3793_v47 = vpop.f32.mrb[72].mxu1  ;;  %v3864_v4 = vpop.f32.mrb[88].mxu0 }
0x1360   :  { %v3795_v52 = vpop.f32.mrb[73].mxu1  ;;  %v3866_v45 = vpop.f32.mrb[89].mxu0 }
0x1361   :  { %v4013_v36 = vadd.f32 %v3866_v45, %v3709_v19  ;;  %v4011_v19 = vadd.f32 %v3795_v52, %v3707_v44  ;;  %v4010_v45 = vadd.f32 %v3793_v47, %v3706_v41  ;;  %v3708_v47 = vld [vmem:[#allocation2 + $0x160] sm:$0xff] }
0x1363   :  { %12609 = vtanh.f32 %v4013_v36  ;;  %v8857_v50 = vmul.f32 -1.442695, %v4011_v19  ;;  %v8856_v0 = vmul.f32 -1.442695, %v4010_v45  ;;  %v8859_v41 = vmul.f32 -1.442695, %v4013_v36 }
0x136d   :  { %v12610_v53 = vpop.eup %12609 }
0x136e   :  { %4066 = vrot.lane.b32.xlu0 %v12610_v53, %s13108_s3 }
0x1391   :  { %v3935_v51 = vpop.f32.mrb[74].mxu1  ;;  %v15197_v22 = vpop.f32.mrb[90].mxu0 }
0x1392   :  { %v15199_v58 = vadd.f32 %v3935_v51, %v3710_v15  ;;  %v3937_v48 = vpop.f32.mrb[75].mxu1  ;;  %v4008_v28 = vpop.f32.mrb[91].mxu0 }
0x1394   :  { %12611 = vtanh.f32 %v15199_v58 }
0x1395   :  { %12613 = vpow2.f32 %v8857_v50 }
0x1396   :  { %12615 = vpow2.f32 %v8856_v0  ;;  %v4012_v0 = vadd.f32 %v3864_v4, %v3708_v47  ;;  %v3712_v47 = vld [vmem:[#allocation2 + $0x180] sm:$0xff] }
0x1398   :  { %v8858_v50 = vmul.f32 -1.442695, %v4012_v0  ;;  %v4016_v0 = vadd.f32 %v15197_v22, %v3712_v47 }
0x139e   :  { %v12612_v54 = vpop.eup %12611 }
0x139f   :  { %4068 = vrot.lane.b32.xlu1 %v12612_v54, %s13108_s3  ;;  %v12614_v53 = vpop.eup %12613 }
0x13a0   :  { %v12616_v3 = vpop.eup %12615  ;;  %v4024_v12 = vadd.f32 1.0, %v12614_v53 }
0x13a1   :  { %v4023_v15 = vadd.f32 1.0, %v12616_v3 }
0x13a2   :  { %12617 = vrcp.f32 %v4024_v12 }
0x13a3   :  { %12619 = vrcp.f32 %v4023_v15 }
0x13a4   :  { %12621 = vpow2.f32 %v8858_v50 }
0x13a5   :  { %12623 = vpow2.f32 %v8859_v41  ;;  %v8862_v41 = vmul.f32 -1.442695, %v4016_v0 }
0x13ac   :  { %v12618_v28 = vpop.eup %12617 }
0x13ad   :  { %v12620_v1 = vpop.eup %12619 }
0x13ae   :  { %v12622_v12 = vpop.eup %12621 }
0x13af   :  { %v12624_v3 = vpop.eup %12623  ;;  %v4035_v44 = vadd.f32 1.0, %v12622_v12  ;;  %v8860_v12 = vmul.f32 -1.442695, %v15199_v58 }
0x13b0   :  { %v4036_v52 = vadd.f32 1.0, %v12624_v3 }
0x13b1   :  { %12625 = vrcp.f32 %v4035_v44 }
0x13b2   :  { %12627 = vrcp.f32 %v4036_v52 }
0x13bb   :  { %v12626_v19 = vpop.eup %12625 }
0x13bc   :  { %v12628_v45 = vpop.eup %12627 }
0x13bd   :  { %v4063_v4 = vmul.f32 %v12628_v45, %v15062_v2  ;;  %v3711_v2 = vld [vmem:[#allocation2 + $0x178] sm:$0xff] }
0x13e0   :  { %v4067_v51 = vpop.permute.xlu0 %4066 }
0x1411   :  { %v4069_v7 = vpop.permute.xlu1 %4068 }
0x1412   :  { %v4070_v54 = vsel %vm1553_vm3, %v4067_v51, %v4069_v7  ;;  %v4074_v60 = vmul.f32 %v12618_v28, %v4069_v7 }
0x1413   :  { %v4073_v46 = vmul.f32 %v12620_v1, %v4070_v54  ;;  %v4061_v1 = vmul.f32 %v12618_v28, %v15058_v32  ;;  %v4015_v54 = vadd.f32 %v3937_v48, %v3711_v2 }
0x1414   :  { %4079 = vrot.lane.b32.xlu1 %v4074_v60, %s13109_s24  ;;  %v4062_v60 = vmul.f32 %v12626_v19, %v15060_v42 }
0x1415   :  { %4077 = vrot.lane.b32.xlu0 %v4073_v46, %s13109_s24  ;;  %v8861_v50 = vmul.f32 -1.442695, %v4015_v54 }
0x1486   :  { %v4080_v7 = vpop.permute.xlu1 %4079 }
0x1487   :  { %v4078_v46 = vpop.permute.xlu0 %4077  ;;  %v15214_v51 = vadd.f32 %v4080_v7, %v4063_v4 }
0x1488   :  { %v4081_v36 = vsel %vm1206_vm4, %v4078_v46, %v4080_v7  ;;  %v15210_v53 = vadd.f32 %v4078_v46, %v4061_v1 }
0x1489   :  { %v15212_v15 = vadd.f32 %v4081_v36, %v4062_v60 }
0x148a   :  { %12629 = vtanh.f32 %v15210_v53 }
0x148b   :  { %12631 = vtanh.f32 %v15212_v15 }
0x148c   :  { %12633 = vtanh.f32 %v15214_v51 }
0x148d   :  { %12635 = vpow2.f32 %v8861_v50 }
0x148e   :  { %12637 = vpow2.f32 %v8862_v41  ;;  %v15290_v41 = vld [vmem:[#allocation3 + $0x568] sm:$0xff] }
0x148f   :  { %12639 = vpow2.f32 %v8860_v12  ;;  %v15294_v12 = vld [vmem:[#allocation3 + $0x560] sm:$0xff] }
0x1490   :  { %17609 = vst [vmem:[#allocation65_spill] sm:$0xff] %v15294_v12 }
0x1494   :  { %v12630_v32 = vpop.eup %12629 }
0x1495   :  { %v12632_v28 = vpop.eup %12631  ;;  %4094 = vrot.lane.b32.xlu0 %v12630_v32, %s13105_s14 }
0x1496   :  { %4096 = vrot.lane.b32.xlu1 %v12632_v28, %s13105_s14  ;;  %v12634_v42 = vpop.eup %12633 }
0x1497   :  { %v12636_v3 = vpop.eup %12635 }
0x1498   :  { %v12638_v44 = vpop.eup %12637  ;;  %v4053_v52 = vadd.f32 1.0, %v12636_v3  ;;  %v15297_v3 = vld [vmem:[#allocation3 + $0x570] sm:$0xff] }
0x1499   :  { %4098 = vrot.lane.b32.xlu0 %v12634_v42, %s13105_s14  ;;  %v12640_v19 = vpop.eup %12639  ;;  %v4054_v45 = vadd.f32 1.0, %v12638_v44  ;;  %17610 = vst [vmem:[#allocation66_spill] sm:$0xff] %v15297_v3  ;;  %v17611_v44 = vld [vmem:[#allocation12_spill] sm:$0xff] }
0x149a   :  { %v4052_v7 = vadd.f32 1.0, %v12640_v19  ;;  %12641 = vrcp.f32 %v4053_v52  ;;  %v17612_v52 = vld [vmem:[#allocation13_spill] sm:$0xff]  ;;  %v17613_v19 = vld [vmem:[#allocation14_spill] sm:$0xff] }
0x149b   :  { %12643 = vrcp.f32 %v4054_v45  ;;  %v17614_v45 = vld [vmem:[#allocation15_spill] sm:$0xff] }
0x149c   :  { %12645 = vrcp.f32 %v4052_v7  ;;  %v17615_v7 = vld [vmem:[#allocation16_spill] sm:$0xff] }
0x14a4   :  { %v12642_v60 = vpop.eup %12641 }
0x14a5   :  { %v12644_v4 = vpop.eup %12643 }
0x14a6   :  { %v12646_v32 = vpop.eup %12645 }
0x1507   :  { %v4095_v48 = vpop.permute.xlu0 %4094 }
0x1508   :  { %v4097_v1 = vpop.permute.xlu1 %4096  ;;  %v15232_v42 = vmul.f32 %v12646_v32, %v4095_v48  ;;  %v17623_v32 = vld [vmem:[#allocation24_spill] sm:$0xff] }
0x1509   :  { %v4100_v22 = vsel %vm1584_vm5, %v4095_v48, %v4097_v1  ;;  %v17616_v48 = vld [vmem:[#allocation17_spill] sm:$0xff] }
0x150a   :  { %v15225_v46 = vmul.f32 %v12642_v60, %v4100_v22  ;;  %17608 = vst [vmem:[#allocation71_spill] sm:$0xff] %v15232_v42  ;;  %v17618_v60 = vld [vmem:[#allocation19_spill] sm:$0xff]  ;;  %v17619_v22 = vld [vmem:[#allocation20_spill] sm:$0xff] }
0x150b   :  { %v4099_v58 = vpop.permute.xlu0 %4098 }
0x150c   :  { %17606 = vst [vmem:[#allocation89_spill] sm:$0xff] %v15225_v46  ;;  %v4101_v36 = vsel %vm1584_vm5, %v4097_v1, %v4099_v58  ;;  %4137 = vrot.lane.b32.xlu1 %v15225_v46, %s13110_s25  ;;  %v17617_v1 = vld [vmem:[#allocation18_spill] sm:$0xff]  ;;  %v17620_v58 = vld [vmem:[#allocation21_spill] sm:$0xff]  ;;  %v17631_v46 = vld [vmem:[#allocation32_spill] sm:$0xff] }
0x150d   :  { %v15230_v28 = vmul.f32 %v12644_v4, %v4101_v36  ;;  %v17621_v4 = vld [vmem:[#allocation22_spill] sm:$0xff]  ;;  %v17622_v36 = vld [vmem:[#allocation23_spill] sm:$0xff] }
0x150f   :  { %17607 = vst [vmem:[#allocation64_spill] sm:$0xff] %v15230_v28  ;;  %4139 = vrot.lane.b32.xlu0 %v15230_v28, %s13110_s25  ;;  %v17629_v28 = vld [vmem:[#allocation30_spill] sm:$0xff] }
0x1510   :  { %4135 = vrot.lane.b32.xlu1 %v15232_v42, %s13110_s25  ;;  %v17630_v42 = vld [vmem:[#allocation31_spill] sm:$0xff] }
0x157e   :  { %v4138_v2 = vpop.permute.xlu1 %4137 }
0x1581   :  { %v4140_v54 = vpop.permute.xlu0 %4139 }
0x1582   :  { %v4142_v47 = vsel %vm1626_vm6, %v4138_v2, %v4140_v54  ;;  %v4136_v0 = vpop.permute.xlu1 %4135  ;;  %v17625_v54 = vld [vmem:[#allocation26_spill] sm:$0xff] }
0x1583   :  { %v4141_v50 = vsel %vm1626_vm6, %v4136_v0, %v4138_v2  ;;  %8864 = vmatprep.mubr.msk.f32.mxu1 %vm1206_vm4, %v4142_v47  ;;  %8865 = vmatprep.mubr.msk.f32.mxu0 %vm1206_vm4, %v4142_v47  ;;  %v17624_v2 = vld [vmem:[#allocation25_spill] sm:$0xff]  ;;  %v17627_v0 = vld [vmem:[#allocation28_spill] sm:$0xff] }
0x1584   :  { %4211 = vmatmul.mubr.f32.vlgmr.msra.gmra.mrb[76].mxu1 %v4141_v50  ;;  %4282 = vmatmul.mubr.f32.vlgmr.msra.gmra.mrb[92].mxu0 %v4141_v50 }
0x1585   :  { %10541 = vmatpush1.bf16.msra.mxu1 %v17258_v23  ;;  %10588 = vmatpush1.bf16.msra.mxu0 %v17259_v13 }
0x1586   :  { %8866 = vmatprep.mubr.msk.f32.mxu1 %vm1206_vm4, %v4142_v47  ;;  %8867 = vmatprep.mubr.msk.f32.mxu0 %vm1206_vm4, %v4142_v47  ;;  %v17626_v47 = vld [vmem:[#allocation27_spill] sm:$0xff] }
0x1587   :  { %10543 = vmatprep.subr.bf16.mxu1 %v17260_v35  ;;  %10589 = vmatprep.subr.bf16.mxu0 %v17227_v25 }
0x1589   :  { %10545 = vmatpush1.bf16.msra.mxu1 %v17261_v55  ;;  %10591 = vmatpush1.bf16.msra.mxu0 %v17262_v37 }
0x158a   :  { %10547 = vmatprep.subr.bf16.mxu1 %v17263_v5  ;;  %10592 = vmatprep.subr.bf16.mxu0 %v17227_v25 }
0x158d   :  { %10549 = vmatpush1.bf16.msra.mxu1 %v17264_v43  ;;  %10594 = vmatpush1.bf16.msra.mxu0 %v17265_v20 }
0x158e   :  { %10551 = vmatprep.subr.bf16.mxu1 %v17266_v21  ;;  %10595 = vmatprep.subr.bf16.mxu0 %v17227_v25 }
0x1591   :  { %10553 = vmatpush1.bf16.msra.mxu1 %v17267_v14  ;;  %10597 = vmatpush1.bf16.msra.mxu0 %v17268_v33 }
0x1592   :  { %10555 = vmatprep.subr.bf16.mxu1 %v17269_v62  ;;  %10598 = vmatprep.subr.bf16.mxu0 %v17227_v25 }
0x1595   :  { %10557 = vmatpush1.bf16.msra.mxu1 %v17270_v59  ;;  %10600 = vmatpush1.bf16.msra.mxu0 %v17271_v16 }
0x1596   :  { %10559 = vmatprep.subr.bf16.mxu1 %v17315_v61  ;;  %10601 = vmatprep.subr.bf16.mxu0 %v17227_v25 }
0x1599   :  { %10561 = vmatpush1.bf16.msra.mxu1 %v17273_v39  ;;  %10603 = vmatpush1.bf16.msra.mxu0 %v17316_v57 }
0x159a   :  { %10563 = vmatprep.subr.bf16.mxu1 %v17317_v18  ;;  %10604 = vmatprep.subr.bf16.mxu0 %v17227_v25 }
0x159d   :  { %10565 = vmatpush1.bf16.msra.mxu1 %v17275_v11  ;;  %10606 = vmatpush1.bf16.msra.mxu0 %v13975_v40 }
0x159e   :  { %10567 = vmatprep.subr.bf16.mxu1 %v17276_v56  ;;  %10607 = vmatprep.subr.bf16.mxu0 %v17227_v25 }
0x15a1   :  { %10569 = vmatpush1.bf16.msra.mxu1 %v17277_v8  ;;  %10609 = vmatpush1.bf16.msra.mxu0 %v13985_v29 }
0x15a2   :  { %10571 = vmatprep.subr.bf16.mxu1 %v17278_v63  ;;  %10610 = vmatprep.subr.bf16.mxu0 %v17227_v25 }
0x15a5   :  { %10573 = vmatpush1.bf16.msra.mxu1 %v17279_v24  ;;  %10612 = vmatpush1.bf16.msra.mxu0 %v17318_v30 }
0x15a6   :  { %10575 = vmatprep.subr.bf16.mxu1 %v17319_v38  ;;  %10613 = vmatprep.subr.bf16.mxu0 %v17227_v25 }
0x15a9   :  { %10577 = vmatpush1.bf16.msra.mxu1 %v13971_v10  ;;  %10615 = vmatpush1.bf16.msra.mxu0 %v14000_v17 }
0x15aa   :  { %10579 = vmatprep.subr.bf16.mxu1 %v17320_v49  ;;  %10616 = vmatprep.subr.bf16.mxu0 %v17227_v25 }
0x15ad   :  { %10581 = vmatpush1.bf16.msra.mxu1 %v17321_v34  ;;  %10618 = vmatpush1.bf16.msra.mxu0 %v14005_v31 }
0x15ae   :  { %10583 = vmatprep.subr.bf16.mxu1 %v13987_v26  ;;  %10619 = vmatprep.subr.bf16.mxu0 %v17227_v25 }
0x15b1   :  { %10585 = vmatpush1.bf16.msra.mxu1 %v17281_v6  ;;  %10621 = vmatpush1.bf16.msra.mxu0 %v14012_v27 }
0x15b2   :  { %4336 = vmatprep.subr.mxu1 %v15290_v41  ;;  %4407 = vmatprep.subr.mxu0 %v17550_v9 }
0x15b5   :  { %4337 = vmatpush1.msra.mxu1 %v15294_v12  ;;  %4408 = vmatpush1.msra.mxu0 %v15297_v3 }
0x15b6   :  { %4353 = vmatmul.mubr.f32.vlgmr.msra.gmra.mrb[78].mxu1 %v4141_v50  ;;  %4424 = vmatmul.mubr.f32.vlgmr.msra.gmra.mrb[94].mxu0 %v4141_v50  ;;  %v17628_v50 = vld [vmem:[#allocation29_spill] sm:$0xff] }
0x15b7   :  { %10623 = vmatprep.subr.bf16.mxu1 %v17611_v44  ;;  %10671 = vmatprep.subr.bf16.mxu0 %v17612_v52 }
0x15b8   :  { %10625 = vmatpush1.bf16.msra.mxu1 %v17613_v19  ;;  %10673 = vmatpush1.bf16.msra.mxu0 %v17614_v45 }
0x15b9   :  { %10627 = vmatprep.subr.bf16.mxu1 %v17615_v7  ;;  %10675 = vmatprep.subr.bf16.mxu0 %v17616_v48  ;;  %v4125_v48 = vld [vmem:[#allocation2 + $0x188] sm:$0xff] }
0x15bc   :  { %10629 = vmatpush1.bf16.msra.mxu1 %v17617_v1  ;;  %10677 = vmatpush1.bf16.msra.mxu0 %v17618_v60  ;;  %v4126_v1 = vld [vmem:[#allocation2 + $0x190] sm:$0xff] }
0x15bd   :  { %10631 = vmatprep.subr.bf16.mxu1 %v17619_v22  ;;  %10679 = vmatprep.subr.bf16.mxu0 %v17620_v58 }
0x15c0   :  { %10633 = vmatpush1.bf16.msra.mxu1 %v17621_v4  ;;  %10681 = vmatpush1.bf16.msra.mxu0 %v17622_v36  ;;  %v17632_v4 = vld [vmem:[#allocation33_spill] sm:$0xff]  ;;  %v17633_v36 = vld [vmem:[#allocation34_spill] sm:$0xff] }
0x15c1   :  { %10635 = vmatprep.subr.bf16.mxu1 %v17623_v32  ;;  %10683 = vmatprep.subr.bf16.mxu0 %v17624_v2  ;;  %v17634_v32 = vld [vmem:[#allocation35_spill] sm:$0xff]  ;;  %v17635_v2 = vld [vmem:[#allocation36_spill] sm:$0xff] }
0x15c4   :  { %10637 = vmatpush1.bf16.msra.mxu1 %v17625_v54  ;;  %10685 = vmatpush1.bf16.msra.mxu0 %v17626_v47  ;;  %v17636_v54 = vld [vmem:[#allocation37_spill] sm:$0xff]  ;;  %v17637_v47 = vld [vmem:[#allocation38_spill] sm:$0xff] }
0x15c5   :  { %10639 = vmatprep.subr.bf16.mxu1 %v17627_v0  ;;  %10687 = vmatprep.subr.bf16.mxu0 %v17628_v50  ;;  %v17638_v0 = vld [vmem:[#allocation39_spill] sm:$0xff]  ;;  %v17639_v50 = vld [vmem:[#allocation40_spill] sm:$0xff] }
0x15c8   :  { %10641 = vmatpush1.bf16.msra.mxu1 %v17629_v28  ;;  %10689 = vmatpush1.bf16.msra.mxu0 %v17630_v42  ;;  %v17640_v28 = vld [vmem:[#allocation41_spill] sm:$0xff]  ;;  %v17641_v42 = vld [vmem:[#allocation42_spill] sm:$0xff] }
0x15c9   :  { %10643 = vmatprep.subr.bf16.mxu1 %v17631_v46  ;;  %10691 = vmatprep.subr.bf16.mxu0 %v17632_v4  ;;  %v17642_v46 = vld [vmem:[#allocation43_spill] sm:$0xff]  ;;  %v17643_v4 = vld [vmem:[#allocation44_spill] sm:$0xff] }
0x15cc   :  { %10645 = vmatpush1.bf16.msra.mxu1 %v17633_v36  ;;  %10693 = vmatpush1.bf16.msra.mxu0 %v17634_v32  ;;  %v17644_v36 = vld [vmem:[#allocation45_spill] sm:$0xff]  ;;  %v17645_v32 = vld [vmem:[#allocation46_spill] sm:$0xff] }
0x15cd   :  { %10647 = vmatprep.subr.bf16.mxu1 %v17635_v2  ;;  %10695 = vmatprep.subr.bf16.mxu0 %v17636_v54  ;;  %v17646_v2 = vld [vmem:[#allocation47_spill] sm:$0xff]  ;;  %v17647_v54 = vld [vmem:[#allocation48_spill] sm:$0xff] }
0x15d0   :  { %10649 = vmatpush1.bf16.msra.mxu1 %v17637_v47  ;;  %10697 = vmatpush1.bf16.msra.mxu0 %v17638_v0  ;;  %v17648_v47 = vld [vmem:[#allocation49_spill] sm:$0xff]  ;;  %v17649_v0 = vld [vmem:[#allocation50_spill] sm:$0xff] }
0x15d1   :  { %10651 = vmatprep.subr.bf16.mxu1 %v17639_v50  ;;  %10699 = vmatprep.subr.bf16.mxu0 %v17640_v28  ;;  %v17650_v50 = vld [vmem:[#allocation51_spill] sm:$0xff]  ;;  %v17651_v28 = vld [vmem:[#allocation52_spill] sm:$0xff] }
0x15d4   :  { %10653 = vmatpush1.bf16.msra.mxu1 %v17641_v42  ;;  %10701 = vmatpush1.bf16.msra.mxu0 %v17642_v46  ;;  %v17652_v42 = vld [vmem:[#allocation53_spill] sm:$0xff]  ;;  %v17653_v46 = vld [vmem:[#allocation54_spill] sm:$0xff] }
0x15d5   :  { %10655 = vmatprep.subr.bf16.mxu1 %v17643_v4  ;;  %10703 = vmatprep.subr.bf16.mxu0 %v17644_v36  ;;  %v17654_v4 = vld [vmem:[#allocation55_spill] sm:$0xff]  ;;  %v17655_v36 = vld [vmem:[#allocation56_spill] sm:$0xff] }
0x15d8   :  { %10657 = vmatpush1.bf16.msra.mxu1 %v17645_v32  ;;  %10705 = vmatpush1.bf16.msra.mxu0 %v17646_v2  ;;  %v17656_v32 = vld [vmem:[#allocation57_spill] sm:$0xff]  ;;  %v17657_v2 = vld [vmem:[#allocation58_spill] sm:$0xff] }
0x15d9   :  { %10659 = vmatprep.subr.bf16.mxu1 %v17647_v54  ;;  %10707 = vmatprep.subr.bf16.mxu0 %v17648_v47  ;;  %v17658_v54 = vld [vmem:[#allocation59_spill] sm:$0xff]  ;;  %v15348_v47 = vld [vmem:[#allocation3 + $0x548] sm:$0xff] }
0x15da   :  { %17659 = vst [vmem:[#allocation74_spill] sm:$0xff] %v15348_v47 }
0x15dc   :  { %10661 = vmatpush1.bf16.msra.mxu1 %v17649_v0  ;;  %10709 = vmatpush1.bf16.msra.mxu0 %v17650_v50  ;;  %v15351_v50 = vld [vmem:[#allocation3 + $0x558] sm:$0xff]  ;;  %v4129_v0 = vld [vmem:[#allocation2 + $0x1a8] sm:$0xff] }
0x15dd   :  { %10663 = vmatprep.subr.bf16.mxu1 %v17651_v28  ;;  %10711 = vmatprep.subr.bf16.mxu0 %v17652_v42  ;;  %17660 = vst [vmem:[#allocation67_spill] sm:$0xff] %v15351_v50  ;;  %v15354_v42 = vld [vmem:[#allocation3 + $0x540] sm:$0xff] }
0x15de   :  { %17661 = vst [vmem:[#allocation79_spill] sm:$0xff] %v15354_v42 }
0x15e0   :  { %10665 = vmatpush1.bf16.msra.mxu1 %v17653_v46  ;;  %10713 = vmatpush1.bf16.msra.mxu0 %v17654_v4  ;;  %v15357_v4 = vld [vmem:[#allocation3 + $0x550] sm:$0xff] }
0x15e1   :  { %10667 = vmatprep.subr.bf16.mxu1 %v17655_v36  ;;  %10715 = vmatprep.subr.bf16.mxu0 %v17656_v32  ;;  %17662 = vst [vmem:[#allocation81_spill] sm:$0xff] %v15357_v4  ;;  %v17663_v32 = vld [vmem:[#allocation62_spill] sm:$0xff] }
0x15e4   :  { %10669 = vmatpush1.bf16.msra.mxu1 %v17657_v2  ;;  %10717 = vmatpush1.bf16.msra.mxu0 %v17658_v54 }
0x15e5   :  { %4613 = vmatprep.subr.mxu1 %v15348_v47  ;;  %4684 = vmatprep.subr.mxu0 %v15351_v50  ;;  %v4128_v47 = vld [vmem:[#allocation2 + $0x1a0] sm:$0xff] }
0x15e8   :  { %4614 = vmatpush1.msra.mxu1 %v15354_v42  ;;  %4685 = vmatpush1.msra.mxu0 %v15357_v4 }
0x15e9   :  { %10719 = vmatprep.subr.bf16.mxu1 %v17663_v32  ;;  %10766 = vmatprep.subr.bf16.mxu0 %v17227_v25 }
0x1657   :  { %v4212_v54 = vpop.f32.mrb[76].mxu1  ;;  %v4283_v2 = vpop.f32.mrb[92].mxu0 }
0x1658   :  { %v4214_v36 = vpop.f32.mrb[77].mxu1  ;;  %v4285_v46 = vpop.f32.mrb[93].mxu0 }
0x1659   :  { %v4432_v28 = vadd.f32 %v4285_v46, %v4128_v47  ;;  %v4430_v46 = vadd.f32 %v4214_v36, %v4126_v1  ;;  %v4429_v47 = vadd.f32 %v4212_v54, %v4125_v48 }
0x165b   :  { %12647 = vtanh.f32 %v4432_v28  ;;  %v8869_v7 = vmul.f32 -1.442695, %v4430_v46  ;;  %v8868_v45 = vmul.f32 -1.442695, %v4429_v47  ;;  %v8871_v1 = vmul.f32 -1.442695, %v4432_v28 }
0x1665   :  { %v12648_v50 = vpop.eup %12647 }
0x1666   :  { %4485 = vrot.lane.b32.xlu0 %v12648_v50, %s13108_s3 }
0x1689   :  { %v4354_v42 = vpop.f32.mrb[78].mxu1  ;;  %v15363_v58 = vpop.f32.mrb[94].mxu0 }
0x168a   :  { %v15365_v22 = vadd.f32 %v4354_v42, %v4129_v0  ;;  %v4356_v4 = vpop.f32.mrb[79].mxu1  ;;  %v4427_v32 = vpop.f32.mrb[95].mxu0 }
0x168c   :  { %12649 = vtanh.f32 %v15365_v22 }
0x168d   :  { %12651 = vpow2.f32 %v8869_v7  ;;  %v4127_v7 = vld [vmem:[#allocation2 + $0x198] sm:$0xff] }
0x168e   :  { %12653 = vpow2.f32 %v8868_v45  ;;  %v4431_v45 = vadd.f32 %v4283_v2, %v4127_v7  ;;  %v4131_v7 = vld [vmem:[#allocation2 + $0x1b8] sm:$0xff] }
0x1690   :  { %v8870_v48 = vmul.f32 -1.442695, %v4431_v45  ;;  %v4435_v45 = vadd.f32 %v15363_v58, %v4131_v7 }
0x1696   :  { %v12650_v60 = vpop.eup %12649 }
0x1697   :  { %4487 = vrot.lane.b32.xlu1 %v12650_v60, %s13108_s3  ;;  %v12652_v50 = vpop.eup %12651 }
0x1698   :  { %v12654_v19 = vpop.eup %12653  ;;  %v4443_v52 = vadd.f32 1.0, %v12652_v50 }
0x1699   :  { %v4442_v42 = vadd.f32 1.0, %v12654_v19 }
0x169a   :  { %12655 = vrcp.f32 %v4443_v52 }
0x169b   :  { %12657 = vrcp.f32 %v4442_v42 }
0x169c   :  { %12659 = vpow2.f32 %v8870_v48 }
0x169d   :  { %12661 = vpow2.f32 %v8871_v1  ;;  %v8874_v1 = vmul.f32 -1.442695, %v4435_v45 }
0x16a4   :  { %v12656_v32 = vpop.eup %12655 }
0x16a5   :  { %v12658_v3 = vpop.eup %12657 }
0x16a6   :  { %v12660_v52 = vpop.eup %12659 }
0x16a7   :  { %v12662_v19 = vpop.eup %12661  ;;  %v4454_v36 = vadd.f32 1.0, %v12660_v52  ;;  %v8872_v52 = vmul.f32 -1.442695, %v15365_v22 }
0x16a8   :  { %v4455_v54 = vadd.f32 1.0, %v12662_v19 }
0x16a9   :  { %12663 = vrcp.f32 %v4454_v36 }
0x16aa   :  { %12665 = vrcp.f32 %v4455_v54 }
0x16b3   :  { %v12664_v46 = vpop.eup %12663 }
0x16b4   :  { %v12666_v47 = vpop.eup %12665 }
0x16b5   :  { %v4482_v2 = vmul.f32 %v12666_v47, %v15214_v51  ;;  %v4130_v51 = vld [vmem:[#allocation2 + $0x1b0] sm:$0xff] }
0x16d8   :  { %v4486_v0 = vpop.permute.xlu0 %4485 }
0x1709   :  { %v4488_v44 = vpop.permute.xlu1 %4487 }
0x170a   :  { %v4489_v60 = vsel %vm1553_vm3, %v4486_v0, %v4488_v44  ;;  %v4493_v12 = vmul.f32 %v12656_v32, %v4488_v44 }
0x170b   :  { %v4492_v9 = vmul.f32 %v12658_v3, %v4489_v60  ;;  %v4480_v3 = vmul.f32 %v12656_v32, %v15210_v53  ;;  %v4434_v60 = vadd.f32 %v4356_v4, %v4130_v51 }
0x170c   :  { %4498 = vrot.lane.b32.xlu1 %v4493_v12, %s13109_s24  ;;  %v4481_v12 = vmul.f32 %v12664_v46, %v15212_v15 }
0x170d   :  { %4496 = vrot.lane.b32.xlu0 %v4492_v9, %s13109_s24  ;;  %v8873_v48 = vmul.f32 -1.442695, %v4434_v60 }
0x177e   :  { %v4499_v44 = vpop.permute.xlu1 %4498 }
0x177f   :  { %v4497_v9 = vpop.permute.xlu0 %4496  ;;  %v15380_v0 = vadd.f32 %v4499_v44, %v4482_v2 }
0x1780   :  { %v4500_v28 = vsel %vm1206_vm4, %v4497_v9, %v4499_v44  ;;  %v15376_v50 = vadd.f32 %v4497_v9, %v4480_v3 }
0x1781   :  { %v15378_v42 = vadd.f32 %v4500_v28, %v4481_v12 }
0x1782   :  { %12667 = vtanh.f32 %v15376_v50 }
0x1783   :  { %12669 = vtanh.f32 %v15378_v42 }
0x1784   :  { %12671 = vtanh.f32 %v15380_v0 }
0x1785   :  { %12673 = vpow2.f32 %v8873_v48 }
0x1786   :  { %12675 = vpow2.f32 %v8874_v1  ;;  %v17667_v1 = vmov 0.0  }
0x1787   :  { %12677 = vpow2.f32 %v8872_v52  ;;  %v17668_v52 = vld [vmem:[#allocation65_spill] sm:$0xff] }
0x178c   :  { %v12668_v53 = vpop.eup %12667 }
0x178d   :  { %v12670_v32 = vpop.eup %12669  ;;  %4513 = vrot.lane.b32.xlu0 %v12668_v53, %s13105_s14 }
0x178e   :  { %4515 = vrot.lane.b32.xlu1 %v12670_v32, %s13105_s14  ;;  %v12672_v15 = vpop.eup %12671 }
0x178f   :  { %v12674_v19 = vpop.eup %12673 }
0x1790   :  { %v12676_v36 = vpop.eup %12675  ;;  %v4472_v54 = vadd.f32 1.0, %v12674_v19  ;;  %v17669_v19 = vld [vmem:[#allocation66_spill] sm:$0xff] }
0x1791   :  { %4517 = vrot.lane.b32.xlu0 %v12672_v15, %s13105_s14  ;;  %v12678_v46 = vpop.eup %12677  ;;  %v4473_v47 = vadd.f32 1.0, %v12676_v36  ;;  %v17670_v36 = vld [vmem:[#allocation12_spill] sm:$0xff] }
0x1792   :  { %v4471_v44 = vadd.f32 1.0, %v12678_v46  ;;  %12679 = vrcp.f32 %v4472_v54  ;;  %v17671_v54 = vld [vmem:[#allocation13_spill] sm:$0xff]  ;;  %v17672_v46 = vld [vmem:[#allocation14_spill] sm:$0xff] }
0x1793   :  { %12681 = vrcp.f32 %v4473_v47  ;;  %v17673_v47 = vld [vmem:[#allocation15_spill] sm:$0xff] }
0x1794   :  { %12683 = vrcp.f32 %v4471_v44  ;;  %v17674_v44 = vld [vmem:[#allocation16_spill] sm:$0xff] }
0x179c   :  { %v12680_v12 = vpop.eup %12679 }
0x179d   :  { %v12682_v2 = vpop.eup %12681 }
0x179e   :  { %v12684_v53 = vpop.eup %12683 }
0x17ff   :  { %v4514_v4 = vpop.permute.xlu0 %4513 }
0x1800   :  { %v4516_v3 = vpop.permute.xlu1 %4515  ;;  %v15398_v15 = vmul.f32 %v12684_v53, %v4514_v4  ;;  %v17682_v53 = vld [vmem:[#allocation24_spill] sm:$0xff] }
0x1801   :  { %v4519_v58 = vsel %vm1584_vm5, %v4514_v4, %v4516_v3  ;;  %v17675_v4 = vld [vmem:[#allocation17_spill] sm:$0xff] }
0x1802   :  { %v15391_v9 = vmul.f32 %v12680_v12, %v4519_v58  ;;  %17666 = vst [vmem:[#allocation85_spill] sm:$0xff] %v15398_v15  ;;  %v17677_v12 = vld [vmem:[#allocation19_spill] sm:$0xff]  ;;  %v17678_v58 = vld [vmem:[#allocation20_spill] sm:$0xff] }
0x1803   :  { %v4518_v22 = vpop.permute.xlu0 %4517 }
0x1804   :  { %17664 = vst [vmem:[#allocation82_spill] sm:$0xff] %v15391_v9  ;;  %v4520_v28 = vsel %vm1584_vm5, %v4516_v3, %v4518_v22  ;;  %4556 = vrot.lane.b32.xlu1 %v15391_v9, %s13110_s25  ;;  %v17676_v3 = vld [vmem:[#allocation18_spill] sm:$0xff]  ;;  %v17679_v22 = vld [vmem:[#allocation21_spill] sm:$0xff]  ;;  %v17690_v9 = vld [vmem:[#allocation32_spill] sm:$0xff] }
0x1805   :  { %v15396_v32 = vmul.f32 %v12682_v2, %v4520_v28  ;;  %v17680_v2 = vld [vmem:[#allocation22_spill] sm:$0xff]  ;;  %v17681_v28 = vld [vmem:[#allocation23_spill] sm:$0xff] }
0x1807   :  { %17665 = vst [vmem:[#allocation84_spill] sm:$0xff] %v15396_v32  ;;  %4558 = vrot.lane.b32.xlu0 %v15396_v32, %s13110_s25  ;;  %v17688_v32 = vld [vmem:[#allocation30_spill] sm:$0xff] }
0x1808   :  { %4554 = vrot.lane.b32.xlu1 %v15398_v15, %s13110_s25  ;;  %v17689_v15 = vld [vmem:[#allocation31_spill] sm:$0xff] }
0x1876   :  { %v4557_v51 = vpop.permute.xlu1 %4556 }
0x1879   :  { %v4559_v60 = vpop.permute.xlu0 %4558 }
0x187a   :  { %v4561_v7 = vsel %vm1626_vm6, %v4557_v51, %v4559_v60  ;;  %v4555_v45 = vpop.permute.xlu1 %4554  ;;  %v17684_v60 = vld [vmem:[#allocation26_spill] sm:$0xff] }
0x187b   :  { %v4560_v48 = vsel %vm1626_vm6, %v4555_v45, %v4557_v51  ;;  %8876 = vmatprep.mubr.msk.f32.mxu1 %vm1206_vm4, %v4561_v7  ;;  %8877 = vmatprep.mubr.msk.f32.mxu0 %vm1206_vm4, %v4561_v7  ;;  %v17683_v51 = vld [vmem:[#allocation25_spill] sm:$0xff]  ;;  %v17686_v45 = vld [vmem:[#allocation28_spill] sm:$0xff] }
0x187c   :  { %4630 = vmatmul.mubr.f32.vlgmr.msra.gmra.mrb[80].mxu1 %v4560_v48  ;;  %4701 = vmatmul.mubr.f32.vlgmr.msra.gmra.mrb[96].mxu0 %v4560_v48 }
0x187d   :  { %10721 = vmatpush1.bf16.msra.mxu1 %v17258_v23  ;;  %10768 = vmatpush1.bf16.msra.mxu0 %v17259_v13 }
0x187e   :  { %8878 = vmatprep.mubr.msk.f32.mxu1 %vm1206_vm4, %v4561_v7  ;;  %8879 = vmatprep.mubr.msk.f32.mxu0 %vm1206_vm4, %v4561_v7  ;;  %v17685_v7 = vld [vmem:[#allocation27_spill] sm:$0xff] }
0x187f   :  { %10723 = vmatprep.subr.bf16.mxu1 %v17260_v35  ;;  %10769 = vmatprep.subr.bf16.mxu0 %v17227_v25 }
0x1881   :  { %10725 = vmatpush1.bf16.msra.mxu1 %v17261_v55  ;;  %10771 = vmatpush1.bf16.msra.mxu0 %v17262_v37 }
0x1882   :  { %10727 = vmatprep.subr.bf16.mxu1 %v17263_v5  ;;  %10772 = vmatprep.subr.bf16.mxu0 %v17227_v25 }
0x1885   :  { %10729 = vmatpush1.bf16.msra.mxu1 %v17264_v43  ;;  %10774 = vmatpush1.bf16.msra.mxu0 %v17265_v20 }
0x1886   :  { %10731 = vmatprep.subr.bf16.mxu1 %v17266_v21  ;;  %10775 = vmatprep.subr.bf16.mxu0 %v17227_v25 }
0x1889   :  { %10733 = vmatpush1.bf16.msra.mxu1 %v17267_v14  ;;  %10777 = vmatpush1.bf16.msra.mxu0 %v17268_v33 }
0x188a   :  { %10735 = vmatprep.subr.bf16.mxu1 %v17269_v62  ;;  %10778 = vmatprep.subr.bf16.mxu0 %v17227_v25 }
0x188d   :  { %10737 = vmatpush1.bf16.msra.mxu1 %v17270_v59  ;;  %10780 = vmatpush1.bf16.msra.mxu0 %v17271_v16 }
0x188e   :  { %10739 = vmatprep.subr.bf16.mxu1 %v17315_v61  ;;  %10781 = vmatprep.subr.bf16.mxu0 %v17227_v25 }
0x1891   :  { %10741 = vmatpush1.bf16.msra.mxu1 %v17273_v39  ;;  %10783 = vmatpush1.bf16.msra.mxu0 %v17316_v57 }
0x1892   :  { %10743 = vmatprep.subr.bf16.mxu1 %v17317_v18  ;;  %10784 = vmatprep.subr.bf16.mxu0 %v17227_v25 }
0x1895   :  { %10745 = vmatpush1.bf16.msra.mxu1 %v17275_v11  ;;  %10786 = vmatpush1.bf16.msra.mxu0 %v13975_v40 }
0x1896   :  { %10747 = vmatprep.subr.bf16.mxu1 %v17276_v56  ;;  %10787 = vmatprep.subr.bf16.mxu0 %v17227_v25 }
0x1899   :  { %10749 = vmatpush1.bf16.msra.mxu1 %v17277_v8  ;;  %10789 = vmatpush1.bf16.msra.mxu0 %v13985_v29 }
0x189a   :  { %10751 = vmatprep.subr.bf16.mxu1 %v17278_v63  ;;  %10790 = vmatprep.subr.bf16.mxu0 %v17227_v25 }
0x189d   :  { %10753 = vmatpush1.bf16.msra.mxu1 %v17279_v24  ;;  %10792 = vmatpush1.bf16.msra.mxu0 %v17318_v30 }
0x189e   :  { %10755 = vmatprep.subr.bf16.mxu1 %v17319_v38  ;;  %10793 = vmatprep.subr.bf16.mxu0 %v17227_v25 }
0x18a1   :  { %10757 = vmatpush1.bf16.msra.mxu1 %v13971_v10  ;;  %10795 = vmatpush1.bf16.msra.mxu0 %v14000_v17 }
0x18a2   :  { %10759 = vmatprep.subr.bf16.mxu1 %v17320_v49  ;;  %10796 = vmatprep.subr.bf16.mxu0 %v17227_v25 }
0x18a5   :  { %10761 = vmatpush1.bf16.msra.mxu1 %v17321_v34  ;;  %10798 = vmatpush1.bf16.msra.mxu0 %v14005_v31 }
0x18a6   :  { %10763 = vmatprep.subr.bf16.mxu1 %v13987_v26  ;;  %10799 = vmatprep.subr.bf16.mxu0 %v17227_v25 }
0x18a9   :  { %10765 = vmatpush1.bf16.msra.mxu1 %v17281_v6  ;;  %10801 = vmatpush1.bf16.msra.mxu0 %v14012_v27 }
0x18aa   :  { %4755 = vmatprep.subr.mxu1 %v15290_v41  ;;  %4826 = vmatprep.subr.mxu0 %v17667_v1 }
0x18ad   :  { %4756 = vmatpush1.msra.mxu1 %v17668_v52  ;;  %4827 = vmatpush1.msra.mxu0 %v17669_v19 }
0x18ae   :  { %4772 = vmatmul.mubr.f32.vlgmr.msra.gmra.mrb[82].mxu1 %v4560_v48  ;;  %4843 = vmatmul.mubr.f32.vlgmr.msra.gmra.mrb[98].mxu0 %v4560_v48  ;;  %v17687_v48 = vld [vmem:[#allocation29_spill] sm:$0xff] }
0x18af   :  { %10803 = vmatprep.subr.bf16.mxu1 %v17670_v36  ;;  %10851 = vmatprep.subr.bf16.mxu0 %v17671_v54 }
0x18b0   :  { %10805 = vmatpush1.bf16.msra.mxu1 %v17672_v46  ;;  %10853 = vmatpush1.bf16.msra.mxu0 %v17673_v47 }
0x18b1   :  { %10807 = vmatprep.subr.bf16.mxu1 %v17674_v44  ;;  %10855 = vmatprep.subr.bf16.mxu0 %v17675_v4  ;;  %v4544_v4 = vld [vmem:[#allocation2 + $0x1c0] sm:$0xff] }
0x18b4   :  { %10809 = vmatpush1.bf16.msra.mxu1 %v17676_v3  ;;  %10857 = vmatpush1.bf16.msra.mxu0 %v17677_v12  ;;  %v4545_v3 = vld [vmem:[#allocation2 + $0x1c8] sm:$0xff] }
0x18b5   :  { %10811 = vmatprep.subr.bf16.mxu1 %v17678_v58  ;;  %10859 = vmatprep.subr.bf16.mxu0 %v17679_v22 }
0x18b8   :  { %10813 = vmatpush1.bf16.msra.mxu1 %v17680_v2  ;;  %10861 = vmatpush1.bf16.msra.mxu0 %v17681_v28  ;;  %v17691_v2 = vld [vmem:[#allocation33_spill] sm:$0xff]  ;;  %v17692_v28 = vld [vmem:[#allocation34_spill] sm:$0xff] }
0x18b9   :  { %10815 = vmatprep.subr.bf16.mxu1 %v17682_v53  ;;  %10863 = vmatprep.subr.bf16.mxu0 %v17683_v51  ;;  %v17693_v53 = vld [vmem:[#allocation35_spill] sm:$0xff]  ;;  %v17694_v51 = vld [vmem:[#allocation36_spill] sm:$0xff] }
0x18bc   :  { %10817 = vmatpush1.bf16.msra.mxu1 %v17684_v60  ;;  %10865 = vmatpush1.bf16.msra.mxu0 %v17685_v7  ;;  %v17695_v60 = vld [vmem:[#allocation37_spill] sm:$0xff]  ;;  %v17696_v7 = vld [vmem:[#allocation38_spill] sm:$0xff] }
0x18bd   :  { %10819 = vmatprep.subr.bf16.mxu1 %v17686_v45  ;;  %10867 = vmatprep.subr.bf16.mxu0 %v17687_v48  ;;  %v17697_v45 = vld [vmem:[#allocation39_spill] sm:$0xff]  ;;  %v17698_v48 = vld [vmem:[#allocation40_spill] sm:$0xff] }
0x18c0   :  { %10821 = vmatpush1.bf16.msra.mxu1 %v17688_v32  ;;  %10869 = vmatpush1.bf16.msra.mxu0 %v17689_v15  ;;  %v17699_v32 = vld [vmem:[#allocation41_spill] sm:$0xff]  ;;  %v17700_v15 = vld [vmem:[#allocation42_spill] sm:$0xff] }
0x18c1   :  { %10823 = vmatprep.subr.bf16.mxu1 %v17690_v9  ;;  %10871 = vmatprep.subr.bf16.mxu0 %v17691_v2  ;;  %v17701_v9 = vld [vmem:[#allocation43_spill] sm:$0xff]  ;;  %v17702_v2 = vld [vmem:[#allocation44_spill] sm:$0xff] }
0x18c4   :  { %10825 = vmatpush1.bf16.msra.mxu1 %v17692_v28  ;;  %10873 = vmatpush1.bf16.msra.mxu0 %v17693_v53  ;;  %v17703_v28 = vld [vmem:[#allocation45_spill] sm:$0xff]  ;;  %v17704_v53 = vld [vmem:[#allocation46_spill] sm:$0xff] }
0x18c5   :  { %10827 = vmatprep.subr.bf16.mxu1 %v17694_v51  ;;  %10875 = vmatprep.subr.bf16.mxu0 %v17695_v60  ;;  %v17705_v51 = vld [vmem:[#allocation47_spill] sm:$0xff]  ;;  %v17706_v60 = vld [vmem:[#allocation48_spill] sm:$0xff] }
0x18c8   :  { %10829 = vmatpush1.bf16.msra.mxu1 %v17696_v7  ;;  %10877 = vmatpush1.bf16.msra.mxu0 %v17697_v45  ;;  %v17707_v7 = vld [vmem:[#allocation49_spill] sm:$0xff]  ;;  %v17708_v45 = vld [vmem:[#allocation50_spill] sm:$0xff] }
0x18c9   :  { %10831 = vmatprep.subr.bf16.mxu1 %v17698_v48  ;;  %10879 = vmatprep.subr.bf16.mxu0 %v17699_v32  ;;  %v17709_v48 = vld [vmem:[#allocation51_spill] sm:$0xff]  ;;  %v17710_v32 = vld [vmem:[#allocation52_spill] sm:$0xff] }
0x18cc   :  { %10833 = vmatpush1.bf16.msra.mxu1 %v17700_v15  ;;  %10881 = vmatpush1.bf16.msra.mxu0 %v17701_v9  ;;  %v17711_v15 = vld [vmem:[#allocation53_spill] sm:$0xff]  ;;  %v17712_v9 = vld [vmem:[#allocation54_spill] sm:$0xff] }
0x18cd   :  { %10835 = vmatprep.subr.bf16.mxu1 %v17702_v2  ;;  %10883 = vmatprep.subr.bf16.mxu0 %v17703_v28  ;;  %v17713_v2 = vld [vmem:[#allocation55_spill] sm:$0xff]  ;;  %v17714_v28 = vld [vmem:[#allocation56_spill] sm:$0xff] }
0x18d0   :  { %10837 = vmatpush1.bf16.msra.mxu1 %v17704_v53  ;;  %10885 = vmatpush1.bf16.msra.mxu0 %v17705_v51  ;;  %v17715_v53 = vld [vmem:[#allocation57_spill] sm:$0xff]  ;;  %v17716_v51 = vld [vmem:[#allocation58_spill] sm:$0xff] }
0x18d1   :  { %10839 = vmatprep.subr.bf16.mxu1 %v17706_v60  ;;  %10887 = vmatprep.subr.bf16.mxu0 %v17707_v7  ;;  %v17717_v60 = vld [vmem:[#allocation59_spill] sm:$0xff]  ;;  %v17718_v7 = vld [vmem:[#allocation74_spill] sm:$0xff] }
0x18d4   :  { %10841 = vmatpush1.bf16.msra.mxu1 %v17708_v45  ;;  %10889 = vmatpush1.bf16.msra.mxu0 %v17709_v48  ;;  %v17719_v45 = vld [vmem:[#allocation67_spill] sm:$0xff] }
0x18d5   :  { %10843 = vmatprep.subr.bf16.mxu1 %v17710_v32  ;;  %10891 = vmatprep.subr.bf16.mxu0 %v17711_v15  ;;  %v17720_v48 = vld [vmem:[#allocation79_spill] sm:$0xff]  ;;  %v17721_v32 = vld [vmem:[#allocation81_spill] sm:$0xff]  ;;  %v17722_v15 = vld [vmem:[#allocation62_spill] sm:$0xff] }
0x18d8   :  { %10845 = vmatpush1.bf16.msra.mxu1 %v17712_v9  ;;  %10893 = vmatpush1.bf16.msra.mxu0 %v17713_v2 }
0x18d9   :  { %10847 = vmatprep.subr.bf16.mxu1 %v17714_v28  ;;  %10895 = vmatprep.subr.bf16.mxu0 %v17715_v53  ;;  %v4547_v53 = vld [vmem:[#allocation2 + $0x1d8] sm:$0xff] }
0x18dc   :  { %10849 = vmatpush1.bf16.msra.mxu1 %v17716_v51  ;;  %10897 = vmatpush1.bf16.msra.mxu0 %v17717_v60 }
0x18dd   :  { %5032 = vmatprep.subr.mxu1 %v17718_v7  ;;  %5103 = vmatprep.subr.mxu0 %v17719_v45  ;;  %v4548_v7 = vld [vmem:[#allocation2 + $0x1e0] sm:$0xff] }
0x18e0   :  { %5033 = vmatpush1.msra.mxu1 %v17720_v48  ;;  %5104 = vmatpush1.msra.mxu0 %v17721_v32 }
0x18e1   :  { %10899 = vmatprep.subr.bf16.mxu1 %v17722_v15  ;;  %10946 = vmatprep.subr.bf16.mxu0 %v17227_v25 }
0x194f   :  { %v4631_v2 = vpop.f32.mrb[80].mxu1  ;;  %v4702_v28 = vpop.f32.mrb[96].mxu0 }
0x1950   :  { %v4633_v9 = vpop.f32.mrb[81].mxu1  ;;  %v4704_v22 = vpop.f32.mrb[97].mxu0 }
0x1951   :  { %v4851_v51 = vadd.f32 %v4704_v22, %v4547_v53  ;;  %v4849_v22 = vadd.f32 %v4633_v9, %v4545_v3  ;;  %v4848_v53 = vadd.f32 %v4631_v2, %v4544_v4  ;;  %v4546_v9 = vld [vmem:[#allocation2 + $0x1d0] sm:$0xff] }
0x1953   :  { %12685 = vtanh.f32 %v4851_v51  ;;  %v8881_v44 = vmul.f32 -1.442695, %v4849_v22  ;;  %v8880_v47 = vmul.f32 -1.442695, %v4848_v53  ;;  %v8883_v4 = vmul.f32 -1.442695, %v4851_v51 }
0x195d   :  { %v12686_v60 = vpop.eup %12685 }
0x195e   :  { %4904 = vrot.lane.b32.xlu0 %v12686_v60, %s13108_s3 }
0x1981   :  { %v4773_v45 = vpop.f32.mrb[82].mxu1  ;;  %v15515_v58 = vpop.f32.mrb[98].mxu0 }
0x1982   :  { %v15517_v48 = vadd.f32 %v4773_v45, %v4548_v7  ;;  %v4775_v32 = vpop.f32.mrb[83].mxu1  ;;  %v4846_v15 = vpop.f32.mrb[99].mxu0 }
0x1984   :  { %12687 = vtanh.f32 %v15517_v48 }
0x1985   :  { %12689 = vpow2.f32 %v8881_v44 }
0x1986   :  { %12691 = vpow2.f32 %v8880_v47  ;;  %v4850_v47 = vadd.f32 %v4702_v28, %v4546_v9  ;;  %v4550_v9 = vld [vmem:[#allocation2 + $0x1f0] sm:$0xff] }
0x1988   :  { %v8882_v44 = vmul.f32 -1.442695, %v4850_v47  ;;  %v4854_v47 = vadd.f32 %v15515_v58, %v4550_v9 }
0x198e   :  { %v12688_v12 = vpop.eup %12687 }
0x198f   :  { %4906 = vrot.lane.b32.xlu1 %v12688_v12, %s13108_s3  ;;  %v12690_v60 = vpop.eup %12689 }
0x1990   :  { %v12692_v46 = vpop.eup %12691  ;;  %v4862_v54 = vadd.f32 1.0, %v12690_v60 }
0x1991   :  { %v4861_v7 = vadd.f32 1.0, %v12692_v46 }
0x1992   :  { %12693 = vrcp.f32 %v4862_v54 }
0x1993   :  { %12695 = vrcp.f32 %v4861_v7 }
0x1994   :  { %12697 = vpow2.f32 %v8882_v44 }
0x1995   :  { %12699 = vpow2.f32 %v8883_v4  ;;  %v8886_v4 = vmul.f32 -1.442695, %v4854_v47 }
0x199c   :  { %v12694_v15 = vpop.eup %12693 }
0x199d   :  { %v12696_v19 = vpop.eup %12695 }
0x199e   :  { %v12698_v54 = vpop.eup %12697 }
0x199f   :  { %v12700_v46 = vpop.eup %12699  ;;  %v4873_v3 = vadd.f32 1.0, %v12698_v54  ;;  %v8884_v54 = vmul.f32 -1.442695, %v15517_v48 }
0x19a0   :  { %v4874_v2 = vadd.f32 1.0, %v12700_v46 }
0x19a1   :  { %12701 = vrcp.f32 %v4873_v3 }
0x19a2   :  { %12703 = vrcp.f32 %v4874_v2 }
0x19ab   :  { %v12702_v22 = vpop.eup %12701 }
0x19ac   :  { %v12704_v53 = vpop.eup %12703 }
0x19ad   :  { %v4901_v28 = vmul.f32 %v12704_v53, %v15380_v0  ;;  %v4549_v0 = vld [vmem:[#allocation2 + $0x1e8] sm:$0xff] }
0x19d0   :  { %v4905_v45 = vpop.permute.xlu0 %4904 }
0x1a01   :  { %v4907_v36 = vpop.permute.xlu1 %4906 }
0x1a02   :  { %v4908_v12 = vsel %vm1553_vm3, %v4905_v45, %v4907_v36  ;;  %v4912_v52 = vmul.f32 %v12694_v15, %v4907_v36 }
0x1a03   :  { %v4911_v1 = vmul.f32 %v12696_v19, %v4908_v12  ;;  %v4899_v19 = vmul.f32 %v12694_v15, %v15376_v50  ;;  %v4853_v12 = vadd.f32 %v4775_v32, %v4549_v0 }
0x1a04   :  { %4917 = vrot.lane.b32.xlu1 %v4912_v52, %s13109_s24  ;;  %v4900_v52 = vmul.f32 %v12702_v22, %v15378_v42 }
0x1a05   :  { %4915 = vrot.lane.b32.xlu0 %v4911_v1, %s13109_s24  ;;  %v8885_v44 = vmul.f32 -1.442695, %v4853_v12 }
0x1a76   :  { %v4918_v36 = vpop.permute.xlu1 %4917 }
0x1a77   :  { %v4916_v1 = vpop.permute.xlu0 %4915  ;;  %v15532_v45 = vadd.f32 %v4918_v36, %v4901_v28 }
0x1a78   :  { %v4919_v51 = vsel %vm1206_vm4, %v4916_v1, %v4918_v36  ;;  %v15528_v60 = vadd.f32 %v4916_v1, %v4899_v19 }
0x1a79   :  { %v15530_v7 = vadd.f32 %v4919_v51, %v4900_v52 }
0x1a7a   :  { %12705 = vtanh.f32 %v15528_v60 }
0x1a7b   :  { %12707 = vtanh.f32 %v15530_v7 }
0x1a7c   :  { %12709 = vtanh.f32 %v15532_v45 }
0x1a7d   :  { %12711 = vpow2.f32 %v8885_v44 }
0x1a7e   :  { %12713 = vpow2.f32 %v8886_v4  ;;  %v17726_v4 = vmov 0.0  }
0x1a7f   :  { %12715 = vpow2.f32 %v8884_v54  ;;  %v17727_v54 = vld [vmem:[#allocation65_spill] sm:$0xff] }
0x1a84   :  { %v12706_v50 = vpop.eup %12705 }
0x1a85   :  { %v12708_v15 = vpop.eup %12707  ;;  %4932 = vrot.lane.b32.xlu0 %v12706_v50, %s13105_s14 }
0x1a86   :  { %4934 = vrot.lane.b32.xlu1 %v12708_v15, %s13105_s14  ;;  %v12710_v42 = vpop.eup %12709 }
0x1a87   :  { %v12712_v46 = vpop.eup %12711 }
0x1a88   :  { %v12714_v3 = vpop.eup %12713  ;;  %v4891_v2 = vadd.f32 1.0, %v12712_v46  ;;  %v17728_v46 = vld [vmem:[#allocation66_spill] sm:$0xff] }
0x1a89   :  { %4936 = vrot.lane.b32.xlu0 %v12710_v42, %s13105_s14  ;;  %v12716_v22 = vpop.eup %12715  ;;  %v4892_v53 = vadd.f32 1.0, %v12714_v3  ;;  %v17729_v3 = vld [vmem:[#allocation12_spill] sm:$0xff] }
0x1a8a   :  { %v4890_v36 = vadd.f32 1.0, %v12716_v22  ;;  %12717 = vrcp.f32 %v4891_v2  ;;  %v17730_v2 = vld [vmem:[#allocation13_spill] sm:$0xff]  ;;  %v17731_v22 = vld [vmem:[#allocation14_spill] sm:$0xff] }
0x1a8b   :  { %12719 = vrcp.f32 %v4892_v53  ;;  %v17732_v53 = vld [vmem:[#allocation15_spill] sm:$0xff] }
0x1a8c   :  { %12721 = vrcp.f32 %v4890_v36  ;;  %v17733_v36 = vld [vmem:[#allocation16_spill] sm:$0xff] }
0x1a94   :  { %v12718_v52 = vpop.eup %12717 }
0x1a95   :  { %v12720_v28 = vpop.eup %12719 }
0x1a96   :  { %v12722_v50 = vpop.eup %12721 }
0x1af7   :  { %v4933_v32 = vpop.permute.xlu0 %4932 }
0x1af8   :  { %v4935_v19 = vpop.permute.xlu1 %4934  ;;  %v15550_v42 = vmul.f32 %v12722_v50, %v4933_v32  ;;  %v17742_v50 = vld [vmem:[#allocation25_spill] sm:$0xff] }
0x1af9   :  { %v4938_v58 = vsel %vm1584_vm5, %v4933_v32, %v4935_v19  ;;  %v17734_v32 = vld [vmem:[#allocation17_spill] sm:$0xff] }
0x1afa   :  { %v15543_v1 = vmul.f32 %v12718_v52, %v4938_v58  ;;  %17725 = vst [vmem:[#allocation95_spill] sm:$0xff] %v15550_v42  ;;  %v17737_v52 = vld [vmem:[#allocation20_spill] sm:$0xff]  ;;  %v17738_v58 = vld [vmem:[#allocation21_spill] sm:$0xff] }
0x1afb   :  { %v4937_v48 = vpop.permute.xlu0 %4936 }
0x1afc   :  { %17723 = vst [vmem:[#allocation90_spill] sm:$0xff] %v15543_v1  ;;  %v4939_v51 = vsel %vm1584_vm5, %v4935_v19, %v4937_v48  ;;  %4975 = vrot.lane.b32.xlu1 %v15543_v1, %s13110_s25  ;;  %v17736_v19 = vld [vmem:[#allocation19_spill] sm:$0xff]  ;;  %v17739_v48 = vld [vmem:[#allocation22_spill] sm:$0xff] }
0x1afd   :  { %v15548_v15 = vmul.f32 %v12720_v28, %v4939_v51  ;;  %v17740_v28 = vld [vmem:[#allocation23_spill] sm:$0xff]  ;;  %v17741_v51 = vld [vmem:[#allocation24_spill] sm:$0xff] }
0x1afe   :  { %v17752_v1 = vld [vmem:[#allocation35_spill] sm:$0xff] }
0x1aff   :  { %17724 = vst [vmem:[#allocation94_spill] sm:$0xff] %v15548_v15  ;;  %4977 = vrot.lane.b32.xlu0 %v15548_v15, %s13110_s25  ;;  %v17750_v15 = vld [vmem:[#allocation33_spill] sm:$0xff] }
0x1b00   :  { %4973 = vrot.lane.b32.xlu1 %v15550_v42, %s13110_s25  ;;  %v17751_v42 = vld [vmem:[#allocation34_spill] sm:$0xff] }
0x1b6e   :  { %v4976_v0 = vpop.permute.xlu1 %4975 }
0x1b71   :  { %v4978_v12 = vpop.permute.xlu0 %4977 }
0x1b72   :  { %v4980_v9 = vsel %vm1626_vm6, %v4976_v0, %v4978_v12  ;;  %v4974_v47 = vpop.permute.xlu1 %4973  ;;  %v17744_v12 = vld [vmem:[#allocation27_spill] sm:$0xff] }
0x1b73   :  { %v4979_v44 = vsel %vm1626_vm6, %v4974_v47, %v4976_v0  ;;  %8888 = vmatprep.mubr.msk.f32.mxu1 %vm1206_vm4, %v4980_v9  ;;  %8889 = vmatprep.mubr.msk.f32.mxu0 %vm1206_vm4, %v4980_v9  ;;  %v17743_v0 = vld [vmem:[#allocation26_spill] sm:$0xff]  ;;  %v17746_v47 = vld [vmem:[#allocation29_spill] sm:$0xff] }
0x1b74   :  { %5049 = vmatmul.mubr.f32.vlgmr.msra.gmra.mrb[84].mxu1 %v4979_v44  ;;  %5120 = vmatmul.mubr.f32.vlgmr.msra.gmra.mrb[100].mxu0 %v4979_v44 }
0x1b75   :  { %10901 = vmatpush1.bf16.msra.mxu1 %v17258_v23  ;;  %10948 = vmatpush1.bf16.msra.mxu0 %v17259_v13 }
0x1b76   :  { %8890 = vmatprep.mubr.msk.f32.mxu1 %vm1206_vm4, %v4980_v9  ;;  %8891 = vmatprep.mubr.msk.f32.mxu0 %vm1206_vm4, %v4980_v9  ;;  %v17745_v9 = vld [vmem:[#allocation28_spill] sm:$0xff] }
0x1b77   :  { %10903 = vmatprep.subr.bf16.mxu1 %v17260_v35  ;;  %10949 = vmatprep.subr.bf16.mxu0 %v17227_v25 }
0x1b79   :  { %10905 = vmatpush1.bf16.msra.mxu1 %v17261_v55  ;;  %10951 = vmatpush1.bf16.msra.mxu0 %v17262_v37 }
0x1b7a   :  { %10907 = vmatprep.subr.bf16.mxu1 %v17263_v5  ;;  %10952 = vmatprep.subr.bf16.mxu0 %v17227_v25 }
0x1b7d   :  { %10909 = vmatpush1.bf16.msra.mxu1 %v17264_v43  ;;  %10954 = vmatpush1.bf16.msra.mxu0 %v17265_v20 }
0x1b7e   :  { %10911 = vmatprep.subr.bf16.mxu1 %v17266_v21  ;;  %10955 = vmatprep.subr.bf16.mxu0 %v17227_v25 }
0x1b81   :  { %10913 = vmatpush1.bf16.msra.mxu1 %v17267_v14  ;;  %10957 = vmatpush1.bf16.msra.mxu0 %v17268_v33 }
0x1b82   :  { %10915 = vmatprep.subr.bf16.mxu1 %v17269_v62  ;;  %10958 = vmatprep.subr.bf16.mxu0 %v17227_v25 }
0x1b85   :  { %10917 = vmatpush1.bf16.msra.mxu1 %v17270_v59  ;;  %10960 = vmatpush1.bf16.msra.mxu0 %v17271_v16 }
0x1b86   :  { %10919 = vmatprep.subr.bf16.mxu1 %v17315_v61  ;;  %10961 = vmatprep.subr.bf16.mxu0 %v17227_v25 }
0x1b89   :  { %10921 = vmatpush1.bf16.msra.mxu1 %v17273_v39  ;;  %10963 = vmatpush1.bf16.msra.mxu0 %v17316_v57 }
0x1b8a   :  { %10923 = vmatprep.subr.bf16.mxu1 %v17317_v18  ;;  %10964 = vmatprep.subr.bf16.mxu0 %v17227_v25 }
0x1b8d   :  { %10925 = vmatpush1.bf16.msra.mxu1 %v17275_v11  ;;  %10966 = vmatpush1.bf16.msra.mxu0 %v13975_v40 }
0x1b8e   :  { %10927 = vmatprep.subr.bf16.mxu1 %v17276_v56  ;;  %10967 = vmatprep.subr.bf16.mxu0 %v17227_v25 }
0x1b91   :  { %10929 = vmatpush1.bf16.msra.mxu1 %v17277_v8  ;;  %10969 = vmatpush1.bf16.msra.mxu0 %v13985_v29 }
0x1b92   :  { %10931 = vmatprep.subr.bf16.mxu1 %v17278_v63  ;;  %10970 = vmatprep.subr.bf16.mxu0 %v17227_v25 }
0x1b95   :  { %10933 = vmatpush1.bf16.msra.mxu1 %v17279_v24  ;;  %10972 = vmatpush1.bf16.msra.mxu0 %v17318_v30 }
0x1b96   :  { %10935 = vmatprep.subr.bf16.mxu1 %v17319_v38  ;;  %10973 = vmatprep.subr.bf16.mxu0 %v17227_v25 }
0x1b99   :  { %10937 = vmatpush1.bf16.msra.mxu1 %v13971_v10  ;;  %10975 = vmatpush1.bf16.msra.mxu0 %v14000_v17 }
0x1b9a   :  { %10939 = vmatprep.subr.bf16.mxu1 %v17320_v49  ;;  %10976 = vmatprep.subr.bf16.mxu0 %v17227_v25 }
0x1b9d   :  { %10941 = vmatpush1.bf16.msra.mxu1 %v17321_v34  ;;  %10978 = vmatpush1.bf16.msra.mxu0 %v14005_v31 }
0x1b9e   :  { %10943 = vmatprep.subr.bf16.mxu1 %v13987_v26  ;;  %10979 = vmatprep.subr.bf16.mxu0 %v17227_v25 }
0x1ba1   :  { %10945 = vmatpush1.bf16.msra.mxu1 %v17281_v6  ;;  %10981 = vmatpush1.bf16.msra.mxu0 %v14012_v27 }
0x1ba2   :  { %5174 = vmatprep.subr.mxu1 %v15290_v41  ;;  %5245 = vmatprep.subr.mxu0 %v17726_v4  ;;  %v17735_v41 = vld [vmem:[#allocation18_spill] sm:$0xff] }
0x1ba5   :  { %5175 = vmatpush1.msra.mxu1 %v17727_v54  ;;  %5246 = vmatpush1.msra.mxu0 %v17728_v46  ;;  %v17748_v54 = vld [vmem:[#allocation31_spill] sm:$0xff]  ;;  %v17749_v46 = vld [vmem:[#allocation32_spill] sm:$0xff] }
0x1ba6   :  { %5191 = vmatmul.mubr.f32.vlgmr.msra.gmra.mrb[86].mxu1 %v4979_v44  ;;  %5262 = vmatmul.mubr.f32.vlgmr.msra.gmra.mrb[102].mxu0 %v4979_v44  ;;  %v17747_v44 = vld [vmem:[#allocation30_spill] sm:$0xff] }
0x1ba7   :  { %10983 = vmatprep.subr.bf16.mxu1 %v17729_v3  ;;  %11031 = vmatprep.subr.bf16.mxu0 %v17730_v2 }
0x1ba8   :  { %10985 = vmatpush1.bf16.msra.mxu1 %v17731_v22  ;;  %11033 = vmatpush1.bf16.msra.mxu0 %v17732_v53 }
0x1ba9   :  { %10987 = vmatprep.subr.bf16.mxu1 %v17733_v36  ;;  %11035 = vmatprep.subr.bf16.mxu0 %v17734_v32 }
0x1bac   :  { %10989 = vmatpush1.bf16.msra.mxu1 %v17735_v41  ;;  %11037 = vmatpush1.bf16.msra.mxu0 %v17736_v19 }
0x1bad   :  { %10991 = vmatprep.subr.bf16.mxu1 %v17737_v52  ;;  %11039 = vmatprep.subr.bf16.mxu0 %v17738_v58  ;;  %v4964_v58 = vld [vmem:[#allocation2 + $0x200] sm:$0xff]  ;;  %v4963_v52 = vld [vmem:[#allocation2 + $0x1f8] sm:$0xff] }
0x1bb0   :  { %10993 = vmatpush1.bf16.msra.mxu1 %v17739_v48  ;;  %11041 = vmatpush1.bf16.msra.mxu0 %v17740_v28 }
0x1bb1   :  { %10995 = vmatprep.subr.bf16.mxu1 %v17741_v51  ;;  %11043 = vmatprep.subr.bf16.mxu0 %v17742_v50  ;;  %v17753_v50 = vld [vmem:[#allocation36_spill] sm:$0xff] }
0x1bb4   :  { %10997 = vmatpush1.bf16.msra.mxu1 %v17743_v0  ;;  %11045 = vmatpush1.bf16.msra.mxu0 %v17744_v12  ;;  %v17754_v0 = vld [vmem:[#allocation37_spill] sm:$0xff]  ;;  %v17755_v12 = vld [vmem:[#allocation38_spill] sm:$0xff] }
0x1bb5   :  { %10999 = vmatprep.subr.bf16.mxu1 %v17745_v9  ;;  %11047 = vmatprep.subr.bf16.mxu0 %v17746_v47  ;;  %v17756_v9 = vld [vmem:[#allocation39_spill] sm:$0xff]  ;;  %v17757_v47 = vld [vmem:[#allocation40_spill] sm:$0xff] }
0x1bb8   :  { %11001 = vmatpush1.bf16.msra.mxu1 %v17747_v44  ;;  %11049 = vmatpush1.bf16.msra.mxu0 %v17748_v54  ;;  %v17758_v44 = vld [vmem:[#allocation41_spill] sm:$0xff]  ;;  %v17759_v54 = vld [vmem:[#allocation42_spill] sm:$0xff] }
0x1bb9   :  { %11003 = vmatprep.subr.bf16.mxu1 %v17749_v46  ;;  %11051 = vmatprep.subr.bf16.mxu0 %v17750_v15  ;;  %v17760_v46 = vld [vmem:[#allocation43_spill] sm:$0xff]  ;;  %v17761_v15 = vld [vmem:[#allocation44_spill] sm:$0xff] }
0x1bbc   :  { %11005 = vmatpush1.bf16.msra.mxu1 %v17751_v42  ;;  %11053 = vmatpush1.bf16.msra.mxu0 %v17752_v1  ;;  %v17762_v42 = vld [vmem:[#allocation45_spill] sm:$0xff]  ;;  %v17763_v1 = vld [vmem:[#allocation46_spill] sm:$0xff] }
0x1bbd   :  { %11007 = vmatprep.subr.bf16.mxu1 %v17753_v50  ;;  %11055 = vmatprep.subr.bf16.mxu0 %v17754_v0  ;;  %v17764_v50 = vld [vmem:[#allocation47_spill] sm:$0xff]  ;;  %v17765_v0 = vld [vmem:[#allocation48_spill] sm:$0xff] }
0x1bc0   :  { %11009 = vmatpush1.bf16.msra.mxu1 %v17755_v12  ;;  %11057 = vmatpush1.bf16.msra.mxu0 %v17756_v9  ;;  %v17766_v12 = vld [vmem:[#allocation49_spill] sm:$0xff]  ;;  %v17767_v9 = vld [vmem:[#allocation50_spill] sm:$0xff] }
0x1bc1   :  { %11011 = vmatprep.subr.bf16.mxu1 %v17757_v47  ;;  %11059 = vmatprep.subr.bf16.mxu0 %v17758_v44  ;;  %v17768_v47 = vld [vmem:[#allocation51_spill] sm:$0xff]  ;;  %v17769_v44 = vld [vmem:[#allocation52_spill] sm:$0xff] }
0x1bc4   :  { %11013 = vmatpush1.bf16.msra.mxu1 %v17759_v54  ;;  %11061 = vmatpush1.bf16.msra.mxu0 %v17760_v46  ;;  %v17770_v54 = vld [vmem:[#allocation53_spill] sm:$0xff]  ;;  %v17771_v46 = vld [vmem:[#allocation54_spill] sm:$0xff] }
0x1bc5   :  { %11015 = vmatprep.subr.bf16.mxu1 %v17761_v15  ;;  %11063 = vmatprep.subr.bf16.mxu0 %v17762_v42  ;;  %v17772_v15 = vld [vmem:[#allocation55_spill] sm:$0xff]  ;;  %v17773_v42 = vld [vmem:[#allocation56_spill] sm:$0xff] }
0x1bc8   :  { %11017 = vmatpush1.bf16.msra.mxu1 %v17763_v1  ;;  %11065 = vmatpush1.bf16.msra.mxu0 %v17764_v50  ;;  %v17774_v1 = vld [vmem:[#allocation57_spill] sm:$0xff]  ;;  %v17775_v50 = vld [vmem:[#allocation58_spill] sm:$0xff] }
0x1bc9   :  { %11019 = vmatprep.subr.bf16.mxu1 %v17765_v0  ;;  %11067 = vmatprep.subr.bf16.mxu0 %v17766_v12  ;;  %v17776_v0 = vld [vmem:[#allocation59_spill] sm:$0xff]  ;;  %v17777_v12 = vld [vmem:[#allocation74_spill] sm:$0xff] }
0x1bcc   :  { %11021 = vmatpush1.bf16.msra.mxu1 %v17767_v9  ;;  %11069 = vmatpush1.bf16.msra.mxu0 %v17768_v47  ;;  %v17778_v9 = vld [vmem:[#allocation67_spill] sm:$0xff] }
0x1bcd   :  { %11023 = vmatprep.subr.bf16.mxu1 %v17769_v44  ;;  %11071 = vmatprep.subr.bf16.mxu0 %v17770_v54  ;;  %v17779_v47 = vld [vmem:[#allocation79_spill] sm:$0xff]  ;;  %v17780_v44 = vld [vmem:[#allocation81_spill] sm:$0xff]  ;;  %v17781_v54 = vld [vmem:[#allocation62_spill] sm:$0xff] }
0x1bd0   :  { %11025 = vmatpush1.bf16.msra.mxu1 %v17771_v46  ;;  %11073 = vmatpush1.bf16.msra.mxu0 %v17772_v15 }
0x1bd1   :  { %11027 = vmatprep.subr.bf16.mxu1 %v17773_v42  ;;  %11075 = vmatprep.subr.bf16.mxu0 %v17774_v1  ;;  %v4966_v1 = vld [vmem:[#allocation2 + $0x210] sm:$0xff] }
0x1bd4   :  { %11029 = vmatpush1.bf16.msra.mxu1 %v17775_v50  ;;  %11077 = vmatpush1.bf16.msra.mxu0 %v17776_v0 }
0x1bd5   :  { %5451 = vmatprep.subr.mxu1 %v17777_v12  ;;  %5522 = vmatprep.subr.mxu0 %v17778_v9  ;;  %v4967_v12 = vld [vmem:[#allocation2 + $0x218] sm:$0xff] }
0x1bd8   :  { %5452 = vmatpush1.msra.mxu1 %v17779_v47  ;;  %5523 = vmatpush1.msra.mxu0 %v17780_v44 }
0x1bd9   :  { %11079 = vmatprep.subr.bf16.mxu1 %v17781_v54  ;;  %11126 = vmatprep.subr.bf16.mxu0 %v17227_v25 }
0x1c47   :  { %v5050_v15 = vpop.f32.mrb[84].mxu1  ;;  %v5121_v42 = vpop.f32.mrb[100].mxu0 }
0x1c48   :  { %v5052_v46 = vpop.f32.mrb[85].mxu1  ;;  %v5123_v51 = vpop.f32.mrb[101].mxu0 }
0x1c49   :  { %v5270_v50 = vadd.f32 %v5123_v51, %v4966_v1  ;;  %v5268_v1 = vadd.f32 %v5052_v46, %v4964_v58  ;;  %v5267_v51 = vadd.f32 %v5050_v15, %v4963_v52  ;;  %v4965_v15 = vld [vmem:[#allocation2 + $0x208] sm:$0xff] }
0x1c4b   :  { %12723 = vtanh.f32 %v5270_v50  ;;  %v8893_v19 = vmul.f32 -1.442695, %v5268_v1  ;;  %v8892_v41 = vmul.f32 -1.442695, %v5267_v51  ;;  %v8895_v52 = vmul.f32 -1.442695, %v5270_v50 }
0x1c55   :  { %v12724_v0 = vpop.eup %12723 }
0x1c56   :  { %5323 = vrot.lane.b32.xlu0 %v12724_v0, %s13108_s3 }
0x1c79   :  { %v5192_v9 = vpop.f32.mrb[86].mxu1  ;;  %v15667_v28 = vpop.f32.mrb[102].mxu0 }
0x1c7a   :  { %v15669_v47 = vadd.f32 %v5192_v9, %v4967_v12  ;;  %v5194_v44 = vpop.f32.mrb[87].mxu1  ;;  %v5265_v54 = vpop.f32.mrb[103].mxu0 }
0x1c7c   :  { %12725 = vtanh.f32 %v15669_v47 }
0x1c7d   :  { %12727 = vpow2.f32 %v8893_v19 }
0x1c7e   :  { %12729 = vpow2.f32 %v8892_v41  ;;  %v5269_v41 = vadd.f32 %v5121_v42, %v4965_v15  ;;  %v4969_v15 = vld [vmem:[#allocation2 + $0x228] sm:$0xff] }
0x1c80   :  { %v8894_v19 = vmul.f32 -1.442695, %v5269_v41  ;;  %v5273_v41 = vadd.f32 %v15667_v28, %v4969_v15 }
0x1c86   :  { %v12726_v48 = vpop.eup %12725 }
0x1c87   :  { %5325 = vrot.lane.b32.xlu1 %v12726_v48, %s13108_s3  ;;  %v12728_v0 = vpop.eup %12727 }
0x1c88   :  { %v12730_v32 = vpop.eup %12729  ;;  %v5281_v36 = vadd.f32 1.0, %v12728_v0 }
0x1c89   :  { %v5280_v12 = vadd.f32 1.0, %v12730_v32 }
0x1c8a   :  { %12731 = vrcp.f32 %v5281_v36 }
0x1c8b   :  { %12733 = vrcp.f32 %v5280_v12 }
0x1c8c   :  { %12735 = vpow2.f32 %v8894_v19 }
0x1c8d   :  { %12737 = vpow2.f32 %v8895_v52  ;;  %v8898_v52 = vmul.f32 -1.442695, %v5273_v41 }
0x1c94   :  { %v12732_v54 = vpop.eup %12731 }
0x1c95   :  { %v12734_v22 = vpop.eup %12733 }
0x1c96   :  { %v12736_v36 = vpop.eup %12735 }
0x1c97   :  { %v12738_v32 = vpop.eup %12737  ;;  %v5292_v58 = vadd.f32 1.0, %v12736_v36  ;;  %v8896_v36 = vmul.f32 -1.442695, %v15669_v47 }
0x1c98   :  { %v5293_v46 = vadd.f32 1.0, %v12738_v32 }
0x1c99   :  { %12739 = vrcp.f32 %v5292_v58 }
0x1c9a   :  { %12741 = vrcp.f32 %v5293_v46 }
0x1ca3   :  { %v12740_v1 = vpop.eup %12739 }
0x1ca4   :  { %v12742_v51 = vpop.eup %12741 }
0x1ca5   :  { %v5320_v42 = vmul.f32 %v12742_v51, %v15532_v45  ;;  %v4968_v45 = vld [vmem:[#allocation2 + $0x220] sm:$0xff] }
0x1cc8   :  { %v5324_v9 = vpop.permute.xlu0 %5323 }
0x1cf9   :  { %v5326_v53 = vpop.permute.xlu1 %5325 }
0x1cfa   :  { %v5327_v48 = vsel %vm1553_vm3, %v5324_v9, %v5326_v53  ;;  %v5331_v2 = vmul.f32 %v12732_v54, %v5326_v53 }
0x1cfb   :  { %v5330_v3 = vmul.f32 %v12734_v22, %v5327_v48  ;;  %v5318_v22 = vmul.f32 %v12732_v54, %v15528_v60  ;;  %v5272_v48 = vadd.f32 %v5194_v44, %v4968_v45 }
0x1cfc   :  { %5336 = vrot.lane.b32.xlu1 %v5331_v2, %s13109_s24  ;;  %v5319_v2 = vmul.f32 %v12740_v1, %v15530_v7 }
0x1cfd   :  { %5334 = vrot.lane.b32.xlu0 %v5330_v3, %s13109_s24  ;;  %v8897_v19 = vmul.f32 -1.442695, %v5272_v48 }
0x1d6e   :  { %v5337_v53 = vpop.permute.xlu1 %5336 }
0x1d6f   :  { %v5335_v3 = vpop.permute.xlu0 %5334  ;;  %v15684_v9 = vadd.f32 %v5337_v53, %v5320_v42 }
0x1d70   :  { %v5338_v50 = vsel %vm1206_vm4, %v5335_v3, %v5337_v53  ;;  %v15680_v0 = vadd.f32 %v5335_v3, %v5318_v22 }
0x1d71   :  { %v15682_v12 = vadd.f32 %v5338_v50, %v5319_v2 }
0x1d72   :  { %12743 = vtanh.f32 %v15680_v0 }
0x1d73   :  { %12745 = vtanh.f32 %v15682_v12 }
0x1d74   :  { %12747 = vtanh.f32 %v15684_v9 }
0x1d75   :  { %12749 = vpow2.f32 %v8897_v19 }
0x1d76   :  { %12751 = vpow2.f32 %v8898_v52  ;;  %v15760_v52 = vld [vmem:[#allocation3 + $0x568] sm:$0xff] }
0x1d77   :  { %12753 = vpow2.f32 %v8896_v36  ;;  %v15764_v36 = vld [vmem:[#allocation3 + $0x560] sm:$0xff] }
0x1d78   :  { %17785 = vst [vmem:[#allocation67_spill] sm:$0xff] %v15764_v36 }
0x1d7c   :  { %v12744_v60 = vpop.eup %12743 }
0x1d7d   :  { %v12746_v54 = vpop.eup %12745  ;;  %5351 = vrot.lane.b32.xlu0 %v12744_v60, %s13105_s14 }
0x1d7e   :  { %5353 = vrot.lane.b32.xlu1 %v12746_v54, %s13105_s14  ;;  %v12748_v7 = vpop.eup %12747 }
0x1d7f   :  { %v12750_v32 = vpop.eup %12749 }
0x1d80   :  { %v12752_v58 = vpop.eup %12751  ;;  %v5310_v46 = vadd.f32 1.0, %v12750_v32  ;;  %v15767_v32 = vld [vmem:[#allocation3 + $0x570] sm:$0xff] }
0x1d81   :  { %5355 = vrot.lane.b32.xlu0 %v12748_v7, %s13105_s14  ;;  %v12754_v1 = vpop.eup %12753  ;;  %v5311_v51 = vadd.f32 1.0, %v12752_v58  ;;  %17786 = vst [vmem:[#allocation79_spill] sm:$0xff] %v15767_v32  ;;  %v17787_v58 = vld [vmem:[#allocation12_spill] sm:$0xff] }
0x1d82   :  { %v5309_v53 = vadd.f32 1.0, %v12754_v1  ;;  %12755 = vrcp.f32 %v5310_v46  ;;  %v17788_v46 = vld [vmem:[#allocation13_spill] sm:$0xff]  ;;  %v17789_v1 = vld [vmem:[#allocation14_spill] sm:$0xff] }
0x1d83   :  { %12757 = vrcp.f32 %v5311_v51  ;;  %v17790_v51 = vld [vmem:[#allocation15_spill] sm:$0xff] }
0x1d84   :  { %12759 = vrcp.f32 %v5309_v53  ;;  %v17791_v53 = vld [vmem:[#allocation16_spill] sm:$0xff] }
0x1d8c   :  { %v12756_v2 = vpop.eup %12755 }
0x1d8d   :  { %v12758_v42 = vpop.eup %12757 }
0x1d8e   :  { %v12760_v60 = vpop.eup %12759 }
0x1def   :  { %v5352_v44 = vpop.permute.xlu0 %5351 }
0x1df0   :  { %v5354_v22 = vpop.permute.xlu1 %5353  ;;  %v15702_v7 = vmul.f32 %v12760_v60, %v5352_v44  ;;  %v17799_v60 = vld [vmem:[#allocation24_spill] sm:$0xff] }
0x1df1   :  { %v5357_v28 = vsel %vm1584_vm5, %v5352_v44, %v5354_v22  ;;  %v17792_v44 = vld [vmem:[#allocation17_spill] sm:$0xff] }
0x1df2   :  { %v15695_v3 = vmul.f32 %v12756_v2, %v5357_v28  ;;  %17784 = vst [vmem:[#allocation74_spill] sm:$0xff] %v15702_v7  ;;  %v17794_v2 = vld [vmem:[#allocation19_spill] sm:$0xff]  ;;  %v17795_v28 = vld [vmem:[#allocation20_spill] sm:$0xff] }
0x1df3   :  { %v5356_v47 = vpop.permute.xlu0 %5355 }
0x1df4   :  { %17782 = vst [vmem:[#allocation65_spill] sm:$0xff] %v15695_v3  ;;  %v5358_v50 = vsel %vm1584_vm5, %v5354_v22, %v5356_v47  ;;  %5394 = vrot.lane.b32.xlu1 %v15695_v3, %s13110_s25  ;;  %v17793_v22 = vld [vmem:[#allocation18_spill] sm:$0xff]  ;;  %v17796_v47 = vld [vmem:[#allocation21_spill] sm:$0xff]  ;;  %v17807_v3 = vld [vmem:[#allocation32_spill] sm:$0xff] }
0x1df5   :  { %v15700_v54 = vmul.f32 %v12758_v42, %v5358_v50  ;;  %v17797_v42 = vld [vmem:[#allocation22_spill] sm:$0xff]  ;;  %v17798_v50 = vld [vmem:[#allocation23_spill] sm:$0xff] }
0x1df7   :  { %17783 = vst [vmem:[#allocation66_spill] sm:$0xff] %v15700_v54  ;;  %5396 = vrot.lane.b32.xlu0 %v15700_v54, %s13110_s25  ;;  %v17805_v54 = vld [vmem:[#allocation30_spill] sm:$0xff] }
0x1df8   :  { %5392 = vrot.lane.b32.xlu1 %v15702_v7, %s13110_s25  ;;  %v17806_v7 = vld [vmem:[#allocation31_spill] sm:$0xff] }
0x1e66   :  { %v5395_v45 = vpop.permute.xlu1 %5394 }
0x1e69   :  { %v5397_v48 = vpop.permute.xlu0 %5396 }
0x1e6a   :  { %v5399_v15 = vsel %vm1626_vm6, %v5395_v45, %v5397_v48  ;;  %v5393_v41 = vpop.permute.xlu1 %5392  ;;  %v17801_v48 = vld [vmem:[#allocation26_spill] sm:$0xff] }
0x1e6b   :  { %v5398_v19 = vsel %vm1626_vm6, %v5393_v41, %v5395_v45  ;;  %8900 = vmatprep.mubr.msk.f32.mxu1 %vm1206_vm4, %v5399_v15  ;;  %8901 = vmatprep.mubr.msk.f32.mxu0 %vm1206_vm4, %v5399_v15  ;;  %v17800_v45 = vld [vmem:[#allocation25_spill] sm:$0xff]  ;;  %v17803_v41 = vld [vmem:[#allocation28_spill] sm:$0xff] }
0x1e6c   :  { %5468 = vmatmul.mubr.f32.vlgmr.msra.gmra.mrb[88].mxu1 %v5398_v19  ;;  %5539 = vmatmul.mubr.f32.vlgmr.msra.gmra.mrb[104].mxu0 %v5398_v19 }
0x1e6d   :  { %11081 = vmatpush1.bf16.msra.mxu1 %v17258_v23  ;;  %11128 = vmatpush1.bf16.msra.mxu0 %v17259_v13 }
0x1e6e   :  { %8902 = vmatprep.mubr.msk.f32.mxu1 %vm1206_vm4, %v5399_v15  ;;  %8903 = vmatprep.mubr.msk.f32.mxu0 %vm1206_vm4, %v5399_v15  ;;  %v17802_v15 = vld [vmem:[#allocation27_spill] sm:$0xff] }
0x1e6f   :  { %11083 = vmatprep.subr.bf16.mxu1 %v17260_v35  ;;  %11129 = vmatprep.subr.bf16.mxu0 %v17227_v25 }
0x1e71   :  { %11085 = vmatpush1.bf16.msra.mxu1 %v17261_v55  ;;  %11131 = vmatpush1.bf16.msra.mxu0 %v17262_v37 }
0x1e72   :  { %11087 = vmatprep.subr.bf16.mxu1 %v17263_v5  ;;  %11132 = vmatprep.subr.bf16.mxu0 %v17227_v25 }
0x1e75   :  { %11089 = vmatpush1.bf16.msra.mxu1 %v17264_v43  ;;  %11134 = vmatpush1.bf16.msra.mxu0 %v17265_v20 }
0x1e76   :  { %11091 = vmatprep.subr.bf16.mxu1 %v17266_v21  ;;  %11135 = vmatprep.subr.bf16.mxu0 %v17227_v25 }
0x1e79   :  { %11093 = vmatpush1.bf16.msra.mxu1 %v17267_v14  ;;  %11137 = vmatpush1.bf16.msra.mxu0 %v17268_v33 }
0x1e7a   :  { %11095 = vmatprep.subr.bf16.mxu1 %v17269_v62  ;;  %11138 = vmatprep.subr.bf16.mxu0 %v17227_v25 }
0x1e7d   :  { %11097 = vmatpush1.bf16.msra.mxu1 %v17270_v59  ;;  %11140 = vmatpush1.bf16.msra.mxu0 %v17271_v16 }
0x1e7e   :  { %11099 = vmatprep.subr.bf16.mxu1 %v17315_v61  ;;  %11141 = vmatprep.subr.bf16.mxu0 %v17227_v25 }
0x1e81   :  { %11101 = vmatpush1.bf16.msra.mxu1 %v17273_v39  ;;  %11143 = vmatpush1.bf16.msra.mxu0 %v17316_v57 }
0x1e82   :  { %11103 = vmatprep.subr.bf16.mxu1 %v17317_v18  ;;  %11144 = vmatprep.subr.bf16.mxu0 %v17227_v25 }
0x1e85   :  { %11105 = vmatpush1.bf16.msra.mxu1 %v17275_v11  ;;  %11146 = vmatpush1.bf16.msra.mxu0 %v13975_v40 }
0x1e86   :  { %11107 = vmatprep.subr.bf16.mxu1 %v17276_v56  ;;  %11147 = vmatprep.subr.bf16.mxu0 %v17227_v25 }
0x1e89   :  { %11109 = vmatpush1.bf16.msra.mxu1 %v17277_v8  ;;  %11149 = vmatpush1.bf16.msra.mxu0 %v13985_v29 }
0x1e8a   :  { %11111 = vmatprep.subr.bf16.mxu1 %v17278_v63  ;;  %11150 = vmatprep.subr.bf16.mxu0 %v17227_v25 }
0x1e8d   :  { %11113 = vmatpush1.bf16.msra.mxu1 %v17279_v24  ;;  %11152 = vmatpush1.bf16.msra.mxu0 %v17318_v30 }
0x1e8e   :  { %11115 = vmatprep.subr.bf16.mxu1 %v17319_v38  ;;  %11153 = vmatprep.subr.bf16.mxu0 %v17227_v25 }
0x1e91   :  { %11117 = vmatpush1.bf16.msra.mxu1 %v13971_v10  ;;  %11155 = vmatpush1.bf16.msra.mxu0 %v14000_v17 }
0x1e92   :  { %11119 = vmatprep.subr.bf16.mxu1 %v17320_v49  ;;  %11156 = vmatprep.subr.bf16.mxu0 %v17227_v25 }
0x1e95   :  { %11121 = vmatpush1.bf16.msra.mxu1 %v17321_v34  ;;  %11158 = vmatpush1.bf16.msra.mxu0 %v14005_v31 }
0x1e96   :  { %11123 = vmatprep.subr.bf16.mxu1 %v13987_v26  ;;  %11159 = vmatprep.subr.bf16.mxu0 %v17227_v25 }
0x1e99   :  { %11125 = vmatpush1.bf16.msra.mxu1 %v17281_v6  ;;  %11161 = vmatpush1.bf16.msra.mxu0 %v14012_v27 }
0x1e9a   :  { %5593 = vmatprep.subr.mxu1 %v15760_v52  ;;  %5664 = vmatprep.subr.mxu0 %v17726_v4 }
0x1e9d   :  { %5594 = vmatpush1.msra.mxu1 %v15764_v36  ;;  %5665 = vmatpush1.msra.mxu0 %v15767_v32 }
0x1e9e   :  { %5610 = vmatmul.mubr.f32.vlgmr.msra.gmra.mrb[90].mxu1 %v5398_v19  ;;  %5681 = vmatmul.mubr.f32.vlgmr.msra.gmra.mrb[106].mxu0 %v5398_v19  ;;  %v17804_v19 = vld [vmem:[#allocation29_spill] sm:$0xff] }
0x1e9f   :  { %11163 = vmatprep.subr.bf16.mxu1 %v17787_v58  ;;  %11211 = vmatprep.subr.bf16.mxu0 %v17788_v46 }
0x1ea0   :  { %11165 = vmatpush1.bf16.msra.mxu1 %v17789_v1  ;;  %11213 = vmatpush1.bf16.msra.mxu0 %v17790_v51 }
0x1ea1   :  { %11167 = vmatprep.subr.bf16.mxu1 %v17791_v53  ;;  %11215 = vmatprep.subr.bf16.mxu0 %v17792_v44  ;;  %v5382_v44 = vld [vmem:[#allocation2 + $0x230] sm:$0xff] }
0x1ea4   :  { %11169 = vmatpush1.bf16.msra.mxu1 %v17793_v22  ;;  %11217 = vmatpush1.bf16.msra.mxu0 %v17794_v2  ;;  %v5383_v22 = vld [vmem:[#allocation2 + $0x238] sm:$0xff] }
0x1ea5   :  { %11171 = vmatprep.subr.bf16.mxu1 %v17795_v28  ;;  %11219 = vmatprep.subr.bf16.mxu0 %v17796_v47 }
0x1ea8   :  { %11173 = vmatpush1.bf16.msra.mxu1 %v17797_v42  ;;  %11221 = vmatpush1.bf16.msra.mxu0 %v17798_v50  ;;  %v17808_v42 = vld [vmem:[#allocation33_spill] sm:$0xff]  ;;  %v17809_v50 = vld [vmem:[#allocation34_spill] sm:$0xff] }
0x1ea9   :  { %11175 = vmatprep.subr.bf16.mxu1 %v17799_v60  ;;  %11223 = vmatprep.subr.bf16.mxu0 %v17800_v45  ;;  %v17810_v60 = vld [vmem:[#allocation35_spill] sm:$0xff]  ;;  %v17811_v45 = vld [vmem:[#allocation36_spill] sm:$0xff] }
0x1eac   :  { %11177 = vmatpush1.bf16.msra.mxu1 %v17801_v48  ;;  %11225 = vmatpush1.bf16.msra.mxu0 %v17802_v15  ;;  %v17812_v48 = vld [vmem:[#allocation37_spill] sm:$0xff]  ;;  %v17813_v15 = vld [vmem:[#allocation38_spill] sm:$0xff] }
0x1ead   :  { %11179 = vmatprep.subr.bf16.mxu1 %v17803_v41  ;;  %11227 = vmatprep.subr.bf16.mxu0 %v17804_v19  ;;  %v17814_v41 = vld [vmem:[#allocation39_spill] sm:$0xff]  ;;  %v17815_v19 = vld [vmem:[#allocation40_spill] sm:$0xff] }
0x1eb0   :  { %11181 = vmatpush1.bf16.msra.mxu1 %v17805_v54  ;;  %11229 = vmatpush1.bf16.msra.mxu0 %v17806_v7  ;;  %v17816_v54 = vld [vmem:[#allocation41_spill] sm:$0xff]  ;;  %v17817_v7 = vld [vmem:[#allocation42_spill] sm:$0xff] }
0x1eb1   :  { %11183 = vmatprep.subr.bf16.mxu1 %v17807_v3  ;;  %11231 = vmatprep.subr.bf16.mxu0 %v17808_v42  ;;  %v17818_v3 = vld [vmem:[#allocation43_spill] sm:$0xff]  ;;  %v17819_v42 = vld [vmem:[#allocation44_spill] sm:$0xff] }
0x1eb4   :  { %11185 = vmatpush1.bf16.msra.mxu1 %v17809_v50  ;;  %11233 = vmatpush1.bf16.msra.mxu0 %v17810_v60  ;;  %v17820_v50 = vld [vmem:[#allocation45_spill] sm:$0xff]  ;;  %v17821_v60 = vld [vmem:[#allocation46_spill] sm:$0xff] }
0x1eb5   :  { %11187 = vmatprep.subr.bf16.mxu1 %v17811_v45  ;;  %11235 = vmatprep.subr.bf16.mxu0 %v17812_v48  ;;  %v17822_v45 = vld [vmem:[#allocation47_spill] sm:$0xff]  ;;  %v17823_v48 = vld [vmem:[#allocation48_spill] sm:$0xff] }
0x1eb8   :  { %11189 = vmatpush1.bf16.msra.mxu1 %v17813_v15  ;;  %11237 = vmatpush1.bf16.msra.mxu0 %v17814_v41  ;;  %v17824_v15 = vld [vmem:[#allocation49_spill] sm:$0xff]  ;;  %v17825_v41 = vld [vmem:[#allocation50_spill] sm:$0xff] }
0x1eb9   :  { %11191 = vmatprep.subr.bf16.mxu1 %v17815_v19  ;;  %11239 = vmatprep.subr.bf16.mxu0 %v17816_v54  ;;  %v17826_v19 = vld [vmem:[#allocation51_spill] sm:$0xff]  ;;  %v17827_v54 = vld [vmem:[#allocation52_spill] sm:$0xff] }
0x1ebc   :  { %11193 = vmatpush1.bf16.msra.mxu1 %v17817_v7  ;;  %11241 = vmatpush1.bf16.msra.mxu0 %v17818_v3  ;;  %v17828_v7 = vld [vmem:[#allocation53_spill] sm:$0xff]  ;;  %v17829_v3 = vld [vmem:[#allocation54_spill] sm:$0xff] }
0x1ebd   :  { %11195 = vmatprep.subr.bf16.mxu1 %v17819_v42  ;;  %11243 = vmatprep.subr.bf16.mxu0 %v17820_v50  ;;  %v17830_v42 = vld [vmem:[#allocation55_spill] sm:$0xff]  ;;  %v17831_v50 = vld [vmem:[#allocation56_spill] sm:$0xff] }
0x1ec0   :  { %11197 = vmatpush1.bf16.msra.mxu1 %v17821_v60  ;;  %11245 = vmatpush1.bf16.msra.mxu0 %v17822_v45  ;;  %v17832_v60 = vld [vmem:[#allocation57_spill] sm:$0xff]  ;;  %v17833_v45 = vld [vmem:[#allocation58_spill] sm:$0xff] }
0x1ec1   :  { %11199 = vmatprep.subr.bf16.mxu1 %v17823_v48  ;;  %11247 = vmatprep.subr.bf16.mxu0 %v17824_v15  ;;  %v17834_v48 = vld [vmem:[#allocation59_spill] sm:$0xff]  ;;  %v15818_v15 = vld [vmem:[#allocation3 + $0x548] sm:$0xff] }
0x1ec2   :  { %17835 = vst [vmem:[#allocation81_spill] sm:$0xff] %v15818_v15 }
0x1ec4   :  { %11201 = vmatpush1.bf16.msra.mxu1 %v17825_v41  ;;  %11249 = vmatpush1.bf16.msra.mxu0 %v17826_v19  ;;  %v15821_v19 = vld [vmem:[#allocation3 + $0x558] sm:$0xff]  ;;  %v5386_v41 = vld [vmem:[#allocation2 + $0x250] sm:$0xff] }
0x1ec5   :  { %11203 = vmatprep.subr.bf16.mxu1 %v17827_v54  ;;  %11251 = vmatprep.subr.bf16.mxu0 %v17828_v7  ;;  %17836 = vst [vmem:[#allocation96_spill] sm:$0xff] %v15821_v19  ;;  %v15824_v7 = vld [vmem:[#allocation3 + $0x540] sm:$0xff] }
0x1ec6   :  { %17837 = vst [vmem:[#allocation97_spill] sm:$0xff] %v15824_v7 }
0x1ec8   :  { %11205 = vmatpush1.bf16.msra.mxu1 %v17829_v3  ;;  %11253 = vmatpush1.bf16.msra.mxu0 %v17830_v42  ;;  %v15827_v42 = vld [vmem:[#allocation3 + $0x550] sm:$0xff] }
0x1ec9   :  { %11207 = vmatprep.subr.bf16.mxu1 %v17831_v50  ;;  %11255 = vmatprep.subr.bf16.mxu0 %v17832_v60  ;;  %17838 = vst [vmem:[#allocation98_spill] sm:$0xff] %v15827_v42  ;;  %v17839_v60 = vld [vmem:[#allocation62_spill] sm:$0xff] }
0x1ecc   :  { %11209 = vmatpush1.bf16.msra.mxu1 %v17833_v45  ;;  %11257 = vmatpush1.bf16.msra.mxu0 %v17834_v48 }
0x1ecd   :  { %5870 = vmatprep.subr.mxu1 %v15818_v15  ;;  %5941 = vmatprep.subr.mxu0 %v15821_v19  ;;  %v5385_v15 = vld [vmem:[#allocation2 + $0x248] sm:$0xff] }
0x1ed0   :  { %5871 = vmatpush1.msra.mxu1 %v15824_v7  ;;  %5942 = vmatpush1.msra.mxu0 %v15827_v42 }
0x1ed1   :  { %11259 = vmatprep.subr.bf16.mxu1 %v17839_v60  ;;  %11306 = vmatprep.subr.bf16.mxu0 %v17227_v25 }
0x1f3f   :  { %v5469_v48 = vpop.f32.mrb[88].mxu1  ;;  %v5540_v45 = vpop.f32.mrb[104].mxu0 }
0x1f40   :  { %v5471_v50 = vpop.f32.mrb[89].mxu1  ;;  %v5542_v3 = vpop.f32.mrb[105].mxu0 }
0x1f41   :  { %v5689_v54 = vadd.f32 %v5542_v3, %v5385_v15  ;;  %v5687_v3 = vadd.f32 %v5471_v50, %v5383_v22  ;;  %v5686_v15 = vadd.f32 %v5469_v48, %v5382_v44 }
0x1f43   :  { %12761 = vtanh.f32 %v5689_v54  ;;  %v8905_v53 = vmul.f32 -1.442695, %v5687_v3  ;;  %v8904_v51 = vmul.f32 -1.442695, %v5686_v15  ;;  %v8907_v22 = vmul.f32 -1.442695, %v5689_v54 }
0x1f4d   :  { %v12762_v19 = vpop.eup %12761 }
0x1f4e   :  { %5742 = vrot.lane.b32.xlu0 %v12762_v19, %s13108_s3 }
0x1f71   :  { %v5611_v7 = vpop.f32.mrb[90].mxu1  ;;  %v15833_v47 = vpop.f32.mrb[106].mxu0 }
0x1f72   :  { %v15835_v28 = vadd.f32 %v5611_v7, %v5386_v41  ;;  %v5613_v42 = vpop.f32.mrb[91].mxu1  ;;  %v5684_v60 = vpop.f32.mrb[107].mxu0 }
0x1f74   :  { %12763 = vtanh.f32 %v15835_v28 }
0x1f75   :  { %12765 = vpow2.f32 %v8905_v53  ;;  %v5384_v53 = vld [vmem:[#allocation2 + $0x240] sm:$0xff] }
0x1f76   :  { %12767 = vpow2.f32 %v8904_v51  ;;  %v5688_v51 = vadd.f32 %v5540_v45, %v5384_v53  ;;  %v5388_v53 = vld [vmem:[#allocation2 + $0x260] sm:$0xff] }
0x1f78   :  { %v8906_v44 = vmul.f32 -1.442695, %v5688_v51  ;;  %v5692_v51 = vadd.f32 %v15833_v47, %v5388_v53 }
0x1f7e   :  { %v12764_v2 = vpop.eup %12763 }
0x1f7f   :  { %5744 = vrot.lane.b32.xlu1 %v12764_v2, %s13108_s3  ;;  %v12766_v19 = vpop.eup %12765 }
0x1f80   :  { %v12768_v1 = vpop.eup %12767  ;;  %v5700_v46 = vadd.f32 1.0, %v12766_v19 }
0x1f81   :  { %v5699_v7 = vadd.f32 1.0, %v12768_v1 }
0x1f82   :  { %12769 = vrcp.f32 %v5700_v46 }
0x1f83   :  { %12771 = vrcp.f32 %v5699_v7 }
0x1f84   :  { %12773 = vpow2.f32 %v8906_v44 }
0x1f85   :  { %12775 = vpow2.f32 %v8907_v22  ;;  %v8910_v22 = vmul.f32 -1.442695, %v5692_v51 }
0x1f8c   :  { %v12770_v60 = vpop.eup %12769 }
0x1f8d   :  { %v12772_v32 = vpop.eup %12771 }
0x1f8e   :  { %v12774_v46 = vpop.eup %12773 }
0x1f8f   :  { %v12776_v1 = vpop.eup %12775  ;;  %v5711_v50 = vadd.f32 1.0, %v12774_v46  ;;  %v8908_v46 = vmul.f32 -1.442695, %v15835_v28 }
0x1f90   :  { %v5712_v48 = vadd.f32 1.0, %v12776_v1 }
0x1f91   :  { %12777 = vrcp.f32 %v5711_v50 }
0x1f92   :  { %12779 = vrcp.f32 %v5712_v48 }
0x1f9b   :  { %v12778_v3 = vpop.eup %12777 }
0x1f9c   :  { %v12780_v15 = vpop.eup %12779 }
0x1f9d   :  { %v5739_v45 = vmul.f32 %v12780_v15, %v15684_v9  ;;  %v5387_v9 = vld [vmem:[#allocation2 + $0x258] sm:$0xff] }
0x1fc0   :  { %v5743_v41 = vpop.permute.xlu0 %5742 }
0x1ff1   :  { %v5745_v58 = vpop.permute.xlu1 %5744 }
0x1ff2   :  { %v5746_v2 = vsel %vm1553_vm3, %v5743_v41, %v5745_v58  ;;  %v5750_v36 = vmul.f32 %v12770_v60, %v5745_v58 }
0x1ff3   :  { %v5749_v4 = vmul.f32 %v12772_v32, %v5746_v2  ;;  %v5737_v32 = vmul.f32 %v12770_v60, %v15680_v0  ;;  %v5691_v2 = vadd.f32 %v5613_v42, %v5387_v9 }
0x1ff4   :  { %5755 = vrot.lane.b32.xlu1 %v5750_v36, %s13109_s24  ;;  %v5738_v36 = vmul.f32 %v12778_v3, %v15682_v12 }
0x1ff5   :  { %5753 = vrot.lane.b32.xlu0 %v5749_v4, %s13109_s24  ;;  %v8909_v44 = vmul.f32 -1.442695, %v5691_v2 }
0x2066   :  { %v5756_v58 = vpop.permute.xlu1 %5755 }
0x2067   :  { %v5754_v4 = vpop.permute.xlu0 %5753  ;;  %v15850_v41 = vadd.f32 %v5756_v58, %v5739_v45 }
0x2068   :  { %v5757_v54 = vsel %vm1206_vm4, %v5754_v4, %v5756_v58  ;;  %v15846_v19 = vadd.f32 %v5754_v4, %v5737_v32 }
0x2069   :  { %v15848_v7 = vadd.f32 %v5757_v54, %v5738_v36 }
0x206a   :  { %12781 = vtanh.f32 %v15846_v19 }
0x206b   :  { %12783 = vtanh.f32 %v15848_v7 }
0x206c   :  { %12785 = vtanh.f32 %v15850_v41 }
0x206d   :  { %12787 = vpow2.f32 %v8909_v44 }
0x206e   :  { %12789 = vpow2.f32 %v8910_v22  ;;  %v17843_v22 = vmov 0.0  }
0x206f   :  { %12791 = vpow2.f32 %v8908_v46  ;;  %v17844_v46 = vld [vmem:[#allocation67_spill] sm:$0xff] }
0x2074   :  { %v12782_v0 = vpop.eup %12781 }
0x2075   :  { %v12784_v60 = vpop.eup %12783  ;;  %5770 = vrot.lane.b32.xlu0 %v12782_v0, %s13105_s14 }
0x2076   :  { %5772 = vrot.lane.b32.xlu1 %v12784_v60, %s13105_s14  ;;  %v12786_v12 = vpop.eup %12785 }
0x2077   :  { %v12788_v1 = vpop.eup %12787 }
0x2078   :  { %v12790_v50 = vpop.eup %12789  ;;  %v5729_v48 = vadd.f32 1.0, %v12788_v1  ;;  %v17845_v1 = vld [vmem:[#allocation79_spill] sm:$0xff] }
0x2079   :  { %5774 = vrot.lane.b32.xlu0 %v12786_v12, %s13105_s14  ;;  %v12792_v3 = vpop.eup %12791  ;;  %v5730_v15 = vadd.f32 1.0, %v12790_v50  ;;  %v17846_v50 = vld [vmem:[#allocation12_spill] sm:$0xff] }
0x207a   :  { %v5728_v58 = vadd.f32 1.0, %v12792_v3  ;;  %12793 = vrcp.f32 %v5729_v48  ;;  %v17847_v48 = vld [vmem:[#allocation13_spill] sm:$0xff]  ;;  %v17848_v3 = vld [vmem:[#allocation14_spill] sm:$0xff] }
0x207b   :  { %12795 = vrcp.f32 %v5730_v15  ;;  %v17849_v15 = vld [vmem:[#allocation15_spill] sm:$0xff] }
0x207c   :  { %12797 = vrcp.f32 %v5728_v58  ;;  %v17850_v58 = vld [vmem:[#allocation16_spill] sm:$0xff] }
0x2084   :  { %v12794_v36 = vpop.eup %12793 }
0x2085   :  { %v12796_v45 = vpop.eup %12795 }
0x2086   :  { %v12798_v0 = vpop.eup %12797 }
0x20e7   :  { %v5771_v42 = vpop.permute.xlu0 %5770 }
0x20e8   :  { %v5773_v32 = vpop.permute.xlu1 %5772  ;;  %v15868_v12 = vmul.f32 %v12798_v0, %v5771_v42  ;;  %v17858_v0 = vld [vmem:[#allocation24_spill] sm:$0xff] }
0x20e9   :  { %v5776_v47 = vsel %vm1584_vm5, %v5771_v42, %v5773_v32  ;;  %v17851_v42 = vld [vmem:[#allocation17_spill] sm:$0xff] }
0x20ea   :  { %v15861_v4 = vmul.f32 %v12794_v36, %v5776_v47  ;;  %17842 = vst [vmem:[#allocation101_spill] sm:$0xff] %v15868_v12  ;;  %v17853_v36 = vld [vmem:[#allocation19_spill] sm:$0xff]  ;;  %v17854_v47 = vld [vmem:[#allocation20_spill] sm:$0xff] }
0x20eb   :  { %v5775_v28 = vpop.permute.xlu0 %5774 }
0x20ec   :  { %17840 = vst [vmem:[#allocation99_spill] sm:$0xff] %v15861_v4  ;;  %v5777_v54 = vsel %vm1584_vm5, %v5773_v32, %v5775_v28  ;;  %5813 = vrot.lane.b32.xlu1 %v15861_v4, %s13110_s25  ;;  %v17852_v32 = vld [vmem:[#allocation18_spill] sm:$0xff]  ;;  %v17855_v28 = vld [vmem:[#allocation21_spill] sm:$0xff]  ;;  %v17866_v4 = vld [vmem:[#allocation32_spill] sm:$0xff] }
0x20ed   :  { %v15866_v60 = vmul.f32 %v12796_v45, %v5777_v54  ;;  %v17856_v45 = vld [vmem:[#allocation22_spill] sm:$0xff]  ;;  %v17857_v54 = vld [vmem:[#allocation23_spill] sm:$0xff] }
0x20ef   :  { %17841 = vst [vmem:[#allocation100_spill] sm:$0xff] %v15866_v60  ;;  %5815 = vrot.lane.b32.xlu0 %v15866_v60, %s13110_s25  ;;  %v17864_v60 = vld [vmem:[#allocation30_spill] sm:$0xff] }
0x20f0   :  { %5811 = vrot.lane.b32.xlu1 %v15868_v12, %s13110_s25  ;;  %v17865_v12 = vld [vmem:[#allocation31_spill] sm:$0xff] }
0x215e   :  { %v5814_v9 = vpop.permute.xlu1 %5813 }
0x2161   :  { %v5816_v2 = vpop.permute.xlu0 %5815 }
0x2162   :  { %v5818_v53 = vsel %vm1626_vm6, %v5814_v9, %v5816_v2  ;;  %v5812_v51 = vpop.permute.xlu1 %5811  ;;  %v17860_v2 = vld [vmem:[#allocation26_spill] sm:$0xff] }
0x2163   :  { %v5817_v44 = vsel %vm1626_vm6, %v5812_v51, %v5814_v9  ;;  %8912 = vmatprep.mubr.msk.f32.mxu1 %vm1206_vm4, %v5818_v53  ;;  %8913 = vmatprep.mubr.msk.f32.mxu0 %vm1206_vm4, %v5818_v53  ;;  %v17859_v9 = vld [vmem:[#allocation25_spill] sm:$0xff]  ;;  %v17862_v51 = vld [vmem:[#allocation28_spill] sm:$0xff] }
0x2164   :  { %5887 = vmatmul.mubr.f32.vlgmr.msra.gmra.mrb[92].mxu1 %v5817_v44  ;;  %5958 = vmatmul.mubr.f32.vlgmr.msra.gmra.mrb[108].mxu0 %v5817_v44 }
0x2165   :  { %11261 = vmatpush1.bf16.msra.mxu1 %v17258_v23  ;;  %11308 = vmatpush1.bf16.msra.mxu0 %v17259_v13 }
0x2166   :  { %8914 = vmatprep.mubr.msk.f32.mxu1 %vm1206_vm4, %v5818_v53  ;;  %8915 = vmatprep.mubr.msk.f32.mxu0 %vm1206_vm4, %v5818_v53  ;;  %v17861_v53 = vld [vmem:[#allocation27_spill] sm:$0xff] }
0x2167   :  { %11263 = vmatprep.subr.bf16.mxu1 %v17260_v35  ;;  %11309 = vmatprep.subr.bf16.mxu0 %v17227_v25 }
0x2169   :  { %11265 = vmatpush1.bf16.msra.mxu1 %v17261_v55  ;;  %11311 = vmatpush1.bf16.msra.mxu0 %v17262_v37 }
0x216a   :  { %11267 = vmatprep.subr.bf16.mxu1 %v17263_v5  ;;  %11312 = vmatprep.subr.bf16.mxu0 %v17227_v25 }
0x216d   :  { %11269 = vmatpush1.bf16.msra.mxu1 %v17264_v43  ;;  %11314 = vmatpush1.bf16.msra.mxu0 %v17265_v20 }
0x216e   :  { %11271 = vmatprep.subr.bf16.mxu1 %v17266_v21  ;;  %11315 = vmatprep.subr.bf16.mxu0 %v17227_v25 }
0x2171   :  { %11273 = vmatpush1.bf16.msra.mxu1 %v17267_v14  ;;  %11317 = vmatpush1.bf16.msra.mxu0 %v17268_v33 }
0x2172   :  { %11275 = vmatprep.subr.bf16.mxu1 %v17269_v62  ;;  %11318 = vmatprep.subr.bf16.mxu0 %v17227_v25 }
0x2175   :  { %11277 = vmatpush1.bf16.msra.mxu1 %v17270_v59  ;;  %11320 = vmatpush1.bf16.msra.mxu0 %v17271_v16 }
0x2176   :  { %11279 = vmatprep.subr.bf16.mxu1 %v17315_v61  ;;  %11321 = vmatprep.subr.bf16.mxu0 %v17227_v25 }
0x2179   :  { %11281 = vmatpush1.bf16.msra.mxu1 %v17273_v39  ;;  %11323 = vmatpush1.bf16.msra.mxu0 %v17316_v57 }
0x217a   :  { %11283 = vmatprep.subr.bf16.mxu1 %v17317_v18  ;;  %11324 = vmatprep.subr.bf16.mxu0 %v17227_v25 }
0x217d   :  { %11285 = vmatpush1.bf16.msra.mxu1 %v17275_v11  ;;  %11326 = vmatpush1.bf16.msra.mxu0 %v13975_v40 }
0x217e   :  { %11287 = vmatprep.subr.bf16.mxu1 %v17276_v56  ;;  %11327 = vmatprep.subr.bf16.mxu0 %v17227_v25 }
0x2181   :  { %11289 = vmatpush1.bf16.msra.mxu1 %v17277_v8  ;;  %11329 = vmatpush1.bf16.msra.mxu0 %v13985_v29 }
0x2182   :  { %11291 = vmatprep.subr.bf16.mxu1 %v17278_v63  ;;  %11330 = vmatprep.subr.bf16.mxu0 %v17227_v25 }
0x2185   :  { %11293 = vmatpush1.bf16.msra.mxu1 %v17279_v24  ;;  %11332 = vmatpush1.bf16.msra.mxu0 %v17318_v30 }
0x2186   :  { %11295 = vmatprep.subr.bf16.mxu1 %v17319_v38  ;;  %11333 = vmatprep.subr.bf16.mxu0 %v17227_v25 }
0x2189   :  { %11297 = vmatpush1.bf16.msra.mxu1 %v13971_v10  ;;  %11335 = vmatpush1.bf16.msra.mxu0 %v14000_v17 }
0x218a   :  { %11299 = vmatprep.subr.bf16.mxu1 %v17320_v49  ;;  %11336 = vmatprep.subr.bf16.mxu0 %v17227_v25 }
0x218d   :  { %11301 = vmatpush1.bf16.msra.mxu1 %v17321_v34  ;;  %11338 = vmatpush1.bf16.msra.mxu0 %v14005_v31 }
0x218e   :  { %11303 = vmatprep.subr.bf16.mxu1 %v13987_v26  ;;  %11339 = vmatprep.subr.bf16.mxu0 %v17227_v25 }
0x2191   :  { %11305 = vmatpush1.bf16.msra.mxu1 %v17281_v6  ;;  %11341 = vmatpush1.bf16.msra.mxu0 %v14012_v27 }
0x2192   :  { %6012 = vmatprep.subr.mxu1 %v15760_v52  ;;  %6083 = vmatprep.subr.mxu0 %v17843_v22 }
0x2195   :  { %6013 = vmatpush1.msra.mxu1 %v17844_v46  ;;  %6084 = vmatpush1.msra.mxu0 %v17845_v1 }
0x2196   :  { %6029 = vmatmul.mubr.f32.vlgmr.msra.gmra.mrb[94].mxu1 %v5817_v44  ;;  %6100 = vmatmul.mubr.f32.vlgmr.msra.gmra.mrb[110].mxu0 %v5817_v44  ;;  %v17863_v44 = vld [vmem:[#allocation29_spill] sm:$0xff] }
0x2197   :  { %11343 = vmatprep.subr.bf16.mxu1 %v17846_v50  ;;  %11391 = vmatprep.subr.bf16.mxu0 %v17847_v48 }
0x2198   :  { %11345 = vmatpush1.bf16.msra.mxu1 %v17848_v3  ;;  %11393 = vmatpush1.bf16.msra.mxu0 %v17849_v15 }
0x2199   :  { %11347 = vmatprep.subr.bf16.mxu1 %v17850_v58  ;;  %11395 = vmatprep.subr.bf16.mxu0 %v17851_v42  ;;  %v5801_v42 = vld [vmem:[#allocation2 + $0x268] sm:$0xff] }
0x219c   :  { %11349 = vmatpush1.bf16.msra.mxu1 %v17852_v32  ;;  %11397 = vmatpush1.bf16.msra.mxu0 %v17853_v36  ;;  %v5802_v32 = vld [vmem:[#allocation2 + $0x270] sm:$0xff] }
0x219d   :  { %11351 = vmatprep.subr.bf16.mxu1 %v17854_v47  ;;  %11399 = vmatprep.subr.bf16.mxu0 %v17855_v28 }
0x21a0   :  { %11353 = vmatpush1.bf16.msra.mxu1 %v17856_v45  ;;  %11401 = vmatpush1.bf16.msra.mxu0 %v17857_v54  ;;  %v17867_v45 = vld [vmem:[#allocation33_spill] sm:$0xff]  ;;  %v17868_v54 = vld [vmem:[#allocation34_spill] sm:$0xff] }
0x21a1   :  { %11355 = vmatprep.subr.bf16.mxu1 %v17858_v0  ;;  %11403 = vmatprep.subr.bf16.mxu0 %v17859_v9  ;;  %v17869_v0 = vld [vmem:[#allocation35_spill] sm:$0xff]  ;;  %v17870_v9 = vld [vmem:[#allocation36_spill] sm:$0xff] }
0x21a4   :  { %11357 = vmatpush1.bf16.msra.mxu1 %v17860_v2  ;;  %11405 = vmatpush1.bf16.msra.mxu0 %v17861_v53  ;;  %v17871_v2 = vld [vmem:[#allocation37_spill] sm:$0xff]  ;;  %v17872_v53 = vld [vmem:[#allocation38_spill] sm:$0xff] }
0x21a5   :  { %11359 = vmatprep.subr.bf16.mxu1 %v17862_v51  ;;  %11407 = vmatprep.subr.bf16.mxu0 %v17863_v44  ;;  %v17873_v51 = vld [vmem:[#allocation39_spill] sm:$0xff]  ;;  %v17874_v44 = vld [vmem:[#allocation40_spill] sm:$0xff] }
0x21a8   :  { %11361 = vmatpush1.bf16.msra.mxu1 %v17864_v60  ;;  %11409 = vmatpush1.bf16.msra.mxu0 %v17865_v12  ;;  %v17875_v60 = vld [vmem:[#allocation41_spill] sm:$0xff]  ;;  %v17876_v12 = vld [vmem:[#allocation42_spill] sm:$0xff] }
0x21a9   :  { %11363 = vmatprep.subr.bf16.mxu1 %v17866_v4  ;;  %11411 = vmatprep.subr.bf16.mxu0 %v17867_v45  ;;  %v17877_v4 = vld [vmem:[#allocation43_spill] sm:$0xff]  ;;  %v17878_v45 = vld [vmem:[#allocation44_spill] sm:$0xff] }
0x21ac   :  { %11365 = vmatpush1.bf16.msra.mxu1 %v17868_v54  ;;  %11413 = vmatpush1.bf16.msra.mxu0 %v17869_v0  ;;  %v17879_v54 = vld [vmem:[#allocation45_spill] sm:$0xff]  ;;  %v17880_v0 = vld [vmem:[#allocation46_spill] sm:$0xff] }
0x21ad   :  { %11367 = vmatprep.subr.bf16.mxu1 %v17870_v9  ;;  %11415 = vmatprep.subr.bf16.mxu0 %v17871_v2  ;;  %v17881_v9 = vld [vmem:[#allocation47_spill] sm:$0xff]  ;;  %v17882_v2 = vld [vmem:[#allocation48_spill] sm:$0xff] }
0x21b0   :  { %11369 = vmatpush1.bf16.msra.mxu1 %v17872_v53  ;;  %11417 = vmatpush1.bf16.msra.mxu0 %v17873_v51  ;;  %v17883_v53 = vld [vmem:[#allocation49_spill] sm:$0xff]  ;;  %v17884_v51 = vld [vmem:[#allocation50_spill] sm:$0xff] }
0x21b1   :  { %11371 = vmatprep.subr.bf16.mxu1 %v17874_v44  ;;  %11419 = vmatprep.subr.bf16.mxu0 %v17875_v60  ;;  %v17885_v44 = vld [vmem:[#allocation51_spill] sm:$0xff]  ;;  %v17886_v60 = vld [vmem:[#allocation52_spill] sm:$0xff] }
0x21b4   :  { %11373 = vmatpush1.bf16.msra.mxu1 %v17876_v12  ;;  %11421 = vmatpush1.bf16.msra.mxu0 %v17877_v4  ;;  %v17887_v12 = vld [vmem:[#allocation53_spill] sm:$0xff]  ;;  %v17888_v4 = vld [vmem:[#allocation54_spill] sm:$0xff] }
0x21b5   :  { %11375 = vmatprep.subr.bf16.mxu1 %v17878_v45  ;;  %11423 = vmatprep.subr.bf16.mxu0 %v17879_v54  ;;  %v17889_v45 = vld [vmem:[#allocation55_spill] sm:$0xff]  ;;  %v17890_v54 = vld [vmem:[#allocation56_spill] sm:$0xff] }
0x21b8   :  { %11377 = vmatpush1.bf16.msra.mxu1 %v17880_v0  ;;  %11425 = vmatpush1.bf16.msra.mxu0 %v17881_v9  ;;  %v17891_v0 = vld [vmem:[#allocation57_spill] sm:$0xff]  ;;  %v17892_v9 = vld [vmem:[#allocation58_spill] sm:$0xff] }
0x21b9   :  { %11379 = vmatprep.subr.bf16.mxu1 %v17882_v2  ;;  %11427 = vmatprep.subr.bf16.mxu0 %v17883_v53  ;;  %v17893_v2 = vld [vmem:[#allocation59_spill] sm:$0xff]  ;;  %v17894_v53 = vld [vmem:[#allocation81_spill] sm:$0xff] }
0x21bc   :  { %11381 = vmatpush1.bf16.msra.mxu1 %v17884_v51  ;;  %11429 = vmatpush1.bf16.msra.mxu0 %v17885_v44  ;;  %v17895_v51 = vld [vmem:[#allocation96_spill] sm:$0xff]  ;;  %v17896_v44 = vld [vmem:[#allocation97_spill] sm:$0xff] }
0x21bd   :  { %11383 = vmatprep.subr.bf16.mxu1 %v17886_v60  ;;  %11431 = vmatprep.subr.bf16.mxu0 %v17887_v12  ;;  %v17897_v60 = vld [vmem:[#allocation98_spill] sm:$0xff] }
0x21be   :  { %v17898_v12 = vld [vmem:[#allocation62_spill] sm:$0xff] }
0x21c0   :  { %11385 = vmatpush1.bf16.msra.mxu1 %v17888_v4  ;;  %11433 = vmatpush1.bf16.msra.mxu0 %v17889_v45 }
0x21c1   :  { %11387 = vmatprep.subr.bf16.mxu1 %v17890_v54  ;;  %11435 = vmatprep.subr.bf16.mxu0 %v17891_v0  ;;  %v5804_v0 = vld [vmem:[#allocation2 + $0x280] sm:$0xff] }
0x21c4   :  { %11389 = vmatpush1.bf16.msra.mxu1 %v17892_v9  ;;  %11437 = vmatpush1.bf16.msra.mxu0 %v17893_v2 }
0x21c5   :  { %6289 = vmatprep.subr.mxu1 %v17894_v53  ;;  %6360 = vmatprep.subr.mxu0 %v17895_v51  ;;  %v5805_v53 = vld [vmem:[#allocation2 + $0x288] sm:$0xff] }
0x21c8   :  { %6290 = vmatpush1.msra.mxu1 %v17896_v44  ;;  %6361 = vmatpush1.msra.mxu0 %v17897_v60 }
0x21c9   :  { %11439 = vmatprep.subr.bf16.mxu1 %v17898_v12  ;;  %11486 = vmatprep.subr.bf16.mxu0 %v17227_v25 }
0x2237   :  { %v5888_v45 = vpop.f32.mrb[92].mxu1  ;;  %v5959_v54 = vpop.f32.mrb[108].mxu0 }
0x2238   :  { %v5890_v4 = vpop.f32.mrb[93].mxu1  ;;  %v5961_v28 = vpop.f32.mrb[109].mxu0 }
0x2239   :  { %v6108_v9 = vadd.f32 %v5961_v28, %v5804_v0  ;;  %v6106_v28 = vadd.f32 %v5890_v4, %v5802_v32  ;;  %v6105_v0 = vadd.f32 %v5888_v45, %v5801_v42  ;;  %v5803_v4 = vld [vmem:[#allocation2 + $0x278] sm:$0xff] }
0x223b   :  { %12799 = vtanh.f32 %v6108_v9  ;;  %v8917_v58 = vmul.f32 -1.442695, %v6106_v28  ;;  %v8916_v15 = vmul.f32 -1.442695, %v6105_v0  ;;  %v8919_v42 = vmul.f32 -1.442695, %v6108_v9 }
0x2245   :  { %v12800_v2 = vpop.eup %12799 }
0x2246   :  { %6161 = vrot.lane.b32.xlu0 %v12800_v2, %s13108_s3 }
0x2269   :  { %v6030_v51 = vpop.f32.mrb[94].mxu1  ;;  %v15985_v47 = vpop.f32.mrb[110].mxu0 }
0x226a   :  { %v15987_v44 = vadd.f32 %v6030_v51, %v5805_v53  ;;  %v6032_v60 = vpop.f32.mrb[95].mxu1  ;;  %v6103_v12 = vpop.f32.mrb[111].mxu0 }
0x226c   :  { %12801 = vtanh.f32 %v15987_v44 }
0x226d   :  { %12803 = vpow2.f32 %v8917_v58 }
0x226e   :  { %12805 = vpow2.f32 %v8916_v15  ;;  %v6107_v15 = vadd.f32 %v5959_v54, %v5803_v4  ;;  %v5807_v4 = vld [vmem:[#allocation2 + $0x298] sm:$0xff] }
0x2270   :  { %v8918_v58 = vmul.f32 -1.442695, %v6107_v15  ;;  %v6111_v15 = vadd.f32 %v15985_v47, %v5807_v4 }
0x2276   :  { %v12802_v36 = vpop.eup %12801 }
0x2277   :  { %6163 = vrot.lane.b32.xlu1 %v12802_v36, %s13108_s3  ;;  %v12804_v2 = vpop.eup %12803 }
0x2278   :  { %v12806_v3 = vpop.eup %12805  ;;  %v6119_v48 = vadd.f32 1.0, %v12804_v2 }
0x2279   :  { %v6118_v53 = vadd.f32 1.0, %v12806_v3 }
0x227a   :  { %12807 = vrcp.f32 %v6119_v48 }
0x227b   :  { %12809 = vrcp.f32 %v6118_v53 }
0x227c   :  { %12811 = vpow2.f32 %v8918_v58 }
0x227d   :  { %12813 = vpow2.f32 %v8919_v42  ;;  %v8922_v42 = vmul.f32 -1.442695, %v6111_v15 }
0x2284   :  { %v12808_v12 = vpop.eup %12807 }
0x2285   :  { %v12810_v1 = vpop.eup %12809 }
0x2286   :  { %v12812_v48 = vpop.eup %12811 }
0x2287   :  { %v12814_v3 = vpop.eup %12813  ;;  %v6130_v32 = vadd.f32 1.0, %v12812_v48  ;;  %v8920_v48 = vmul.f32 -1.442695, %v15987_v44 }
0x2288   :  { %v6131_v45 = vadd.f32 1.0, %v12814_v3 }
0x2289   :  { %12815 = vrcp.f32 %v6130_v32 }
0x228a   :  { %12817 = vrcp.f32 %v6131_v45 }
0x2293   :  { %v12816_v28 = vpop.eup %12815 }
0x2294   :  { %v12818_v0 = vpop.eup %12817 }
0x2295   :  { %v6158_v54 = vmul.f32 %v12818_v0, %v15850_v41  ;;  %v5806_v41 = vld [vmem:[#allocation2 + $0x290] sm:$0xff] }
0x22b8   :  { %v6162_v51 = vpop.permute.xlu0 %6161 }
0x22e9   :  { %v6164_v50 = vpop.permute.xlu1 %6163 }
0x22ea   :  { %v6165_v36 = vsel %vm1553_vm3, %v6162_v51, %v6164_v50  ;;  %v6169_v46 = vmul.f32 %v12808_v12, %v6164_v50 }
0x22eb   :  { %v6168_v22 = vmul.f32 %v12810_v1, %v6165_v36  ;;  %v6156_v1 = vmul.f32 %v12808_v12, %v15846_v19  ;;  %v6110_v36 = vadd.f32 %v6032_v60, %v5806_v41 }
0x22ec   :  { %6174 = vrot.lane.b32.xlu1 %v6169_v46, %s13109_s24  ;;  %v6157_v46 = vmul.f32 %v12816_v28, %v15848_v7 }
0x22ed   :  { %6172 = vrot.lane.b32.xlu0 %v6168_v22, %s13109_s24  ;;  %v8921_v58 = vmul.f32 -1.442695, %v6110_v36 }
0x235e   :  { %v6175_v50 = vpop.permute.xlu1 %6174 }
0x235f   :  { %v6173_v22 = vpop.permute.xlu0 %6172  ;;  %v16002_v51 = vadd.f32 %v6175_v50, %v6158_v54 }
0x2360   :  { %v6176_v9 = vsel %vm1206_vm4, %v6173_v22, %v6175_v50  ;;  %v15998_v2 = vadd.f32 %v6173_v22, %v6156_v1 }
0x2361   :  { %v16000_v53 = vadd.f32 %v6176_v9, %v6157_v46 }
0x2362   :  { %12819 = vtanh.f32 %v15998_v2 }
0x2363   :  { %12821 = vtanh.f32 %v16000_v53 }
0x2364   :  { %12823 = vtanh.f32 %v16002_v51 }
0x2365   :  { %12825 = vpow2.f32 %v8921_v58 }
0x2366   :  { %12827 = vpow2.f32 %v8922_v42  ;;  %v17902_v42 = vmov 0.0  }
0x2367   :  { %12829 = vpow2.f32 %v8920_v48  ;;  %v17903_v48 = vld [vmem:[#allocation67_spill] sm:$0xff] }
0x236c   :  { %v12820_v19 = vpop.eup %12819 }
0x236d   :  { %v12822_v12 = vpop.eup %12821  ;;  %6189 = vrot.lane.b32.xlu0 %v12820_v19, %s13105_s14 }
0x236e   :  { %6191 = vrot.lane.b32.xlu1 %v12822_v12, %s13105_s14  ;;  %v12824_v7 = vpop.eup %12823 }
0x236f   :  { %v12826_v3 = vpop.eup %12825 }
0x2370   :  { %v12828_v32 = vpop.eup %12827  ;;  %v6148_v45 = vadd.f32 1.0, %v12826_v3  ;;  %v17904_v3 = vld [vmem:[#allocation79_spill] sm:$0xff] }
0x2371   :  { %6193 = vrot.lane.b32.xlu0 %v12824_v7, %s13105_s14  ;;  %v12830_v28 = vpop.eup %12829  ;;  %v6149_v0 = vadd.f32 1.0, %v12828_v32  ;;  %v17905_v32 = vld [vmem:[#allocation12_spill] sm:$0xff] }
0x2372   :  { %v6147_v50 = vadd.f32 1.0, %v12830_v28  ;;  %12831 = vrcp.f32 %v6148_v45  ;;  %v17906_v45 = vld [vmem:[#allocation13_spill] sm:$0xff]  ;;  %v17907_v28 = vld [vmem:[#allocation14_spill] sm:$0xff] }
0x2373   :  { %12833 = vrcp.f32 %v6149_v0  ;;  %v17908_v0 = vld [vmem:[#allocation15_spill] sm:$0xff] }
0x2374   :  { %12835 = vrcp.f32 %v6147_v50  ;;  %v17909_v50 = vld [vmem:[#allocation16_spill] sm:$0xff] }
0x237c   :  { %v12832_v46 = vpop.eup %12831 }
0x237d   :  { %v12834_v54 = vpop.eup %12833 }
0x237e   :  { %v12836_v19 = vpop.eup %12835 }
0x23df   :  { %v6190_v60 = vpop.permute.xlu0 %6189 }
0x23e0   :  { %v6192_v1 = vpop.permute.xlu1 %6191  ;;  %v16020_v7 = vmul.f32 %v12836_v19, %v6190_v60  ;;  %v17918_v19 = vld [vmem:[#allocation25_spill] sm:$0xff] }
0x23e1   :  { %v6195_v47 = vsel %vm1584_vm5, %v6190_v60, %v6192_v1  ;;  %v17910_v60 = vld [vmem:[#allocation17_spill] sm:$0xff] }
0x23e2   :  { %v16013_v22 = vmul.f32 %v12832_v46, %v6195_v47  ;;  %17901 = vst [vmem:[#allocation104_spill] sm:$0xff] %v16020_v7  ;;  %v17913_v46 = vld [vmem:[#allocation20_spill] sm:$0xff]  ;;  %v17914_v47 = vld [vmem:[#allocation21_spill] sm:$0xff] }
0x23e3   :  { %v6194_v44 = vpop.permute.xlu0 %6193 }
0x23e4   :  { %17899 = vst [vmem:[#allocation102_spill] sm:$0xff] %v16013_v22  ;;  %v6196_v9 = vsel %vm1584_vm5, %v6192_v1, %v6194_v44  ;;  %6232 = vrot.lane.b32.xlu1 %v16013_v22, %s13110_s25  ;;  %v17912_v1 = vld [vmem:[#allocation19_spill] sm:$0xff]  ;;  %v17915_v44 = vld [vmem:[#allocation22_spill] sm:$0xff] }
0x23e5   :  { %v16018_v12 = vmul.f32 %v12834_v54, %v6196_v9  ;;  %v17916_v54 = vld [vmem:[#allocation23_spill] sm:$0xff]  ;;  %v17917_v9 = vld [vmem:[#allocation24_spill] sm:$0xff] }
0x23e6   :  { %v17928_v22 = vld [vmem:[#allocation35_spill] sm:$0xff] }
0x23e7   :  { %17900 = vst [vmem:[#allocation103_spill] sm:$0xff] %v16018_v12  ;;  %6234 = vrot.lane.b32.xlu0 %v16018_v12, %s13110_s25  ;;  %v17926_v12 = vld [vmem:[#allocation33_spill] sm:$0xff] }
0x23e8   :  { %6230 = vrot.lane.b32.xlu1 %v16020_v7, %s13110_s25  ;;  %v17927_v7 = vld [vmem:[#allocation34_spill] sm:$0xff] }
0x2456   :  { %v6233_v41 = vpop.permute.xlu1 %6232 }
0x2459   :  { %v6235_v36 = vpop.permute.xlu0 %6234 }
0x245a   :  { %v6237_v4 = vsel %vm1626_vm6, %v6233_v41, %v6235_v36  ;;  %v6231_v15 = vpop.permute.xlu1 %6230  ;;  %v17920_v36 = vld [vmem:[#allocation27_spill] sm:$0xff] }
0x245b   :  { %v6236_v58 = vsel %vm1626_vm6, %v6231_v15, %v6233_v41  ;;  %8924 = vmatprep.mubr.msk.f32.mxu1 %vm1206_vm4, %v6237_v4  ;;  %8925 = vmatprep.mubr.msk.f32.mxu0 %vm1206_vm4, %v6237_v4  ;;  %v17919_v41 = vld [vmem:[#allocation26_spill] sm:$0xff]  ;;  %v17922_v15 = vld [vmem:[#allocation29_spill] sm:$0xff] }
0x245c   :  { %6306 = vmatmul.mubr.f32.vlgmr.msra.gmra.mrb[96].mxu1 %v6236_v58  ;;  %6377 = vmatmul.mubr.f32.vlgmr.msra.gmra.mrb[112].mxu0 %v6236_v58 }
0x245d   :  { %11441 = vmatpush1.bf16.msra.mxu1 %v17258_v23  ;;  %11488 = vmatpush1.bf16.msra.mxu0 %v17259_v13 }
0x245e   :  { %8926 = vmatprep.mubr.msk.f32.mxu1 %vm1206_vm4, %v6237_v4  ;;  %8927 = vmatprep.mubr.msk.f32.mxu0 %vm1206_vm4, %v6237_v4  ;;  %v17921_v4 = vld [vmem:[#allocation28_spill] sm:$0xff] }
0x245f   :  { %11443 = vmatprep.subr.bf16.mxu1 %v17260_v35  ;;  %11489 = vmatprep.subr.bf16.mxu0 %v17227_v25 }
0x2461   :  { %11445 = vmatpush1.bf16.msra.mxu1 %v17261_v55  ;;  %11491 = vmatpush1.bf16.msra.mxu0 %v17262_v37 }
0x2462   :  { %11447 = vmatprep.subr.bf16.mxu1 %v17263_v5  ;;  %11492 = vmatprep.subr.bf16.mxu0 %v17227_v25 }
0x2465   :  { %11449 = vmatpush1.bf16.msra.mxu1 %v17264_v43  ;;  %11494 = vmatpush1.bf16.msra.mxu0 %v17265_v20 }
0x2466   :  { %11451 = vmatprep.subr.bf16.mxu1 %v17266_v21  ;;  %11495 = vmatprep.subr.bf16.mxu0 %v17227_v25 }
0x2469   :  { %11453 = vmatpush1.bf16.msra.mxu1 %v17267_v14  ;;  %11497 = vmatpush1.bf16.msra.mxu0 %v17268_v33 }
0x246a   :  { %11455 = vmatprep.subr.bf16.mxu1 %v17269_v62  ;;  %11498 = vmatprep.subr.bf16.mxu0 %v17227_v25 }
0x246d   :  { %11457 = vmatpush1.bf16.msra.mxu1 %v17270_v59  ;;  %11500 = vmatpush1.bf16.msra.mxu0 %v17271_v16 }
0x246e   :  { %11459 = vmatprep.subr.bf16.mxu1 %v17315_v61  ;;  %11501 = vmatprep.subr.bf16.mxu0 %v17227_v25 }
0x2471   :  { %11461 = vmatpush1.bf16.msra.mxu1 %v17273_v39  ;;  %11503 = vmatpush1.bf16.msra.mxu0 %v17316_v57 }
0x2472   :  { %11463 = vmatprep.subr.bf16.mxu1 %v17317_v18  ;;  %11504 = vmatprep.subr.bf16.mxu0 %v17227_v25 }
0x2475   :  { %11465 = vmatpush1.bf16.msra.mxu1 %v17275_v11  ;;  %11506 = vmatpush1.bf16.msra.mxu0 %v13975_v40 }
0x2476   :  { %11467 = vmatprep.subr.bf16.mxu1 %v17276_v56  ;;  %11507 = vmatprep.subr.bf16.mxu0 %v17227_v25 }
0x2479   :  { %11469 = vmatpush1.bf16.msra.mxu1 %v17277_v8  ;;  %11509 = vmatpush1.bf16.msra.mxu0 %v13985_v29 }
0x247a   :  { %11471 = vmatprep.subr.bf16.mxu1 %v17278_v63  ;;  %11510 = vmatprep.subr.bf16.mxu0 %v17227_v25 }
0x247d   :  { %11473 = vmatpush1.bf16.msra.mxu1 %v17279_v24  ;;  %11512 = vmatpush1.bf16.msra.mxu0 %v17318_v30 }
0x247e   :  { %11475 = vmatprep.subr.bf16.mxu1 %v17319_v38  ;;  %11513 = vmatprep.subr.bf16.mxu0 %v17227_v25 }
0x2481   :  { %11477 = vmatpush1.bf16.msra.mxu1 %v13971_v10  ;;  %11515 = vmatpush1.bf16.msra.mxu0 %v14000_v17 }
0x2482   :  { %11479 = vmatprep.subr.bf16.mxu1 %v17320_v49  ;;  %11516 = vmatprep.subr.bf16.mxu0 %v17227_v25 }
0x2485   :  { %11481 = vmatpush1.bf16.msra.mxu1 %v17321_v34  ;;  %11518 = vmatpush1.bf16.msra.mxu0 %v14005_v31 }
0x2486   :  { %11483 = vmatprep.subr.bf16.mxu1 %v13987_v26  ;;  %11519 = vmatprep.subr.bf16.mxu0 %v17227_v25 }
0x2489   :  { %11485 = vmatpush1.bf16.msra.mxu1 %v17281_v6  ;;  %11521 = vmatpush1.bf16.msra.mxu0 %v14012_v27 }
0x248a   :  { %6431 = vmatprep.subr.mxu1 %v15760_v52  ;;  %6502 = vmatprep.subr.mxu0 %v17902_v42  ;;  %v17911_v52 = vld [vmem:[#allocation18_spill] sm:$0xff] }
0x248d   :  { %6432 = vmatpush1.msra.mxu1 %v17903_v48  ;;  %6503 = vmatpush1.msra.mxu0 %v17904_v3  ;;  %v17924_v48 = vld [vmem:[#allocation31_spill] sm:$0xff]  ;;  %v17925_v3 = vld [vmem:[#allocation32_spill] sm:$0xff] }
0x248e   :  { %6448 = vmatmul.mubr.f32.vlgmr.msra.gmra.mrb[98].mxu1 %v6236_v58  ;;  %6519 = vmatmul.mubr.f32.vlgmr.msra.gmra.mrb[114].mxu0 %v6236_v58  ;;  %v17923_v58 = vld [vmem:[#allocation30_spill] sm:$0xff] }
0x248f   :  { %11523 = vmatprep.subr.bf16.mxu1 %v17905_v32  ;;  %11571 = vmatprep.subr.bf16.mxu0 %v17906_v45 }
0x2490   :  { %11525 = vmatpush1.bf16.msra.mxu1 %v17907_v28  ;;  %11573 = vmatpush1.bf16.msra.mxu0 %v17908_v0 }
0x2491   :  { %11527 = vmatprep.subr.bf16.mxu1 %v17909_v50  ;;  %11575 = vmatprep.subr.bf16.mxu0 %v17910_v60 }
0x2494   :  { %11529 = vmatpush1.bf16.msra.mxu1 %v17911_v52  ;;  %11577 = vmatpush1.bf16.msra.mxu0 %v17912_v1 }
0x2495   :  { %11531 = vmatprep.subr.bf16.mxu1 %v17913_v46  ;;  %11579 = vmatprep.subr.bf16.mxu0 %v17914_v47  ;;  %v6221_v47 = vld [vmem:[#allocation2 + $0x2a8] sm:$0xff]  ;;  %v6220_v46 = vld [vmem:[#allocation2 + $0x2a0] sm:$0xff] }
0x2498   :  { %11533 = vmatpush1.bf16.msra.mxu1 %v17915_v44  ;;  %11581 = vmatpush1.bf16.msra.mxu0 %v17916_v54 }
0x2499   :  { %11535 = vmatprep.subr.bf16.mxu1 %v17917_v9  ;;  %11583 = vmatprep.subr.bf16.mxu0 %v17918_v19  ;;  %v17929_v19 = vld [vmem:[#allocation36_spill] sm:$0xff] }
0x249c   :  { %11537 = vmatpush1.bf16.msra.mxu1 %v17919_v41  ;;  %11585 = vmatpush1.bf16.msra.mxu0 %v17920_v36  ;;  %v17930_v41 = vld [vmem:[#allocation37_spill] sm:$0xff]  ;;  %v17931_v36 = vld [vmem:[#allocation38_spill] sm:$0xff] }
0x249d   :  { %11539 = vmatprep.subr.bf16.mxu1 %v17921_v4  ;;  %11587 = vmatprep.subr.bf16.mxu0 %v17922_v15  ;;  %v17932_v4 = vld [vmem:[#allocation39_spill] sm:$0xff]  ;;  %v17933_v15 = vld [vmem:[#allocation40_spill] sm:$0xff] }
0x24a0   :  { %11541 = vmatpush1.bf16.msra.mxu1 %v17923_v58  ;;  %11589 = vmatpush1.bf16.msra.mxu0 %v17924_v48  ;;  %v17934_v58 = vld [vmem:[#allocation41_spill] sm:$0xff]  ;;  %v17935_v48 = vld [vmem:[#allocation42_spill] sm:$0xff] }
0x24a1   :  { %11543 = vmatprep.subr.bf16.mxu1 %v17925_v3  ;;  %11591 = vmatprep.subr.bf16.mxu0 %v17926_v12  ;;  %v17936_v3 = vld [vmem:[#allocation43_spill] sm:$0xff]  ;;  %v17937_v12 = vld [vmem:[#allocation44_spill] sm:$0xff] }
0x24a4   :  { %11545 = vmatpush1.bf16.msra.mxu1 %v17927_v7  ;;  %11593 = vmatpush1.bf16.msra.mxu0 %v17928_v22  ;;  %v17938_v7 = vld [vmem:[#allocation45_spill] sm:$0xff]  ;;  %v17939_v22 = vld [vmem:[#allocation46_spill] sm:$0xff] }
0x24a5   :  { %11547 = vmatprep.subr.bf16.mxu1 %v17929_v19  ;;  %11595 = vmatprep.subr.bf16.mxu0 %v17930_v41  ;;  %v17940_v19 = vld [vmem:[#allocation47_spill] sm:$0xff]  ;;  %v17941_v41 = vld [vmem:[#allocation48_spill] sm:$0xff] }
0x24a8   :  { %11549 = vmatpush1.bf16.msra.mxu1 %v17931_v36  ;;  %11597 = vmatpush1.bf16.msra.mxu0 %v17932_v4  ;;  %v17942_v36 = vld [vmem:[#allocation49_spill] sm:$0xff]  ;;  %v17943_v4 = vld [vmem:[#allocation50_spill] sm:$0xff] }
0x24a9   :  { %11551 = vmatprep.subr.bf16.mxu1 %v17933_v15  ;;  %11599 = vmatprep.subr.bf16.mxu0 %v17934_v58  ;;  %v17944_v15 = vld [vmem:[#allocation51_spill] sm:$0xff]  ;;  %v17945_v58 = vld [vmem:[#allocation52_spill] sm:$0xff] }
0x24ac   :  { %11553 = vmatpush1.bf16.msra.mxu1 %v17935_v48  ;;  %11601 = vmatpush1.bf16.msra.mxu0 %v17936_v3  ;;  %v17946_v48 = vld [vmem:[#allocation53_spill] sm:$0xff]  ;;  %v17947_v3 = vld [vmem:[#allocation54_spill] sm:$0xff] }
0x24ad   :  { %11555 = vmatprep.subr.bf16.mxu1 %v17937_v12  ;;  %11603 = vmatprep.subr.bf16.mxu0 %v17938_v7  ;;  %v17948_v12 = vld [vmem:[#allocation55_spill] sm:$0xff]  ;;  %v17949_v7 = vld [vmem:[#allocation56_spill] sm:$0xff] }
0x24b0   :  { %11557 = vmatpush1.bf16.msra.mxu1 %v17939_v22  ;;  %11605 = vmatpush1.bf16.msra.mxu0 %v17940_v19  ;;  %v17950_v22 = vld [vmem:[#allocation57_spill] sm:$0xff]  ;;  %v17951_v19 = vld [vmem:[#allocation58_spill] sm:$0xff] }
0x24b1   :  { %11559 = vmatprep.subr.bf16.mxu1 %v17941_v41  ;;  %11607 = vmatprep.subr.bf16.mxu0 %v17942_v36  ;;  %v17952_v41 = vld [vmem:[#allocation59_spill] sm:$0xff]  ;;  %v17953_v36 = vld [vmem:[#allocation81_spill] sm:$0xff] }
0x24b4   :  { %11561 = vmatpush1.bf16.msra.mxu1 %v17943_v4  ;;  %11609 = vmatpush1.bf16.msra.mxu0 %v17944_v15  ;;  %v17954_v4 = vld [vmem:[#allocation96_spill] sm:$0xff]  ;;  %v17955_v15 = vld [vmem:[#allocation97_spill] sm:$0xff] }
0x24b5   :  { %11563 = vmatprep.subr.bf16.mxu1 %v17945_v58  ;;  %11611 = vmatprep.subr.bf16.mxu0 %v17946_v48  ;;  %v17956_v58 = vld [vmem:[#allocation98_spill] sm:$0xff] }
0x24b6   :  { %v17957_v48 = vld [vmem:[#allocation62_spill] sm:$0xff] }
0x24b8   :  { %11565 = vmatpush1.bf16.msra.mxu1 %v17947_v3  ;;  %11613 = vmatpush1.bf16.msra.mxu0 %v17948_v12 }
0x24b9   :  { %11567 = vmatprep.subr.bf16.mxu1 %v17949_v7  ;;  %11615 = vmatprep.subr.bf16.mxu0 %v17950_v22  ;;  %v6223_v22 = vld [vmem:[#allocation2 + $0x2b8] sm:$0xff] }
0x24bc   :  { %11569 = vmatpush1.bf16.msra.mxu1 %v17951_v19  ;;  %11617 = vmatpush1.bf16.msra.mxu0 %v17952_v41 }
0x24bd   :  { %6708 = vmatprep.subr.mxu1 %v17953_v36  ;;  %6779 = vmatprep.subr.mxu0 %v17954_v4  ;;  %v6224_v36 = vld [vmem:[#allocation2 + $0x2c0] sm:$0xff] }
0x24c0   :  { %6709 = vmatpush1.msra.mxu1 %v17955_v15  ;;  %6780 = vmatpush1.msra.mxu0 %v17956_v58 }
0x24c1   :  { %11619 = vmatprep.subr.bf16.mxu1 %v17957_v48  ;;  %11666 = vmatprep.subr.bf16.mxu0 %v17227_v25 }
0x252f   :  { %v6307_v12 = vpop.f32.mrb[96].mxu1  ;;  %v6378_v7 = vpop.f32.mrb[112].mxu0 }
0x2530   :  { %v6309_v3 = vpop.f32.mrb[97].mxu1  ;;  %v6380_v9 = vpop.f32.mrb[113].mxu0 }
0x2531   :  { %v6527_v19 = vadd.f32 %v6380_v9, %v6223_v22  ;;  %v6525_v22 = vadd.f32 %v6309_v3, %v6221_v47  ;;  %v6524_v9 = vadd.f32 %v6307_v12, %v6220_v46  ;;  %v6222_v12 = vld [vmem:[#allocation2 + $0x2b0] sm:$0xff] }
0x2533   :  { %12837 = vtanh.f32 %v6527_v19  ;;  %v8929_v1 = vmul.f32 -1.442695, %v6525_v22  ;;  %v8928_v52 = vmul.f32 -1.442695, %v6524_v9  ;;  %v8931_v46 = vmul.f32 -1.442695, %v6527_v19 }
0x253d   :  { %v12838_v41 = vpop.eup %12837 }
0x253e   :  { %6580 = vrot.lane.b32.xlu0 %v12838_v41, %s13108_s3 }
0x2561   :  { %v6449_v4 = vpop.f32.mrb[98].mxu1  ;;  %v16137_v54 = vpop.f32.mrb[114].mxu0 }
0x2562   :  { %v16139_v15 = vadd.f32 %v6449_v4, %v6224_v36  ;;  %v6451_v58 = vpop.f32.mrb[99].mxu1  ;;  %v6522_v48 = vpop.f32.mrb[115].mxu0 }
0x2564   :  { %12839 = vtanh.f32 %v16139_v15 }
0x2565   :  { %12841 = vpow2.f32 %v8929_v1 }
0x2566   :  { %12843 = vpow2.f32 %v8928_v52  ;;  %v6526_v52 = vadd.f32 %v6378_v7, %v6222_v12  ;;  %v6226_v12 = vld [vmem:[#allocation2 + $0x2d0] sm:$0xff] }
0x2568   :  { %v8930_v1 = vmul.f32 -1.442695, %v6526_v52  ;;  %v6530_v52 = vadd.f32 %v16137_v54, %v6226_v12 }
0x256e   :  { %v12840_v44 = vpop.eup %12839 }
0x256f   :  { %6582 = vrot.lane.b32.xlu1 %v12840_v44, %s13108_s3  ;;  %v12842_v41 = vpop.eup %12841 }
0x2570   :  { %v12844_v60 = vpop.eup %12843  ;;  %v6538_v50 = vadd.f32 1.0, %v12842_v41 }
0x2571   :  { %v6537_v36 = vadd.f32 1.0, %v12844_v60 }
0x2572   :  { %12845 = vrcp.f32 %v6538_v50 }
0x2573   :  { %12847 = vrcp.f32 %v6537_v36 }
0x2574   :  { %12849 = vpow2.f32 %v8930_v1 }
0x2575   :  { %12851 = vpow2.f32 %v8931_v46  ;;  %v8934_v46 = vmul.f32 -1.442695, %v6530_v52 }
0x257c   :  { %v12846_v48 = vpop.eup %12845 }
0x257d   :  { %v12848_v28 = vpop.eup %12847 }
0x257e   :  { %v12850_v50 = vpop.eup %12849 }
0x257f   :  { %v12852_v60 = vpop.eup %12851  ;;  %v6549_v47 = vadd.f32 1.0, %v12850_v50  ;;  %v8932_v50 = vmul.f32 -1.442695, %v16139_v15 }
0x2580   :  { %v6550_v3 = vadd.f32 1.0, %v12852_v60 }
0x2581   :  { %12853 = vrcp.f32 %v6549_v47 }
0x2582   :  { %12855 = vrcp.f32 %v6550_v3 }
0x258b   :  { %v12854_v22 = vpop.eup %12853 }
0x258c   :  { %v12856_v9 = vpop.eup %12855 }
0x258d   :  { %v6577_v7 = vmul.f32 %v12856_v9, %v16002_v51  ;;  %v6225_v51 = vld [vmem:[#allocation2 + $0x2c8] sm:$0xff] }
0x25b0   :  { %v6581_v4 = vpop.permute.xlu0 %6580 }
0x25e1   :  { %v6583_v0 = vpop.permute.xlu1 %6582 }
0x25e2   :  { %v6584_v44 = vsel %vm1553_vm3, %v6581_v4, %v6583_v0  ;;  %v6588_v45 = vmul.f32 %v12846_v48, %v6583_v0 }
0x25e3   :  { %v6587_v32 = vmul.f32 %v12848_v28, %v6584_v44  ;;  %v6575_v28 = vmul.f32 %v12846_v48, %v15998_v2  ;;  %v6529_v44 = vadd.f32 %v6451_v58, %v6225_v51 }
0x25e4   :  { %6593 = vrot.lane.b32.xlu1 %v6588_v45, %s13109_s24  ;;  %v6576_v45 = vmul.f32 %v12854_v22, %v16000_v53 }
0x25e5   :  { %6591 = vrot.lane.b32.xlu0 %v6587_v32, %s13109_s24  ;;  %v8933_v1 = vmul.f32 -1.442695, %v6529_v44 }
0x2656   :  { %v6594_v0 = vpop.permute.xlu1 %6593 }
0x2657   :  { %v6592_v32 = vpop.permute.xlu0 %6591  ;;  %v16154_v4 = vadd.f32 %v6594_v0, %v6577_v7 }
0x2658   :  { %v6595_v19 = vsel %vm1206_vm4, %v6592_v32, %v6594_v0  ;;  %v16150_v41 = vadd.f32 %v6592_v32, %v6575_v28 }
0x2659   :  { %v16152_v36 = vadd.f32 %v6595_v19, %v6576_v45 }
0x265a   :  { %12857 = vtanh.f32 %v16150_v41 }
0x265b   :  { %12859 = vtanh.f32 %v16152_v36 }
0x265c   :  { %12861 = vtanh.f32 %v16154_v4 }
0x265d   :  { %12863 = vpow2.f32 %v8933_v1 }
0x265e   :  { %12865 = vpow2.f32 %v8934_v46  ;;  %v16230_v46 = vld [vmem:[#allocation3 + $0x568] sm:$0xff] }
0x265f   :  { %12867 = vpow2.f32 %v8932_v50  ;;  %v16234_v50 = vld [vmem:[#allocation3 + $0x560] sm:$0xff] }
0x2660   :  { %17961 = vst [vmem:[#allocation96_spill] sm:$0xff] %v16234_v50 }
0x2664   :  { %v12858_v2 = vpop.eup %12857 }
0x2665   :  { %v12860_v48 = vpop.eup %12859  ;;  %6608 = vrot.lane.b32.xlu0 %v12858_v2, %s13105_s14 }
0x2666   :  { %6610 = vrot.lane.b32.xlu1 %v12860_v48, %s13105_s14  ;;  %v12862_v53 = vpop.eup %12861 }
0x2667   :  { %v12864_v60 = vpop.eup %12863 }
0x2668   :  { %v12866_v47 = vpop.eup %12865  ;;  %v6567_v3 = vadd.f32 1.0, %v12864_v60  ;;  %v16237_v60 = vld [vmem:[#allocation3 + $0x570] sm:$0xff] }
0x2669   :  { %6612 = vrot.lane.b32.xlu0 %v12862_v53, %s13105_s14  ;;  %v12868_v22 = vpop.eup %12867  ;;  %v6568_v9 = vadd.f32 1.0, %v12866_v47  ;;  %17962 = vst [vmem:[#allocation97_spill] sm:$0xff] %v16237_v60  ;;  %v17963_v47 = vld [vmem:[#allocation12_spill] sm:$0xff] }
0x266a   :  { %v6566_v0 = vadd.f32 1.0, %v12868_v22  ;;  %12869 = vrcp.f32 %v6567_v3  ;;  %v17964_v3 = vld [vmem:[#allocation13_spill] sm:$0xff]  ;;  %v17965_v22 = vld [vmem:[#allocation14_spill] sm:$0xff] }
0x266b   :  { %12871 = vrcp.f32 %v6568_v9  ;;  %v17966_v9 = vld [vmem:[#allocation15_spill] sm:$0xff] }
0x266c   :  { %12873 = vrcp.f32 %v6566_v0  ;;  %v17967_v0 = vld [vmem:[#allocation16_spill] sm:$0xff] }
0x2674   :  { %v12870_v45 = vpop.eup %12869 }
0x2675   :  { %v12872_v7 = vpop.eup %12871 }
0x2676   :  { %v12874_v2 = vpop.eup %12873 }
0x26d7   :  { %v6609_v58 = vpop.permute.xlu0 %6608 }
0x26d8   :  { %v6611_v28 = vpop.permute.xlu1 %6610  ;;  %v16172_v53 = vmul.f32 %v12874_v2, %v6609_v58  ;;  %v17975_v2 = vld [vmem:[#allocation24_spill] sm:$0xff] }
0x26d9   :  { %v6614_v54 = vsel %vm1584_vm5, %v6609_v58, %v6611_v28  ;;  %v17968_v58 = vld [vmem:[#allocation17_spill] sm:$0xff] }
0x26da   :  { %v16165_v32 = vmul.f32 %v12870_v45, %v6614_v54  ;;  %17960 = vst [vmem:[#allocation81_spill] sm:$0xff] %v16172_v53  ;;  %v17970_v45 = vld [vmem:[#allocation19_spill] sm:$0xff]  ;;  %v17971_v54 = vld [vmem:[#allocation20_spill] sm:$0xff] }
0x26db   :  { %v6613_v15 = vpop.permute.xlu0 %6612 }
0x26dc   :  { %17958 = vst [vmem:[#allocation67_spill] sm:$0xff] %v16165_v32  ;;  %v6615_v19 = vsel %vm1584_vm5, %v6611_v28, %v6613_v15  ;;  %6651 = vrot.lane.b32.xlu1 %v16165_v32, %s13110_s25  ;;  %v17969_v28 = vld [vmem:[#allocation18_spill] sm:$0xff]  ;;  %v17972_v15 = vld [vmem:[#allocation21_spill] sm:$0xff]  ;;  %v17983_v32 = vld [vmem:[#allocation32_spill] sm:$0xff] }
0x26dd   :  { %v16170_v48 = vmul.f32 %v12872_v7, %v6615_v19  ;;  %v17973_v7 = vld [vmem:[#allocation22_spill] sm:$0xff]  ;;  %v17974_v19 = vld [vmem:[#allocation23_spill] sm:$0xff] }
0x26df   :  { %17959 = vst [vmem:[#allocation79_spill] sm:$0xff] %v16170_v48  ;;  %6653 = vrot.lane.b32.xlu0 %v16170_v48, %s13110_s25  ;;  %v17981_v48 = vld [vmem:[#allocation30_spill] sm:$0xff] }
0x26e0   :  { %6649 = vrot.lane.b32.xlu1 %v16172_v53, %s13110_s25  ;;  %v17982_v53 = vld [vmem:[#allocation31_spill] sm:$0xff] }
0x274e   :  { %v6652_v51 = vpop.permute.xlu1 %6651 }
0x2751   :  { %v6654_v44 = vpop.permute.xlu0 %6653 }
0x2752   :  { %v6656_v12 = vsel %vm1626_vm6, %v6652_v51, %v6654_v44  ;;  %v6650_v52 = vpop.permute.xlu1 %6649  ;;  %v17977_v44 = vld [vmem:[#allocation26_spill] sm:$0xff] }
0x2753   :  { %v6655_v1 = vsel %vm1626_vm6, %v6650_v52, %v6652_v51  ;;  %8936 = vmatprep.mubr.msk.f32.mxu1 %vm1206_vm4, %v6656_v12  ;;  %8937 = vmatprep.mubr.msk.f32.mxu0 %vm1206_vm4, %v6656_v12  ;;  %v17976_v51 = vld [vmem:[#allocation25_spill] sm:$0xff]  ;;  %v17979_v52 = vld [vmem:[#allocation28_spill] sm:$0xff] }
0x2754   :  { %6725 = vmatmul.mubr.f32.vlgmr.msra.gmra.mrb[100].mxu1 %v6655_v1  ;;  %6796 = vmatmul.mubr.f32.vlgmr.msra.gmra.mrb[116].mxu0 %v6655_v1 }
0x2755   :  { %11621 = vmatpush1.bf16.msra.mxu1 %v17258_v23  ;;  %11668 = vmatpush1.bf16.msra.mxu0 %v17259_v13 }
0x2756   :  { %8938 = vmatprep.mubr.msk.f32.mxu1 %vm1206_vm4, %v6656_v12  ;;  %8939 = vmatprep.mubr.msk.f32.mxu0 %vm1206_vm4, %v6656_v12  ;;  %v17978_v12 = vld [vmem:[#allocation27_spill] sm:$0xff] }
0x2757   :  { %11623 = vmatprep.subr.bf16.mxu1 %v17260_v35  ;;  %11669 = vmatprep.subr.bf16.mxu0 %v17227_v25 }
0x2759   :  { %11625 = vmatpush1.bf16.msra.mxu1 %v17261_v55  ;;  %11671 = vmatpush1.bf16.msra.mxu0 %v17262_v37 }
0x275a   :  { %11627 = vmatprep.subr.bf16.mxu1 %v17263_v5  ;;  %11672 = vmatprep.subr.bf16.mxu0 %v17227_v25 }
0x275d   :  { %11629 = vmatpush1.bf16.msra.mxu1 %v17264_v43  ;;  %11674 = vmatpush1.bf16.msra.mxu0 %v17265_v20 }
0x275e   :  { %11631 = vmatprep.subr.bf16.mxu1 %v17266_v21  ;;  %11675 = vmatprep.subr.bf16.mxu0 %v17227_v25 }
0x2761   :  { %11633 = vmatpush1.bf16.msra.mxu1 %v17267_v14  ;;  %11677 = vmatpush1.bf16.msra.mxu0 %v17268_v33 }
0x2762   :  { %11635 = vmatprep.subr.bf16.mxu1 %v17269_v62  ;;  %11678 = vmatprep.subr.bf16.mxu0 %v17227_v25 }
0x2765   :  { %11637 = vmatpush1.bf16.msra.mxu1 %v17270_v59  ;;  %11680 = vmatpush1.bf16.msra.mxu0 %v17271_v16 }
0x2766   :  { %11639 = vmatprep.subr.bf16.mxu1 %v17315_v61  ;;  %11681 = vmatprep.subr.bf16.mxu0 %v17227_v25 }
0x2769   :  { %11641 = vmatpush1.bf16.msra.mxu1 %v17273_v39  ;;  %11683 = vmatpush1.bf16.msra.mxu0 %v17316_v57 }
0x276a   :  { %11643 = vmatprep.subr.bf16.mxu1 %v17317_v18  ;;  %11684 = vmatprep.subr.bf16.mxu0 %v17227_v25 }
0x276d   :  { %11645 = vmatpush1.bf16.msra.mxu1 %v17275_v11  ;;  %11686 = vmatpush1.bf16.msra.mxu0 %v13975_v40 }
0x276e   :  { %11647 = vmatprep.subr.bf16.mxu1 %v17276_v56  ;;  %11687 = vmatprep.subr.bf16.mxu0 %v17227_v25 }
0x2771   :  { %11649 = vmatpush1.bf16.msra.mxu1 %v17277_v8  ;;  %11689 = vmatpush1.bf16.msra.mxu0 %v13985_v29 }
0x2772   :  { %11651 = vmatprep.subr.bf16.mxu1 %v17278_v63  ;;  %11690 = vmatprep.subr.bf16.mxu0 %v17227_v25 }
0x2775   :  { %11653 = vmatpush1.bf16.msra.mxu1 %v17279_v24  ;;  %11692 = vmatpush1.bf16.msra.mxu0 %v17318_v30 }
0x2776   :  { %11655 = vmatprep.subr.bf16.mxu1 %v17319_v38  ;;  %11693 = vmatprep.subr.bf16.mxu0 %v17227_v25 }
0x2779   :  { %11657 = vmatpush1.bf16.msra.mxu1 %v13971_v10  ;;  %11695 = vmatpush1.bf16.msra.mxu0 %v14000_v17 }
0x277a   :  { %11659 = vmatprep.subr.bf16.mxu1 %v17320_v49  ;;  %11696 = vmatprep.subr.bf16.mxu0 %v17227_v25 }
0x277d   :  { %11661 = vmatpush1.bf16.msra.mxu1 %v17321_v34  ;;  %11698 = vmatpush1.bf16.msra.mxu0 %v14005_v31 }
0x277e   :  { %11663 = vmatprep.subr.bf16.mxu1 %v13987_v26  ;;  %11699 = vmatprep.subr.bf16.mxu0 %v17227_v25 }
0x2781   :  { %11665 = vmatpush1.bf16.msra.mxu1 %v17281_v6  ;;  %11701 = vmatpush1.bf16.msra.mxu0 %v14012_v27 }
0x2782   :  { %6850 = vmatprep.subr.mxu1 %v16230_v46  ;;  %6921 = vmatprep.subr.mxu0 %v17902_v42 }
0x2785   :  { %6851 = vmatpush1.msra.mxu1 %v16234_v50  ;;  %6922 = vmatpush1.msra.mxu0 %v16237_v60 }
0x2786   :  { %6867 = vmatmul.mubr.f32.vlgmr.msra.gmra.mrb[102].mxu1 %v6655_v1  ;;  %6938 = vmatmul.mubr.f32.vlgmr.msra.gmra.mrb[118].mxu0 %v6655_v1  ;;  %v17980_v1 = vld [vmem:[#allocation29_spill] sm:$0xff] }
0x2787   :  { %11703 = vmatprep.subr.bf16.mxu1 %v17963_v47  ;;  %11751 = vmatprep.subr.bf16.mxu0 %v17964_v3 }
0x2788   :  { %11705 = vmatpush1.bf16.msra.mxu1 %v17965_v22  ;;  %11753 = vmatpush1.bf16.msra.mxu0 %v17966_v9 }
0x2789   :  { %11707 = vmatprep.subr.bf16.mxu1 %v17967_v0  ;;  %11755 = vmatprep.subr.bf16.mxu0 %v17968_v58  ;;  %v6639_v58 = vld [vmem:[#allocation2 + $0x2d8] sm:$0xff] }
0x278c   :  { %11709 = vmatpush1.bf16.msra.mxu1 %v17969_v28  ;;  %11757 = vmatpush1.bf16.msra.mxu0 %v17970_v45  ;;  %v6640_v28 = vld [vmem:[#allocation2 + $0x2e0] sm:$0xff] }
0x278d   :  { %11711 = vmatprep.subr.bf16.mxu1 %v17971_v54  ;;  %11759 = vmatprep.subr.bf16.mxu0 %v17972_v15 }
0x2790   :  { %11713 = vmatpush1.bf16.msra.mxu1 %v17973_v7  ;;  %11761 = vmatpush1.bf16.msra.mxu0 %v17974_v19  ;;  %v17984_v7 = vld [vmem:[#allocation33_spill] sm:$0xff]  ;;  %v17985_v19 = vld [vmem:[#allocation34_spill] sm:$0xff] }
0x2791   :  { %11715 = vmatprep.subr.bf16.mxu1 %v17975_v2  ;;  %11763 = vmatprep.subr.bf16.mxu0 %v17976_v51  ;;  %v17986_v2 = vld [vmem:[#allocation35_spill] sm:$0xff]  ;;  %v17987_v51 = vld [vmem:[#allocation36_spill] sm:$0xff] }
0x2794   :  { %11717 = vmatpush1.bf16.msra.mxu1 %v17977_v44  ;;  %11765 = vmatpush1.bf16.msra.mxu0 %v17978_v12  ;;  %v17988_v44 = vld [vmem:[#allocation37_spill] sm:$0xff]  ;;  %v17989_v12 = vld [vmem:[#allocation38_spill] sm:$0xff] }
0x2795   :  { %11719 = vmatprep.subr.bf16.mxu1 %v17979_v52  ;;  %11767 = vmatprep.subr.bf16.mxu0 %v17980_v1  ;;  %v17990_v52 = vld [vmem:[#allocation39_spill] sm:$0xff]  ;;  %v17991_v1 = vld [vmem:[#allocation40_spill] sm:$0xff] }
0x2798   :  { %11721 = vmatpush1.bf16.msra.mxu1 %v17981_v48  ;;  %11769 = vmatpush1.bf16.msra.mxu0 %v17982_v53  ;;  %v17992_v48 = vld [vmem:[#allocation41_spill] sm:$0xff]  ;;  %v17993_v53 = vld [vmem:[#allocation42_spill] sm:$0xff] }
0x2799   :  { %11723 = vmatprep.subr.bf16.mxu1 %v17983_v32  ;;  %11771 = vmatprep.subr.bf16.mxu0 %v17984_v7  ;;  %v17994_v32 = vld [vmem:[#allocation43_spill] sm:$0xff]  ;;  %v17995_v7 = vld [vmem:[#allocation44_spill] sm:$0xff] }
0x279c   :  { %11725 = vmatpush1.bf16.msra.mxu1 %v17985_v19  ;;  %11773 = vmatpush1.bf16.msra.mxu0 %v17986_v2  ;;  %v17996_v19 = vld [vmem:[#allocation45_spill] sm:$0xff]  ;;  %v17997_v2 = vld [vmem:[#allocation46_spill] sm:$0xff] }
0x279d   :  { %11727 = vmatprep.subr.bf16.mxu1 %v17987_v51  ;;  %11775 = vmatprep.subr.bf16.mxu0 %v17988_v44  ;;  %v17998_v51 = vld [vmem:[#allocation47_spill] sm:$0xff]  ;;  %v17999_v44 = vld [vmem:[#allocation48_spill] sm:$0xff] }
0x27a0   :  { %11729 = vmatpush1.bf16.msra.mxu1 %v17989_v12  ;;  %11777 = vmatpush1.bf16.msra.mxu0 %v17990_v52  ;;  %v18000_v12 = vld [vmem:[#allocation49_spill] sm:$0xff]  ;;  %v18001_v52 = vld [vmem:[#allocation50_spill] sm:$0xff] }
0x27a1   :  { %11731 = vmatprep.subr.bf16.mxu1 %v17991_v1  ;;  %11779 = vmatprep.subr.bf16.mxu0 %v17992_v48  ;;  %v18002_v1 = vld [vmem:[#allocation51_spill] sm:$0xff]  ;;  %v18003_v48 = vld [vmem:[#allocation52_spill] sm:$0xff] }
0x27a4   :  { %11733 = vmatpush1.bf16.msra.mxu1 %v17993_v53  ;;  %11781 = vmatpush1.bf16.msra.mxu0 %v17994_v32  ;;  %v18004_v53 = vld [vmem:[#allocation53_spill] sm:$0xff]  ;;  %v18005_v32 = vld [vmem:[#allocation54_spill] sm:$0xff] }
0x27a5   :  { %11735 = vmatprep.subr.bf16.mxu1 %v17995_v7  ;;  %11783 = vmatprep.subr.bf16.mxu0 %v17996_v19  ;;  %v18006_v7 = vld [vmem:[#allocation55_spill] sm:$0xff]  ;;  %v18007_v19 = vld [vmem:[#allocation56_spill] sm:$0xff] }
0x27a8   :  { %11737 = vmatpush1.bf16.msra.mxu1 %v17997_v2  ;;  %11785 = vmatpush1.bf16.msra.mxu0 %v17998_v51  ;;  %v18008_v2 = vld [vmem:[#allocation57_spill] sm:$0xff]  ;;  %v18009_v51 = vld [vmem:[#allocation58_spill] sm:$0xff] }
0x27a9   :  { %11739 = vmatprep.subr.bf16.mxu1 %v17999_v44  ;;  %11787 = vmatprep.subr.bf16.mxu0 %v18000_v12  ;;  %v18010_v44 = vld [vmem:[#allocation59_spill] sm:$0xff]  ;;  %v16288_v12 = vld [vmem:[#allocation3 + $0x548] sm:$0xff] }
0x27aa   :  { %18011 = vst [vmem:[#allocation98_spill] sm:$0xff] %v16288_v12 }
0x27ac   :  { %11741 = vmatpush1.bf16.msra.mxu1 %v18001_v52  ;;  %11789 = vmatpush1.bf16.msra.mxu0 %v18002_v1  ;;  %v16291_v1 = vld [vmem:[#allocation3 + $0x558] sm:$0xff] }
0x27ad   :  { %11743 = vmatprep.subr.bf16.mxu1 %v18003_v48  ;;  %11791 = vmatprep.subr.bf16.mxu0 %v18004_v53  ;;  %18012 = vst [vmem:[#allocation105_spill] sm:$0xff] %v16291_v1  ;;  %v16294_v53 = vld [vmem:[#allocation3 + $0x540] sm:$0xff]  ;;  %v6643_v52 = vld [vmem:[#allocation2 + $0x2f8] sm:$0xff] }
0x27ae   :  { %18013 = vst [vmem:[#allocation106_spill] sm:$0xff] %v16294_v53 }
0x27b0   :  { %11745 = vmatpush1.bf16.msra.mxu1 %v18005_v32  ;;  %11793 = vmatpush1.bf16.msra.mxu0 %v18006_v7  ;;  %v16297_v7 = vld [vmem:[#allocation3 + $0x550] sm:$0xff] }
0x27b1   :  { %11747 = vmatprep.subr.bf16.mxu1 %v18007_v19  ;;  %11795 = vmatprep.subr.bf16.mxu0 %v18008_v2  ;;  %18014 = vst [vmem:[#allocation107_spill] sm:$0xff] %v16297_v7  ;;  %v18015_v2 = vld [vmem:[#allocation62_spill] sm:$0xff] }
0x27b4   :  { %11749 = vmatpush1.bf16.msra.mxu1 %v18009_v51  ;;  %11797 = vmatpush1.bf16.msra.mxu0 %v18010_v44 }
0x27b5   :  { %7127 = vmatprep.subr.mxu1 %v16288_v12  ;;  %7198 = vmatprep.subr.mxu0 %v16291_v1  ;;  %v6642_v12 = vld [vmem:[#allocation2 + $0x2f0] sm:$0xff] }
0x27b8   :  { %7128 = vmatpush1.msra.mxu1 %v16294_v53  ;;  %7199 = vmatpush1.msra.mxu0 %v16297_v7 }
0x27b9   :  { %11799 = vmatprep.subr.bf16.mxu1 %v18015_v2  ;;  %11846 = vmatprep.subr.bf16.mxu0 %v17227_v25 }
0x2827   :  { %v6726_v44 = vpop.f32.mrb[100].mxu1  ;;  %v6797_v51 = vpop.f32.mrb[116].mxu0 }
0x2828   :  { %v6728_v19 = vpop.f32.mrb[101].mxu1  ;;  %v6799_v32 = vpop.f32.mrb[117].mxu0 }
0x2829   :  { %v6946_v48 = vadd.f32 %v6799_v32, %v6642_v12  ;;  %v6944_v32 = vadd.f32 %v6728_v19, %v6640_v28  ;;  %v6943_v12 = vadd.f32 %v6726_v44, %v6639_v58 }
0x282b   :  { %12875 = vtanh.f32 %v6946_v48  ;;  %v8941_v0 = vmul.f32 -1.442695, %v6944_v32  ;;  %v8940_v9 = vmul.f32 -1.442695, %v6943_v12  ;;  %v8943_v28 = vmul.f32 -1.442695, %v6946_v48 }
0x2835   :  { %v12876_v1 = vpop.eup %12875 }
0x2836   :  { %6999 = vrot.lane.b32.xlu0 %v12876_v1, %s13108_s3 }
0x2859   :  { %v6868_v53 = vpop.f32.mrb[102].mxu1  ;;  %v16303_v15 = vpop.f32.mrb[118].mxu0 }
0x285a   :  { %v16305_v54 = vadd.f32 %v6868_v53, %v6643_v52  ;;  %v6870_v7 = vpop.f32.mrb[103].mxu1  ;;  %v6941_v2 = vpop.f32.mrb[119].mxu0 }
0x285c   :  { %12877 = vtanh.f32 %v16305_v54 }
0x285d   :  { %12879 = vpow2.f32 %v8941_v0  ;;  %v6641_v0 = vld [vmem:[#allocation2 + $0x2e8] sm:$0xff] }
0x285e   :  { %12881 = vpow2.f32 %v8940_v9  ;;  %v6945_v9 = vadd.f32 %v6797_v51, %v6641_v0  ;;  %v6645_v0 = vld [vmem:[#allocation2 + $0x308] sm:$0xff] }
0x2860   :  { %v8942_v58 = vmul.f32 -1.442695, %v6945_v9  ;;  %v6949_v9 = vadd.f32 %v16303_v15, %v6645_v0 }
0x2866   :  { %v12878_v45 = vpop.eup %12877 }
0x2867   :  { %7001 = vrot.lane.b32.xlu1 %v12878_v45, %s13108_s3  ;;  %v12880_v1 = vpop.eup %12879 }
0x2868   :  { %v12882_v22 = vpop.eup %12881  ;;  %v6957_v3 = vadd.f32 1.0, %v12880_v1 }
0x2869   :  { %v6956_v53 = vadd.f32 1.0, %v12882_v22 }
0x286a   :  { %12883 = vrcp.f32 %v6957_v3 }
0x286b   :  { %12885 = vrcp.f32 %v6956_v53 }
0x286c   :  { %12887 = vpow2.f32 %v8942_v58 }
0x286d   :  { %12889 = vpow2.f32 %v8943_v28  ;;  %v8946_v28 = vmul.f32 -1.442695, %v6949_v9 }
0x2874   :  { %v12884_v2 = vpop.eup %12883 }
0x2875   :  { %v12886_v60 = vpop.eup %12885 }
0x2876   :  { %v12888_v3 = vpop.eup %12887 }
0x2877   :  { %v12890_v22 = vpop.eup %12889  ;;  %v6968_v19 = vadd.f32 1.0, %v12888_v3  ;;  %v8944_v3 = vmul.f32 -1.442695, %v16305_v54 }
0x2878   :  { %v6969_v44 = vadd.f32 1.0, %v12890_v22 }
0x2879   :  { %12891 = vrcp.f32 %v6968_v19 }
0x287a   :  { %12893 = vrcp.f32 %v6969_v44 }
0x2883   :  { %v12892_v32 = vpop.eup %12891 }
0x2884   :  { %v12894_v12 = vpop.eup %12893 }
0x2885   :  { %v6996_v51 = vmul.f32 %v12894_v12, %v16154_v4  ;;  %v6644_v4 = vld [vmem:[#allocation2 + $0x300] sm:$0xff] }
0x28a8   :  { %v7000_v52 = vpop.permute.xlu0 %6999 }
0x28d9   :  { %v7002_v47 = vpop.permute.xlu1 %7001 }
0x28da   :  { %v7003_v45 = vsel %vm1553_vm3, %v7000_v52, %v7002_v47  ;;  %v7007_v50 = vmul.f32 %v12884_v2, %v7002_v47 }
0x28db   :  { %v7006_v42 = vmul.f32 %v12886_v60, %v7003_v45  ;;  %v6994_v60 = vmul.f32 %v12884_v2, %v16150_v41  ;;  %v6948_v45 = vadd.f32 %v6870_v7, %v6644_v4 }
0x28dc   :  { %7012 = vrot.lane.b32.xlu1 %v7007_v50, %s13109_s24  ;;  %v6995_v50 = vmul.f32 %v12892_v32, %v16152_v36 }
0x28dd   :  { %7010 = vrot.lane.b32.xlu0 %v7006_v42, %s13109_s24  ;;  %v8945_v58 = vmul.f32 -1.442695, %v6948_v45 }
0x294e   :  { %v7013_v47 = vpop.permute.xlu1 %7012 }
0x294f   :  { %v7011_v42 = vpop.permute.xlu0 %7010  ;;  %v16320_v52 = vadd.f32 %v7013_v47, %v6996_v51 }
0x2950   :  { %v7014_v48 = vsel %vm1206_vm4, %v7011_v42, %v7013_v47  ;;  %v16316_v1 = vadd.f32 %v7011_v42, %v6994_v60 }
0x2951   :  { %v16318_v53 = vadd.f32 %v7014_v48, %v6995_v50 }
0x2952   :  { %12895 = vtanh.f32 %v16316_v1 }
0x2953   :  { %12897 = vtanh.f32 %v16318_v53 }
0x2954   :  { %12899 = vtanh.f32 %v16320_v52 }
0x2955   :  { %12901 = vpow2.f32 %v8945_v58 }
0x2956   :  { %12903 = vpow2.f32 %v8946_v28  ;;  %v18019_v28 = vmov 0.0  }
0x2957   :  { %12905 = vpow2.f32 %v8944_v3  ;;  %v18020_v3 = vld [vmem:[#allocation96_spill] sm:$0xff] }
0x295c   :  { %v12896_v41 = vpop.eup %12895 }
0x295d   :  { %v12898_v2 = vpop.eup %12897  ;;  %7027 = vrot.lane.b32.xlu0 %v12896_v41, %s13105_s14 }
0x295e   :  { %7029 = vrot.lane.b32.xlu1 %v12898_v2, %s13105_s14  ;;  %v12900_v36 = vpop.eup %12899 }
0x295f   :  { %v12902_v22 = vpop.eup %12901 }
0x2960   :  { %v12904_v19 = vpop.eup %12903  ;;  %v6986_v44 = vadd.f32 1.0, %v12902_v22  ;;  %v18021_v22 = vld [vmem:[#allocation97_spill] sm:$0xff] }
0x2961   :  { %7031 = vrot.lane.b32.xlu0 %v12900_v36, %s13105_s14  ;;  %v12906_v32 = vpop.eup %12905  ;;  %v6987_v12 = vadd.f32 1.0, %v12904_v19  ;;  %v18022_v19 = vld [vmem:[#allocation12_spill] sm:$0xff] }
0x2962   :  { %v6985_v47 = vadd.f32 1.0, %v12906_v32  ;;  %12907 = vrcp.f32 %v6986_v44  ;;  %v18023_v44 = vld [vmem:[#allocation13_spill] sm:$0xff]  ;;  %v18024_v32 = vld [vmem:[#allocation14_spill] sm:$0xff] }
0x2963   :  { %12909 = vrcp.f32 %v6987_v12  ;;  %v18025_v12 = vld [vmem:[#allocation15_spill] sm:$0xff] }
0x2964   :  { %12911 = vrcp.f32 %v6985_v47  ;;  %v18026_v47 = vld [vmem:[#allocation16_spill] sm:$0xff] }
0x296c   :  { %v12908_v50 = vpop.eup %12907 }
0x296d   :  { %v12910_v51 = vpop.eup %12909 }
0x296e   :  { %v12912_v41 = vpop.eup %12911 }
0x29cf   :  { %v7028_v7 = vpop.permute.xlu0 %7027 }
0x29d0   :  { %v7030_v60 = vpop.permute.xlu1 %7029  ;;  %v16338_v36 = vmul.f32 %v12912_v41, %v7028_v7  ;;  %v18034_v41 = vld [vmem:[#allocation24_spill] sm:$0xff] }
0x29d1   :  { %v7033_v15 = vsel %vm1584_vm5, %v7028_v7, %v7030_v60  ;;  %v18027_v7 = vld [vmem:[#allocation17_spill] sm:$0xff] }
0x29d2   :  { %v16331_v42 = vmul.f32 %v12908_v50, %v7033_v15  ;;  %18018 = vst [vmem:[#allocation110_spill] sm:$0xff] %v16338_v36  ;;  %v18029_v50 = vld [vmem:[#allocation19_spill] sm:$0xff]  ;;  %v18030_v15 = vld [vmem:[#allocation20_spill] sm:$0xff] }
0x29d3   :  { %v7032_v54 = vpop.permute.xlu0 %7031 }
0x29d4   :  { %18016 = vst [vmem:[#allocation108_spill] sm:$0xff] %v16331_v42  ;;  %v7034_v48 = vsel %vm1584_vm5, %v7030_v60, %v7032_v54  ;;  %7070 = vrot.lane.b32.xlu1 %v16331_v42, %s13110_s25  ;;  %v18028_v60 = vld [vmem:[#allocation18_spill] sm:$0xff]  ;;  %v18031_v54 = vld [vmem:[#allocation21_spill] sm:$0xff] }
0x29d5   :  { %v16336_v2 = vmul.f32 %v12910_v51, %v7034_v48  ;;  %v18032_v51 = vld [vmem:[#allocation22_spill] sm:$0xff]  ;;  %v18033_v48 = vld [vmem:[#allocation23_spill] sm:$0xff] }
0x29d7   :  { %18017 = vst [vmem:[#allocation109_spill] sm:$0xff] %v16336_v2  ;;  %7072 = vrot.lane.b32.xlu0 %v16336_v2, %s13110_s25 }
0x29d8   :  { %7068 = vrot.lane.b32.xlu1 %v16338_v36, %s13110_s25 }
0x2a46   :  { %v7071_v4 = vpop.permute.xlu1 %7070 }
0x2a49   :  { %v7073_v45 = vpop.permute.xlu0 %7072 }
0x2a4a   :  { %v7075_v0 = vsel %vm1626_vm6, %v7071_v4, %v7073_v45  ;;  %v7069_v9 = vpop.permute.xlu1 %7068  ;;  %v18036_v45 = vld [vmem:[#allocation26_spill] sm:$0xff] }
0x2a4b   :  { %v7074_v58 = vsel %vm1626_vm6, %v7069_v9, %v7071_v4  ;;  %8948 = vmatprep.mubr.msk.f32.mxu1 %vm1206_vm4, %v7075_v0  ;;  %8949 = vmatprep.mubr.msk.f32.mxu0 %vm1206_vm4, %v7075_v0  ;;  %v18035_v4 = vld [vmem:[#allocation25_spill] sm:$0xff]  ;;  %v18038_v9 = vld [vmem:[#allocation28_spill] sm:$0xff] }
0x2a4c   :  { %7144 = vmatmul.mubr.f32.vlgmr.msra.gmra.mrb[104].mxu1 %v7074_v58  ;;  %7215 = vmatmul.mubr.f32.vlgmr.msra.gmra.mrb[120].mxu0 %v7074_v58 }
0x2a4d   :  { %11801 = vmatpush1.bf16.msra.mxu1 %v17258_v23  ;;  %11848 = vmatpush1.bf16.msra.mxu0 %v17259_v13 }
0x2a4e   :  { %8950 = vmatprep.mubr.msk.f32.mxu1 %vm1206_vm4, %v7075_v0  ;;  %8951 = vmatprep.mubr.msk.f32.mxu0 %vm1206_vm4, %v7075_v0  ;;  %v18037_v0 = vld [vmem:[#allocation27_spill] sm:$0xff] }
0x2a4f   :  { %11803 = vmatprep.subr.bf16.mxu1 %v17260_v35  ;;  %11849 = vmatprep.subr.bf16.mxu0 %v17227_v25 }
0x2a51   :  { %11805 = vmatpush1.bf16.msra.mxu1 %v17261_v55  ;;  %11851 = vmatpush1.bf16.msra.mxu0 %v17262_v37 }
0x2a52   :  { %11807 = vmatprep.subr.bf16.mxu1 %v17263_v5  ;;  %11852 = vmatprep.subr.bf16.mxu0 %v17227_v25 }
0x2a55   :  { %11809 = vmatpush1.bf16.msra.mxu1 %v17264_v43  ;;  %11854 = vmatpush1.bf16.msra.mxu0 %v17265_v20 }
0x2a56   :  { %11811 = vmatprep.subr.bf16.mxu1 %v17266_v21  ;;  %11855 = vmatprep.subr.bf16.mxu0 %v17227_v25 }
0x2a59   :  { %11813 = vmatpush1.bf16.msra.mxu1 %v17267_v14  ;;  %11857 = vmatpush1.bf16.msra.mxu0 %v17268_v33 }
0x2a5a   :  { %11815 = vmatprep.subr.bf16.mxu1 %v17269_v62  ;;  %11858 = vmatprep.subr.bf16.mxu0 %v17227_v25 }
0x2a5d   :  { %11817 = vmatpush1.bf16.msra.mxu1 %v17270_v59  ;;  %11860 = vmatpush1.bf16.msra.mxu0 %v17271_v16 }
0x2a5e   :  { %11819 = vmatprep.subr.bf16.mxu1 %v17315_v61  ;;  %11861 = vmatprep.subr.bf16.mxu0 %v17227_v25 }
0x2a61   :  { %11821 = vmatpush1.bf16.msra.mxu1 %v17273_v39  ;;  %11863 = vmatpush1.bf16.msra.mxu0 %v17316_v57 }
0x2a62   :  { %11823 = vmatprep.subr.bf16.mxu1 %v17317_v18  ;;  %11864 = vmatprep.subr.bf16.mxu0 %v17227_v25 }
0x2a65   :  { %11825 = vmatpush1.bf16.msra.mxu1 %v17275_v11  ;;  %11866 = vmatpush1.bf16.msra.mxu0 %v13975_v40 }
0x2a66   :  { %11827 = vmatprep.subr.bf16.mxu1 %v17276_v56  ;;  %11867 = vmatprep.subr.bf16.mxu0 %v17227_v25 }
0x2a69   :  { %11829 = vmatpush1.bf16.msra.mxu1 %v17277_v8  ;;  %11869 = vmatpush1.bf16.msra.mxu0 %v13985_v29 }
0x2a6a   :  { %11831 = vmatprep.subr.bf16.mxu1 %v17278_v63  ;;  %11870 = vmatprep.subr.bf16.mxu0 %v17227_v25 }
0x2a6d   :  { %11833 = vmatpush1.bf16.msra.mxu1 %v17279_v24  ;;  %11872 = vmatpush1.bf16.msra.mxu0 %v17318_v30 }
0x2a6e   :  { %11835 = vmatprep.subr.bf16.mxu1 %v17319_v38  ;;  %11873 = vmatprep.subr.bf16.mxu0 %v17227_v25 }
0x2a71   :  { %11837 = vmatpush1.bf16.msra.mxu1 %v13971_v10  ;;  %11875 = vmatpush1.bf16.msra.mxu0 %v14000_v17 }
0x2a72   :  { %11839 = vmatprep.subr.bf16.mxu1 %v17320_v49  ;;  %11876 = vmatprep.subr.bf16.mxu0 %v17227_v25 }
0x2a75   :  { %11841 = vmatpush1.bf16.msra.mxu1 %v17321_v34  ;;  %11878 = vmatpush1.bf16.msra.mxu0 %v14005_v31 }
0x2a76   :  { %11843 = vmatprep.subr.bf16.mxu1 %v13987_v26  ;;  %11879 = vmatprep.subr.bf16.mxu0 %v17227_v25 }
0x2a79   :  { %11845 = vmatpush1.bf16.msra.mxu1 %v17281_v6  ;;  %11881 = vmatpush1.bf16.msra.mxu0 %v14012_v27 }
0x2a7a   :  { %7269 = vmatprep.subr.mxu1 %v16230_v46  ;;  %7340 = vmatprep.subr.mxu0 %v18019_v28 }
0x2a7d   :  { %7270 = vmatpush1.msra.mxu1 %v18020_v3  ;;  %7341 = vmatpush1.msra.mxu0 %v18021_v22 }
0x2a7e   :  { %7286 = vmatmul.mubr.f32.vlgmr.msra.gmra.mrb[106].mxu1 %v7074_v58  ;;  %7357 = vmatmul.mubr.f32.vlgmr.msra.gmra.mrb[122].mxu0 %v7074_v58  ;;  %v18039_v58 = vld [vmem:[#allocation29_spill] sm:$0xff] }
0x2a7f   :  { %11883 = vmatprep.subr.bf16.mxu1 %v18022_v19  ;;  %11931 = vmatprep.subr.bf16.mxu0 %v18023_v44  ;;  %v18040_v19 = vld [vmem:[#allocation30_spill] sm:$0xff]  ;;  %v18041_v44 = vld [vmem:[#allocation31_spill] sm:$0xff] }
0x2a80   :  { %11885 = vmatpush1.bf16.msra.mxu1 %v18024_v32  ;;  %11933 = vmatpush1.bf16.msra.mxu0 %v18025_v12  ;;  %v18042_v32 = vld [vmem:[#allocation32_spill] sm:$0xff]  ;;  %v18043_v12 = vld [vmem:[#allocation33_spill] sm:$0xff] }
0x2a81   :  { %11887 = vmatprep.subr.bf16.mxu1 %v18026_v47  ;;  %11935 = vmatprep.subr.bf16.mxu0 %v18027_v7  ;;  %v18044_v47 = vld [vmem:[#allocation34_spill] sm:$0xff]  ;;  %v18045_v7 = vld [vmem:[#allocation35_spill] sm:$0xff] }
0x2a84   :  { %11889 = vmatpush1.bf16.msra.mxu1 %v18028_v60  ;;  %11937 = vmatpush1.bf16.msra.mxu0 %v18029_v50  ;;  %v18046_v60 = vld [vmem:[#allocation36_spill] sm:$0xff]  ;;  %v18047_v50 = vld [vmem:[#allocation37_spill] sm:$0xff] }
0x2a85   :  { %11891 = vmatprep.subr.bf16.mxu1 %v18030_v15  ;;  %11939 = vmatprep.subr.bf16.mxu0 %v18031_v54  ;;  %v18048_v15 = vld [vmem:[#allocation38_spill] sm:$0xff]  ;;  %v18049_v54 = vld [vmem:[#allocation39_spill] sm:$0xff] }
0x2a88   :  { %11893 = vmatpush1.bf16.msra.mxu1 %v18032_v51  ;;  %11941 = vmatpush1.bf16.msra.mxu0 %v18033_v48  ;;  %v18050_v51 = vld [vmem:[#allocation40_spill] sm:$0xff]  ;;  %v18051_v48 = vld [vmem:[#allocation41_spill] sm:$0xff] }
0x2a89   :  { %11895 = vmatprep.subr.bf16.mxu1 %v18034_v41  ;;  %11943 = vmatprep.subr.bf16.mxu0 %v18035_v4  ;;  %v18052_v41 = vld [vmem:[#allocation42_spill] sm:$0xff]  ;;  %v18053_v4 = vld [vmem:[#allocation43_spill] sm:$0xff] }
0x2a8c   :  { %11897 = vmatpush1.bf16.msra.mxu1 %v18036_v45  ;;  %11945 = vmatpush1.bf16.msra.mxu0 %v18037_v0  ;;  %v18054_v45 = vld [vmem:[#allocation44_spill] sm:$0xff]  ;;  %v18055_v0 = vld [vmem:[#allocation45_spill] sm:$0xff] }
0x2a8d   :  { %11899 = vmatprep.subr.bf16.mxu1 %v18038_v9  ;;  %11947 = vmatprep.subr.bf16.mxu0 %v18039_v58  ;;  %v18056_v9 = vld [vmem:[#allocation46_spill] sm:$0xff]  ;;  %v18057_v58 = vld [vmem:[#allocation47_spill] sm:$0xff] }
0x2a90   :  { %11901 = vmatpush1.bf16.msra.mxu1 %v18040_v19  ;;  %11949 = vmatpush1.bf16.msra.mxu0 %v18041_v44  ;;  %v18058_v19 = vld [vmem:[#allocation48_spill] sm:$0xff]  ;;  %v18059_v44 = vld [vmem:[#allocation49_spill] sm:$0xff] }
0x2a91   :  { %11903 = vmatprep.subr.bf16.mxu1 %v18042_v32  ;;  %11951 = vmatprep.subr.bf16.mxu0 %v18043_v12  ;;  %v18060_v32 = vld [vmem:[#allocation50_spill] sm:$0xff]  ;;  %v18061_v12 = vld [vmem:[#allocation51_spill] sm:$0xff] }
0x2a94   :  { %11905 = vmatpush1.bf16.msra.mxu1 %v18044_v47  ;;  %11953 = vmatpush1.bf16.msra.mxu0 %v18045_v7  ;;  %v18062_v47 = vld [vmem:[#allocation52_spill] sm:$0xff]  ;;  %v18063_v7 = vld [vmem:[#allocation53_spill] sm:$0xff] }
0x2a95   :  { %11907 = vmatprep.subr.bf16.mxu1 %v18046_v60  ;;  %11955 = vmatprep.subr.bf16.mxu0 %v18047_v50  ;;  %v18064_v60 = vld [vmem:[#allocation54_spill] sm:$0xff]  ;;  %v18065_v50 = vld [vmem:[#allocation55_spill] sm:$0xff] }
0x2a98   :  { %11909 = vmatpush1.bf16.msra.mxu1 %v18048_v15  ;;  %11957 = vmatpush1.bf16.msra.mxu0 %v18049_v54  ;;  %v18066_v15 = vld [vmem:[#allocation56_spill] sm:$0xff]  ;;  %v18067_v54 = vld [vmem:[#allocation57_spill] sm:$0xff] }
0x2a99   :  { %11911 = vmatprep.subr.bf16.mxu1 %v18050_v51  ;;  %11959 = vmatprep.subr.bf16.mxu0 %v18051_v48  ;;  %v18068_v51 = vld [vmem:[#allocation58_spill] sm:$0xff]  ;;  %v18069_v48 = vld [vmem:[#allocation59_spill] sm:$0xff] }
0x2a9c   :  { %11913 = vmatpush1.bf16.msra.mxu1 %v18052_v41  ;;  %11961 = vmatpush1.bf16.msra.mxu0 %v18053_v4  ;;  %v18070_v41 = vld [vmem:[#allocation98_spill] sm:$0xff]  ;;  %v18071_v4 = vld [vmem:[#allocation105_spill] sm:$0xff] }
0x2a9d   :  { %11915 = vmatprep.subr.bf16.mxu1 %v18054_v45  ;;  %11963 = vmatprep.subr.bf16.mxu0 %v18055_v0  ;;  %v18072_v45 = vld [vmem:[#allocation106_spill] sm:$0xff]  ;;  %v18073_v0 = vld [vmem:[#allocation107_spill] sm:$0xff] }
0x2aa0   :  { %11917 = vmatpush1.bf16.msra.mxu1 %v18056_v9  ;;  %11965 = vmatpush1.bf16.msra.mxu0 %v18057_v58  ;;  %v18074_v9 = vld [vmem:[#allocation62_spill] sm:$0xff] }
0x2aa1   :  { %11919 = vmatprep.subr.bf16.mxu1 %v18058_v19  ;;  %11967 = vmatprep.subr.bf16.mxu0 %v18059_v44 }
0x2aa4   :  { %11921 = vmatpush1.bf16.msra.mxu1 %v18060_v32  ;;  %11969 = vmatpush1.bf16.msra.mxu0 %v18061_v12  ;;  %v7061_v32 = vld [vmem:[#allocation2 + $0x328] sm:$0xff] }
0x2aa5   :  { %11923 = vmatprep.subr.bf16.mxu1 %v18062_v47  ;;  %11971 = vmatprep.subr.bf16.mxu0 %v18063_v7 }
0x2aa8   :  { %11925 = vmatpush1.bf16.msra.mxu1 %v18064_v60  ;;  %11973 = vmatpush1.bf16.msra.mxu0 %v18065_v50  ;;  %v7062_v60 = vld [vmem:[#allocation2 + $0x330] sm:$0xff] }
0x2aa9   :  { %11927 = vmatprep.subr.bf16.mxu1 %v18066_v15  ;;  %11975 = vmatprep.subr.bf16.mxu0 %v18067_v54 }
0x2aac   :  { %11929 = vmatpush1.bf16.msra.mxu1 %v18068_v51  ;;  %11977 = vmatpush1.bf16.msra.mxu0 %v18069_v48 }
0x2aad   :  { %7546 = vmatprep.subr.mxu1 %v18070_v41  ;;  %7617 = vmatprep.subr.mxu0 %v18071_v4  ;;  %v7059_v4 = vld [vmem:[#allocation2 + $0x318] sm:$0xff] }
0x2ab0   :  { %7547 = vmatpush1.msra.mxu1 %v18072_v45  ;;  %7618 = vmatpush1.msra.mxu0 %v18073_v0  ;;  %v7058_v45 = vld [vmem:[#allocation2 + $0x310] sm:$0xff] }
0x2ab1   :  { %11979 = vmatprep.subr.bf16.mxu1 %v18074_v9  ;;  %12026 = vmatprep.subr.bf16.mxu0 %v17227_v25 }
0x2b1f   :  { %v7145_v58 = vpop.f32.mrb[104].mxu1  ;;  %v7216_v19 = vpop.f32.mrb[120].mxu0 }
0x2b20   :  { %v7147_v44 = vpop.f32.mrb[105].mxu1  ;;  %v7218_v12 = vpop.f32.mrb[121].mxu0  ;;  %v7362_v9 = vadd.f32 %v7145_v58, %v7058_v45  ;;  %v7060_v58 = vld [vmem:[#allocation2 + $0x320] sm:$0xff] }
0x2b21   :  { %v7365_v47 = vadd.f32 %v7218_v12, %v7061_v32  ;;  %v7363_v0 = vadd.f32 %v7147_v44, %v7059_v4  ;;  %v7364_v44 = vadd.f32 %v7216_v19, %v7060_v58  ;;  %v7064_v58 = vld [vmem:[#allocation2 + $0x340] sm:$0xff] }
0x2b22   :  { %v8952_v12 = vmul.f32 -1.442695, %v7362_v9 }
0x2b23   :  { %12913 = vtanh.f32 %v7365_v47  ;;  %v8953_v32 = vmul.f32 -1.442695, %v7363_v0  ;;  %v8954_v4 = vmul.f32 -1.442695, %v7364_v44  ;;  %v8955_v45 = vmul.f32 -1.442695, %v7365_v47 }
0x2b2d   :  { %v12914_v7 = vpop.eup %12913 }
0x2b2e   :  { %7418 = vrot.lane.b32.xlu0 %v12914_v7, %s13108_s3 }
0x2b51   :  { %v7287_v50 = vpop.f32.mrb[106].mxu1  ;;  %v16455_v15 = vpop.f32.mrb[122].mxu0 }
0x2b52   :  { %v16457_v54 = vadd.f32 %v7287_v50, %v7062_v60  ;;  %v7289_v51 = vpop.f32.mrb[107].mxu1  ;;  %v7360_v48 = vpop.f32.mrb[123].mxu0  ;;  %v7368_v44 = vadd.f32 %v16455_v15, %v7064_v58 }
0x2b54   :  { %12915 = vtanh.f32 %v16457_v54 }
0x2b55   :  { %12917 = vpow2.f32 %v8953_v32 }
0x2b56   :  { %12919 = vpow2.f32 %v8952_v12 }
0x2b5e   :  { %v12916_v41 = vpop.eup %12915 }
0x2b5f   :  { %7420 = vrot.lane.b32.xlu1 %v12916_v41, %s13108_s3  ;;  %v12918_v7 = vpop.eup %12917 }
0x2b60   :  { %v12920_v2 = vpop.eup %12919  ;;  %v7376_v36 = vadd.f32 1.0, %v12918_v7 }
0x2b61   :  { %v7375_v60 = vadd.f32 1.0, %v12920_v2 }
0x2b62   :  { %12921 = vrcp.f32 %v7376_v36 }
0x2b63   :  { %12923 = vrcp.f32 %v7375_v60 }
0x2b64   :  { %12925 = vpow2.f32 %v8954_v4 }
0x2b65   :  { %12927 = vpow2.f32 %v8955_v45  ;;  %v8958_v45 = vmul.f32 -1.442695, %v7368_v44 }
0x2b6c   :  { %v12922_v50 = vpop.eup %12921 }
0x2b6d   :  { %v12924_v22 = vpop.eup %12923 }
0x2b6e   :  { %v12926_v2 = vpop.eup %12925 }
0x2b6f   :  { %v12928_v36 = vpop.eup %12927  ;;  %v7387_v0 = vadd.f32 1.0, %v12926_v2  ;;  %v8956_v2 = vmul.f32 -1.442695, %v16457_v54 }
0x2b70   :  { %v7388_v9 = vadd.f32 1.0, %v12928_v36 }
0x2b71   :  { %12929 = vrcp.f32 %v7387_v0 }
0x2b72   :  { %12931 = vrcp.f32 %v7388_v9 }
0x2b7b   :  { %v12930_v32 = vpop.eup %12929 }
0x2b7c   :  { %v12932_v12 = vpop.eup %12931 }
0x2b7d   :  { %v7415_v19 = vmul.f32 %v12932_v12, %v16320_v52  ;;  %v7063_v52 = vld [vmem:[#allocation2 + $0x338] sm:$0xff] }
0x2ba0   :  { %v7419_v48 = vpop.permute.xlu0 %7418 }
0x2bd1   :  { %v7421_v42 = vpop.permute.xlu1 %7420 }
0x2bd2   :  { %v7422_v41 = vsel %vm1553_vm3, %v7419_v48, %v7421_v42  ;;  %v7426_v3 = vmul.f32 %v12922_v50, %v7421_v42 }
0x2bd3   :  { %v7425_v28 = vmul.f32 %v12924_v22, %v7422_v41  ;;  %v7413_v22 = vmul.f32 %v12922_v50, %v16316_v1  ;;  %v7367_v41 = vadd.f32 %v7289_v51, %v7063_v52 }
0x2bd4   :  { %7431 = vrot.lane.b32.xlu1 %v7426_v3, %s13109_s24  ;;  %v7414_v3 = vmul.f32 %v12930_v32, %v16318_v53 }
0x2bd5   :  { %7429 = vrot.lane.b32.xlu0 %v7425_v28, %s13109_s24  ;;  %v8957_v4 = vmul.f32 -1.442695, %v7367_v41 }
0x2c46   :  { %v7432_v42 = vpop.permute.xlu1 %7431 }
0x2c47   :  { %v7430_v28 = vpop.permute.xlu0 %7429  ;;  %v16472_v48 = vadd.f32 %v7432_v42, %v7415_v19 }
0x2c48   :  { %v7433_v47 = vsel %vm1206_vm4, %v7430_v28, %v7432_v42  ;;  %v16468_v7 = vadd.f32 %v7430_v28, %v7413_v22 }
0x2c49   :  { %v16470_v60 = vadd.f32 %v7433_v47, %v7414_v3 }
0x2c4a   :  { %12933 = vtanh.f32 %v16468_v7 }
0x2c4b   :  { %12935 = vtanh.f32 %v16470_v60 }
0x2c4c   :  { %12937 = vtanh.f32 %v16472_v48 }
0x2c4d   :  { %12939 = vpow2.f32 %v8957_v4 }
0x2c4e   :  { %12941 = vpow2.f32 %v8958_v45 }
0x2c4f   :  { %12943 = vpow2.f32 %v8956_v2 }
0x2c54   :  { %v12934_v1 = vpop.eup %12933 }
0x2c55   :  { %v12936_v50 = vpop.eup %12935  ;;  %7446 = vrot.lane.b32.xlu0 %v12934_v1, %s13105_s14 }
0x2c56   :  { %7448 = vrot.lane.b32.xlu1 %v12936_v50, %s13105_s14  ;;  %v12938_v53 = vpop.eup %12937 }
0x2c57   :  { %v12940_v36 = vpop.eup %12939 }
0x2c58   :  { %v12942_v0 = vpop.eup %12941  ;;  %v7405_v9 = vadd.f32 1.0, %v12940_v36 }
0x2c59   :  { %7450 = vrot.lane.b32.xlu0 %v12938_v53, %s13105_s14  ;;  %v12944_v32 = vpop.eup %12943  ;;  %v7406_v12 = vadd.f32 1.0, %v12942_v0 }
0x2c5a   :  { %v7404_v42 = vadd.f32 1.0, %v12944_v32  ;;  %12945 = vrcp.f32 %v7405_v9 }
0x2c5b   :  { %12947 = vrcp.f32 %v7406_v12 }
0x2c5c   :  { %12949 = vrcp.f32 %v7404_v42 }
0x2c64   :  { %v12946_v3 = vpop.eup %12945 }
0x2c65   :  { %v12948_v19 = vpop.eup %12947 }
0x2c66   :  { %v12950_v1 = vpop.eup %12949 }
0x2cc7   :  { %v7447_v51 = vpop.permute.xlu0 %7446 }
0x2cc8   :  { %v7449_v22 = vpop.permute.xlu1 %7448  ;;  %v16490_v53 = vmul.f32 %v12950_v1, %v7447_v51 }
0x2cc9   :  { %v7452_v15 = vsel %vm1584_vm5, %v7447_v51, %v7449_v22 }
0x2cca   :  { %v16483_v28 = vmul.f32 %v12946_v3, %v7452_v15 }
0x2ccb   :  { %v7451_v54 = vpop.permute.xlu0 %7450 }
0x2ccc   :  { %v7453_v47 = vsel %vm1584_vm5, %v7449_v22, %v7451_v54  ;;  %7489 = vrot.lane.b32.xlu1 %v16483_v28, %s13110_s25 }
0x2ccd   :  { %v16488_v50 = vmul.f32 %v12948_v19, %v7453_v47 }
0x2ccf   :  { %7491 = vrot.lane.b32.xlu0 %v16488_v50, %s13110_s25 }
0x2cd0   :  { %7487 = vrot.lane.b32.xlu1 %v16490_v53, %s13110_s25 }
0x2d3e   :  { %v7490_v52 = vpop.permute.xlu1 %7489 }
0x2d41   :  { %v7492_v41 = vpop.permute.xlu0 %7491 }
0x2d42   :  { %v7494_v58 = vsel %vm1626_vm6, %v7490_v52, %v7492_v41  ;;  %v7488_v44 = vpop.permute.xlu1 %7487 }
0x2d43   :  { %v7493_v4 = vsel %vm1626_vm6, %v7488_v44, %v7490_v52  ;;  %8960 = vmatprep.mubr.msk.f32.mxu1 %vm1206_vm4, %v7494_v58  ;;  %8961 = vmatprep.mubr.msk.f32.mxu0 %vm1206_vm4, %v7494_v58 }
0x2d44   :  { %7563 = vmatmul.mubr.f32.vlgmr.msra.gmra.mrb[108].mxu1 %v7493_v4  ;;  %7634 = vmatmul.mubr.f32.vlgmr.msra.gmra.mrb[124].mxu0 %v7493_v4 }
0x2d45   :  { %11981 = vmatpush1.bf16.msra.mxu1 %v17258_v23  ;;  %12028 = vmatpush1.bf16.msra.mxu0 %v17259_v13 }
0x2d46   :  { %8962 = vmatprep.mubr.msk.f32.mxu1 %vm1206_vm4, %v7494_v58  ;;  %8963 = vmatprep.mubr.msk.f32.mxu0 %vm1206_vm4, %v7494_v58 }
0x2d47   :  { %11983 = vmatprep.subr.bf16.mxu1 %v17260_v35  ;;  %12029 = vmatprep.subr.bf16.mxu0 %v17227_v25 }
0x2d49   :  { %11985 = vmatpush1.bf16.msra.mxu1 %v17261_v55  ;;  %12031 = vmatpush1.bf16.msra.mxu0 %v17262_v37  ;;  %v13111_v37 = vmov 0  }
0x2d4a   :  { %11987 = vmatprep.subr.bf16.mxu1 %v17263_v5  ;;  %12032 = vmatprep.subr.bf16.mxu0 %v17227_v25 }
0x2d4b   :  { %12345 = vset.pattern.permute.xlu1 %v13111_v37  ;;  %12339 = vset.pattern.permute.xlu0 %v13111_v37 }
0x2d4d   :  { %11989 = vmatpush1.bf16.msra.mxu1 %v17264_v43  ;;  %12034 = vmatpush1.bf16.msra.mxu0 %v17265_v20  ;;  %v7478_v43 = vld [vmem:[#allocation2 + $0x350] sm:$0xff]  ;;  %v7477_v20 = vld [vmem:[#allocation2 + $0x348] sm:$0xff] }
0x2d4e   :  { %11991 = vmatprep.subr.bf16.mxu1 %v17266_v21  ;;  %12035 = vmatprep.subr.bf16.mxu0 %v17227_v25 }
0x2d51   :  { %11993 = vmatpush1.bf16.msra.mxu1 %v17267_v14  ;;  %12037 = vmatpush1.bf16.msra.mxu0 %v17268_v33 }
0x2d52   :  { %11995 = vmatprep.subr.bf16.mxu1 %v17269_v62  ;;  %12038 = vmatprep.subr.bf16.mxu0 %v17227_v25 }
0x2d55   :  { %11997 = vmatpush1.bf16.msra.mxu1 %v17270_v59  ;;  %12040 = vmatpush1.bf16.msra.mxu0 %v17271_v16 }
0x2d56   :  { %11999 = vmatprep.subr.bf16.mxu1 %v17315_v61  ;;  %12041 = vmatprep.subr.bf16.mxu0 %v17227_v25  ;;  %v1195_v61 = vld [vmem:[%s16889_s4] sm:$0xff] }
0x2d57   :  { %vm2432_vm7 = vcmp.gt.s32.totalorder %v1195_v61, 2  ;;  %vm2851_vm8 = vcmp.gt.s32.totalorder %v1195_v61, 3  ;;  %vm1593_vm9 = vcmp.gt.s32.totalorder %v1195_v61, 0  ;;  %vm2013_vm10 = vcmp.gt.s32.totalorder %v1195_v61, 1 }
0x2d58   :  { %vm3270_vm11 = vcmp.gt.s32.totalorder %v1195_v61, 4  ;;  %vm3689_vm12 = vcmp.gt.s32.totalorder %v1195_v61, 5  ;;  %vm4108_vm13 = vcmp.gt.s32.totalorder %v1195_v61, 6  ;;  %vm4527_vm14 = vcmp.gt.s32.totalorder %v1195_v61, 7 }
0x2d59   :  { %12001 = vmatpush1.bf16.msra.mxu1 %v17273_v39  ;;  %12043 = vmatpush1.bf16.msra.mxu0 %v17316_v57  ;;  %vm4946_vm15 = vcmp.gt.s32.totalorder %v1195_v61, 8  ;;  %vm5365_vm0 = vcmp.gt.s32.totalorder %v1195_v61, 9  ;;  %vm5784_vm1 = vcmp.gt.s32.totalorder %v1195_v61, 10  ;;  %vm6203_vm2 = vcmp.gt.s32.totalorder %v1195_v61, 11 }
0x2d5a   :  { %12003 = vmatprep.subr.bf16.mxu1 %v17317_v18  ;;  %12044 = vmatprep.subr.bf16.mxu0 %v17227_v25 }
0x2d5d   :  { %12005 = vmatpush1.bf16.msra.mxu1 %v17275_v11  ;;  %12046 = vmatpush1.bf16.msra.mxu0 %v13975_v40  ;;  %v18077_v40 = vld [vmem:[#allocation97_spill] sm:$0xff] }
0x2d5e   :  { %12007 = vmatprep.subr.bf16.mxu1 %v17276_v56  ;;  %12047 = vmatprep.subr.bf16.mxu0 %v17227_v25 }
0x2d61   :  { %12009 = vmatpush1.bf16.msra.mxu1 %v17277_v8  ;;  %12049 = vmatpush1.bf16.msra.mxu0 %v13985_v29 }
0x2d62   :  { %12011 = vmatprep.subr.bf16.mxu1 %v17278_v63  ;;  %12050 = vmatprep.subr.bf16.mxu0 %v17227_v25 }
0x2d65   :  { %12013 = vmatpush1.bf16.msra.mxu1 %v17279_v24  ;;  %12052 = vmatpush1.bf16.msra.mxu0 %v17318_v30  ;;  %v18075_v24 = vmov 0.0  }
0x2d66   :  { %12015 = vmatprep.subr.bf16.mxu1 %v17319_v38  ;;  %12053 = vmatprep.subr.bf16.mxu0 %v17227_v25  ;;  %v8815_v38 = vsel %vm2432_vm7, 1.0, %v18075_v24  ;;  %v8839_v12 = vsel %vm3270_vm11, 1.0, %v18075_v24  ;;  %v8851_v42 = vsel %vm3689_vm12, 1.0, %v18075_v24  ;;  %v8863_v51 = vsel %vm4108_vm13, 1.0, %v18075_v24 }
0x2d67   :  { %v8875_v22 = vsel %vm4527_vm14, 1.0, %v18075_v24  ;;  %v12351_v3 = vpack.i.bf16 %v8851_v42, %v8839_v12  ;;  %v8887_v54 = vsel %vm4946_vm15, 1.0, %v18075_v24  ;;  %v8899_v19 = vsel %vm5365_vm0, 1.0, %v18075_v24  ;;  %v7911_v12 = vld [vmem:[#allocation6 + $0x40] sm:$0xff]  ;;  %v7913_v42 = vld [vmem:[#allocation6 + $0x50] sm:$0xff] }
0x2d68   :  { %v12356_v15 = vpack.i.bf16 %v8875_v22, %v8863_v51  ;;  %v8911_v47 = vsel %vm5784_vm1, 1.0, %v18075_v24  ;;  %v8923_v1 = vsel %vm6203_vm2, 1.0, %v18075_v24  ;;  %vm7041_vm7 = vcmp.gt.s32.totalorder %v1195_v61, 13  ;;  %v7916_v51 = vld [vmem:[#allocation6 + $0x68] sm:$0xff]  ;;  %v7918_v22 = vld [vmem:[#allocation6 + $0x78] sm:$0xff] }
0x2d69   :  { %12017 = vmatpush1.bf16.msra.mxu1 %v13971_v10  ;;  %12055 = vmatpush1.bf16.msra.mxu0 %v14000_v17  ;;  %v18076_v10 = vld [vmem:[#allocation96_spill] sm:$0xff]  ;;  %v12361_v52 = vpack.i.bf16 %v8899_v19, %v8887_v54  ;;  %v12366_v41 = vpack.i.bf16 %v8923_v1, %v8911_v47  ;;  %v8947_v44 = vsel %vm7041_vm7, 1.0, %v18075_v24  ;;  %v7917_v19 = vld [vmem:[#allocation6 + $0x70] sm:$0xff]  ;;  %v7922_v1 = vld [vmem:[#allocation6 + $0x98] sm:$0xff] }
0x2d6a   :  { %12019 = vmatprep.subr.bf16.mxu1 %v17320_v49  ;;  %12056 = vmatprep.subr.bf16.mxu0 %v17227_v25  ;;  %v8827_v49 = vsel %vm2851_vm8, 1.0, %v18075_v24  ;;  %vm7460_vm8 = vcmp.gt.s32.totalorder %v1195_v61, 14  ;;  %v7915_v54 = vld [vmem:[#allocation6 + $0x60] sm:$0xff]  ;;  %v7920_v47 = vld [vmem:[#allocation6 + $0x88] sm:$0xff] }
0x2d6b   :  { %v12346_v9 = vpack.i.bf16 %v8827_v49, %v8815_v38  ;;  %v7910_v38 = vld [vmem:[#allocation6 + $0x38] sm:$0xff] }
0x2d6d   :  { %12021 = vmatpush1.bf16.msra.mxu1 %v17321_v34  ;;  %12058 = vmatpush1.bf16.msra.mxu0 %v14005_v31  ;;  %v7480_v31 = vld [vmem:[#allocation2 + $0x360] sm:$0xff]  ;;  %v8791_v34 = vsel %vm1593_vm9, 1.0, %v18075_v24  ;;  %vm7879_vm9 = vcmp.gt.s32.totalorder %v1195_v61, 15 }
0x2d6e   :  { %12023 = vmatprep.subr.bf16.mxu1 %v13987_v26  ;;  %12059 = vmatprep.subr.bf16.mxu0 %v17227_v25 }
0x2d71   :  { %12025 = vmatpush1.bf16.msra.mxu1 %v17281_v6  ;;  %12061 = vmatpush1.bf16.msra.mxu0 %v14012_v27  ;;  %v7481_v27 = vld [vmem:[#allocation2 + $0x368] sm:$0xff] }
0x2d72   :  { %7688 = vmatprep.subr.mxu1 %v16230_v46  ;;  %7759 = vmatprep.subr.mxu0 %v18075_v24  ;;  %v8803_v46 = vsel %vm2013_vm10, 1.0, %v18075_v24 }
0x2d73   :  { %v12340_v32 = vpack.i.bf16 %v8803_v46, %v8791_v34  ;;  %v7907_v34 = vld [vmem:[#allocation6 + $0x20] sm:$0xff]  ;;  %v7909_v46 = vld [vmem:[#allocation6 + $0x30] sm:$0xff] }
0x2d75   :  { %7689 = vmatpush1.msra.mxu1 %v18076_v10  ;;  %7760 = vmatpush1.msra.mxu0 %v18077_v40  ;;  %v8959_v40 = vsel %vm7460_vm8, 1.0, %v18075_v24 }
0x2d76   :  { %7705 = vmatmul.mubr.f32.vlgmr.msra.gmra.mrb[110].mxu1 %v7493_v4  ;;  %7776 = vmatmul.mubr.f32.vlgmr.msra.gmra.mrb[126].mxu0 %v7493_v4  ;;  %v7893_v4 = vld [vmem:[%s16890_s5] sm:$0xff] }
0x2e17   :  { %v7564_v29 = vpop.f32.mrb[108].mxu1  ;;  %v16552_v17 = vpop.f32.mrb[124].mxu0 }
0x2e18   :  { %v7566_v26 = vpop.f32.mrb[109].mxu1  ;;  %v7637_v11 = vpop.f32.mrb[125].mxu0  ;;  %v7781_v14 = vadd.f32 %v7564_v29, %v7477_v20  ;;  %v8971_v29 = vsel %vm7879_vm9, 1.0, %v18075_v24 }
0x2e19   :  { %v16554_v8 = vadd.f32 %v7637_v11, %v7480_v31  ;;  %v7782_v21 = vadd.f32 %v7566_v26, %v7478_v43  ;;  %v12376_v26 = vpack.i.bf16 %v8971_v29, %v8959_v40  ;;  %v7479_v31 = vld [vmem:[#allocation2 + $0x358] sm:$0xff] }
0x2e1a   :  { %v8964_v62 = vmul.f32 -1.442695, %v7781_v14  ;;  %v7783_v11 = vadd.f32 %v16552_v17, %v7479_v31  ;;  %v7925_v31 = vld [vmem:[#allocation6 + $0xb0] sm:$0xff] }
0x2e1b   :  { %12951 = vtanh.f32 %v16554_v8  ;;  %v8965_v33 = vmul.f32 -1.442695, %v7782_v21 }
0x2e25   :  { %v12952_v6 = vpop.eup %12951 }
0x2e26   :  { %7837 = vrot.lane.b32.xlu0 %v12952_v6, %s13108_s3  ;;  %v8966_v6 = vmul.f32 -1.442695, %v7783_v11  ;;  %v7928_v11 = vld [vmem:[#allocation6 + $0xc8] sm:$0xff] }
0x2e49   :  { %v7706_v56 = vpop.f32.mrb[110].mxu1  ;;  %v16558_v23 = vpop.f32.mrb[126].mxu0 }
0x2e4a   :  { %v16560_v13 = vadd.f32 %v7706_v56, %v7481_v27  ;;  %v16562_v35 = vpop.f32.mrb[111].mxu1  ;;  %v7779_v55 = vpop.f32.mrb[127].mxu0  ;;  %v8967_v27 = vmul.f32 -1.442695, %v16554_v8 }
0x2e4c   :  { %12953 = vtanh.f32 %v16560_v13 }
0x2e4d   :  { %12955 = vpow2.f32 %v8965_v33 }
0x2e4e   :  { %12957 = vpow2.f32 %v8964_v62 }
0x2e56   :  { %v12954_v5 = vpop.eup %12953 }
0x2e57   :  { %7839 = vrot.lane.b32.xlu1 %v12954_v5, %s13108_s3  ;;  %v12956_v59 = vpop.eup %12955 }
0x2e58   :  { %v12958_v16 = vpop.eup %12957  ;;  %v7795_v63 = vadd.f32 1.0, %v12956_v59 }
0x2e59   :  { %v7794_v39 = vadd.f32 1.0, %v12958_v16 }
0x2e5a   :  { %12959 = vrcp.f32 %v7795_v63 }
0x2e5b   :  { %12961 = vrcp.f32 %v7794_v39 }
0x2e5c   :  { %12963 = vpow2.f32 %v8966_v6  ;;  %v7930_v6 = vld [vmem:[#allocation6 + $0xd8] sm:$0xff] }
0x2e5d   :  { %12965 = vpow2.f32 %v8967_v27 }
0x2e64   :  { %v16569_v57 = vpop.eup %12959 }
0x2e65   :  { %v12962_v45 = vpop.eup %12961  ;;  %v7832_v14 = vmul.f32 %v16569_v57, %v16468_v7 }
0x2e66   :  { %v12964_v56 = vpop.eup %12963 }
0x2e67   :  { %v12966_v55 = vpop.eup %12965  ;;  %v7806_v37 = vadd.f32 1.0, %v12964_v56  ;;  %v12086_v56 = vpack.c.bf16 %v7930_v6, %v7928_v11  ;;  %v18084_v11 = vld [vmem:[#allocation70_spill] sm:$0xff] }
0x2e68   :  { %v7807_v5 = vadd.f32 1.0, %v12966_v55  ;;  %v7927_v55 = vld [vmem:[#allocation6 + $0xc0] sm:$0xff] }
0x2e69   :  { %12967 = vrcp.f32 %v7806_v37  ;;  %v7929_v37 = vld [vmem:[#allocation6 + $0xd0] sm:$0xff] }
0x2e6a   :  { %12969 = vrcp.f32 %v7807_v5  ;;  %v7932_v5 = vld [vmem:[#allocation6 + $0xe8] sm:$0xff] }
0x2e73   :  { %v12968_v43 = vpop.eup %12967 }
0x2e74   :  { %v12970_v20 = vpop.eup %12969  ;;  %v7833_v33 = vmul.f32 %v12968_v43, %v16470_v60  ;;  %v7904_v60 = vld [vmem:[#allocation6 + $0x8] sm:$0xff]  ;;  %v7934_v43 = vld [vmem:[#allocation6 + $0xf8] sm:$0xff] }
0x2e75   :  { %v7834_v62 = vmul.f32 %v12970_v20, %v16472_v48  ;;  %v7903_v48 = vld [vmem:[#allocation6] sm:$0xff]  ;;  %v12088_v20 = vpack.c.bf16 %v7929_v37, %v7927_v55 }
0x2e98   :  { %v7838_v18 = vpop.permute.xlu0 %7837 }
0x2ec9   :  { %v7840_v30 = vpop.permute.xlu1 %7839 }
0x2eca   :  { %v7841_v2 = vsel %vm1553_vm3, %v7838_v18, %v7840_v30  ;;  %v7845_v36 = vmul.f32 %v16569_v57, %v7840_v30  ;;  %vm6622_vm3 = vcmp.gt.s32.totalorder %v1195_v61, 12  ;;  %v7906_v57 = vld [vmem:[#allocation6 + $0x18] sm:$0xff]  ;;  %v7905_v18 = vld [vmem:[#allocation6 + $0x10] sm:$0xff]  ;;  %v7908_v30 = vld [vmem:[#allocation6 + $0x28] sm:$0xff] }
0x2ecb   :  { %v7844_v0 = vmul.f32 %v12962_v45, %v7841_v2  ;;  %v8935_v58 = vsel %vm6622_vm3, 1.0, %v18075_v24  ;;  %v12062_v49 = vpack.c.bf16 %v7906_v57, %v7904_v60  ;;  %v12064_v45 = vpack.c.bf16 %v7905_v18, %v7903_v48  ;;  %v7912_v2 = vld [vmem:[#allocation6 + $0x48] sm:$0xff]  ;;  %v7939_v48 = vld [vmem:[#allocation6 + $0x120] sm:$0xff]  ;;  %v7941_v18 = vld [vmem:[#allocation6 + $0x130] sm:$0xff] }
0x2ecc   :  { %7850 = vrot.lane.b32.xlu1 %v7845_v36, %s13109_s24  ;;  %v12371_v10 = vpack.i.bf16 %v8947_v44, %v8935_v58  ;;  %v7914_v36 = vld [vmem:[#allocation6 + $0x58] sm:$0xff]  ;;  %v7919_v58 = vld [vmem:[#allocation6 + $0x80] sm:$0xff]  ;;  %v7921_v44 = vld [vmem:[#allocation6 + $0x90] sm:$0xff] }
0x2ecd   :  { %7848 = vrot.lane.b32.xlu0 %v7844_v0, %s13109_s24  ;;  %12063 = vmatprep.subr.bf16.mxu1 %v12062_v49  ;;  %v12066_v0 = vpack.c.bf16 %v7910_v38, %v7908_v30  ;;  %v12080_v40 = vpack.c.bf16 %v7921_v44, %v7919_v58  ;;  %v7944_v49 = vld [vmem:[#allocation6 + $0x148] sm:$0xff]  ;;  %v7949_v58 = vld [vmem:[#allocation6 + $0x170] sm:$0xff] }
0x2ece   :  { %12065 = vmatpush1.bf16.msra.mxu1 %v12064_v45  ;;  %v18082_v44 = vld [vmem:[#allocation77_spill] sm:$0xff] }
0x2ecf   :  { %12067 = vmatprep.subr.bf16.mxu1 %v12066_v0  ;;  %v7945_v0 = vld [vmem:[#allocation6 + $0x150] sm:$0xff] }
0x2ed0   :  { %12347 = vperm.xlu1 %12345, %v12346_v9   ;;  %v12068_v9 = vpack.c.bf16 %v7909_v46, %v7907_v34  ;;  %v7946_v34 = vld [vmem:[#allocation6 + $0x158] sm:$0xff]  ;;  %v12100_v46 = vpack.c.bf16 %v7941_v18, %v7939_v48 }
0x2ed1   :  { %12341 = vperm.xlu0 %12339, %v12340_v32   ;;  %v12070_v32 = vpack.c.bf16 %v7914_v36, %v7912_v2  ;;  %v12102_v2 = vpack.c.bf16 %v7946_v34, %v7944_v49  ;;  %v7943_v36 = vld [vmem:[#allocation6 + $0x140] sm:$0xff]  ;;  %v18091_v18 = vld [vmem:[#allocation78_spill] sm:$0xff] }
0x2ed2   :  { %12069 = vmatpush1.bf16.msra.mxu1 %v12068_v9  ;;  %v18078_v9 = vld [vmem:[#allocation68_spill] sm:$0xff] }
0x2ed3   :  { %12071 = vmatprep.subr.bf16.mxu1 %v12070_v32 }
0x2ed4   :  { %12352 = vperm.xlu1 %12345, %v12351_v3   ;;  %v12072_v3 = vpack.c.bf16 %v7913_v42, %v7911_v12  ;;  %v18079_v12 = vld [vmem:[#allocation60_spill] sm:$0xff] }
0x2ed5   :  { %12357 = vperm.xlu0 %12339, %v12356_v15   ;;  %v12074_v15 = vpack.c.bf16 %v7918_v22, %v7916_v51  ;;  %v7948_v51 = vld [vmem:[#allocation6 + $0x168] sm:$0xff]  ;;  %v7950_v22 = vld [vmem:[#allocation6 + $0x178] sm:$0xff] }
0x2ed6   :  { %12073 = vmatpush1.bf16.msra.mxu1 %v12072_v3  ;;  %v18080_v3 = vld [vmem:[#allocation69_spill] sm:$0xff] }
0x2ed7   :  { %12075 = vmatprep.subr.bf16.mxu1 %v12074_v15 }
0x2ed8   :  { %12362 = vperm.xlu1 %12345, %v12361_v52   ;;  %v12076_v52 = vpack.c.bf16 %v7917_v19, %v7915_v54  ;;  %v18081_v54 = vld [vmem:[#allocation63_spill] sm:$0xff] }
0x2ed9   :  { %12367 = vperm.xlu0 %12339, %v12366_v41   ;;  %v12078_v41 = vpack.c.bf16 %v7922_v1, %v7920_v47  ;;  %v12104_v1 = vpack.c.bf16 %v7945_v0, %v7943_v36  ;;  %v18093_v0 = vld [vmem:[#allocation86_spill] sm:$0xff] }
0x2eda   :  { %12077 = vmatpush1.bf16.msra.mxu1 %v12076_v52  ;;  %v12106_v52 = vpack.c.bf16 %v7950_v22, %v7948_v51 }
0x2edb   :  { %12079 = vmatprep.subr.bf16.mxu1 %v12078_v41  ;;  %v7947_v41 = vld [vmem:[#allocation6 + $0x160] sm:$0xff] }
0x2edc   :  { %7896 = vperm.xlu1 %12345, %v7893_v4   ;;  %v7924_v4 = vld [vmem:[#allocation6 + $0xa8] sm:$0xff] }
0x2edd   :  { %12372 = vperm.xlu0 %12339, %v12371_v10   ;;  %v7926_v10 = vld [vmem:[#allocation6 + $0xb8] sm:$0xff] }
0x2ede   :  { %v12082_v29 = vpack.c.bf16 %v7926_v10, %v7924_v4  ;;  %12081 = vmatpush1.bf16.msra.mxu1 %v12080_v40  ;;  %v18083_v10 = vld [vmem:[#allocation61_spill] sm:$0xff] }
0x2ee0   :  { %12377 = vperm.xlu1 %12345, %v12376_v26   ;;  %v7923_v26 = vld [vmem:[#allocation6 + $0xa0] sm:$0xff]  ;;  %12083 = vmatprep.subr.bf16.mxu1 %v12082_v29 }
0x2ee1   :  { %v12084_v27 = vpack.c.bf16 %v7925_v31, %v7923_v26 }
0x2ee3   :  { %12085 = vmatpush1.bf16.msra.mxu1 %v12084_v27  ;;  %v12108_v27 = vpack.c.bf16 %v7949_v58, %v7947_v41  ;;  %v18096_v58 = vld [vmem:[#allocation89_spill] sm:$0xff] }
0x2ee4   :  { %12087 = vmatprep.subr.bf16.mxu1 %v12086_v56  ;;  %v18085_v56 = vld [vmem:[#allocation72_spill] sm:$0xff] }
0x2ee7   :  { %12089 = vmatpush1.bf16.msra.mxu1 %v12088_v20 }
0x2f3e   :  { %v7851_v21 = vpop.permute.xlu1 %7850 }
0x2f3f   :  { %v7849_v17 = vpop.permute.xlu0 %7848  ;;  %v7858_v63 = vadd.f32 %v7851_v21, %v7834_v62  ;;  %v7938_v62 = vld [vmem:[#allocation6 + $0x118] sm:$0xff] }
0x2f40   :  { %v7852_v8 = vsel %vm1206_vm4, %v7849_v17, %v7851_v21  ;;  %v7856_v59 = vadd.f32 %v7849_v17, %v7832_v14  ;;  %v12090_v21 = vpack.c.bf16 %v7934_v43, %v7932_v5  ;;  %v7931_v14 = vld [vmem:[#allocation6 + $0xe0] sm:$0xff]  ;;  %v7936_v17 = vld [vmem:[#allocation6 + $0x108] sm:$0xff] }
0x2f41   :  { %v7857_v16 = vadd.f32 %v7852_v8, %v7833_v33  ;;  %v7933_v33 = vld [vmem:[#allocation6 + $0xf0] sm:$0xff] }
0x2f42   :  { %12971 = vtanh.f32 %v7856_v59  ;;  %v12092_v8 = vpack.c.bf16 %v7933_v33, %v7931_v14  ;;  %12091 = vmatprep.subr.bf16.mxu1 %v12090_v21  ;;  %v12094_v59 = vpack.c.bf16 %v7938_v62, %v7936_v17  ;;  %v18086_v21 = vld [vmem:[#allocation73_spill] sm:$0xff]  ;;  %v18087_v33 = vld [vmem:[#allocation80_spill] sm:$0xff] }
0x2f43   :  { %12973 = vtanh.f32 %v7857_v16  ;;  %v7935_v16 = vld [vmem:[#allocation6 + $0x100] sm:$0xff] }
0x2f44   :  { %12975 = vtanh.f32 %v7858_v63  ;;  %v7937_v63 = vld [vmem:[#allocation6 + $0x110] sm:$0xff]  ;;  %12093 = vmatpush1.bf16.msra.mxu1 %v12092_v8  ;;  %v18088_v8 = vld [vmem:[#allocation76_spill] sm:$0xff] }
0x2f45   :  { %v12096_v60 = vpack.c.bf16 %v7937_v63, %v7935_v16  ;;  %12095 = vmatprep.subr.bf16.mxu1 %v12094_v59 }
0x2f48   :  { %12097 = vmatpush1.bf16.msra.mxu1 %v12096_v60 }
0x2f4c   :  { %v12972_v39 = vpop.eup %12971 }
0x2f4d   :  { %v12974_v61 = vpop.eup %12973  ;;  %7865 = vrot.lane.b32.xlu0 %v12972_v39, %s13105_s14  ;;  %v7940_v39 = vld [vmem:[#allocation6 + $0x128] sm:$0xff] }
0x2f4e   :  { %7867 = vrot.lane.b32.xlu1 %v12974_v61, %s13105_s14  ;;  %v12976_v7 = vpop.eup %12975  ;;  %v7942_v61 = vld [vmem:[#allocation6 + $0x138] sm:$0xff] }
0x2f4f   :  { %v12098_v57 = vpack.c.bf16 %v7942_v61, %v7940_v39  ;;  %v12348_v45 = vpop.permute.xlu1 %12347  ;;  %v18089_v61 = vld [vmem:[#allocation83_spill] sm:$0xff] }
0x2f50   :  { %v12349_v47 = vunpack.i.l.bf16 %v12348_v45  ;;  %v12350_v31 = vunpack.i.h.bf16 %v12348_v45  ;;  %v7482_v45 = vld [vmem:[#allocation2 + $0x370] sm:$0xff] }
0x2f51   :  { %7869 = vrot.lane.b32.xlu0 %v12976_v7, %s13105_s14  ;;  %v12342_v7 = vpop.permute.xlu0 %12341  ;;  %12099 = vmatprep.subr.bf16.mxu1 %v12098_v57  ;;  %v18090_v57 = vld [vmem:[#allocation75_spill] sm:$0xff]  ;;  %s13112_s14 = smov [#allocation8]  }
0x2f52   :  { %v12344_v30 = vunpack.i.h.bf16 %v12342_v7  ;;  %v12343_v38 = vunpack.i.l.bf16 %v12342_v7  ;;  %12101 = vmatpush1.bf16.msra.mxu1 %v12100_v46  ;;  %v2441_v6 = vmul.f32 %v12349_v47, %v18084_v11  ;;  %v2440_v55 = vmul.f32 %v12349_v47, %v18085_v56 }
0x2f53   :  { %12103 = vmatprep.subr.bf16.mxu1 %v12102_v2  ;;  %v12353_v37 = vpop.permute.xlu1 %12352  ;;  %v2860_v14 = vmul.f32 %v12350_v31, %v18086_v21  ;;  %v2442_v17 = vmul.f32 %v12349_v47, %v18087_v33  ;;  %v2859_v59 = vmul.f32 %v12350_v31, %v18088_v8  ;;  %v2861_v7 = vmul.f32 %v12350_v31, %v18089_v61  ;;  %v18092_v2 = vld [vmem:[#allocation91_spill] sm:$0xff]  ;;  %v18101_v21 = vld [vmem:[#allocation84_spill] sm:$0xff] }
0x2f54   :  { %v2022_v32 = vmul.f32 %v12344_v30, %v18078_v9  ;;  %v1602_v42 = vmul.f32 %v12343_v38, %v18079_v12  ;;  %v2021_v15 = vmul.f32 %v12344_v30, %v18080_v3  ;;  %v1601_v19 = vmul.f32 %v12343_v38, %v18081_v54  ;;  %v7483_v54 = vld [vmem:[#allocation2 + $0x378] sm:$0xff] }
0x2f55   :  { %v2023_v4 = vmul.f32 %v12344_v30, %v18082_v44  ;;  %v1603_v40 = vmul.f32 %v12343_v38, %v18083_v10  ;;  %v12354_v62 = vunpack.i.l.bf16 %v12353_v37  ;;  %v12355_v60 = vunpack.i.h.bf16 %v12353_v37  ;;  %v12358_v38 = vpop.permute.xlu0 %12357  ;;  %v18097_v10 = vld [vmem:[#allocation71_spill] sm:$0xff] }
0x2f56   :  { %v2025_v29 = vadd.f32 %v2022_v32, %v1602_v42  ;;  %v2024_v26 = vadd.f32 %v2021_v15, %v1601_v19  ;;  %12105 = vmatpush1.bf16.msra.mxu1 %v12104_v1  ;;  %v12359_v32 = vunpack.i.l.bf16 %v12358_v38  ;;  %v7786_v12 = vadd.f32 %v16562_v35, %v7482_v45  ;;  %v18094_v42 = vld [vmem:[#allocation88_spill] sm:$0xff]  ;;  %v18095_v1 = vld [vmem:[#allocation87_spill] sm:$0xff] }
0x2f57   :  { %12107 = vmatprep.subr.bf16.mxu1 %v12106_v52  ;;  %v2026_v5 = vadd.f32 %v2023_v4, %v1603_v40  ;;  %v3279_v48 = vmul.f32 %v12354_v62, %v18090_v57  ;;  %v3278_v30 = vmul.f32 %v12354_v62, %v18091_v18  ;;  %v3698_v36 = vmul.f32 %v12355_v60, %v18092_v2  ;;  %v18103_v8 = vld [vmem:[#allocation95_spill] sm:$0xff]  ;;  %v18105_v57 = vld [vmem:[#allocation94_spill] sm:$0xff] }
0x2f58   :  { %v2444_v43 = vadd.f32 %v2441_v6, %v2025_v29  ;;  %v2443_v20 = vadd.f32 %v2440_v55, %v2024_v26  ;;  %v3280_v9 = vmul.f32 %v12354_v62, %v18093_v0  ;;  %v3697_v51 = vmul.f32 %v12355_v60, %v18094_v42  ;;  %v12363_v29 = vpop.permute.xlu1 %12362  ;;  %v18098_v6 = vld [vmem:[#allocation82_spill] sm:$0xff] }
0x2f59   :  { %v2445_v16 = vadd.f32 %v2442_v17, %v2026_v5  ;;  %v8968_v15 = vmul.f32 -1.442695, %v16560_v13  ;;  %v7787_v47 = vadd.f32 %v16558_v23, %v7483_v54  ;;  %v3699_v52 = vmul.f32 %v12355_v60, %v18095_v1  ;;  %v18100_v23 = vld [vmem:[#allocation85_spill] sm:$0xff]  ;;  %v18102_v17 = vld [vmem:[#allocation90_spill] sm:$0xff] }
0x2f5a   :  { %12109 = vmatpush1.bf16.msra.mxu1 %v12108_v27  ;;  %v2863_v63 = vadd.f32 %v2860_v14, %v2444_v43  ;;  %v2862_v39 = vadd.f32 %v2859_v59, %v2443_v20  ;;  %v12360_v41 = vunpack.i.h.bf16 %v12358_v38  ;;  %v4117_v44 = vmul.f32 %v12359_v32, %v18096_v58  ;;  %v18099_v27 = vld [vmem:[#allocation64_spill] sm:$0xff]  ;;  %v18106_v38 = vld [vmem:[#allocation74_spill] sm:$0xff] }
0x2f5b   :  { %v2864_v49 = vadd.f32 %v2861_v7, %v2445_v16  ;;  %v8969_v4 = vmul.f32 -1.442695, %v7786_v12  ;;  %v4116_v40 = vmul.f32 %v12359_v32, %v18097_v10  ;;  %12977 = vpow2.f32 %v8968_v15  ;;  %v12368_v16 = vpop.permute.xlu0 %12367  ;;  %v18104_v7 = vld [vmem:[#allocation65_spill] sm:$0xff]  ;;  %v18107_v0 = vld [vmem:[#allocation66_spill] sm:$0xff]  ;;  %v18108_v12 = vld [vmem:[#allocation99_spill] sm:$0xff] }
0x2f5c   :  { %v3282_v34 = vadd.f32 %v3279_v48, %v2863_v63  ;;  %v3281_v46 = vadd.f32 %v3278_v30, %v2862_v39  ;;  %v8970_v11 = vmul.f32 -1.442695, %v7787_v47  ;;  %v4536_v13 = vmul.f32 %v12360_v41, %v18098_v6  ;;  %v18113_v6 = vld [vmem:[#allocation103_spill] sm:$0xff] }
0x2f5d   :  { %v3283_v22 = vadd.f32 %v3280_v9, %v2864_v49  ;;  %v4118_v56 = vmul.f32 %v12359_v32, %v18099_v27  ;;  %v12364_v55 = vunpack.i.l.bf16 %v12363_v29  ;;  %12979 = vpow2.f32 %v8969_v4 }
0x2f5e   :  { %v3701_v3 = vadd.f32 %v3698_v36, %v3282_v34  ;;  %v3700_v19 = vadd.f32 %v3697_v51, %v3281_v46  ;;  %v4535_v37 = vmul.f32 %v12360_v41, %v18100_v23  ;;  %12981 = vpow2.f32 %v8970_v11  ;;  %v18109_v51 = vld [vmem:[#allocation101_spill] sm:$0xff] }
0x2f5f   :  { %v3702_v35 = vadd.f32 %v3699_v52, %v3283_v22  ;;  %v4537_v14 = vmul.f32 %v12360_v41, %v18101_v21  ;;  %v12365_v33 = vunpack.i.h.bf16 %v12363_v29  ;;  %v4955_v62 = vmul.f32 %v12364_v55, %v18102_v17  ;;  %v7897_v52 = vpop.permute.xlu1 %7896  ;;  %v18110_v41 = vld [vmem:[#allocation102_spill] sm:$0xff]  ;;  %v18112_v29 = vld [vmem:[#allocation104_spill] sm:$0xff]  ;;  %v18115_v23 = vld [vmem:[#allocation81_spill] sm:$0xff] }
0x2f60   :  { %v4120_v26 = vadd.f32 %v4117_v44, %v3701_v3  ;;  %v4119_v31 = vadd.f32 %v4116_v40, %v3700_v19  ;;  %v4954_v59 = vmul.f32 %v12364_v55, %v18103_v8  ;;  %v4956_v48 = vmul.f32 %v12364_v55, %v18105_v57  ;;  %v12373_v3 = vpop.permute.xlu0 %12372  ;;  %v18111_v44 = vld [vmem:[#allocation100_spill] sm:$0xff]  ;;  %v18117_v17 = vld [vmem:[#allocation79_spill] sm:$0xff] }
0x2f61   :  { %v4121_v5 = vadd.f32 %v4118_v56, %v3702_v35  ;;  %v5374_v60 = vmul.f32 %v12365_v33, %v18104_v7  ;;  %v12369_v18 = vunpack.i.l.bf16 %v12368_v16  ;;  %v5373_v49 = vmul.f32 %v12365_v33, %v18106_v38  ;;  %v18114_v56 = vld [vmem:[#allocation67_spill] sm:$0xff] }
0x2f62   :  { %v4539_v43 = vadd.f32 %v4536_v13, %v4120_v26  ;;  %v4538_v20 = vadd.f32 %v4535_v37, %v4119_v31  ;;  %v5375_v9 = vmul.f32 %v12365_v33, %v18107_v0  ;;  %v12370_v32 = vunpack.i.h.bf16 %v12368_v16 }
0x2f63   :  { %v4540_v63 = vadd.f32 %v4537_v14, %v4121_v5  ;;  %v5793_v42 = vmul.f32 %v12369_v18, %v18108_v12  ;;  %v5792_v22 = vmul.f32 %v12369_v18, %v18109_v51  ;;  %v5794_v4 = vmul.f32 %v12369_v18, %v18111_v44  ;;  %v12378_v5 = vpop.permute.xlu1 %12377  ;;  %v18116_v14 = vld [vmem:[#allocation108_spill] sm:$0xff] }
0x2f64   :  { %v4958_v39 = vadd.f32 %v4955_v62, %v4539_v43  ;;  %v4957_v61 = vadd.f32 %v4954_v59, %v4538_v20  ;;  %v6212_v58 = vmul.f32 %v12370_v32, %v18110_v41  ;;  %v12374_v10 = vunpack.i.l.bf16 %v12373_v3  ;;  %v18118_v59 = vld [vmem:[#allocation110_spill] sm:$0xff]  ;;  %v8193_v51 = vld [vmem:[#allocation6 + $0x328] sm:$0xff] }
0x2f65   :  { %v12978_v30 = vpop.eup %12977  ;;  %v4959_v34 = vadd.f32 %v4956_v48, %v4540_v63  ;;  %v6211_v35 = vmul.f32 %v12370_v32, %v18112_v29  ;;  %v6213_v13 = vmul.f32 %v12370_v32, %v18113_v6  ;;  %v12375_v27 = vunpack.i.h.bf16 %v12373_v3  ;;  %v7952_v63 = vld [vmem:[#allocation6 + $0x188] sm:$0xff]  ;;  %v8054_v6 = vld [vmem:[#allocation6 + $0x190] sm:$0xff] }
0x2f66   :  { %v5377_v46 = vadd.f32 %v5374_v60, %v4958_v39  ;;  %v5376_v2 = vadd.f32 %v5373_v49, %v4957_v61  ;;  %v7823_v36 = vadd.f32 1.0, %v12978_v30  ;;  %v6631_v55 = vmul.f32 %v12374_v10, %v18114_v56  ;;  %8030 = vmatprep.subr.mxu1 %v7952_v63  ;;  %v18119_v49 = vld [vmem:[#allocation109_spill] sm:$0xff]  ;;  %v8059_v56 = vld [vmem:[#allocation6 + $0x1b8] sm:$0xff] }
0x2f67   :  { %v12980_v45 = vpop.eup %12979  ;;  %v5378_v19 = vadd.f32 %v5375_v9, %v4959_v34  ;;  %v6630_v37 = vmul.f32 %v12374_v10, %v18115_v23  ;;  %v7050_v33 = vmul.f32 %v12375_v27, %v18116_v14  ;;  %v6632_v62 = vmul.f32 %v12374_v10, %v18117_v17  ;;  %v7951_v9 = vld [vmem:[#allocation6 + $0x180] sm:$0xff]  ;;  %v8062_v17 = vld [vmem:[#allocation6 + $0x1d0] sm:$0xff] }
0x2f68   :  { %v12982_v15 = vpop.eup %12981  ;;  %v7824_v54 = vadd.f32 1.0, %v12980_v45  ;;  %v5796_v47 = vadd.f32 %v5793_v42, %v5377_v46  ;;  %v5795_v1 = vadd.f32 %v5792_v22, %v5376_v2  ;;  %12983 = vrcp.f32 %v7823_v36  ;;  %8031 = vmatpush1.msra.mxu1 %v7951_v9  ;;  %v8195_v22 = vld [vmem:[#allocation6 + $0x338] sm:$0xff] }
0x2f69   :  { %v7825_v40 = vadd.f32 1.0, %v12982_v15  ;;  %v5797_v26 = vadd.f32 %v5794_v4, %v5378_v19  ;;  %v12379_v8 = vunpack.i.l.bf16 %v12378_v5  ;;  %v7049_v16 = vmul.f32 %v12375_v27, %v18118_v59  ;;  %v8069_v59 = vld [vmem:[#allocation6 + $0x208] sm:$0xff] }
0x2f6a   :  { %12985 = vrcp.f32 %v7824_v54  ;;  %v6215_v31 = vadd.f32 %v6212_v58, %v5796_v47  ;;  %v6214_v11 = vadd.f32 %v6211_v35, %v5795_v1  ;;  %v12380_v48 = vunpack.i.h.bf16 %v12378_v5  ;;  %v8058_v5 = vld [vmem:[#allocation6 + $0x1b0] sm:$0xff] }
0x2f6b   :  { %12987 = vrcp.f32 %v7825_v40  ;;  %v6216_v43 = vadd.f32 %v6213_v13, %v5797_v26  ;;  %v7051_v34 = vmul.f32 %v12375_v27, %v18119_v49  ;;  %v7469_v46 = vmul.f32 %v12379_v8, %v16483_v28  ;;  %v8056_v27 = vld [vmem:[#allocation6 + $0x1a0] sm:$0xff]  ;;  %v8077_v49 = vld [vmem:[#allocation6 + $0x248] sm:$0xff] }
0x2f6c   :  { %v6634_v20 = vadd.f32 %v6631_v55, %v6215_v31  ;;  %v6633_v21 = vadd.f32 %v6630_v37, %v6214_v11  ;;  %12989 = vrcp.f32 %v7897_v52  ;;  %v7468_v2 = vmul.f32 %v12379_v8, %v16490_v53  ;;  %v8057_v11 = vld [vmem:[#allocation6 + $0x1a8] sm:$0xff] }
0x2f6d   :  { %v6635_v61 = vadd.f32 %v6632_v62, %v6216_v43  ;;  %v12158_v47 = vpack.c.bf16 %v8195_v22, %v8193_v51  ;;  %v7470_v28 = vmul.f32 %v12379_v8, %v16488_v50  ;;  %v8055_v50 = vld [vmem:[#allocation6 + $0x198] sm:$0xff]  ;;  %v8061_v55 = vld [vmem:[#allocation6 + $0x1c8] sm:$0xff]  ;;  %v12112_v23 = vpack.c.bf16 %v8056_v27, %v8054_v6  ;;  %v8060_v43 = vld [vmem:[#allocation6 + $0x1c0] sm:$0xff] }
0x2f6e   :  { %v7053_v7 = vadd.f32 %v7050_v33, %v6634_v20  ;;  %v7052_v57 = vadd.f32 %v7049_v16, %v6633_v21  ;;  %v12110_v13 = vpack.c.bf16 %v8057_v11, %v8055_v50  ;;  %v12114_v37 = vpack.c.bf16 %v8061_v55, %v8059_v56  ;;  %v8063_v20 = vld [vmem:[#allocation6 + $0x1d8] sm:$0xff]  ;;  %v8065_v21 = vld [vmem:[#allocation6 + $0x1e8] sm:$0xff]  ;;  %v8064_v62 = vld [vmem:[#allocation6 + $0x1e0] sm:$0xff] }
0x2f6f   :  { %v7054_v32 = vadd.f32 %v7051_v34, %v6635_v61  ;;  %12159 = vmatprep.subr.bf16.mxu1 %v12158_v47  ;;  %v12116_v14 = vpack.c.bf16 %v8060_v43, %v8058_v5  ;;  %v12118_v33 = vpack.c.bf16 %v8065_v21, %v8063_v20  ;;  %v8067_v8 = vld [vmem:[#allocation6 + $0x1f8] sm:$0xff]  ;;  %v12120_v16 = vpack.c.bf16 %v8064_v62, %v8062_v17  ;;  %v8068_v61 = vld [vmem:[#allocation6 + $0x200] sm:$0xff]  ;;  %v8085_v22 = vld [vmem:[#allocation6 + $0x288] sm:$0xff] }
0x2f70   :  { %v7472_v12 = vadd.f32 %v7469_v46, %v7053_v7  ;;  %v7471_v15 = vadd.f32 %v7468_v2, %v7052_v57  ;;  %12111 = vmatprep.subr.bf16.mxu0 %v12110_v13  ;;  %v12122_v63 = vpack.c.bf16 %v8069_v59, %v8067_v8  ;;  %v8071_v7 = vld [vmem:[#allocation6 + $0x218] sm:$0xff]  ;;  %v8076_v2 = vld [vmem:[#allocation6 + $0x240] sm:$0xff]  ;;  %v8094_v11 = vld [vmem:[#allocation6 + $0x2d0] sm:$0xff] }
0x2f71   :  { %v7473_v58 = vadd.f32 %v7470_v28, %v7054_v32  ;;  %12113 = vmatpush1.bf16.msra.mxu0 %v12112_v23  ;;  %v8083_v51 = vld [vmem:[#allocation6 + $0x278] sm:$0xff]  ;;  %v8089_v28 = vld [vmem:[#allocation6 + $0x2a8] sm:$0xff]  ;;  %v8096_v6 = vld [vmem:[#allocation6 + $0x2e0] sm:$0xff] }
0x2f72   :  { %v12984_v39 = vpop.eup %12983  ;;  %12115 = vmatprep.subr.bf16.mxu0 %v12114_v37  ;;  %v8087_v47 = vld [vmem:[#allocation6 + $0x298] sm:$0xff]  ;;  %v8101_v27 = vld [vmem:[#allocation6 + $0x308] sm:$0xff]  ;;  %v12152_v56 = vpack.c.bf16 %v8096_v6, %v8094_v11  ;;  %v8098_v23 = vld [vmem:[#allocation6 + $0x2f0] sm:$0xff] }
0x2f73   :  { %v8099_v13 = vld [vmem:[#allocation6 + $0x2f8] sm:$0xff]  ;;  %v8100_v37 = vld [vmem:[#allocation6 + $0x300] sm:$0xff]  ;;  %v8194_v21 = vld [vmem:[#allocation6 + $0x330] sm:$0xff] }
0x2f74   :  { %v12986_v38 = vpop.eup %12985  ;;  %v12154_v55 = vpack.c.bf16 %v8101_v27, %v8099_v13  ;;  %v12156_v5 = vpack.c.bf16 %v8100_v37, %v8098_v23  ;;  %v8192_v20 = vld [vmem:[#allocation6 + $0x320] sm:$0xff]  ;;  %v8227_v11 = vld [vmem:[#allocation6 + $0x438] sm:$0xff] }
0x2f75   :  { %v12988_v3 = vpop.eup %12987  ;;  %12117 = vmatpush1.bf16.msra.mxu0 %v12116_v14  ;;  %v8197_v14 = vld [vmem:[#allocation6 + $0x348] sm:$0xff]  ;;  %v12160_v62 = vpack.c.bf16 %v8194_v21, %v8192_v20  ;;  %v8224_v27 = vld [vmem:[#allocation6 + $0x420] sm:$0xff]  ;;  %v8231_v23 = vld [vmem:[#allocation6 + $0x458] sm:$0xff] }
0x2f76   :  { %v12990_v41 = vpop.eup %12989  ;;  %12119 = vmatprep.subr.bf16.mxu0 %v12118_v33  ;;  %v8199_v33 = vld [vmem:[#allocation6 + $0x358] sm:$0xff]  ;;  %v8230_v20 = vld [vmem:[#allocation6 + $0x450] sm:$0xff]  ;;  %v8233_v21 = vld [vmem:[#allocation6 + $0x468] sm:$0xff] }
0x2f79   :  { %12121 = vmatpush1.bf16.msra.mxu0 %v12120_v16  ;;  %v12162_v16 = vpack.c.bf16 %v8199_v33, %v8197_v14  ;;  %v8235_v14 = vld [vmem:[#allocation6 + $0x478] sm:$0xff] }
0x2f7a   :  { %12123 = vmatprep.subr.bf16.mxu0 %v12122_v63  ;;  %v8196_v63 = vld [vmem:[#allocation6 + $0x340] sm:$0xff] }
0x2fbf   :  { %v7866_v60 = vpop.permute.xlu0 %7865 }
0x2fc0   :  { %v7876_v18 = vmul.f32 %v12984_v39, %v7866_v60  ;;  %v7868_v30 = vpop.permute.xlu1 %7867  ;;  %v8066_v39 = vld [vmem:[#allocation6 + $0x1f0] sm:$0xff] }
0x2fc1   :  { %v7871_v45 = vsel %vm1584_vm5, %v7866_v60, %v7868_v30  ;;  %v8073_v60 = vld [vmem:[#allocation6 + $0x228] sm:$0xff]  ;;  %v12124_v57 = vpack.c.bf16 %v8068_v61, %v8066_v39  ;;  %v8198_v39 = vld [vmem:[#allocation6 + $0x350] sm:$0xff] }
0x2fc2   :  { %v7887_v36 = vmul.f32 %v12380_v48, %v7876_v18  ;;  %v7877_v0 = vmul.f32 %v12986_v38, %v7871_v45  ;;  %v8070_v18 = vld [vmem:[#allocation6 + $0x210] sm:$0xff]  ;;  %v8075_v38 = vld [vmem:[#allocation6 + $0x238] sm:$0xff] }
0x2fc3   :  { %v7870_v42 = vpop.permute.xlu0 %7869  ;;  %12125 = vmatpush1.bf16.msra.mxu0 %v12124_v57  ;;  %v12130_v46 = vpack.c.bf16 %v8077_v49, %v8075_v38  ;;  %v8074_v45 = vld [vmem:[#allocation6 + $0x230] sm:$0xff]  ;;  %v8200_v38 = vld [vmem:[#allocation6 + $0x360] sm:$0xff] }
0x2fc4   :  { %v7888_v54 = vmul.f32 %v12380_v48, %v7877_v0  ;;  %v7872_v19 = vsel %vm1584_vm5, %v7868_v30, %v7870_v42  ;;  %v7890_v52 = vadd.f32 %v7887_v36, %v7471_v15  ;;  %v8072_v30 = vld [vmem:[#allocation6 + $0x220] sm:$0xff]  ;;  %v8079_v36 = vld [vmem:[#allocation6 + $0x258] sm:$0xff]  ;;  %v8081_v0 = vld [vmem:[#allocation6 + $0x268] sm:$0xff]  ;;  %v12132_v9 = vpack.c.bf16 %v8076_v2, %v8074_v45 }
0x2fc5   :  { %v7878_v1 = vmul.f32 %v12988_v3, %v7872_v19  ;;  %v12128_v34 = vpack.c.bf16 %v8072_v30, %v8070_v18  ;;  %v12134_v32 = vpack.c.bf16 %v8081_v0, %v8079_v36  ;;  %v8080_v42 = vld [vmem:[#allocation6 + $0x260] sm:$0xff]  ;;  %v12138_v15 = vpack.c.bf16 %v8085_v22, %v8083_v51  ;;  %v8202_v49 = vld [vmem:[#allocation6 + $0x370] sm:$0xff]  ;;  %v8207_v45 = vld [vmem:[#allocation6 + $0x398] sm:$0xff] }
0x2fc6   :  { %v7891_v53 = vadd.f32 %v7888_v54, %v7472_v12  ;;  %v7900_v40 = vmul.f32 %v12990_v41, %v7890_v52  ;;  %v8078_v12 = vld [vmem:[#allocation6 + $0x250] sm:$0xff]  ;;  %v8084_v19 = vld [vmem:[#allocation6 + $0x280] sm:$0xff]  ;;  %v12142_v52 = vpack.c.bf16 %v8089_v28, %v8087_v47  ;;  %v12168_v2 = vpack.c.bf16 %v8202_v49, %v8200_v38  ;;  %v8103_v49 = vld [vmem:[#allocation6 + $0x318] sm:$0xff] }
0x2fc7   :  { %v7889_v44 = vmul.f32 %v12380_v48, %v7878_v1  ;;  %v12126_v48 = vpack.c.bf16 %v8073_v60, %v8071_v7  ;;  %v12136_v3 = vpack.c.bf16 %v8080_v42, %v8078_v12  ;;  %v8082_v54 = vld [vmem:[#allocation6 + $0x270] sm:$0xff]  ;;  %v8201_v7 = vld [vmem:[#allocation6 + $0x368] sm:$0xff]  ;;  %v8203_v60 = vld [vmem:[#allocation6 + $0x378] sm:$0xff]  ;;  %vm8680_vm5 = vcmask 17408  }
0x2fc8   :  { %v7901_v4 = vmul.f32 %v12990_v41, %v7891_v53  ;;  %v7968_v31 = vrot.slane %v7900_v40, 2  ;;  %v12140_v1 = vpack.c.bf16 %v8084_v19, %v8082_v54  ;;  %v8086_v53 = vld [vmem:[#allocation6 + $0x290] sm:$0xff]  ;;  %v12166_v30 = vpack.c.bf16 %v8203_v60, %v8201_v7  ;;  %v8204_v0 = vld [vmem:[#allocation6 + $0x380] sm:$0xff]  ;;  %v8211_v12 = vld [vmem:[#allocation6 + $0x3b8] sm:$0xff] }
0x2fc9   :  { %v7892_v10 = vadd.f32 %v7889_v44, %v7473_v58  ;;  %12127 = vmatprep.subr.bf16.mxu0 %v12126_v48  ;;  %v8091_v58 = vld [vmem:[#allocation6 + $0x2b8] sm:$0xff]  ;;  %v8093_v44 = vld [vmem:[#allocation6 + $0x2c8] sm:$0xff]  ;;  %v12164_v48 = vpack.c.bf16 %v8198_v39, %v8196_v63  ;;  %v8208_v22 = vld [vmem:[#allocation6 + $0x3a0] sm:$0xff] }
0x2fca   :  { %v7969_v29 = vrot.slane %v7901_v4, 2  ;;  %12129 = vmatpush1.bf16.msra.mxu0 %v12128_v34  ;;  %v8215_v54 = vld [vmem:[#allocation6 + $0x3d8] sm:$0xff]  ;;  %v8212_v28 = vld [vmem:[#allocation6 + $0x3c0] sm:$0xff]  ;;  %v8238_v7 = vld [vmem:[#allocation6 + $0x490] sm:$0xff] }
0x2fcb   :  { %v7902_v35 = vmul.f32 %v12990_v41, %v7892_v10  ;;  %12131 = vmatprep.subr.bf16.mxu0 %v12130_v46  ;;  %v8088_v41 = vld [vmem:[#allocation6 + $0x2a0] sm:$0xff]  ;;  %v12146_v10 = vpack.c.bf16 %v8093_v44, %v8091_v58  ;;  %v8205_v46 = vld [vmem:[#allocation6 + $0x388] sm:$0xff] }
0x2fcc   :  { %7973 = vrot.lane.b32.xlu1 %v7969_v29, %s13110_s25  ;;  %v8092_v29 = vld [vmem:[#allocation6 + $0x2c0] sm:$0xff]  ;;  %v12170_v36 = vpack.c.bf16 %v8207_v45, %v8205_v46  ;;  %v8339_v46 = vld [vmem:[#allocation6 + $0x4b8] sm:$0xff]  ;;  %v8341_v45 = vld [vmem:[#allocation6 + $0x4c8] sm:$0xff] }
0x2fcd   :  { %v7970_v26 = vrot.slane %v7902_v35, 2  ;;  %v8216_v44 = vld [vmem:[#allocation6 + $0x3e0] sm:$0xff] }
0x2fce   :  { %12133 = vmatpush1.bf16.msra.mxu0 %v12132_v9  ;;  %v8206_v9 = vld [vmem:[#allocation6 + $0x390] sm:$0xff] }
0x2fcf   :  { %7975 = vrot.lane.b32.xlu0 %v7970_v26, %s13110_s25  ;;  %12135 = vmatprep.subr.bf16.mxu0 %v12134_v32  ;;  %v8097_v26 = vld [vmem:[#allocation6 + $0x2e8] sm:$0xff]  ;;  %v12172_v42 = vpack.c.bf16 %v8206_v9, %v8204_v0 }
0x2fd0   :  { %7971 = vrot.lane.b32.xlu1 %v7968_v31, %s13110_s25  ;;  %v8209_v32 = vld [vmem:[#allocation6 + $0x3a8] sm:$0xff] }
0x2fd1   :  { %v12174_v51 = vpack.c.bf16 %v8211_v12, %v8209_v32  ;;  %v18120_v0 = vld [vmem:[#allocation93_spill] sm:$0xff]  ;;  %v18121_v32 = vld [vmem:[#allocation92_spill] sm:$0xff] }
0x2fd2   :  { %12137 = vmatpush1.bf16.msra.mxu0 %v12136_v3  ;;  %v8210_v3 = vld [vmem:[#allocation6 + $0x3b0] sm:$0xff] }
0x2fd3   :  { %8257 = vrot.lane.b32.xlu0 %v7901_v4, %s13110_s25  ;;  %12139 = vmatprep.subr.bf16.mxu0 %v12138_v15  ;;  %v12144_v4 = vpack.c.bf16 %v8088_v41, %v8086_v53  ;;  %v8213_v15 = vld [vmem:[#allocation6 + $0x3c8] sm:$0xff]  ;;  %v12176_v19 = vpack.c.bf16 %v8210_v3, %v8208_v22  ;;  %v8219_v53 = vld [vmem:[#allocation6 + $0x3f8] sm:$0xff]  ;;  %v8338_v12 = vld [vmem:[#allocation6 + $0x4b0] sm:$0xff] }
0x2fd4   :  { %8259 = vrot.lane.b32.xlu1 %v7902_v35, %s13110_s25  ;;  %v8095_v35 = vld [vmem:[#allocation6 + $0x2d8] sm:$0xff]  ;;  %v12178_v47 = vpack.c.bf16 %v8215_v54, %v8213_v15  ;;  %v8345_v3 = vld [vmem:[#allocation6 + $0x4e8] sm:$0xff] }
0x2fd5   :  { %v12150_v50 = vpack.c.bf16 %v8097_v26, %v8095_v35  ;;  %v8220_v26 = vld [vmem:[#allocation6 + $0x400] sm:$0xff]  ;;  %v8343_v22 = vld [vmem:[#allocation6 + $0x4d8] sm:$0xff] }
0x2fd6   :  { %12141 = vmatpush1.bf16.msra.mxu0 %v12140_v1  ;;  %v8214_v1 = vld [vmem:[#allocation6 + $0x3d0] sm:$0xff] }
0x2fd7   :  { %8255 = vrot.lane.b32.xlu0 %v7900_v40, %s13110_s25  ;;  %12143 = vmatprep.subr.bf16.mxu0 %v12142_v52  ;;  %v8090_v40 = vld [vmem:[#allocation6 + $0x2b0] sm:$0xff]  ;;  %v8217_v52 = vld [vmem:[#allocation6 + $0x3e8] sm:$0xff]  ;;  %v12180_v41 = vpack.c.bf16 %v8214_v1, %v8212_v28  ;;  %v12210_v28 = vpack.c.bf16 %v8345_v3, %v8343_v22 }
0x2fd8   :  { %v12148_v31 = vpack.c.bf16 %v8092_v29, %v8090_v40  ;;  %v12182_v58 = vpack.c.bf16 %v8219_v53, %v8217_v52  ;;  %v8223_v40 = vld [vmem:[#allocation6 + $0x418] sm:$0xff]  ;;  %v8342_v1 = vld [vmem:[#allocation6 + $0x4d0] sm:$0xff]  ;;  %v8344_v52 = vld [vmem:[#allocation6 + $0x4e0] sm:$0xff] }
0x2fd9   :  { %v8347_v53 = vld [vmem:[#allocation6 + $0x4f8] sm:$0xff]  ;;  %v8378_v3 = vld [vmem:[#allocation6 + $0x5f0] sm:$0xff] }
0x2fda   :  { %12145 = vmatpush1.bf16.msra.mxu0 %v12144_v4  ;;  %v8218_v4 = vld [vmem:[#allocation6 + $0x3f0] sm:$0xff] }
0x2fdb   :  { %12147 = vmatprep.subr.bf16.mxu0 %v12146_v10  ;;  %v8221_v10 = vld [vmem:[#allocation6 + $0x408] sm:$0xff]  ;;  %v12184_v29 = vpack.c.bf16 %v8218_v4, %v8216_v44  ;;  %v8346_v4 = vld [vmem:[#allocation6 + $0x4f0] sm:$0xff] }
0x2fdc   :  { %v12186_v35 = vpack.c.bf16 %v8223_v40, %v8221_v10  ;;  %v8348_v10 = vld [vmem:[#allocation6 + $0x500] sm:$0xff]  ;;  %v8351_v40 = vld [vmem:[#allocation6 + $0x518] sm:$0xff] }
0x2fde   :  { %12149 = vmatpush1.bf16.msra.mxu0 %v12148_v31  ;;  %v8222_v31 = vld [vmem:[#allocation6 + $0x410] sm:$0xff] }
0x2fdf   :  { %12151 = vmatprep.subr.bf16.mxu0 %v12150_v50  ;;  %v8225_v50 = vld [vmem:[#allocation6 + $0x428] sm:$0xff]  ;;  %v12188_v6 = vpack.c.bf16 %v8222_v31, %v8220_v26  ;;  %v8350_v31 = vld [vmem:[#allocation6 + $0x510] sm:$0xff] }
0x2fe0   :  { %v12190_v13 = vpack.c.bf16 %v8227_v11, %v8225_v50  ;;  %v8352_v50 = vld [vmem:[#allocation6 + $0x520] sm:$0xff]  ;;  %v8355_v11 = vld [vmem:[#allocation6 + $0x538] sm:$0xff] }
0x2fe2   :  { %12153 = vmatpush1.bf16.msra.mxu0 %v12152_v56  ;;  %v8226_v56 = vld [vmem:[#allocation6 + $0x430] sm:$0xff] }
0x2fe3   :  { %12155 = vmatprep.subr.bf16.mxu0 %v12154_v55  ;;  %v8229_v55 = vld [vmem:[#allocation6 + $0x448] sm:$0xff]  ;;  %v12192_v37 = vpack.c.bf16 %v8226_v56, %v8224_v27  ;;  %v8354_v56 = vld [vmem:[#allocation6 + $0x530] sm:$0xff] }
0x2fe6   :  { %12157 = vmatpush1.bf16.msra.mxu0 %v12156_v5  ;;  %v12194_v5 = vpack.c.bf16 %v8231_v23, %v8229_v55  ;;  %v8356_v55 = vld [vmem:[#allocation6 + $0x540] sm:$0xff]  ;;  %v8359_v23 = vld [vmem:[#allocation6 + $0x558] sm:$0xff] }
0x2fe7   :  { %8168 = vmatprep.subr.mxu0 %v8103_v49  ;;  %v8370_v49 = vld [vmem:[#allocation6 + $0x5b0] sm:$0xff] }
0x303e   :  { %v7974_v43 = vpop.permute.xlu1 %7973 }
0x3041   :  { %v7976_v17 = vpop.permute.xlu0 %7975 }
0x3042   :  { %v7978_v8 = vsel %vm1626_vm6, %v7974_v43, %v7976_v17  ;;  %v7972_v59 = vpop.permute.xlu1 %7971  ;;  %v12198_v17 = vpack.c.bf16 %v8235_v14, %v8233_v21  ;;  %v8360_v21 = vld [vmem:[#allocation6 + $0x560] sm:$0xff]  ;;  %v8363_v14 = vld [vmem:[#allocation6 + $0x578] sm:$0xff] }
0x3043   :  { %v7977_v61 = vsel %vm1626_vm6, %v7972_v59, %v7974_v43  ;;  %8972 = vmatprep.mubr.msk.f32.mxu1 %vm1206_vm4, %v7978_v8  ;;  %v8228_v43 = vld [vmem:[#allocation6 + $0x440] sm:$0xff]  ;;  %v8234_v8 = vld [vmem:[#allocation6 + $0x470] sm:$0xff]  ;;  %v8237_v59 = vld [vmem:[#allocation6 + $0x488] sm:$0xff] }
0x3044   :  { %8047 = vmatmul.mubr.f32.vlgmr.msra.gmra.mrb[112].mxu1 %v7977_v61  ;;  %v12196_v33 = vpack.c.bf16 %v8230_v20, %v8228_v43  ;;  %v8236_v61 = vld [vmem:[#allocation6 + $0x480] sm:$0xff]  ;;  %v8358_v20 = vld [vmem:[#allocation6 + $0x550] sm:$0xff] }
0x3045   :  { %12161 = vmatpush1.bf16.msra.mxu1 %v12160_v62  ;;  %v16663_v57 = vpop.permute.xlu0 %8257  ;;  %v8232_v62 = vld [vmem:[#allocation6 + $0x460] sm:$0xff]  ;;  %v12204_v60 = vpack.c.bf16 %v8238_v7, %v8236_v61  ;;  %v8366_v7 = vld [vmem:[#allocation6 + $0x590] sm:$0xff] }
0x3046   :  { %v8260_v18 = vpop.permute.xlu1 %8259  ;;  %12163 = vmatprep.subr.bf16.mxu1 %v12162_v16  ;;  %v8239_v16 = vld [vmem:[#allocation6 + $0x498] sm:$0xff]  ;;  %v12200_v63 = vpack.c.bf16 %v8234_v8, %v8232_v62  ;;  %v8362_v8 = vld [vmem:[#allocation6 + $0x570] sm:$0xff] }
0x3047   :  { %v8262_v34 = vsel %vm1626_vm6, %v16663_v57, %v8260_v18  ;;  %v12202_v39 = vpack.c.bf16 %v8239_v16, %v8237_v59  ;;  %v8364_v59 = vld [vmem:[#allocation6 + $0x580] sm:$0xff]  ;;  %v8367_v16 = vld [vmem:[#allocation6 + $0x598] sm:$0xff] }
0x3048   :  { %8976 = vmatprep.mubr.msk.f32.mxu1 %vm1206_vm4, %v8262_v34  ;;  %v8102_v34 = vld [vmem:[#allocation6 + $0x310] sm:$0xff] }
0x3049   :  { %12165 = vmatpush1.bf16.msra.mxu1 %v12164_v48  ;;  %v8241_v48 = vld [vmem:[#allocation6 + $0x4a8] sm:$0xff]  ;;  %v8256_v18 = vpop.permute.xlu0 %8255  ;;  %8169 = vmatpush1.msra.mxu0 %v8102_v34  ;;  %v8372_v34 = vld [vmem:[#allocation6 + $0x5c0] sm:$0xff] }
0x304a   :  { %12167 = vmatprep.subr.bf16.mxu1 %v12166_v30  ;;  %v8240_v30 = vld [vmem:[#allocation6 + $0x4a0] sm:$0xff]  ;;  %v8261_v38 = vsel %vm1626_vm6, %v8256_v18, %v16663_v57  ;;  %v8373_v18 = vld [vmem:[#allocation6 + $0x5c8] sm:$0xff] }
0x304d   :  { %12169 = vmatpush1.bf16.msra.mxu1 %v12168_v2  ;;  %v12206_v2 = vpack.c.bf16 %v8341_v45, %v8339_v46  ;;  %v8375_v46 = vld [vmem:[#allocation6 + $0x5d8] sm:$0xff]  ;;  %v8377_v45 = vld [vmem:[#allocation6 + $0x5e8] sm:$0xff] }
0x304e   :  { %12171 = vmatprep.subr.bf16.mxu1 %v12170_v36  ;;  %v7953_v36 = vld [vmem:[%s16892_s7] sm:$0x3] }
0x304f   :  { %12207 = vmatprep.subr.bf16.mxu0 %v12206_v2  ;;  %v7962_v9 = vrot.slane %v7953_v36, %v18120_v0  ;;  %v7958_v57 = vrot.slane %v7953_v36, %v18121_v32  ;;  %v12240_v2 = vpack.c.bf16 %v8372_v34, %v8370_v49  ;;  %v12242_v36 = vpack.c.bf16 %v8377_v45, %v8375_v46  ;;  %v8495_v49 = vld [vmem:[%s16893_s8 + $0xa0] sm:$0xff]  ;;  %v8496_v34 = vld [vmem:[%s16893_s8 + $0xa8] sm:$0xff]  ;;  %v8497_v45 = vld [vmem:[%s16893_s8 + $0xb0] sm:$0xff] }
0x3050   :  { %v12321_v46 = vpack.c.bf16 %v8496_v34, %v8495_v49 }
0x3051   :  { %12173 = vmatpush1.bf16.msra.mxu1 %v12172_v42  ;;  %v8340_v42 = vld [vmem:[#allocation6 + $0x4c0] sm:$0xff] }
0x3052   :  { %12175 = vmatprep.subr.bf16.mxu1 %v12174_v51 }
0x3055   :  { %12177 = vmatpush1.bf16.msra.mxu1 %v12176_v19  ;;  %v12208_v19 = vpack.c.bf16 %v8340_v42, %v8338_v12  ;;  %v8379_v12 = vld [vmem:[#allocation6 + $0x5f8] sm:$0xff]  ;;  %v8381_v42 = vld [vmem:[#allocation6 + $0x608] sm:$0xff] }
0x3056   :  { %12179 = vmatprep.subr.bf16.mxu1 %v12178_v47  ;;  %v12246_v22 = vpack.c.bf16 %v8381_v42, %v8379_v12  ;;  %v8981_v12 = vld [vmem:[%s16893_s8 + $0xd8] sm:$0xff]  ;;  %v8982_v42 = vld [vmem:[%s16893_s8 + $0xe0] sm:$0xff] }
0x3059   :  { %12181 = vmatpush1.bf16.msra.mxu1 %v12180_v41  ;;  %v8349_v41 = vld [vmem:[#allocation6 + $0x508] sm:$0xff] }
0x305a   :  { %12183 = vmatprep.subr.bf16.mxu1 %v12182_v58  ;;  %v12212_v58 = vpack.c.bf16 %v8344_v52, %v8342_v1  ;;  %v12214_v44 = vpack.c.bf16 %v8349_v41, %v8347_v53  ;;  %v8382_v1 = vld [vmem:[#allocation6 + $0x610] sm:$0xff]  ;;  %v8384_v52 = vld [vmem:[#allocation6 + $0x620] sm:$0xff]  ;;  %v8975_v53 = vld [vmem:[%s16892_s7 + $0x4] sm:$0x3] }
0x305b   :  { %v12252_v41 = vpack.c.bf16 %v8384_v52, %v8382_v1  ;;  %v8987_v52 = vld [vmem:[%s16893_s8 + $0x108] sm:$0xff] }
0x305d   :  { %12185 = vmatpush1.bf16.msra.mxu1 %v12184_v29  ;;  %v8353_v29 = vld [vmem:[#allocation6 + $0x528] sm:$0xff] }
0x305e   :  { %12187 = vmatprep.subr.bf16.mxu1 %v12186_v35  ;;  %v12216_v35 = vpack.c.bf16 %v8348_v10, %v8346_v4  ;;  %v12218_v26 = vpack.c.bf16 %v8353_v29, %v8351_v40  ;;  %v8248_v4 = vrot.slane %v8975_v53, %v18121_v32  ;;  %v8475_v10 = vld [vmem:[%s16893_s8] sm:$0xff]  ;;  %v8476_v40 = vld [vmem:[%s16893_s8 + $0x8] sm:$0xff] }
0x3061   :  { %12189 = vmatpush1.bf16.msra.mxu1 %v12188_v6  ;;  %v8357_v6 = vld [vmem:[#allocation6 + $0x548] sm:$0xff] }
0x3062   :  { %12191 = vmatprep.subr.bf16.mxu1 %v12190_v13  ;;  %v12220_v13 = vpack.c.bf16 %v8352_v50, %v8350_v31  ;;  %v12222_v27 = vpack.c.bf16 %v8357_v6, %v8355_v11  ;;  %v12291_v50 = vpack.c.bf16 %v8476_v40, %v8475_v10  ;;  %v8477_v6 = vld [vmem:[%s16893_s8 + $0x10] sm:$0xff]  ;;  %v8991_v10 = vld [vmem:[%s16893_s8 + $0x128] sm:$0xff] }
0x3063   :  { %v8992_v40 = vld [vmem:[%s16893_s8 + $0x130] sm:$0xff] }
0x3065   :  { %12193 = vmatpush1.bf16.msra.mxu1 %v12192_v37  ;;  %v8361_v37 = vld [vmem:[#allocation6 + $0x568] sm:$0xff] }
0x3066   :  { %12195 = vmatprep.subr.bf16.mxu1 %v12194_v5  ;;  %v12224_v5 = vpack.c.bf16 %v8356_v55, %v8354_v56  ;;  %v12226_v43 = vpack.c.bf16 %v8361_v37, %v8359_v23  ;;  %v8479_v56 = vld [vmem:[%s16893_s8 + $0x20] sm:$0xff]  ;;  %v8480_v55 = vld [vmem:[%s16893_s8 + $0x28] sm:$0xff]  ;;  %v8481_v37 = vld [vmem:[%s16893_s8 + $0x30] sm:$0xff] }
0x3067   :  { %v12297_v23 = vpack.c.bf16 %v8480_v55, %v8479_v56  ;;  %v8999_v55 = vld [vmem:[%s16893_s8 + $0x168] sm:$0xff] }
0x3069   :  { %12197 = vmatpush1.bf16.msra.mxu1 %v12196_v33  ;;  %v8365_v33 = vld [vmem:[#allocation6 + $0x588] sm:$0xff] }
0x306a   :  { %12199 = vmatprep.subr.bf16.mxu1 %v12198_v17  ;;  %v12228_v17 = vpack.c.bf16 %v8360_v21, %v8358_v20  ;;  %v12230_v62 = vpack.c.bf16 %v8365_v33, %v8363_v14  ;;  %v8483_v20 = vld [vmem:[%s16893_s8 + $0x40] sm:$0xff]  ;;  %v8484_v21 = vld [vmem:[%s16893_s8 + $0x48] sm:$0xff]  ;;  %v8485_v33 = vld [vmem:[%s16893_s8 + $0x50] sm:$0xff] }
0x306b   :  { %v12303_v14 = vpack.c.bf16 %v8484_v21, %v8483_v20  ;;  %v9003_v21 = vld [vmem:[%s16893_s8 + $0x188] sm:$0xff] }
0x306d   :  { %12201 = vmatpush1.bf16.msra.mxu1 %v12200_v63  ;;  %v8369_v63 = vld [vmem:[#allocation6 + $0x5a8] sm:$0xff] }
0x306e   :  { %12203 = vmatprep.subr.bf16.mxu1 %v12202_v39  ;;  %v12232_v39 = vpack.c.bf16 %v8364_v59, %v8362_v8  ;;  %v12234_v61 = vpack.c.bf16 %v8369_v63, %v8367_v16  ;;  %v8487_v8 = vld [vmem:[%s16893_s8 + $0x60] sm:$0xff]  ;;  %v8488_v59 = vld [vmem:[%s16893_s8 + $0x68] sm:$0xff]  ;;  %v8489_v63 = vld [vmem:[%s16893_s8 + $0x70] sm:$0xff] }
0x306f   :  { %v12309_v16 = vpack.c.bf16 %v8488_v59, %v8487_v8 }
0x3071   :  { %12205 = vmatpush1.bf16.msra.mxu1 %v12204_v60  ;;  %v8368_v60 = vld [vmem:[#allocation6 + $0x5a0] sm:$0xff] }
0x3072   :  { %8314 = vmatprep.subr.mxu1 %v8241_v48  ;;  %v8371_v48 = vld [vmem:[#allocation6 + $0x5b8] sm:$0xff] }
0x3075   :  { %8315 = vmatpush1.msra.mxu1 %v8240_v30  ;;  %v12236_v30 = vpack.c.bf16 %v8368_v60, %v8366_v7  ;;  %v8491_v7 = vld [vmem:[%s16893_s8 + $0x80] sm:$0xff]  ;;  %v8492_v60 = vld [vmem:[%s16893_s8 + $0x88] sm:$0xff] }
0x3076   :  { %8331 = vmatmul.mubr.f32.vlgmr.msra.gmra.mrb[114].mxu1 %v8261_v38  ;;  %12254 = vmatprep.subr.bf16.mxu1 %v17227_v25  ;;  %v12238_v38 = vpack.c.bf16 %v8373_v18, %v8371_v48  ;;  %v12315_v48 = vpack.c.bf16 %v8492_v60, %v8491_v7  ;;  %v8493_v18 = vld [vmem:[%s16893_s8 + $0x90] sm:$0xff] }
0x3117   :  { %v8048_v51 = vpop.f32.mrb[112].mxu1 }
0x3118   :  { %v8050_v15 = vpop.f32.mrb[113].mxu1  ;;  %v8049_v47 = vadd.f32 %v8048_v51, %v7958_v57  ;;  %v8376_v57 = vld [vmem:[#allocation6 + $0x5e0] sm:$0xff] }
0x3119   :  { %v8051_v54 = vadd.f32 %v8050_v15, %v7962_v9  ;;  %v8374_v9 = vld [vmem:[#allocation6 + $0x5d0] sm:$0xff]  ;;  %v8380_v15 = vld [vmem:[#allocation6 + $0x600] sm:$0xff] }
0x311a   :  { %v12244_v51 = vpack.c.bf16 %v8376_v57, %v8374_v9  ;;  %v8498_v9 = vld [vmem:[%s16893_s8 + $0xb8] sm:$0xff] }
0x311b   :  { %8974 = vmatprep.mubr.msk.f32.mxu0 %vm1206_vm4, %v8051_v54  ;;  %v8383_v54 = vld [vmem:[#allocation6 + $0x618] sm:$0xff] }
0x311c   :  { %8185 = vmatmul.mubr.f32.vlgmr.msra.gmra.mrb[128].mxu0 %v8049_v47  ;;  %v12248_v47 = vpack.c.bf16 %v8380_v15, %v8378_v3  ;;  %v8983_v3 = vld [vmem:[%s16893_s8 + $0xe8] sm:$0xff]  ;;  %v8984_v15 = vld [vmem:[%s16893_s8 + $0xf0] sm:$0xff] }
0x311d   :  { %12209 = vmatpush1.bf16.msra.mxu0 %v12208_v19  ;;  %v8385_v19 = vld [vmem:[#allocation6 + $0x628] sm:$0xff] }
0x311e   :  { %12211 = vmatprep.subr.bf16.mxu0 %v12210_v28  ;;  %v12250_v28 = vpack.c.bf16 %v8385_v19, %v8383_v54  ;;  %v12261_v54 = vpack.c.bf16 %v8984_v15, %v8983_v3  ;;  %v8985_v19 = vld [vmem:[%s16893_s8 + $0xf8] sm:$0xff] }
0x3121   :  { %12213 = vmatpush1.bf16.msra.mxu0 %v12212_v58  ;;  %v8252_v58 = vrot.slane %v8975_v53, %v18120_v0  ;;  %v8988_v53 = vld [vmem:[%s16893_s8 + $0x110] sm:$0xff] }
0x3122   :  { %12215 = vmatprep.subr.bf16.mxu0 %v12214_v44  ;;  %v8387_v44 = vld [vmem:[#allocation6 + $0x638] sm:$0xff] }
0x3125   :  { %12217 = vmatpush1.bf16.msra.mxu0 %v12216_v35 }
0x3126   :  { %12219 = vmatprep.subr.bf16.mxu0 %v12218_v26  ;;  %v8386_v26 = vld [vmem:[#allocation6 + $0x630] sm:$0xff] }
0x3129   :  { %12221 = vmatpush1.bf16.msra.mxu0 %v12220_v13  ;;  %v8478_v13 = vld [vmem:[%s16893_s8 + $0x18] sm:$0xff] }
0x312a   :  { %12223 = vmatprep.subr.bf16.mxu0 %v12222_v27  ;;  %v12294_v27 = vpack.c.bf16 %v8478_v13, %v8477_v6  ;;  %v8997_v13 = vld [vmem:[%s16893_s8 + $0x158] sm:$0xff] }
0x312d   :  { %12225 = vmatpush1.bf16.msra.mxu0 %v12224_v5  ;;  %v8482_v5 = vld [vmem:[%s16893_s8 + $0x38] sm:$0xff] }
0x312e   :  { %12227 = vmatprep.subr.bf16.mxu0 %v12226_v43  ;;  %v12300_v43 = vpack.c.bf16 %v8482_v5, %v8481_v37  ;;  %v9001_v5 = vld [vmem:[%s16893_s8 + $0x178] sm:$0xff] }
0x3131   :  { %12229 = vmatpush1.bf16.msra.mxu0 %v12228_v17  ;;  %v8486_v17 = vld [vmem:[%s16893_s8 + $0x58] sm:$0xff] }
0x3132   :  { %12231 = vmatprep.subr.bf16.mxu0 %v12230_v62  ;;  %v12306_v62 = vpack.c.bf16 %v8486_v17, %v8485_v33 }
0x3135   :  { %12233 = vmatpush1.bf16.msra.mxu0 %v12232_v39  ;;  %v8490_v39 = vld [vmem:[%s16893_s8 + $0x78] sm:$0xff] }
0x3136   :  { %12235 = vmatprep.subr.bf16.mxu0 %v12234_v61  ;;  %v12312_v61 = vpack.c.bf16 %v8490_v39, %v8489_v63 }
0x3139   :  { %12237 = vmatpush1.bf16.msra.mxu0 %v12236_v30  ;;  %v8494_v30 = vld [vmem:[%s16893_s8 + $0x98] sm:$0xff] }
0x313a   :  { %12239 = vmatprep.subr.bf16.mxu0 %v12238_v38  ;;  %v12318_v38 = vpack.c.bf16 %v8494_v30, %v8493_v18 }
0x313d   :  { %12241 = vmatpush1.bf16.msra.mxu0 %v12240_v2  ;;  %v8979_v2 = vld [vmem:[%s16893_s8 + $0xc8] sm:$0xff] }
0x313e   :  { %12243 = vmatprep.subr.bf16.mxu0 %v12242_v36  ;;  %v8980_v36 = vld [vmem:[%s16893_s8 + $0xd0] sm:$0xff] }
0x313f   :  { %v12255_v57 = vpack.c.bf16 %v8980_v36, %v8979_v2 }
0x3141   :  { %12245 = vmatpush1.bf16.msra.mxu0 %v12244_v51  ;;  %12256 = vmatpush1.bf16.msra.mxu1 %v12255_v57  ;;  %v12258_v51 = vpack.c.bf16 %v8982_v42, %v8981_v12 }
0x3142   :  { %12247 = vmatprep.subr.bf16.mxu0 %v12246_v22  ;;  %v12324_v22 = vpack.c.bf16 %v8498_v9, %v8497_v45  ;;  %12257 = vmatprep.subr.bf16.mxu1 %v17227_v25 }
0x3145   :  { %12249 = vmatpush1.bf16.msra.mxu0 %v12248_v47  ;;  %12259 = vmatpush1.bf16.msra.mxu1 %v12258_v51  ;;  %v8986_v47 = vld [vmem:[%s16893_s8 + $0x100] sm:$0xff] }
0x3146   :  { %12251 = vmatprep.subr.bf16.mxu0 %v12250_v28  ;;  %12260 = vmatprep.subr.bf16.mxu1 %v17227_v25  ;;  %v8499_v28 = vld [vmem:[%s16893_s8 + $0xc0] sm:$0xff]  ;;  %v12264_v1 = vpack.c.bf16 %v8986_v47, %v8985_v19 }
0x3149   :  { %v8332_v29 = vpop.f32.mrb[114].mxu1  ;;  %12253 = vmatpush1.bf16.msra.mxu0 %v12252_v41  ;;  %12262 = vmatpush1.bf16.msra.mxu1 %v12261_v54  ;;  %v12267_v41 = vpack.c.bf16 %v8988_v53, %v8987_v52 }
0x314a   :  { %v8334_v35 = vpop.f32.mrb[115].mxu1  ;;  %8452 = vmatprep.subr.mxu0 %v8387_v44  ;;  %v8333_v11 = vadd.f32 %v8332_v29, %v8248_v4  ;;  %12263 = vmatprep.subr.bf16.mxu1 %v17227_v25  ;;  %v8990_v44 = vld [vmem:[%s16893_s8 + $0x120] sm:$0xff]  ;;  %v12273_v29 = vpack.c.bf16 %v8992_v40, %v8991_v10 }
0x314b   :  { %v8335_v31 = vadd.f32 %v8334_v35, %v8252_v58  ;;  %v8989_v58 = vld [vmem:[%s16893_s8 + $0x118] sm:$0xff] }
0x314c   :  { %v12270_v4 = vpack.c.bf16 %v8990_v44, %v8989_v58  ;;  %v8993_v35 = vld [vmem:[%s16893_s8 + $0x138] sm:$0xff] }
0x314d   :  { %8453 = vmatpush1.msra.mxu0 %v8386_v26  ;;  %8978 = vmatprep.mubr.msk.f32.mxu0 %vm1206_vm4, %v8335_v31  ;;  %v8994_v26 = vld [vmem:[%s16893_s8 + $0x140] sm:$0xff] }
0x314e   :  { %8469 = vmatmul.mubr.f32.vlgmr.msra.gmra.mrb[130].mxu0 %v8333_v11  ;;  %12290 = vmatprep.subr.bf16.mxu0 %v17227_v25  ;;  %v12276_v31 = vpack.c.bf16 %v8994_v26, %v8993_v35  ;;  %v8996_v11 = vld [vmem:[%s16893_s8 + $0x150] sm:$0xff] }
0x314f   :  { %12292 = vmatpush1.bf16.msra.mxu0 %v12291_v50  ;;  %12265 = vmatpush1.bf16.msra.mxu1 %v12264_v1  ;;  %v8995_v50 = vld [vmem:[%s16893_s8 + $0x148] sm:$0xff] }
0x3150   :  { %12293 = vmatprep.subr.bf16.mxu0 %v17227_v25  ;;  %12266 = vmatprep.subr.bf16.mxu1 %v17227_v25  ;;  %v12279_v6 = vpack.c.bf16 %v8996_v11, %v8995_v50 }
0x3153   :  { %12295 = vmatpush1.bf16.msra.mxu0 %v12294_v27  ;;  %12268 = vmatpush1.bf16.msra.mxu1 %v12267_v41  ;;  %v8998_v27 = vld [vmem:[%s16893_s8 + $0x160] sm:$0xff] }
0x3154   :  { %12296 = vmatprep.subr.bf16.mxu0 %v17227_v25  ;;  %12269 = vmatprep.subr.bf16.mxu1 %v17227_v25  ;;  %v12282_v56 = vpack.c.bf16 %v8998_v27, %v8997_v13 }
0x3157   :  { %12298 = vmatpush1.bf16.msra.mxu0 %v12297_v23  ;;  %12271 = vmatpush1.bf16.msra.mxu1 %v12270_v4  ;;  %v9000_v23 = vld [vmem:[%s16893_s8 + $0x170] sm:$0xff] }
0x3158   :  { %12299 = vmatprep.subr.bf16.mxu0 %v17227_v25  ;;  %12272 = vmatprep.subr.bf16.mxu1 %v17227_v25  ;;  %v12285_v37 = vpack.c.bf16 %v9000_v23, %v8999_v55 }
0x315b   :  { %12301 = vmatpush1.bf16.msra.mxu0 %v12300_v43  ;;  %12274 = vmatpush1.bf16.msra.mxu1 %v12273_v29  ;;  %v9002_v43 = vld [vmem:[%s16893_s8 + $0x180] sm:$0xff] }
0x315c   :  { %12302 = vmatprep.subr.bf16.mxu0 %v17227_v25  ;;  %12275 = vmatprep.subr.bf16.mxu1 %v17227_v25  ;;  %v12288_v20 = vpack.c.bf16 %v9002_v43, %v9001_v5 }
0x315f   :  { %12304 = vmatpush1.bf16.msra.mxu0 %v12303_v14  ;;  %12277 = vmatpush1.bf16.msra.mxu1 %v12276_v31 }
0x3160   :  { %12305 = vmatprep.subr.bf16.mxu0 %v17227_v25  ;;  %12278 = vmatprep.subr.bf16.mxu1 %v17227_v25 }
0x3163   :  { %12307 = vmatpush1.bf16.msra.mxu0 %v12306_v62  ;;  %12280 = vmatpush1.bf16.msra.mxu1 %v12279_v6 }
0x3164   :  { %12308 = vmatprep.subr.bf16.mxu0 %v17227_v25  ;;  %12281 = vmatprep.subr.bf16.mxu1 %v17227_v25 }
0x3167   :  { %12310 = vmatpush1.bf16.msra.mxu0 %v12309_v16  ;;  %12283 = vmatpush1.bf16.msra.mxu1 %v12282_v56 }
0x3168   :  { %12311 = vmatprep.subr.bf16.mxu0 %v17227_v25  ;;  %12284 = vmatprep.subr.bf16.mxu1 %v17227_v25 }
0x316b   :  { %12313 = vmatpush1.bf16.msra.mxu0 %v12312_v61  ;;  %12286 = vmatpush1.bf16.msra.mxu1 %v12285_v37 }
0x316c   :  { %12314 = vmatprep.subr.bf16.mxu0 %v17227_v25  ;;  %12287 = vmatprep.subr.bf16.mxu1 %v17227_v25 }
0x316f   :  { %12316 = vmatpush1.bf16.msra.mxu0 %v12315_v48  ;;  %12289 = vmatpush1.bf16.msra.mxu1 %v12288_v20 }
0x3170   :  { %12317 = vmatprep.subr.bf16.mxu0 %v17227_v25  ;;  %8577 = vmatprep.subr.mxu1 %v18075_v24 }
0x3173   :  { %12319 = vmatpush1.bf16.msra.mxu0 %v12318_v38  ;;  %8578 = vmatpush1.msra.mxu1 %v9003_v21  ;;  %v9006_v38 = vld [vmem:[%s16894_s9] ss:$0 sm:$0xff] }
0x3174   :  { %12320 = vmatprep.subr.bf16.mxu0 %v17227_v25 }
0x3177   :  { %12322 = vmatpush1.bf16.msra.mxu0 %v12321_v46 }
0x3178   :  { %12323 = vmatprep.subr.bf16.mxu0 %v17227_v25  ;;  %v8973_v25 = vld [vmem:[%s16892_s7 + $0x2] sm:$0x3] }
0x3179   :  { %v8114_v14 = vrot.slane %v8973_v25, %v18120_v0  ;;  %v8110_v33 = vrot.slane %v8973_v25, %v18121_v32 }
0x317b   :  { %12325 = vmatpush1.bf16.msra.mxu0 %v12324_v22 }
0x317c   :  { %8650 = vmatprep.subr.mxu0 %v18075_v24  ;;  %v8977_v24 = vld [vmem:[%s16892_s7 + $0x6] sm:$0x3]  ;;  %s8688_s7 = sshll.u32 %s13112_s14, 4  ;;  %s8689_s7 = int_to_ptr.vmem [resolvable:$true] %s8688_s7 }
0x317d   :  { %v8398_v16 = vrot.slane %v8977_v24, %v18120_v0  ;;  %v8394_v63 = vrot.slane %v8977_v24, %v18121_v32  ;;  %s13072_s28 = scalar_lea.vmem %s8689_s7, 32  ;;  %p13077_p3 = scmp.lt.s32.totalorder %s8689_s7, %s8689_s7 }
0x317e   :  { %p13073_p2 = scmp.ne.s32.totalorder %s8689_s7, %s13072_s28  ;;  %p13078_p4 = scmp.lt.s32.totalorder %s13072_s28, %s13072_s28 }
0x317f   :  { %8651 = vmatpush1.msra.mxu0 %v8499_v28 }
0x3180   :  { %p13079_p5 = por %p13078_p4, %p13077_p3 }
0x3182   :  { %p13080_p6 = pnand %p13079_p5, %p13073_p2 }
0x31ef   :  { %v8186_v17 = vpop.f32.mrb[128].mxu0 }
0x31f0   :  { %v8188_v62 = vpop.f32.mrb[129].mxu0  ;;  %v8187_v59 = vadd.f32 %v8186_v17, %v8110_v33 }
0x31f1   :  { %v8189_v8 = vadd.f32 %v8188_v62, %v8114_v14 }
0x31f3   :  { %9005 = vmatprep.mubr.msk.f32.mxu0 %vm1206_vm4, %v8189_v8 }
0x31f4   :  { %8667 = vmatmul.mubr.f32.vlgmr.msra.gmra.mrb[132].mxu0 %v8187_v59 }
0x3221   :  { %v8470_v39 = vpop.f32.mrb[130].mxu0 }
0x3222   :  { %v8472_v61 = vpop.f32.mrb[131].mxu0  ;;  %v8471_v60 = vadd.f32 %v8470_v39, %v8394_v63 }
0x3223   :  { %v8473_v7 = vadd.f32 %v8472_v61, %v8398_v16 }
0x3225   :  { %9004 = vmatprep.mubr.msk.f32.mxu1 %vm1206_vm4, %v8473_v7 }
0x3226   :  { %8594 = vmatmul.mubr.f32.vlgmr.msra.gmra.mrb[116].mxu1 %v8471_v60 }
0x32c7   :  { %v8668_v48 = vpop.f32.mrb[132].mxu0 }
0x32c8   :  { %v8670_v18 = vpop.f32.mrb[133].mxu0 }
0x32f9   :  { %v8595_v30 = vpop.f32.mrb[116].mxu1 }
0x32fa   :  { %v8669_v49 = vadd.f32 %v8668_v48, %v8595_v30  ;;  %v8597_v0 = vpop.f32.mrb[117].mxu1 }
0x32fc   :  { %v8679_v32 = vadd.f32 %v9006_v38, %v8669_v49 }
0x32fe   :  { %8681 = vst.msk [vmem:[#allocation8] sm:$0x3] %vm8680_vm5, %v8679_v32 }
0x32ff   :  { %13083 = shalt.err (!%p13080_p6)
}
0x3300   :  { %s13084_s30 = scalar_lea.hbm %s16895_s10, 32 }
0x3301   :  { %p13085_p7 = scmp.ne.s32.totalorder %s16895_s10, %s13084_s30  ;;  %p13088_p8 = scmp.lt.u32.totalorder %s13084_s30, %s16895_s10 }
0x3303   :  { %p13090_p9 = pnand %p13088_p8, %p13085_p7 }
0x3305   :  { %13093 = shalt.err (!%p13090_p9)
}
0x3306   :  { %8691 = dma.vmem_to_hbm [thread:$0]  %s8689_s7, 32, %s16895_s10, [#allocation5]  }
0x3307   :  { %13098 = dma.done.wait [#allocation5], 32  }
0x3308   :  { %13099 = vsyncadd [#allocation5], 4294967264 }
0x3309   :  { %8695 = vsyncpa [#allocation4], 1 }
0x330a   :  { %8696 = vsyncpa [#allocation7], 1 }
0x330b   :  { %8697 = vsyncpa [#allocation5], 1 }

</bundles_post_ra>
